<compile_context>
chip_gen: v7x
topology: tpu7x:2x2x1
jax: 0.10.0
libtpu: 0.0.40
codegen_flags: <defaults>
</compile_context>

<pallas_src>
import functools

import numpy as np
import jax
import jax.numpy as jnp
from jax.experimental import pallas as pl
from jax.experimental.pallas import tpu as pltpu


# ---------------------------------------------------------------------------
# small helpers
# ---------------------------------------------------------------------------
def _round_up(x, m):
    return (x + m - 1) // m * m


def _pad2(a, rows, cols):
    """Zero-pad the last two dims of `a` up to (rows, cols); no-op if aligned."""
    pr, pc = rows - a.shape[-2], cols - a.shape[-1]
    if pr == 0 and pc == 0:
        return a
    pad = [(0, 0)] * (a.ndim - 2) + [(0, pr), (0, pc)]
    return jnp.pad(a, pad)


def _has_megacore():
    """True on chips with 2 TensorCores (v4 / v5p / v7x).  v5e / v6e -> False.
    Used only to decide whether the first conv gets a 2-way parallel M split."""
    try:
        kind = jax.devices()[0].device_kind.lower()
    except Exception:
        return False
    return any(tag in kind for tag in ("v4", "v5p", "v7", "7x"))


# ---------------------------------------------------------------------------
# Pallas kernels
# ---------------------------------------------------------------------------
def _matmul_bias_kernel(x_ref, w_ref, b_ref, o_ref, *, post_relu):
    """Single-shot (full-K) GEMM + bias [+ ReLU]; leading axis = batch/phase."""
    out = jnp.dot(x_ref[0], w_ref[0], preferred_element_type=jnp.float32)
    out = out + b_ref[...]                       # (tm, Np) + (1, Np)
    if post_relu:
        out = jnp.maximum(out, 0.0)
    o_ref[0] = out.astype(o_ref.dtype)


def _bottleneck_kernel(s_ref, w3_ref, w1_ref, b_ref, xin_ref, out_ref, *, num_res):
    """One grid step == one bottleneck layer, executed entirely in VMEM.

    Layer pattern per half (encoder / decoder): [Conv3x3+bias, Res, ..., Res].
      pos == 0            -> plain 3x3 conv (+bias), no activation.
      pos in 1..num_res   -> residual block x + Conv1x1(relu(Conv3x3(relu(x)))).
      pos == num_res      -> residual-stack-final ReLU.
    The activation is carried in out_ref (constant block index -> VMEM-resident
    across the whole "arbitrary" grid).  3x3 conv = sum over 9 taps of
    (S_t @ x) @ W_t, where S_t is a constant 0/1 gather matrix implementing the
    shifted / zero-padded neighbourhood.
    """
    l = pl.program_id(0)
    period = num_res + 1
    pos = l % period
    is_res = pos > 0
    is_final = jnp.logical_and(pos == num_res, num_res > 0)

    @pl.when(l == 0)
    def _():                                  # load the bottleneck input once
        out_ref[...] = xin_ref[...]

    x = out_ref[...]                                           # (M, C) carry
    xs = jnp.where(is_res, jnp.maximum(x, 0.0), x)             # pre-ReLU on x

    h = jnp.zeros_like(x) + b_ref[0]                           # bias (zeros for res)
    for t in range(9):                                         # 3x3 conv, 9 taps
        g = jnp.dot(s_ref[t], xs, preferred_element_type=jnp.float32)
        h = h + jnp.dot(g, w3_ref[0, t], preferred_element_type=jnp.float32)

    # 1x1 branch + residual add (result discarded via select for conv layers).
    hr = jnp.maximum(h, 0.0)
    hr = jnp.dot(hr, w1_ref[0], preferred_element_type=jnp.float32)
    out = jnp.where(is_res, x + hr, h)
    out = jnp.where(is_final, jnp.maximum(out, 0.0), out)
    out_ref[...] = out.astype(out_ref.dtype)


# ---------------------------------------------------------------------------
# Pallas wrappers
# ---------------------------------------------------------------------------
def pallas_matmul_bias(x, w, b, *, post_relu=False, m_tiles=1):
    """Batched single-shot GEMM: out[p] = maybe_relu(x[p] @ w[p] + b).

    x: (B, M, K) activations (padded here to w's Kp).
    w: (B, Kp, Np) PRE-padded / pre-laid-out weights (from prepare_params).
    b: (1, Np)     pre-padded bias.
    K and N are never split; M is one tile unless m_tiles==2 (megacore only).
    """
    B, M, K = x.shape
    Bw, Kp, Np = w.shape
    assert Bw == B and Kp >= K
    if M < 64:
        m_tiles = 1
    tm = _round_up(-(-M // m_tiles), 8)
    Mp = tm * m_tiles
    xp = _pad2(x.astype(jnp.float32), Mp, Kp)

    out = pl.pallas_call(
        functools.partial(_matmul_bias_kernel, post_relu=post_relu),
        out_shape=jax.ShapeDtypeStruct((B, Mp, Np), jnp.float32),
        grid=(B, m_tiles),
        in_specs=[pl.BlockSpec((1, tm, Kp), lambda p, i: (p, i, 0)),
                  pl.BlockSpec((1, Kp, Np), lambda p, i: (p, 0, 0)),
                  pl.BlockSpec((1, Np), lambda p, i: (0, 0))],
        out_specs=pl.BlockSpec((1, tm, Np), lambda p, i: (p, i, 0)),
        compiler_params=pltpu.CompilerParams(
            dimension_semantics=("parallel", "parallel")),
    )(xp, w, b)
    return out[:, :M, :] if Mp > M else out


def _build_shift_mats(N, H, W):
    """(9, M, M) 0/1 gather matrices: (S_t @ x_flat) == the 3x3 tap-t shifted,
    zero-padded copy of x (flat row order n-major, then h, then w)."""
    M = N * H * W
    S = np.zeros((9, M, M), np.float32)
    t = 0
    for kh in range(3):
        for kw in range(3):
            oh, ow = kh - 1, kw - 1
            for n in range(N):
                for h in range(H):
                    for w in range(W):
                        hh, ww = h + oh, w + ow
                        if 0 <= hh < H and 0 <= ww < W:
                            S[t, (n * H + h) * W + w, (n * H + hh) * W + ww] = 1.0
            t += 1
    return jnp.asarray(S)


def fused_bottleneck(x, w3_all, w1_all, b_all):
    """Encoder Conv3x3 + enc residual stack + decoder Conv3x3 + dec residual
    stack, all in one pallas_call (grid axis = layer, weights prefetched)."""
    N, H, W, C = x.shape
    M = N * H * W
    L = w3_all.shape[0]
    num_res = L // 2 - 1
    S = _build_shift_mats(N, H, W)                     # compile-time constant

    out = pl.pallas_call(
        functools.partial(_bottleneck_kernel, num_res=num_res),
        out_shape=jax.ShapeDtypeStruct((M, C), jnp.float32),
        grid=(L,),
        in_specs=[
            pl.BlockSpec((9, M, M), lambda l: (0, 0, 0)),        # gather mats
            pl.BlockSpec((1, 9, C, C), lambda l: (l, 0, 0, 0)),  # 3x3 taps
            pl.BlockSpec((1, C, C), lambda l: (l, 0, 0)),        # 1x1 weight
            pl.BlockSpec((1, 1, C), lambda l: (l, 0, 0)),        # bias
            pl.BlockSpec((M, C), lambda l: (0, 0)),              # input act
        ],
        out_specs=pl.BlockSpec((M, C), lambda l: (0, 0)),        # carried act
        compiler_params=pltpu.CompilerParams(
            dimension_semantics=("arbitrary",)),                 # sequential carry
    )(S, w3_all, w1_all, b_all, x.reshape(M, C).astype(jnp.float32))
    return out.reshape(N, H, W, C)


# ---------------------------------------------------------------------------
# conv glue (activation-side im2col / phase gathering stays plain JAX)
# ---------------------------------------------------------------------------
def _im2col(x, kh, kw, stride, pad):
    """x: (N,H,W,C) -> cols (N*Ho*Wo, kh*kw*C); patch order (kh, kw, C)."""
    if pad > 0:
        x = jnp.pad(x, ((0, 0), (pad, pad), (pad, pad), (0, 0)))
    N, H, W, C = x.shape
    Ho = (H - kh) // stride + 1
    Wo = (W - kw) // stride + 1
    patches = []
    for i in range(kh):
        for j in range(kw):
            patches.append(x[:, i:i + Ho * stride:stride,
                             j:j + Wo * stride:stride, :])
    cols = jnp.concatenate(patches, axis=-1)
    return cols.reshape(N * Ho * Wo, kh * kw * C), (N, Ho, Wo)


def conv_transpose2d_s2_pallas(x, w_phase, b, *, post_relu=False):
    """ConvTranspose2d(k=4, s=2, p=1) via sub-pixel phase decomposition: the 4
    output phases are 4 stride-1 2x2-tap GEMMs batched in one pallas_call."""
    N, H, W, C = x.shape
    Cout = w_phase.shape[-1]
    xp = jnp.pad(x, ((0, 0), (1, 1), (1, 1), (0, 0)))
    cols = []
    for r in range(2):
        for c in range(2):
            patches = [xp[:, r + dh:r + dh + H, c + dw:c + dw + W, :]
                       for dh in range(2) for dw in range(2)]
            cols.append(jnp.concatenate(patches, -1).reshape(N * H * W, 4 * C))
    cols = jnp.stack(cols, 0)                                     # (4, M, 4C)
    out = pallas_matmul_bias(cols, w_phase, b, post_relu=post_relu)  # (4, M, Cout)
    out = out.reshape(2, 2, N, H, W, Cout)
    out = jnp.transpose(out, (2, 3, 0, 4, 1, 5)).reshape(N, 2 * H, 2 * W, Cout)
    return out


# ---------------------------------------------------------------------------
# one-time weight preparation (hoisted out of the jitted forward)
# ---------------------------------------------------------------------------
def prepare_params(p):
    f32 = lambda a: jnp.asarray(a, jnp.float32)
    C = p["enc_w3"].shape[0]                      # num_hiddens (multiple of 128)
    Ch = p["enc_res"][0][0].shape[0]              # num_residual_hiddens

    def gemm_w(w_pt):                             # Conv2d (Cout,Cin,kh,kw) -> (1,Kp,Np)
        Cout, Cin, kh, kw = w_pt.shape
        m = jnp.transpose(f32(w_pt), (2, 3, 1, 0)).reshape(kh * kw * Cin, Cout)
        return _pad2(m, _round_up(m.shape[0], 128), _round_up(Cout, 128))[None]

    def gemm_b(b):
        b = f32(b).reshape(1, -1)
        return _pad2(b, 1, _round_up(b.shape[1], 128))

    def conv3x3_taps(w_pt):                       # (Cout,Cin,3,3) -> (9, Cin, C) padded
        Cout, Cin = w_pt.shape[:2]
        t = jnp.transpose(f32(w_pt), (2, 3, 1, 0)).reshape(9, Cin, Cout)
        return jnp.pad(t, ((0, 0), (0, 0), (0, C - Cout)))

    def convT_phase_w(w_pt):                      # ConvT (Cin,Cout,4,4) -> (4, 4Cin, Np)
        Cin, Cout = w_pt.shape[:2]
        mats = []
        for r in range(2):
            for c in range(2):
                taps = [f32(w_pt[:, :, 3 - r - 2 * dh, 3 - c - 2 * dw])
                        for dh in range(2) for dw in range(2)]
                mats.append(jnp.concatenate(taps, axis=0))
        w = jnp.stack(mats, 0)
        return _pad2(w, _round_up(w.shape[1], 128), _round_up(Cout, 128))

    # --- fused bottleneck weight stacks: [enc conv3x3, enc res..., dec conv3x3, dec res...]
    w3s, w1s, bs = [], [], []

    def add_conv(w, b):
        w3s.append(conv3x3_taps(w))
        w1s.append(jnp.zeros((C, C), jnp.float32))       # unused (selected away)
        bs.append(f32(b).reshape(1, C))

    def add_res(w3, w1):
        w3s.append(conv3x3_taps(w3))                     # (9, C, C): hidden lanes padded
        m = jnp.transpose(f32(w1), (2, 3, 1, 0)).reshape(Ch, C)
        w1s.append(jnp.pad(m, ((0, C - Ch), (0, 0))))    # padded rows hit zero activations
        bs.append(jnp.zeros((1, C), jnp.float32))        # res convs are bias-free

    add_conv(p["enc_w3"], p["enc_b3"])
    for w3, w1 in p["enc_res"]:
        add_res(w3, w1)
    add_conv(p["dec_w1"], p["dec_b1"])
    for w3, w1 in p["dec_res"]:
        add_res(w3, w1)

    # Final 3-channel ConvTranspose is run in XLA (perf review): equivalent direct
    # conv kernel = spatially flipped, HWIO with I=Cin, O=Cout.
    t2 = jnp.transpose(f32(p["dec_tw2"]), (2, 3, 0, 1))[::-1, ::-1, :, :]

    return {
        "c1_w": gemm_w(p["enc_w1"]), "c1_b": gemm_b(p["enc_b1"]),
        "c2_w": gemm_w(p["enc_w2"]), "c2_b": gemm_b(p["enc_b2"]),
        "bn_w3": jnp.stack(w3s), "bn_w1": jnp.stack(w1s), "bn_b": jnp.stack(bs),
        "t1_w": convT_phase_w(p["dec_tw1"]), "t1_b": gemm_b(p["dec_tb1"]),
        "t2_w": t2, "t2_b": f32(p["dec_tb2"]),
    }


# ---------------------------------------------------------------------------
# Model forward
# ---------------------------------------------------------------------------
def autoencoder_forward(x_nchw, prep):
    x = jnp.transpose(x_nchw, (0, 2, 3, 1)).astype(jnp.float32)   # NCHW -> NHWC

    # ---- Encoder: two strided 4x4 convs + ReLU (im2col + single-shot Pallas GEMM)
    m_tiles = 2 if _has_megacore() else 1            # 2-way split only helps with 2 TCs
    cols, (N, H, W) = _im2col(x, 4, 4, 2, 1)
    y = pallas_matmul_bias(cols[None], prep["c1_w"], prep["c1_b"],
                           post_relu=True, m_tiles=m_tiles)
    x = y[0].reshape(N, H, W, -1)

    cols, (N, H, W) = _im2col(x, 4, 4, 2, 1)
    y = pallas_matmul_bias(cols[None], prep["c2_w"], prep["c2_b"], post_relu=True)
    x = y[0].reshape(N, H, W, -1)

    # ---- Fused bottleneck: enc conv3x3 + enc res-stack + dec conv3x3 + dec res-stack
    x = fused_bottleneck(x, prep["bn_w3"], prep["bn_w1"], prep["bn_b"])

    # ---- Decoder upsample 1: ConvTranspose(4,2,1) phase GEMMs with fused ReLU
    x = conv_transpose2d_s2_pallas(x, prep["t1_w"], prep["t1_b"], post_relu=True)

    # ---- Final ConvTranspose to 3 channels: plain XLA per perf review (the
    #      lane-padded Pallas writeback + interleave outweighs this tiny GEMM).
    y = jax.lax.conv_general_dilated(
        x, prep["t2_w"], window_strides=(1, 1), padding=((2, 2), (2, 2)),
        lhs_dilation=(2, 2), dimension_numbers=("NHWC", "HWIO", "NHWC"))
    y = y + prep["t2_b"].reshape(1, 1, 1, -1)

    return jnp.transpose(y, (0, 3, 1, 2))            # back to NCHW


# ---------------------------------------------------------------------------
# Parameter init (PyTorch layouts)
# ---------------------------------------------------------------------------
def init_params(key, num_hiddens=256, num_residual_layers=2,
                num_residual_hiddens=32, in_channels=3):
    scale = 0.05
    ks = iter(jax.random.split(key, 64))

    def w(shape):
        return scale * jax.random.normal(next(ks), shape, jnp.float32)

    def res_layers(ch):
        layers = []
        for _ in range(num_residual_layers):
            w3 = w((num_residual_hiddens, ch, 3, 3))            # Conv3x3, bias=False
            w1 = w((num_hiddens, num_residual_hiddens, 1, 1))   # Conv1x1, bias=False
            layers.append((w3, w1))
        return layers

    return {
        # Encoder
        "enc_w1": w((num_hiddens // 2, in_channels, 4, 4)),
        "enc_b1": w((num_hiddens // 2,)),
        "enc_w2": w((num_hiddens, num_hiddens // 2, 4, 4)),
        "enc_b2": w((num_hiddens,)),
        "enc_w3": w((num_hiddens, num_hiddens, 3, 3)),
        "enc_b3": w((num_hiddens,)),
        "enc_res": res_layers(num_hiddens),
        # Decoder
        "dec_w1": w((num_hiddens, num_hiddens, 3, 3)),
        "dec_b1": w((num_hiddens,)),
        "dec_res": res_layers(num_hiddens),
        "dec_tw1": w((num_hiddens, num_hiddens // 2, 4, 4)),    # ConvT: (Cin,Cout,kh,kw)
        "dec_tb1": w((num_hiddens // 2,)),
        "dec_tw2": w((num_hiddens // 2, 3, 4, 4)),
        "dec_tb2": w((3,)),
    }


if __name__ == "__main__":
    key = jax.random.PRNGKey(0)
    k_param, k_data = jax.random.split(key)

    params = init_params(k_param, num_hiddens=256, num_residual_layers=2,
                         num_residual_hiddens=32, in_channels=3)
    prep = prepare_params(params)                     # one-time weight re-layout

    # PyTorch-style NCHW input: batch=2, channels=3, 16x16 spatial
    x = jax.random.normal(k_data, (2, 3, 16, 16), jnp.float32)

    fwd = jax.jit(autoencoder_forward)
    x_recon = fwd(x, prep)
    jax.block_until_ready(x_recon)

    assert x_recon.shape == (2, 3, 16, 16), x_recon.shape
    assert bool(jnp.all(jnp.isfinite(x_recon)))
    print("KERNEL_OK")
</pallas_src>

<mosaic_0001>
module attributes {stable_mosaic.version = 11 : i64} {
  func.func @_matmul_bias_kernel(%arg0: i32, %arg1: i32, %arg2: memref<1x128x128xf32, #tpu.memory_space<vmem>>, %arg3: memref<1x128x128xf32, #tpu.memory_space<vmem>>, %arg4: memref<1x128xf32, #tpu.memory_space<vmem>>, %arg5: memref<1x128x128xf32, #tpu.memory_space<vmem>>) attributes {dimension_semantics = [#tpu.dimension_semantics<parallel>, #tpu.dimension_semantics<parallel>], iteration_bounds = array<i64: 1, 1>, scalar_prefetch = 0 : i64, scratch_operands = 0 : i64, tpu.core_type = #tpu.core_type<tc>, window_params = [{transform_indices = @transform_0, window_bounds = array<i64: 1, 128, 128>}, {transform_indices = @transform_1, window_bounds = array<i64: 1, 128, 128>}, {pipeline_mode = #tpu.pipeline_mode<synchronous>, transform_indices = @transform_2, window_bounds = array<i64: 1, 128>}, {transform_indices = @transform_3, window_bounds = array<i64: 1, 128, 128>}]} {
    %c0 = arith.constant 0 : index
    %c0_0 = arith.constant 0 : index
    %c0_1 = arith.constant 0 : index
    %0 = vector.load %arg2[%c0, %c0_0, %c0_1] : memref<1x128x128xf32, #tpu.memory_space<vmem>>, vector<1x128x128xf32>
    %1 = vector.shape_cast %0 : vector<1x128x128xf32> to vector<128x128xf32>
    %c0_2 = arith.constant 0 : index
    %c0_3 = arith.constant 0 : index
    %c0_4 = arith.constant 0 : index
    %2 = vector.load %arg3[%c0_2, %c0_3, %c0_4] : memref<1x128x128xf32, #tpu.memory_space<vmem>>, vector<1x128x128xf32>
    %3 = vector.shape_cast %2 : vector<1x128x128xf32> to vector<128x128xf32>
    %cst = arith.constant dense<0.000000e+00> : vector<128x128xf32>
    %4 = tpu.matmul %1, %3, %cst {dimension_numbers = #tpu.dot_dimension_numbers<[1], [0], [0], [1], [0, 0, 1, 1], [], []>} : vector<128x128xf32>, vector<128x128xf32>, vector<128x128xf32> -> vector<128x128xf32>
    %c0_5 = arith.constant 0 : index
    %c0_6 = arith.constant 0 : index
    %5 = vector.load %arg4[%c0_5, %c0_6] : memref<1x128xf32, #tpu.memory_space<vmem>>, vector<1x128xf32>
    %6 = vector.broadcast %5 : vector<1x128xf32> to vector<128x128xf32>
    %7 = arith.addf %4, %6 : vector<128x128xf32>
    %cst_7 = arith.constant 0.000000e+00 : f32
    %8 = vector.broadcast %cst_7 : f32 to vector<128x128xf32>
    %9 = arith.maximumf %7, %8 : vector<128x128xf32>
    %c0_8 = arith.constant 0 : index
    %c0_9 = arith.constant 0 : index
    %c0_10 = arith.constant 0 : index
    %10 = vector.load %arg5[%c0_8, %c0_9, %c0_10] : memref<1x128x128xf32, #tpu.memory_space<vmem>>, vector<1x128x128xf32>
    %11 = vector.shape_cast %10 : vector<1x128x128xf32> to vector<128x128xf32>
    %12 = vector.shape_cast %9 : vector<128x128xf32> to vector<1x128x128xf32>
    tpu.vector_store %arg5[%c0_8, %c0_9, %c0_10], %12 {strides = array<i32>} : memref<1x128x128xf32, #tpu.memory_space<vmem>>, vector<1x128x128xf32>,
    return
  }
  func.func @transform_0(%arg0: i32, %arg1: i32) -> (i32, i32, i32) {
    %c0_i32 = arith.constant 0 : i32
    %c0_i32_0 = arith.constant 0 : i32
    return %arg0, %arg1, %c0_i32 : i32, i32, i32
  }
  func.func @transform_1(%arg0: i32, %arg1: i32) -> (i32, i32, i32) {
    %c0_i32 = arith.constant 0 : i32
    %c0_i32_0 = arith.constant 0 : i32
    %c0_i32_1 = arith.constant 0 : i32
    return %arg0, %c0_i32, %c0_i32_0 : i32, i32, i32
  }
  func.func @transform_2(%arg0: i32, %arg1: i32) -> (i32, i32) {
    %c0_i32 = arith.constant 0 : i32
    %c0_i32_0 = arith.constant 0 : i32
    %c0_i32_1 = arith.constant 0 : i32
    return %c0_i32, %c0_i32_0 : i32, i32
  }
  func.func @transform_3(%arg0: i32, %arg1: i32) -> (i32, i32, i32) {
    %c0_i32 = arith.constant 0 : i32
    %c0_i32_0 = arith.constant 0 : i32
    return %arg0, %arg1, %c0_i32 : i32, i32, i32
  }
}

module attributes {stable_mosaic.version = 11 : i64} {
  func.func @_matmul_bias_kernel(%arg0: i32, %arg1: i32, %arg2: memref<1x32x2048xf32, #tpu.memory_space<vmem>>, %arg3: memref<1x2048x256xf32, #tpu.memory_space<vmem>>, %arg4: memref<1x256xf32, #tpu.memory_space<vmem>>, %arg5: memref<1x32x256xf32, #tpu.memory_space<vmem>>) attributes {dimension_semantics = [#tpu.dimension_semantics<parallel>, #tpu.dimension_semantics<parallel>], iteration_bounds = array<i64: 1, 1>, scalar_prefetch = 0 : i64, scratch_operands = 0 : i64, tpu.core_type = #tpu.core_type<tc>, window_params = [{transform_indices = @transform_0, window_bounds = array<i64: 1, 32, 2048>}, {transform_indices = @transform_1, window_bounds = array<i64: 1, 2048, 256>}, {pipeline_mode = #tpu.pipeline_mode<synchronous>, transform_indices = @transform_2, window_bounds = array<i64: 1, 256>}, {transform_indices = @transform_3, window_bounds = array<i64: 1, 32, 256>}]} {
    %c0 = arith.constant 0 : index
    %c0_0 = arith.constant 0 : index
    %c0_1 = arith.constant 0 : index
    %0 = vector.load %arg2[%c0, %c0_0, %c0_1] : memref<1x32x2048xf32, #tpu.memory_space<vmem>>, vector<1x32x2048xf32>
    %1 = vector.shape_cast %0 : vector<1x32x2048xf32> to vector<32x2048xf32>
    %c0_2 = arith.constant 0 : index
    %c0_3 = arith.constant 0 : index
    %c0_4 = arith.constant 0 : index
    %2 = vector.load %arg3[%c0_2, %c0_3, %c0_4] : memref<1x2048x256xf32, #tpu.memory_space<vmem>>, vector<1x2048x256xf32>
    %3 = vector.shape_cast %2 : vector<1x2048x256xf32> to vector<2048x256xf32>
    %cst = arith.constant dense<0.000000e+00> : vector<32x256xf32>
    %4 = tpu.matmul %1, %3, %cst {dimension_numbers = #tpu.dot_dimension_numbers<[1], [0], [0], [1], [0, 0, 1, 1], [], []>} : vector<32x2048xf32>, vector<2048x256xf32>, vector<32x256xf32> -> vector<32x256xf32>
    %c0_5 = arith.constant 0 : index
    %c0_6 = arith.constant 0 : index
    %5 = vector.load %arg4[%c0_5, %c0_6] : memref<1x256xf32, #tpu.memory_space<vmem>>, vector<1x256xf32>
    %6 = vector.broadcast %5 : vector<1x256xf32> to vector<32x256xf32>
    %7 = arith.addf %4, %6 : vector<32x256xf32>
    %cst_7 = arith.constant 0.000000e+00 : f32
    %8 = vector.broadcast %cst_7 : f32 to vector<32x256xf32>
    %9 = arith.maximumf %7, %8 : vector<32x256xf32>
    %c0_8 = arith.constant 0 : index
    %c0_9 = arith.constant 0 : index
    %c0_10 = arith.constant 0 : index
    %10 = vector.load %arg5[%c0_8, %c0_9, %c0_10] : memref<1x32x256xf32, #tpu.memory_space<vmem>>, vector<1x32x256xf32>
    %11 = vector.shape_cast %10 : vector<1x32x256xf32> to vector<32x256xf32>
    %12 = vector.shape_cast %9 : vector<32x256xf32> to vector<1x32x256xf32>
    tpu.vector_store %arg5[%c0_8, %c0_9, %c0_10], %12 {strides = array<i32>} : memref<1x32x256xf32, #tpu.memory_space<vmem>>, vector<1x32x256xf32>,
    return
  }
  func.func @transform_0(%arg0: i32, %arg1: i32) -> (i32, i32, i32) {
    %c0_i32 = arith.constant 0 : i32
    %c0_i32_0 = arith.constant 0 : i32
    return %arg0, %arg1, %c0_i32 : i32, i32, i32
  }
  func.func @transform_1(%arg0: i32, %arg1: i32) -> (i32, i32, i32) {
    %c0_i32 = arith.constant 0 : i32
    %c0_i32_0 = arith.constant 0 : i32
    %c0_i32_1 = arith.constant 0 : i32
    return %arg0, %c0_i32, %c0_i32_0 : i32, i32, i32
  }
  func.func @transform_2(%arg0: i32, %arg1: i32) -> (i32, i32) {
    %c0_i32 = arith.constant 0 : i32
    %c0_i32_0 = arith.constant 0 : i32
    %c0_i32_1 = arith.constant 0 : i32
    return %c0_i32, %c0_i32_0 : i32, i32
  }
  func.func @transform_3(%arg0: i32, %arg1: i32) -> (i32, i32, i32) {
    %c0_i32 = arith.constant 0 : i32
    %c0_i32_0 = arith.constant 0 : i32
    return %arg0, %arg1, %c0_i32 : i32, i32, i32
  }
}

module attributes {stable_mosaic.version = 11 : i64} {
  func.func @_bottleneck_kernel(%arg0: i32, %arg1: memref<9x32x32xf32, #tpu.memory_space<vmem>>, %arg2: memref<1x9x256x256xf32, #tpu.memory_space<vmem>>, %arg3: memref<1x256x256xf32, #tpu.memory_space<vmem>>, %arg4: memref<1x1x256xf32, #tpu.memory_space<vmem>>, %arg5: memref<32x256xf32, #tpu.memory_space<vmem>>, %arg6: memref<32x256xf32, #tpu.memory_space<vmem>>) attributes {dimension_semantics = [#tpu.dimension_semantics<arbitrary>], iteration_bounds = array<i64: 6>, scalar_prefetch = 0 : i64, scratch_operands = 0 : i64, tpu.core_type = #tpu.core_type<tc>, window_params = [{pipeline_mode = #tpu.pipeline_mode<synchronous>, transform_indices = @transform_0, window_bounds = array<i64: 9, 32, 32>}, {transform_indices = @transform_1, window_bounds = array<i64: 1, 9, 256, 256>}, {transform_indices = @transform_2, window_bounds = array<i64: 1, 256, 256>}, {transform_indices = @transform_3, window_bounds = array<i64: 1, 1, 256>}, {pipeline_mode = #tpu.pipeline_mode<synchronous>, transform_indices = @transform_4, window_bounds = array<i64: 32, 256>}, {pipeline_mode = #tpu.pipeline_mode<synchronous>, transform_indices = @transform_5, window_bounds = array<i64: 32, 256>}]} {
    %c3_i32 = arith.constant 3 : i32
    %c0_i32 = arith.constant 0 : i32
    %0 = arith.cmpi eq, %c3_i32, %c0_i32 : i32
    %c1_i32 = arith.constant 1 : i32
    %1 = arith.select %0, %c1_i32, %c3_i32 : i32
    %2 = arith.remsi %arg0, %1 : i32
    %c0_i32_0 = arith.constant 0 : i32
    %3 = arith.cmpi ne, %2, %c0_i32_0 : i32
    %c0_i32_1 = arith.constant 0 : i32
    %4 = arith.cmpi slt, %2, %c0_i32_1 : i32
    %c0_i32_2 = arith.constant 0 : i32
    %5 = arith.cmpi slt, %1, %c0_i32_2 : i32
    %6 = arith.xori %4, %5 : i1
    %7 = arith.andi %6, %3 : i1
    %8 = arith.addi %2, %1 : i32
    %9 = arith.select %7, %8, %2 : i32
    %c0_i32_3 = arith.constant 0 : i32
    %10 = arith.cmpi sgt, %9, %c0_i32_3 : i32
    %c2_i32 = arith.constant 2 : i32
    %11 = arith.cmpi eq, %9, %c2_i32 : i32
    %true = arith.constant true
    %12 = arith.andi %11, %true : i1
    %c0_i32_4 = arith.constant 0 : i32
    %13 = arith.cmpi eq, %arg0, %c0_i32_4 : i32
    %14 = arith.extui %13 : i1 to i32
    %c0_i32_5 = arith.constant 0 : i32
    %15 = arith.cmpi ne, %14, %c0_i32_5 : i32
    scf.if %15 {
      %c0_92 = arith.constant 0 : index
      %c0_93 = arith.constant 0 : index
      %99 = vector.load %arg5[%c0_92, %c0_93] : memref<32x256xf32, #tpu.memory_space<vmem>>, vector<32x256xf32>
      %c0_94 = arith.constant 0 : index
      %c0_95 = arith.constant 0 : index
      %100 = vector.load %arg6[%c0_94, %c0_95] : memref<32x256xf32, #tpu.memory_space<vmem>>, vector<32x256xf32>
      tpu.vector_store %arg6[%c0_94, %c0_95], %99 {strides = array<i32>} : memref<32x256xf32, #tpu.memory_space<vmem>>, vector<32x256xf32>,
    } else {
    }
    %c0 = arith.constant 0 : index
    %c0_6 = arith.constant 0 : index
    %16 = vector.load %arg6[%c0, %c0_6] : memref<32x256xf32, #tpu.memory_space<vmem>>, vector<32x256xf32>
    %cst = arith.constant 0.000000e+00 : f32
    %17 = vector.broadcast %cst : f32 to vector<32x256xf32>
    %18 = arith.maximumf %16, %17 : vector<32x256xf32>
    %19 = arith.select %10, %18, %16 : vector<32x256xf32>
    %cst_7 = arith.constant 0.000000e+00 : f32
    %20 = vector.broadcast %cst_7 : f32 to vector<32x256xf32>
    %c0_8 = arith.constant 0 : index
    %c0_9 = arith.constant 0 : index
    %c0_10 = arith.constant 0 : index
    %21 = vector.load %arg4[%c0_8, %c0_9, %c0_10] : memref<1x1x256xf32, #tpu.memory_space<vmem>>, vector<1x1x256xf32>
    %22 = vector.shape_cast %21 : vector<1x1x256xf32> to vector<1x256xf32>
    %23 = vector.broadcast %22 : vector<1x256xf32> to vector<32x256xf32>
    %24 = arith.addf %20, %23 : vector<32x256xf32>
    %c0_11 = arith.constant 0 : index
    %c0_12 = arith.constant 0 : index
    %c0_13 = arith.constant 0 : index
    %25 = vector.load %arg1[%c0_11, %c0_12, %c0_13] : memref<9x32x32xf32, #tpu.memory_space<vmem>>, vector<1x32x32xf32>
    %26 = vector.shape_cast %25 : vector<1x32x32xf32> to vector<32x32xf32>
    %cst_14 = arith.constant dense<0.000000e+00> : vector<32x256xf32>
    %27 = tpu.matmul %26, %19, %cst_14 {dimension_numbers = #tpu.dot_dimension_numbers<[1], [0], [0], [1], [0, 0, 1, 1], [], []>} : vector<32x32xf32>, vector<32x256xf32>, vector<32x256xf32> -> vector<32x256xf32>
    %c0_15 = arith.constant 0 : index
    %c0_16 = arith.constant 0 : index
    %c0_17 = arith.constant 0 : index
    %c0_18 = arith.constant 0 : index
    %28 = vector.load %arg2[%c0_15, %c0_16, %c0_17, %c0_18] : memref<1x9x256x256xf32, #tpu.memory_space<vmem>>, vector<1x1x256x256xf32>
    %29 = vector.shape_cast %28 : vector<1x1x256x256xf32> to vector<256x256xf32>
    %cst_19 = arith.constant dense<0.000000e+00> : vector<32x256xf32>
    %30 = tpu.matmul %27, %29, %cst_19 {dimension_numbers = #tpu.dot_dimension_numbers<[1], [0], [0], [1], [0, 0, 1, 1], [], []>} : vector<32x256xf32>, vector<256x256xf32>, vector<32x256xf32> -> vector<32x256xf32>
    %31 = arith.addf %24, %30 : vector<32x256xf32>
    %c1 = arith.constant 1 : index
    %c0_20 = arith.constant 0 : index
    %c0_21 = arith.constant 0 : index
    %32 = vector.load %arg1[%c1, %c0_20, %c0_21] : memref<9x32x32xf32, #tpu.memory_space<vmem>>, vector<1x32x32xf32>
    %33 = vector.shape_cast %32 : vector<1x32x32xf32> to vector<32x32xf32>
    %cst_22 = arith.constant dense<0.000000e+00> : vector<32x256xf32>
    %34 = tpu.matmul %33, %19, %cst_22 {dimension_numbers = #tpu.dot_dimension_numbers<[1], [0], [0], [1], [0, 0, 1, 1], [], []>} : vector<32x32xf32>, vector<32x256xf32>, vector<32x256xf32> -> vector<32x256xf32>
    %c0_23 = arith.constant 0 : index
    %c1_24 = arith.constant 1 : index
    %c0_25 = arith.constant 0 : index
    %c0_26 = arith.constant 0 : index
    %35 = vector.load %arg2[%c0_23, %c1_24, %c0_25, %c0_26] : memref<1x9x256x256xf32, #tpu.memory_space<vmem>>, vector<1x1x256x256xf32>
    %36 = vector.shape_cast %35 : vector<1x1x256x256xf32> to vector<256x256xf32>
    %cst_27 = arith.constant dense<0.000000e+00> : vector<32x256xf32>
    %37 = tpu.matmul %34, %36, %cst_27 {dimension_numbers = #tpu.dot_dimension_numbers<[1], [0], [0], [1], [0, 0, 1, 1], [], []>} : vector<32x256xf32>, vector<256x256xf32>, vector<32x256xf32> -> vector<32x256xf32>
    %38 = arith.addf %31, %37 : vector<32x256xf32>
    %c2 = arith.constant 2 : index
    %c0_28 = arith.constant 0 : index
    %c0_29 = arith.constant 0 : index
    %39 = vector.load %arg1[%c2, %c0_28, %c0_29] : memref<9x32x32xf32, #tpu.memory_space<vmem>>, vector<1x32x32xf32>
    %40 = vector.shape_cast %39 : vector<1x32x32xf32> to vector<32x32xf32>
    %cst_30 = arith.constant dense<0.000000e+00> : vector<32x256xf32>
    %41 = tpu.matmul %40, %19, %cst_30 {dimension_numbers = #tpu.dot_dimension_numbers<[1], [0], [0], [1], [0, 0, 1, 1], [], []>} : vector<32x32xf32>, vector<32x256xf32>, vector<32x256xf32> -> vector<32x256xf32>
    %c0_31 = arith.constant 0 : index
    %c2_32 = arith.constant 2 : index
    %c0_33 = arith.constant 0 : index
    %c0_34 = arith.constant 0 : index
    %42 = vector.load %arg2[%c0_31, %c2_32, %c0_33, %c0_34] : memref<1x9x256x256xf32, #tpu.memory_space<vmem>>, vector<1x1x256x256xf32>
    %43 = vector.shape_cast %42 : vector<1x1x256x256xf32> to vector<256x256xf32>
    %cst_35 = arith.constant dense<0.000000e+00> : vector<32x256xf32>
    %44 = tpu.matmul %41, %43, %cst_35 {dimension_numbers = #tpu.dot_dimension_numbers<[1], [0], [0], [1], [0, 0, 1, 1], [], []>} : vector<32x256xf32>, vector<256x256xf32>, vector<32x256xf32> -> vector<32x256xf32>
    %45 = arith.addf %38, %44 : vector<32x256xf32>
    %c3 = arith.constant 3 : index
    %c0_36 = arith.constant 0 : index
    %c0_37 = arith.constant 0 : index
    %46 = vector.load %arg1[%c3, %c0_36, %c0_37] : memref<9x32x32xf32, #tpu.memory_space<vmem>>, vector<1x32x32xf32>
    %47 = vector.shape_cast %46 : vector<1x32x32xf32> to vector<32x32xf32>
    %cst_38 = arith.constant dense<0.000000e+00> : vector<32x256xf32>
    %48 = tpu.matmul %47, %19, %cst_38 {dimension_numbers = #tpu.dot_dimension_numbers<[1], [0], [0], [1], [0, 0, 1, 1], [], []>} : vector<32x32xf32>, vector<32x256xf32>, vector<32x256xf32> -> vector<32x256xf32>
    %c0_39 = arith.constant 0 : index
    %c3_40 = arith.constant 3 : index
    %c0_41 = arith.constant 0 : index
    %c0_42 = arith.constant 0 : index
    %49 = vector.load %arg2[%c0_39, %c3_40, %c0_41, %c0_42] : memref<1x9x256x256xf32, #tpu.memory_space<vmem>>, vector<1x1x256x256xf32>
    %50 = vector.shape_cast %49 : vector<1x1x256x256xf32> to vector<256x256xf32>
    %cst_43 = arith.constant dense<0.000000e+00> : vector<32x256xf32>
    %51 = tpu.matmul %48, %50, %cst_43 {dimension_numbers = #tpu.dot_dimension_numbers<[1], [0], [0], [1], [0, 0, 1, 1], [], []>} : vector<32x256xf32>, vector<256x256xf32>, vector<32x256xf32> -> vector<32x256xf32>
    %52 = arith.addf %45, %51 : vector<32x256xf32>
    %c4 = arith.constant 4 : index
    %c0_44 = arith.constant 0 : index
    %c0_45 = arith.constant 0 : index
    %53 = vector.load %arg1[%c4, %c0_44, %c0_45] : memref<9x32x32xf32, #tpu.memory_space<vmem>>, vector<1x32x32xf32>
    %54 = vector.shape_cast %53 : vector<1x32x32xf32> to vector<32x32xf32>
    %cst_46 = arith.constant dense<0.000000e+00> : vector<32x256xf32>
    %55 = tpu.matmul %54, %19, %cst_46 {dimension_numbers = #tpu.dot_dimension_numbers<[1], [0], [0], [1], [0, 0, 1, 1], [], []>} : vector<32x32xf32>, vector<32x256xf32>, vector<32x256xf32> -> vector<32x256xf32>
    %c0_47 = arith.constant 0 : index
    %c4_48 = arith.constant 4 : index
    %c0_49 = arith.constant 0 : index
    %c0_50 = arith.constant 0 : index
    %56 = vector.load %arg2[%c0_47, %c4_48, %c0_49, %c0_50] : memref<1x9x256x256xf32, #tpu.memory_space<vmem>>, vector<1x1x256x256xf32>
    %57 = vector.shape_cast %56 : vector<1x1x256x256xf32> to vector<256x256xf32>
    %cst_51 = arith.constant dense<0.000000e+00> : vector<32x256xf32>
    %58 = tpu.matmul %55, %57, %cst_51 {dimension_numbers = #tpu.dot_dimension_numbers<[1], [0], [0], [1], [0, 0, 1, 1], [], []>} : vector<32x256xf32>, vector<256x256xf32>, vector<32x256xf32> -> vector<32x256xf32>
    %59 = arith.addf %52, %58 : vector<32x256xf32>
    %c5 = arith.constant 5 : index
    %c0_52 = arith.constant 0 : index
    %c0_53 = arith.constant 0 : index
    %60 = vector.load %arg1[%c5, %c0_52, %c0_53] : memref<9x32x32xf32, #tpu.memory_space<vmem>>, vector<1x32x32xf32>
    %61 = vector.shape_cast %60 : vector<1x32x32xf32> to vector<32x32xf32>
    %cst_54 = arith.constant dense<0.000000e+00> : vector<32x256xf32>
    %62 = tpu.matmul %61, %19, %cst_54 {dimension_numbers = #tpu.dot_dimension_numbers<[1], [0], [0], [1], [0, 0, 1, 1], [], []>} : vector<32x32xf32>, vector<32x256xf32>, vector<32x256xf32> -> vector<32x256xf32>
    %c0_55 = arith.constant 0 : index
    %c5_56 = arith.constant 5 : index
    %c0_57 = arith.constant 0 : index
    %c0_58 = arith.constant 0 : index
    %63 = vector.load %arg2[%c0_55, %c5_56, %c0_57, %c0_58] : memref<1x9x256x256xf32, #tpu.memory_space<vmem>>, vector<1x1x256x256xf32>
    %64 = vector.shape_cast %63 : vector<1x1x256x256xf32> to vector<256x256xf32>
    %cst_59 = arith.constant dense<0.000000e+00> : vector<32x256xf32>
    %65 = tpu.matmul %62, %64, %cst_59 {dimension_numbers = #tpu.dot_dimension_numbers<[1], [0], [0], [1], [0, 0, 1, 1], [], []>} : vector<32x256xf32>, vector<256x256xf32>, vector<32x256xf32> -> vector<32x256xf32>
    %66 = arith.addf %59, %65 : vector<32x256xf32>
    %c6 = arith.constant 6 : index
    %c0_60 = arith.constant 0 : index
    %c0_61 = arith.constant 0 : index
    %67 = vector.load %arg1[%c6, %c0_60, %c0_61] : memref<9x32x32xf32, #tpu.memory_space<vmem>>, vector<1x32x32xf32>
    %68 = vector.shape_cast %67 : vector<1x32x32xf32> to vector<32x32xf32>
    %cst_62 = arith.constant dense<0.000000e+00> : vector<32x256xf32>
    %69 = tpu.matmul %68, %19, %cst_62 {dimension_numbers = #tpu.dot_dimension_numbers<[1], [0], [0], [1], [0, 0, 1, 1], [], []>} : vector<32x32xf32>, vector<32x256xf32>, vector<32x256xf32> -> vector<32x256xf32>
    %c0_63 = arith.constant 0 : index
    %c6_64 = arith.constant 6 : index
    %c0_65 = arith.constant 0 : index
    %c0_66 = arith.constant 0 : index
    %70 = vector.load %arg2[%c0_63, %c6_64, %c0_65, %c0_66] : memref<1x9x256x256xf32, #tpu.memory_space<vmem>>, vector<1x1x256x256xf32>
    %71 = vector.shape_cast %70 : vector<1x1x256x256xf32> to vector<256x256xf32>
    %cst_67 = arith.constant dense<0.000000e+00> : vector<32x256xf32>
    %72 = tpu.matmul %69, %71, %cst_67 {dimension_numbers = #tpu.dot_dimension_numbers<[1], [0], [0], [1], [0, 0, 1, 1], [], []>} : vector<32x256xf32>, vector<256x256xf32>, vector<32x256xf32> -> vector<32x256xf32>
    %73 = arith.addf %66, %72 : vector<32x256xf32>
    %c7 = arith.constant 7 : index
    %c0_68 = arith.constant 0 : index
    %c0_69 = arith.constant 0 : index
    %74 = vector.load %arg1[%c7, %c0_68, %c0_69] : memref<9x32x32xf32, #tpu.memory_space<vmem>>, vector<1x32x32xf32>
    %75 = vector.shape_cast %74 : vector<1x32x32xf32> to vector<32x32xf32>
    %cst_70 = arith.constant dense<0.000000e+00> : vector<32x256xf32>
    %76 = tpu.matmul %75, %19, %cst_70 {dimension_numbers = #tpu.dot_dimension_numbers<[1], [0], [0], [1], [0, 0, 1, 1], [], []>} : vector<32x32xf32>, vector<32x256xf32>, vector<32x256xf32> -> vector<32x256xf32>
    %c0_71 = arith.constant 0 : index
    %c7_72 = arith.constant 7 : index
    %c0_73 = arith.constant 0 : index
    %c0_74 = arith.constant 0 : index
    %77 = vector.load %arg2[%c0_71, %c7_72, %c0_73, %c0_74] : memref<1x9x256x256xf32, #tpu.memory_space<vmem>>, vector<1x1x256x256xf32>
    %78 = vector.shape_cast %77 : vector<1x1x256x256xf32> to vector<256x256xf32>
    %cst_75 = arith.constant dense<0.000000e+00> : vector<32x256xf32>
    %79 = tpu.matmul %76, %78, %cst_75 {dimension_numbers = #tpu.dot_dimension_numbers<[1], [0], [0], [1], [0, 0, 1, 1], [], []>} : vector<32x256xf32>, vector<256x256xf32>, vector<32x256xf32> -> vector<32x256xf32>
    %80 = arith.addf %73, %79 : vector<32x256xf32>
    %c8 = arith.constant 8 : index
    %c0_76 = arith.constant 0 : index
    %c0_77 = arith.constant 0 : index
    %81 = vector.load %arg1[%c8, %c0_76, %c0_77] : memref<9x32x32xf32, #tpu.memory_space<vmem>>, vector<1x32x32xf32>
    %82 = vector.shape_cast %81 : vector<1x32x32xf32> to vector<32x32xf32>
    %cst_78 = arith.constant dense<0.000000e+00> : vector<32x256xf32>
    %83 = tpu.matmul %82, %19, %cst_78 {dimension_numbers = #tpu.dot_dimension_numbers<[1], [0], [0], [1], [0, 0, 1, 1], [], []>} : vector<32x32xf32>, vector<32x256xf32>, vector<32x256xf32> -> vector<32x256xf32>
    %c0_79 = arith.constant 0 : index
    %c8_80 = arith.constant 8 : index
    %c0_81 = arith.constant 0 : index
    %c0_82 = arith.constant 0 : index
    %84 = vector.load %arg2[%c0_79, %c8_80, %c0_81, %c0_82] : memref<1x9x256x256xf32, #tpu.memory_space<vmem>>, vector<1x1x256x256xf32>
    %85 = vector.shape_cast %84 : vector<1x1x256x256xf32> to vector<256x256xf32>
    %cst_83 = arith.constant dense<0.000000e+00> : vector<32x256xf32>
    %86 = tpu.matmul %83, %85, %cst_83 {dimension_numbers = #tpu.dot_dimension_numbers<[1], [0], [0], [1], [0, 0, 1, 1], [], []>} : vector<32x256xf32>, vector<256x256xf32>, vector<32x256xf32> -> vector<32x256xf32>
    %87 = arith.addf %80, %86 : vector<32x256xf32>
    %cst_84 = arith.constant 0.000000e+00 : f32
    %88 = vector.broadcast %cst_84 : f32 to vector<32x256xf32>
    %89 = arith.maximumf %87, %88 : vector<32x256xf32>
    %c0_85 = arith.constant 0 : index
    %c0_86 = arith.constant 0 : index
    %c0_87 = arith.constant 0 : index
    %90 = vector.load %arg3[%c0_85, %c0_86, %c0_87] : memref<1x256x256xf32, #tpu.memory_space<vmem>>, vector<1x256x256xf32>
    %91 = vector.shape_cast %90 : vector<1x256x256xf32> to vector<256x256xf32>
    %cst_88 = arith.constant dense<0.000000e+00> : vector<32x256xf32>
    %92 = tpu.matmul %89, %91, %cst_88 {dimension_numbers = #tpu.dot_dimension_numbers<[1], [0], [0], [1], [0, 0, 1, 1], [], []>} : vector<32x256xf32>, vector<256x256xf32>, vector<32x256xf32> -> vector<32x256xf32>
    %93 = arith.addf %16, %92 : vector<32x256xf32>
    %94 = arith.select %10, %93, %87 : vector<32x256xf32>
    %cst_89 = arith.constant 0.000000e+00 : f32
    %95 = vector.broadcast %cst_89 : f32 to vector<32x256xf32>
    %96 = arith.maximumf %94, %95 : vector<32x256xf32>
    %97 = arith.select %12, %96, %94 : vector<32x256xf32>
    %c0_90 = arith.constant 0 : index
    %c0_91 = arith.constant 0 : index
    %98 = vector.load %arg6[%c0_90, %c0_91] : memref<32x256xf32, #tpu.memory_space<vmem>>, vector<32x256xf32>
    tpu.vector_store %arg6[%c0_90, %c0_91], %97 {strides = array<i32>} : memref<32x256xf32, #tpu.memory_space<vmem>>, vector<32x256xf32>,
    return
  }
  func.func @transform_0(%arg0: i32) -> (i32, i32, i32) {
    %c0_i32 = arith.constant 0 : i32
    %c0_i32_0 = arith.constant 0 : i32
    %c0_i32_1 = arith.constant 0 : i32
    %c0_i32_2 = arith.constant 0 : i32
    return %c0_i32, %c0_i32_0, %c0_i32_1 : i32, i32, i32
  }
  func.func @transform_1(%arg0: i32) -> (i32, i32, i32, i32) {
    %c0_i32 = arith.constant 0 : i32
    %c0_i32_0 = arith.constant 0 : i32
    %c0_i32_1 = arith.constant 0 : i32
    %c0_i32_2 = arith.constant 0 : i32
    return %arg0, %c0_i32, %c0_i32_0, %c0_i32_1 : i32, i32, i32, i32
  }
  func.func @transform_2(%arg0: i32) -> (i32, i32, i32) {
    %c0_i32 = arith.constant 0 : i32
    %c0_i32_0 = arith.constant 0 : i32
    %c0_i32_1 = arith.constant 0 : i32
    return %arg0, %c0_i32, %c0_i32_0 : i32, i32, i32
  }
  func.func @transform_3(%arg0: i32) -> (i32, i32, i32) {
    %c0_i32 = arith.constant 0 : i32
    %c0_i32_0 = arith.constant 0 : i32
    %c0_i32_1 = arith.constant 0 : i32
    return %arg0, %c0_i32, %c0_i32_0 : i32, i32, i32
  }
  func.func @transform_4(%arg0: i32) -> (i32, i32) {
    %c0_i32 = arith.constant 0 : i32
    %c0_i32_0 = arith.constant 0 : i32
    %c0_i32_1 = arith.constant 0 : i32
    return %c0_i32, %c0_i32_0 : i32, i32
  }
  func.func @transform_5(%arg0: i32) -> (i32, i32) {
    %c0_i32 = arith.constant 0 : i32
    %c0_i32_0 = arith.constant 0 : i32
    %c0_i32_1 = arith.constant 0 : i32
    return %c0_i32, %c0_i32_0 : i32, i32
  }
}

module attributes {stable_mosaic.version = 11 : i64} {
  func.func @_matmul_bias_kernel(%arg0: i32, %arg1: i32, %arg2: memref<1x32x1024xf32, #tpu.memory_space<vmem>>, %arg3: memref<1x1024x128xf32, #tpu.memory_space<vmem>>, %arg4: memref<1x128xf32, #tpu.memory_space<vmem>>, %arg5: memref<1x32x128xf32, #tpu.memory_space<vmem>>) attributes {dimension_semantics = [#tpu.dimension_semantics<parallel>, #tpu.dimension_semantics<parallel>], iteration_bounds = array<i64: 4, 1>, scalar_prefetch = 0 : i64, scratch_operands = 0 : i64, tpu.core_type = #tpu.core_type<tc>, window_params = [{transform_indices = @transform_0, window_bounds = array<i64: 1, 32, 1024>}, {transform_indices = @transform_1, window_bounds = array<i64: 1, 1024, 128>}, {pipeline_mode = #tpu.pipeline_mode<synchronous>, transform_indices = @transform_2, window_bounds = array<i64: 1, 128>}, {transform_indices = @transform_3, window_bounds = array<i64: 1, 32, 128>}]} {
    %c0 = arith.constant 0 : index
    %c0_0 = arith.constant 0 : index
    %c0_1 = arith.constant 0 : index
    %0 = vector.load %arg2[%c0, %c0_0, %c0_1] : memref<1x32x1024xf32, #tpu.memory_space<vmem>>, vector<1x32x1024xf32>
    %1 = vector.shape_cast %0 : vector<1x32x1024xf32> to vector<32x1024xf32>
    %c0_2 = arith.constant 0 : index
    %c0_3 = arith.constant 0 : index
    %c0_4 = arith.constant 0 : index
    %2 = vector.load %arg3[%c0_2, %c0_3, %c0_4] : memref<1x1024x128xf32, #tpu.memory_space<vmem>>, vector<1x1024x128xf32>
    %3 = vector.shape_cast %2 : vector<1x1024x128xf32> to vector<1024x128xf32>
    %cst = arith.constant dense<0.000000e+00> : vector<32x128xf32>
    %4 = tpu.matmul %1, %3, %cst {dimension_numbers = #tpu.dot_dimension_numbers<[1], [0], [0], [1], [0, 0, 1, 1], [], []>} : vector<32x1024xf32>, vector<1024x128xf32>, vector<32x128xf32> -> vector<32x128xf32>
    %c0_5 = arith.constant 0 : index
    %c0_6 = arith.constant 0 : index
    %5 = vector.load %arg4[%c0_5, %c0_6] : memref<1x128xf32, #tpu.memory_space<vmem>>, vector<1x128xf32>
    %6 = vector.broadcast %5 : vector<1x128xf32> to vector<32x128xf32>
    %7 = arith.addf %4, %6 : vector<32x128xf32>
    %cst_7 = arith.constant 0.000000e+00 : f32
    %8 = vector.broadcast %cst_7 : f32 to vector<32x128xf32>
    %9 = arith.maximumf %7, %8 : vector<32x128xf32>
    %c0_8 = arith.constant 0 : index
    %c0_9 = arith.constant 0 : index
    %c0_10 = arith.constant 0 : index
    %10 = vector.load %arg5[%c0_8, %c0_9, %c0_10] : memref<1x32x128xf32, #tpu.memory_space<vmem>>, vector<1x32x128xf32>
    %11 = vector.shape_cast %10 : vector<1x32x128xf32> to vector<32x128xf32>
    %12 = vector.shape_cast %9 : vector<32x128xf32> to vector<1x32x128xf32>
    tpu.vector_store %arg5[%c0_8, %c0_9, %c0_10], %12 {strides = array<i32>} : memref<1x32x128xf32, #tpu.memory_space<vmem>>, vector<1x32x128xf32>,
    return
  }
  func.func @transform_0(%arg0: i32, %arg1: i32) -> (i32, i32, i32) {
    %c0_i32 = arith.constant 0 : i32
    %c0_i32_0 = arith.constant 0 : i32
    return %arg0, %arg1, %c0_i32 : i32, i32, i32
  }
  func.func @transform_1(%arg0: i32, %arg1: i32) -> (i32, i32, i32) {
    %c0_i32 = arith.constant 0 : i32
    %c0_i32_0 = arith.constant 0 : i32
    %c0_i32_1 = arith.constant 0 : i32
    return %arg0, %c0_i32, %c0_i32_0 : i32, i32, i32
  }
  func.func @transform_2(%arg0: i32, %arg1: i32) -> (i32, i32) {
    %c0_i32 = arith.constant 0 : i32
    %c0_i32_0 = arith.constant 0 : i32
    %c0_i32_1 = arith.constant 0 : i32
    return %c0_i32, %c0_i32_0 : i32, i32
  }
  func.func @transform_3(%arg0: i32, %arg1: i32) -> (i32, i32, i32) {
    %c0_i32 = arith.constant 0 : i32
    %c0_i32_0 = arith.constant 0 : i32
    return %arg0, %arg1, %c0_i32 : i32, i32, i32
  }
}

</mosaic_0001>

<bundles_post_ra>
// kernel: autoencoder_forward.4
= control target key start
LH: loop header
LB: loop body
LE: loop exit
PB: predicated region body
PF: predicated region fallthrough
CT: control target
= control target key end

     0   :  { %s538_s1 = inlined_call_operand.vmem [shape: f32[1,128,128], index: 1, kind: input, shape index: {}]   ;;  %s539_s0 = inlined_call_operand.vmem [shape: f32[1,128,128], index: 0, kind: input, shape index: {}]   ;;  %s540_s2 = inlined_call_operand.vmem [shape: f32[1,128], index: 2, kind: input, shape index: {}]   ;;  %s541_s3 = inlined_call_operand.vmem [shape: f32[1,128,128], index: 3, kind: output, shape index: {}]  }
   0x1   :  { %v30_v0 = vld [vmem:[%s538_s1] sm:$0xff]  ;;  %v31_v1 = vld [vmem:[%s538_s1 + $0x8] sm:$0xff]  ;;  %v32_v2 = vld [vmem:[%s538_s1 + $0x10] sm:$0xff] }
   0x2   :  { %v323_v3 = vpack.c.bf16 %v31_v1, %v30_v0  ;;  %v33_v4 = vld [vmem:[%s538_s1 + $0x18] sm:$0xff]  ;;  %v34_v6 = vld [vmem:[%s538_s1 + $0x20] sm:$0xff]  ;;  %v35_v7 = vld [vmem:[%s538_s1 + $0x28] sm:$0xff] }
   0x3   :  { %v327_v5 = vpack.c.bf16 %v33_v4, %v32_v2  ;;  %v331_v8 = vpack.c.bf16 %v35_v7, %v34_v6  ;;  %v14_v9 = vld [vmem:[%s539_s0] sm:$0xff]  ;;  %v36_v11 = vld [vmem:[%s538_s1 + $0x30] sm:$0xff]  ;;  %v37_v12 = vld [vmem:[%s538_s1 + $0x38] sm:$0xff] }
   0x4   :  { %324 = vmatprep.subr.bf16.mxu0 %v323_v3  ;;  %355 = vmatprep.subr.bf16.mxu1 %v323_v3  ;;  %v22_v10 = vld [vmem:[%s539_s0 + $0x40] sm:$0xff]  ;;  %v335_v13 = vpack.c.bf16 %v37_v12, %v36_v11  ;;  %v39_v15 = vld [vmem:[%s538_s1 + $0x48] sm:$0xff]  ;;  %v40_v17 = vld [vmem:[%s538_s1 + $0x50] sm:$0xff] }
   0x5   :  { %326 = vmatpush3.bf16.msra.mxu0 %v323_v3  ;;  %363 = vmatpush3.bf16.msra.mxu1 %v323_v3  ;;  %v38_v14 = vld [vmem:[%s538_s1 + $0x40] sm:$0xff]  ;;  %v41_v18 = vld [vmem:[%s538_s1 + $0x58] sm:$0xff]  ;;  %v43_v21 = vld [vmem:[%s538_s1 + $0x68] sm:$0xff] }
   0x6   :  { %328 = vmatprep.subr.bf16.mxu0 %v327_v5  ;;  %356 = vmatprep.subr.bf16.mxu1 %v327_v5  ;;  %v339_v16 = vpack.c.bf16 %v39_v15, %v38_v14  ;;  %v343_v19 = vpack.c.bf16 %v41_v18, %v40_v17  ;;  %v42_v20 = vld [vmem:[%s538_s1 + $0x60] sm:$0xff]  ;;  %v44_v23 = vld [vmem:[%s538_s1 + $0x70] sm:$0xff]  ;;  %v45_v24 = vld [vmem:[%s538_s1 + $0x78] sm:$0xff] }
   0x7   :  { %299 = vmatprep.mubr.f32.mxu0 %v14_v9  ;;  %311 = vmatprep.mubr.f32.mxu1 %v22_v10  ;;  %v347_v22 = vpack.c.bf16 %v43_v21, %v42_v20  ;;  %v351_v25 = vpack.c.bf16 %v45_v24, %v44_v23  ;;  %v15_v26 = vld [vmem:[%s539_s0 + $0x8] sm:$0xff]  ;;  %v16_v28 = vld [vmem:[%s539_s0 + $0x10] sm:$0xff]  ;;  %v17_v30 = vld [vmem:[%s539_s0 + $0x18] sm:$0xff] }
   0x8   :  { %v23_v27 = vld [vmem:[%s539_s0 + $0x48] sm:$0xff]  ;;  %v24_v29 = vld [vmem:[%s539_s0 + $0x50] sm:$0xff]  ;;  %v25_v31 = vld [vmem:[%s539_s0 + $0x58] sm:$0xff] }
   0x9   :  { %330 = vmatpush3.bf16.msra.mxu0 %v327_v5  ;;  %364 = vmatpush3.bf16.msra.mxu1 %v327_v5  ;;  %v18_v32 = vld [vmem:[%s539_s0 + $0x20] sm:$0xff]  ;;  %v19_v34 = vld [vmem:[%s539_s0 + $0x28] sm:$0xff]  ;;  %v20_v36 = vld [vmem:[%s539_s0 + $0x30] sm:$0xff] }
   0xa   :  { %332 = vmatprep.subr.bf16.mxu0 %v331_v8  ;;  %357 = vmatprep.subr.bf16.mxu1 %v331_v8  ;;  %v26_v33 = vld [vmem:[%s539_s0 + $0x60] sm:$0xff]  ;;  %v27_v35 = vld [vmem:[%s539_s0 + $0x68] sm:$0xff]  ;;  %v28_v37 = vld [vmem:[%s539_s0 + $0x70] sm:$0xff] }
   0xb   :  { %v21_v38 = vld [vmem:[%s539_s0 + $0x38] sm:$0xff]  ;;  %v234_v40 = vld [vmem:[%s540_s2] ss:$0 sm:$0xff] }
   0xc   :  { %v29_v39 = vld [vmem:[%s539_s0 + $0x78] sm:$0xff] }
   0xd   :  { %334 = vmatpush3.bf16.msra.mxu0 %v331_v8  ;;  %365 = vmatpush3.bf16.msra.mxu1 %v331_v8 }
   0xe   :  { %336 = vmatprep.subr.bf16.mxu0 %v335_v13  ;;  %358 = vmatprep.subr.bf16.mxu1 %v335_v13 }
  0x11   :  { %338 = vmatpush3.bf16.msra.mxu0 %v335_v13  ;;  %366 = vmatpush3.bf16.msra.mxu1 %v335_v13 }
  0x12   :  { %340 = vmatprep.subr.bf16.mxu0 %v339_v16  ;;  %359 = vmatprep.subr.bf16.mxu1 %v339_v16 }
  0x15   :  { %342 = vmatpush3.bf16.msra.mxu0 %v339_v16  ;;  %367 = vmatpush3.bf16.msra.mxu1 %v339_v16 }
  0x16   :  { %344 = vmatprep.subr.bf16.mxu0 %v343_v19  ;;  %360 = vmatprep.subr.bf16.mxu1 %v343_v19 }
  0x19   :  { %346 = vmatpush3.bf16.msra.mxu0 %v343_v19  ;;  %368 = vmatpush3.bf16.msra.mxu1 %v343_v19 }
  0x1a   :  { %348 = vmatprep.subr.bf16.mxu0 %v347_v22  ;;  %361 = vmatprep.subr.bf16.mxu1 %v347_v22 }
  0x1d   :  { %350 = vmatpush3.bf16.msra.mxu0 %v347_v22  ;;  %369 = vmatpush3.bf16.msra.mxu1 %v347_v22 }
  0x1e   :  { %352 = vmatprep.subr.bf16.mxu0 %v351_v25  ;;  %362 = vmatprep.subr.bf16.mxu1 %v351_v25 }
  0x21   :  { %354 = vmatpush3.bf16.msra.mxu0 %v351_v25  ;;  %370 = vmatpush3.bf16.msra.mxu1 %v351_v25 }
  0x24   :  { %300 = vmatmul.mubr.f32.vlgmr.msra.gmra.mrb[0].mxu0 %v15_v26  ;;  %312 = vmatmul.mubr.f32.vlgmr.msra.gmra.mrb[0].mxu1 %v23_v27 }
  0x25   :  { %302 = vmatprep.mubr.f32.mxu0 %v16_v28  ;;  %314 = vmatprep.mubr.f32.mxu1 %v24_v29 }
  0x28   :  { %303 = vmatmul.mubr.f32.gmra.mrb[2].mxu0 %v17_v30  ;;  %315 = vmatmul.mubr.f32.gmra.mrb[2].mxu1 %v25_v31 }
  0x29   :  { %305 = vmatprep.mubr.f32.mxu0 %v18_v32  ;;  %317 = vmatprep.mubr.f32.mxu1 %v26_v33 }
  0x2c   :  { %306 = vmatmul.mubr.f32.gmra.mrb[4].mxu0 %v19_v34  ;;  %318 = vmatmul.mubr.f32.gmra.mrb[4].mxu1 %v27_v35 }
  0x2d   :  { %308 = vmatprep.mubr.f32.mxu0 %v20_v36  ;;  %320 = vmatprep.mubr.f32.mxu1 %v28_v37 }
  0x30   :  { %309 = vmatmul.mubr.f32.gmra.mrb[6].mxu0 %v21_v38  ;;  %321 = vmatmul.mubr.f32.gmra.mrb[6].mxu1 %v29_v39 }
  0xf7   :  { %v301_v41 = vpop.f32.mrb[0].mxu0  ;;  %v313_v42 = vpop.f32.mrb[0].mxu1 }
  0xf8   :  { %v125_v43 = vadd.f32 %v301_v41, %v234_v40  ;;  %v165_v44 = vadd.f32 %v313_v42, %v234_v40  ;;  %v119_v45 = vpop.f32.mrb[1].mxu0  ;;  %v159_v46 = vpop.f32.mrb[1].mxu1 }
  0xf9   :  { %v120_v47 = vadd.f32 %v234_v40, %v119_v45  ;;  %v160_v48 = vadd.f32 %v234_v40, %v159_v46 }
  0xfa   :  { %v199_v49 = vmax.f32 %v125_v43, 0.0  ;;  %v207_v50 = vmax.f32 %v165_v44, 0.0 }
  0xfb   :  { %v198_v51 = vmax.f32 %v120_v47, 0.0  ;;  %v206_v52 = vmax.f32 %v160_v48, 0.0  ;;  %v304_v53 = vpop.f32.mrb[2].mxu0  ;;  %v316_v54 = vpop.f32.mrb[2].mxu1 }
  0xfc   :  { %215 = vst [vmem:[%s541_s3 + $0x8] sm:$0xff] %v199_v49  ;;  %223 = vst [vmem:[%s541_s3 + $0x48] sm:$0xff] %v207_v50  ;;  %v135_v55 = vadd.f32 %v304_v53, %v234_v40  ;;  %v175_v56 = vadd.f32 %v316_v54, %v234_v40  ;;  %v129_v57 = vpop.f32.mrb[3].mxu0  ;;  %v169_v58 = vpop.f32.mrb[3].mxu1 }
  0xfd   :  { %214 = vst [vmem:[%s541_s3] sm:$0xff] %v198_v51  ;;  %222 = vst [vmem:[%s541_s3 + $0x40] sm:$0xff] %v206_v52  ;;  %v130_v59 = vadd.f32 %v234_v40, %v129_v57  ;;  %v170_v60 = vadd.f32 %v234_v40, %v169_v58 }
  0xfe   :  { %v201_v61 = vmax.f32 %v135_v55, 0.0  ;;  %v209_v62 = vmax.f32 %v175_v56, 0.0 }
  0xff   :  { %v200_v63 = vmax.f32 %v130_v59, 0.0  ;;  %v208_v0 = vmax.f32 %v170_v60, 0.0  ;;  %v307_v1 = vpop.f32.mrb[4].mxu0  ;;  %v319_v2 = vpop.f32.mrb[4].mxu1 }
 0x100   :  { %217 = vst [vmem:[%s541_s3 + $0x18] sm:$0xff] %v201_v61  ;;  %225 = vst [vmem:[%s541_s3 + $0x58] sm:$0xff] %v209_v62  ;;  %v145_v3 = vadd.f32 %v307_v1, %v234_v40  ;;  %v185_v4 = vadd.f32 %v319_v2, %v234_v40  ;;  %v139_v5 = vpop.f32.mrb[5].mxu0  ;;  %v179_v6 = vpop.f32.mrb[5].mxu1 }
 0x101   :  { %216 = vst [vmem:[%s541_s3 + $0x10] sm:$0xff] %v200_v63  ;;  %224 = vst [vmem:[%s541_s3 + $0x50] sm:$0xff] %v208_v0  ;;  %v140_v7 = vadd.f32 %v234_v40, %v139_v5  ;;  %v180_v8 = vadd.f32 %v234_v40, %v179_v6 }
 0x102   :  { %v203_v9 = vmax.f32 %v145_v3, 0.0  ;;  %v211_v10 = vmax.f32 %v185_v4, 0.0 }
 0x103   :  { %v202_v11 = vmax.f32 %v140_v7, 0.0  ;;  %v210_v12 = vmax.f32 %v180_v8, 0.0  ;;  %v310_v13 = vpop.f32.mrb[6].mxu0  ;;  %v322_v14 = vpop.f32.mrb[6].mxu1 }
 0x104   :  { %219 = vst [vmem:[%s541_s3 + $0x28] sm:$0xff] %v203_v9  ;;  %227 = vst [vmem:[%s541_s3 + $0x68] sm:$0xff] %v211_v10  ;;  %v155_v15 = vadd.f32 %v310_v13, %v234_v40  ;;  %v195_v16 = vadd.f32 %v322_v14, %v234_v40  ;;  %v149_v17 = vpop.f32.mrb[7].mxu0  ;;  %v189_v18 = vpop.f32.mrb[7].mxu1 }
 0x105   :  { %218 = vst [vmem:[%s541_s3 + $0x20] sm:$0xff] %v202_v11  ;;  %226 = vst [vmem:[%s541_s3 + $0x60] sm:$0xff] %v210_v12  ;;  %v150_v19 = vadd.f32 %v234_v40, %v149_v17  ;;  %v190_v20 = vadd.f32 %v234_v40, %v189_v18 }
 0x106   :  { %v205_v21 = vmax.f32 %v155_v15, 0.0  ;;  %v213_v22 = vmax.f32 %v195_v16, 0.0 }
 0x107   :  { %v204_v23 = vmax.f32 %v150_v19, 0.0  ;;  %v212_v24 = vmax.f32 %v190_v20, 0.0 }
 0x108   :  { %221 = vst [vmem:[%s541_s3 + $0x38] sm:$0xff] %v205_v21  ;;  %229 = vst [vmem:[%s541_s3 + $0x78] sm:$0xff] %v213_v22 }
 0x109   :  { %220 = vst [vmem:[%s541_s3 + $0x30] sm:$0xff] %v204_v23  ;;  %228 = vst [vmem:[%s541_s3 + $0x70] sm:$0xff] %v212_v24 }

// kernel: autoencoder_forward.7
= control target key start
LH: loop header
LB: loop body
LE: loop exit
PB: predicated region body
PF: predicated region fallthrough
CT: control target
= control target key end

     0   :  { %s1239_s12 = smov 0   ;;  %s1241_s13 = smov 0   ;;  %s1447_s0 = inlined_call_operand.vmem [shape: f32[4,32,1024], index: 0, kind: input, shape index: {}]   ;;  %s1448_s1 = inlined_call_operand.vmem [shape: f32[4,1024,128], index: 1, kind: input, shape index: {}]   ;;  %s1449_s2 = inlined_call_operand.vmem [shape: f32[1,128], index: 2, kind: input, shape index: {}]   ;;  %s1450_s3 = inlined_call_operand.vmem [shape: f32[4,32,128], index: 3, kind: output, shape index: {}]  }
   0x1   :  { %s1243_s14 = smov 0  }
   0x2 LB: > { %s25_s15 = sadd.s32 1, %s1213_s13  ;;  %p854_p0 = scmp.ge.s32.totalorder %s1217_s14, 1  ;;  %s1217_s14 = sphi %s1243_s14, %s13_s14   ;;  %s1213_s13 = sphi %s1241_s13, %s1452_s13   ;;  %s1209_s12 = sphi %s1239_s12, %s1451_s12  }
   0x3   : > { %p27_p1 = scmp.ge.s32.totalorder %s25_s15, 4  ;;  %p169_p2 = scmp.lt.s32.totalorder %s1217_s14, 5 }
   0x5   : > { %s1454_s15 = smov (%p27_p1, %s25_s15), 0  ;;  %p170_p3 = pnand %p854_p0, %p169_p2 }
   0x6   : > { %p208_p4 = scmp.lt.s32.totalorder (!%p170_p3), %s1209_s12, 3 }
   0x7   : > { %173 = sbr.rel (%p170_p3) target bundleno = 318 (0x13e), region = 32 }
   0xe   : > { %s1456_s12 = smov (!%p208_p4, %s1209_s12), 3 }
   0xf   : > { %s865_s16 = sshll.u32 %s1456_s12, 10  ;;  %s864_s20 = sshll.u32 %s1456_s12, 8 }
  0x10   : > { %s1263_s19 = scalar_lea.vmem %s1448_s1, %s865_s16  ;;  %s1319_s23 = scalar_lea.vmem %s1447_s0, %s864_s20 }
  0x11   : > { %v281_v0 = vld [vmem:[%s1263_s19 + $0x80] sm:$0xff]  ;;  %v282_v1 = vld [vmem:[%s1263_s19 + $0x88] sm:$0xff]  ;;  %v283_v11 = vld [vmem:[%s1263_s19 + $0x90] sm:$0xff]  ;;  %s866_s26 = sshll.u32 %s1456_s12, 5 }
  0x12   : > { %v265_v2 = vld [vmem:[%s1263_s19] sm:$0xff]  ;;  %v1043_v3 = vpack.c.bf16 %v282_v1, %v281_v0  ;;  %v266_v4 = vld [vmem:[%s1263_s19 + $0x8] sm:$0xff]  ;;  %v284_v13 = vld [vmem:[%s1263_s19 + $0x98] sm:$0xff]  ;;  %s231_s29 = scalar_lea.vmem %s1450_s3, %s866_s26 }
  0x13   : > { %v313_v5 = vld [vmem:[%s1263_s19 + $0x180] sm:$0xff]  ;;  %v314_v6 = vld [vmem:[%s1263_s19 + $0x188] sm:$0xff]  ;;  %v1045_v7 = vpack.c.bf16 %v266_v4, %v265_v2  ;;  %v267_v14 = vld [vmem:[%s1263_s19 + $0x10] sm:$0xff]  ;;  %v1047_v16 = vpack.c.bf16 %v284_v13, %v283_v11 }
  0x14   : > { %v1075_v8 = vpack.c.bf16 %v314_v6, %v313_v5  ;;  %v297_v9 = vld [vmem:[%s1263_s19 + $0x100] sm:$0xff]  ;;  %v298_v10 = vld [vmem:[%s1263_s19 + $0x108] sm:$0xff]  ;;  %1044 = vmatprep.subr.bf16.mxu0 %v1043_v3  ;;  %v268_v15 = vld [vmem:[%s1263_s19 + $0x18] sm:$0xff] }
  0x15   : > { %v1077_v12 = vpack.c.bf16 %v298_v10, %v297_v9  ;;  %1046 = vmatpush3.bf16.msra.mxu0 %v1045_v7  ;;  %v1049_v17 = vpack.c.bf16 %v268_v15, %v267_v14  ;;  %v315_v18 = vld [vmem:[%s1263_s19 + $0x190] sm:$0xff]  ;;  %v316_v19 = vld [vmem:[%s1263_s19 + $0x198] sm:$0xff]  ;;  %v285_v23 = vld [vmem:[%s1263_s19 + $0xa0] sm:$0xff] }
  0x16   : > { %1076 = vmatprep.subr.bf16.mxu1 %v1075_v8  ;;  %v299_v20 = vld [vmem:[%s1263_s19 + $0x110] sm:$0xff]  ;;  %v1079_v21 = vpack.c.bf16 %v316_v19, %v315_v18  ;;  %v300_v22 = vld [vmem:[%s1263_s19 + $0x118] sm:$0xff]  ;;  %v286_v24 = vld [vmem:[%s1263_s19 + $0xa8] sm:$0xff]  ;;  %1048 = vmatprep.subr.bf16.mxu0 %v1047_v16 }
  0x17   : > { %1078 = vmatpush3.bf16.msra.mxu1 %v1077_v12  ;;  %v1081_v25 = vpack.c.bf16 %v300_v22, %v299_v20  ;;  %v1051_v26 = vpack.c.bf16 %v286_v24, %v285_v23  ;;  %v269_v27 = vld [vmem:[%s1263_s19 + $0x20] sm:$0xff]  ;;  %v270_v28 = vld [vmem:[%s1263_s19 + $0x28] sm:$0xff]  ;;  %v287_v35 = vld [vmem:[%s1263_s19 + $0xb0] sm:$0xff] }
  0x18   : > { %v317_v29 = vld [vmem:[%s1263_s19 + $0x1a0] sm:$0xff]  ;;  %1080 = vmatprep.subr.bf16.mxu1 %v1079_v21  ;;  %v318_v30 = vld [vmem:[%s1263_s19 + $0x1a8] sm:$0xff]  ;;  %v1053_v33 = vpack.c.bf16 %v270_v28, %v269_v27  ;;  %v288_v36 = vld [vmem:[%s1263_s19 + $0xb8] sm:$0xff] }
  0x19   : > { %v301_v31 = vld [vmem:[%s1263_s19 + $0x120] sm:$0xff]  ;;  %v302_v32 = vld [vmem:[%s1263_s19 + $0x128] sm:$0xff]  ;;  %1050 = vmatpush3.bf16.msra.mxu0 %v1049_v17  ;;  %v1083_v34 = vpack.c.bf16 %v318_v30, %v317_v29  ;;  %v271_v37 = vld [vmem:[%s1263_s19 + $0x30] sm:$0xff]  ;;  %v1055_v39 = vpack.c.bf16 %v288_v36, %v287_v35 }
  0x1a   : > { %1052 = vmatprep.subr.bf16.mxu0 %v1051_v26  ;;  %v1085_v38 = vpack.c.bf16 %v302_v32, %v301_v31  ;;  %v272_v40 = vld [vmem:[%s1263_s19 + $0x38] sm:$0xff]  ;;  %v319_v41 = vld [vmem:[%s1263_s19 + $0x1b0] sm:$0xff]  ;;  %v289_v46 = vld [vmem:[%s1263_s19 + $0xc0] sm:$0xff] }
  0x1b   : > { %1082 = vmatpush3.bf16.msra.mxu1 %v1081_v25  ;;  %v320_v42 = vld [vmem:[%s1263_s19 + $0x1b8] sm:$0xff]  ;;  %v303_v44 = vld [vmem:[%s1263_s19 + $0x130] sm:$0xff]  ;;  %v290_v47 = vld [vmem:[%s1263_s19 + $0xc8] sm:$0xff]  ;;  %v1057_v48 = vpack.c.bf16 %v272_v40, %v271_v37 }
  0x1c   : > { %1084 = vmatprep.subr.bf16.mxu1 %v1083_v34  ;;  %v1087_v43 = vpack.c.bf16 %v320_v42, %v319_v41  ;;  %v304_v45 = vld [vmem:[%s1263_s19 + $0x138] sm:$0xff]  ;;  %v321_v49 = vld [vmem:[%s1263_s19 + $0x1c0] sm:$0xff]  ;;  %v322_v50 = vld [vmem:[%s1263_s19 + $0x1c8] sm:$0xff]  ;;  %v1059_v52 = vpack.c.bf16 %v290_v47, %v289_v46 }
  0x1d   : > { %1054 = vmatpush3.bf16.msra.mxu0 %v1053_v33  ;;  %v1089_v51 = vpack.c.bf16 %v304_v45, %v303_v44  ;;  %v273_v53 = vld [vmem:[%s1263_s19 + $0x40] sm:$0xff]  ;;  %v274_v54 = vld [vmem:[%s1263_s19 + $0x48] sm:$0xff]  ;;  %v1091_v56 = vpack.c.bf16 %v322_v50, %v321_v49  ;;  %v291_v58 = vld [vmem:[%s1263_s19 + $0xd0] sm:$0xff] }
  0x1e   : > { %1056 = vmatprep.subr.bf16.mxu0 %v1055_v39  ;;  %v305_v55 = vld [vmem:[%s1263_s19 + $0x140] sm:$0xff]  ;;  %v306_v57 = vld [vmem:[%s1263_s19 + $0x148] sm:$0xff]  ;;  %v292_v59 = vld [vmem:[%s1263_s19 + $0xd8] sm:$0xff]  ;;  %v1061_v62 = vpack.c.bf16 %v274_v54, %v273_v53 }
  0x1f   : > { %1086 = vmatpush3.bf16.msra.mxu1 %v1085_v38  ;;  %v323_v60 = vld [vmem:[%s1263_s19 + $0x1d0] sm:$0xff]  ;;  %v324_v61 = vld [vmem:[%s1263_s19 + $0x1d8] sm:$0xff]  ;;  %v1093_v63 = vpack.c.bf16 %v306_v57, %v305_v55  ;;  %v1063_v0 = vpack.c.bf16 %v292_v59, %v291_v58  ;;  %v293_v6 = vld [vmem:[%s1263_s19 + $0xe0] sm:$0xff] }
  0x20   : > { %1088 = vmatprep.subr.bf16.mxu1 %v1087_v43  ;;  %v275_v1 = vld [vmem:[%s1263_s19 + $0x50] sm:$0xff]  ;;  %v276_v2 = vld [vmem:[%s1263_s19 + $0x58] sm:$0xff]  ;;  %v1095_v4 = vpack.c.bf16 %v324_v61, %v323_v60  ;;  %v294_v7 = vld [vmem:[%s1263_s19 + $0xe8] sm:$0xff] }
  0x21   : > { %1058 = vmatpush3.bf16.msra.mxu0 %v1057_v48  ;;  %v307_v3 = vld [vmem:[%s1263_s19 + $0x150] sm:$0xff]  ;;  %v308_v5 = vld [vmem:[%s1263_s19 + $0x158] sm:$0xff]  ;;  %v325_v8 = vld [vmem:[%s1263_s19 + $0x1e0] sm:$0xff]  ;;  %v1065_v10 = vpack.c.bf16 %v276_v2, %v275_v1  ;;  %v1067_v14 = vpack.c.bf16 %v294_v7, %v293_v6 }
  0x22   : > { %1060 = vmatprep.subr.bf16.mxu0 %v1059_v52  ;;  %v326_v9 = vld [vmem:[%s1263_s19 + $0x1e8] sm:$0xff]  ;;  %v277_v11 = vld [vmem:[%s1263_s19 + $0x60] sm:$0xff]  ;;  %v1097_v13 = vpack.c.bf16 %v308_v5, %v307_v3  ;;  %v295_v19 = vld [vmem:[%s1263_s19 + $0xf0] sm:$0xff] }
  0x23   : > { %1090 = vmatpush3.bf16.msra.mxu1 %v1089_v51  ;;  %v278_v12 = vld [vmem:[%s1263_s19 + $0x68] sm:$0xff]  ;;  %v309_v15 = vld [vmem:[%s1263_s19 + $0x160] sm:$0xff]  ;;  %v1099_v18 = vpack.c.bf16 %v326_v9, %v325_v8  ;;  %v296_v20 = vld [vmem:[%s1263_s19 + $0xf8] sm:$0xff] }
  0x24   : > { %1092 = vmatprep.subr.bf16.mxu1 %v1091_v56  ;;  %v310_v16 = vld [vmem:[%s1263_s19 + $0x168] sm:$0xff]  ;;  %v236_v21 = vld [vmem:[%s1319_s23 + $0x18] sm:$0xff]  ;;  %v327_v22 = vld [vmem:[%s1263_s19 + $0x1f0] sm:$0xff]  ;;  %v1069_v24 = vpack.c.bf16 %v278_v12, %v277_v11  ;;  %v1071_v26 = vpack.c.bf16 %v296_v20, %v295_v19 }
  0x25   : > { %1062 = vmatpush3.bf16.msra.mxu0 %v1061_v62  ;;  %v234_v17 = vld [vmem:[%s1319_s23 + $0x8] sm:$0xff]  ;;  %v328_v23 = vld [vmem:[%s1263_s19 + $0x1f8] sm:$0xff]  ;;  %549 = vmatprep.mubr.f32.mxu1 %v236_v21  ;;  %v1101_v25 = vpack.c.bf16 %v310_v16, %v309_v15  ;;  %v279_v27 = vld [vmem:[%s1263_s19 + $0x70] sm:$0xff] }
  0x26   : > { %1064 = vmatprep.subr.bf16.mxu0 %v1063_v0  ;;  %464 = vmatprep.mubr.f32.mxu0 %v234_v17  ;;  %v280_v28 = vld [vmem:[%s1263_s19 + $0x78] sm:$0xff]  ;;  %v311_v29 = vld [vmem:[%s1263_s19 + $0x170] sm:$0xff]  ;;  %v1103_v30 = vpack.c.bf16 %v328_v23, %v327_v22  ;;  %v345_v32 = vld [vmem:[%s1263_s19 + $0x280] sm:$0xff] }
  0x27   : > { %1094 = vmatpush3.bf16.msra.mxu1 %v1093_v63  ;;  %v312_v31 = vld [vmem:[%s1263_s19 + $0x178] sm:$0xff]  ;;  %v346_v33 = vld [vmem:[%s1263_s19 + $0x288] sm:$0xff]  ;;  %v377_v34 = vld [vmem:[%s1263_s19 + $0x380] sm:$0xff]  ;;  %v1073_v36 = vpack.c.bf16 %v280_v28, %v279_v27 }
  0x28   : > { %1096 = vmatprep.subr.bf16.mxu1 %v1095_v4  ;;  %v378_v35 = vld [vmem:[%s1263_s19 + $0x388] sm:$0xff]  ;;  %v1105_v37 = vpack.c.bf16 %v312_v31, %v311_v29  ;;  %v1107_v38 = vpack.c.bf16 %v346_v33, %v345_v32  ;;  %v329_v39 = vld [vmem:[%s1263_s19 + $0x200] sm:$0xff]  ;;  %v347_v44 = vld [vmem:[%s1263_s19 + $0x290] sm:$0xff] }
  0x29   : > { %1066 = vmatpush3.bf16.msra.mxu0 %v1065_v10  ;;  %v330_v40 = vld [vmem:[%s1263_s19 + $0x208] sm:$0xff]  ;;  %v361_v41 = vld [vmem:[%s1263_s19 + $0x300] sm:$0xff]  ;;  %v1139_v42 = vpack.c.bf16 %v378_v35, %v377_v34  ;;  %v348_v45 = vld [vmem:[%s1263_s19 + $0x298] sm:$0xff] }
  0x2a   : > { %1068 = vmatprep.subr.bf16.mxu0 %v1067_v14  ;;  %v362_v43 = vld [vmem:[%s1263_s19 + $0x308] sm:$0xff]  ;;  %v379_v46 = vld [vmem:[%s1263_s19 + $0x390] sm:$0xff]  ;;  %v380_v47 = vld [vmem:[%s1263_s19 + $0x398] sm:$0xff]  ;;  %v1109_v49 = vpack.c.bf16 %v330_v40, %v329_v39  ;;  %v1111_v52 = vpack.c.bf16 %v348_v45, %v347_v44 }
  0x2b   : > { %1098 = vmatpush3.bf16.msra.mxu1 %v1097_v13  ;;  %v233_v48 = vld [vmem:[%s1319_s23] sm:$0xff]  ;;  %v235_v50 = vld [vmem:[%s1319_s23 + $0x10] sm:$0xff]  ;;  %v1141_v51 = vpack.c.bf16 %v362_v43, %v361_v41  ;;  %v332_v54 = vld [vmem:[%s1263_s19 + $0x218] sm:$0xff]  ;;  %v1143_v56 = vpack.c.bf16 %v380_v47, %v379_v46 }
  0x2c   : > { %1100 = vmatprep.subr.bf16.mxu1 %v1099_v18  ;;  %v331_v53 = vld [vmem:[%s1263_s19 + $0x210] sm:$0xff]  ;;  %v364_v57 = vld [vmem:[%s1263_s19 + $0x318] sm:$0xff]  ;;  %v349_v58 = vld [vmem:[%s1263_s19 + $0x2a0] sm:$0xff] }
  0x2d   : > { %1070 = vmatpush3.bf16.msra.mxu0 %v1069_v24  ;;  %v363_v55 = vld [vmem:[%s1263_s19 + $0x310] sm:$0xff]  ;;  %v350_v59 = vld [vmem:[%s1263_s19 + $0x2a8] sm:$0xff]  ;;  %v381_v60 = vld [vmem:[%s1263_s19 + $0x3a0] sm:$0xff]  ;;  %v1113_v63 = vpack.c.bf16 %v332_v54, %v331_v53 }
  0x2e   : > { %1072 = vmatprep.subr.bf16.mxu0 %v1071_v26  ;;  %v382_v61 = vld [vmem:[%s1263_s19 + $0x3a8] sm:$0xff]  ;;  %v333_v0 = vld [vmem:[%s1263_s19 + $0x220] sm:$0xff]  ;;  %v244_v2 = vld [vmem:[%s1319_s23 + $0x58] sm:$0xff]  ;;  %v1145_v3 = vpack.c.bf16 %v364_v57, %v363_v55  ;;  %v1115_v4 = vpack.c.bf16 %v350_v59, %v349_v58 }
  0x2f   : > { %1102 = vmatpush3.bf16.msra.mxu1 %v1101_v25  ;;  %v242_v62 = vld [vmem:[%s1319_s23 + $0x48] sm:$0xff]  ;;  %v241_v1 = vld [vmem:[%s1319_s23 + $0x40] sm:$0xff]  ;;  %v243_v7 = vld [vmem:[%s1319_s23 + $0x50] sm:$0xff]  ;;  %v1147_v8 = vpack.c.bf16 %v382_v61, %v381_v60 }
  0x30   : > { %1104 = vmatprep.subr.bf16.mxu1 %v1103_v30  ;;  %v334_v5 = vld [vmem:[%s1263_s19 + $0x228] sm:$0xff]  ;;  %v365_v6 = vld [vmem:[%s1263_s19 + $0x320] sm:$0xff]  ;;  %v351_v10 = vld [vmem:[%s1263_s19 + $0x2b0] sm:$0xff] }
  0x31   : > { %1074 = vmatpush3.bf16.msra.mxu0 %v1073_v36  ;;  %v366_v9 = vld [vmem:[%s1263_s19 + $0x328] sm:$0xff]  ;;  %v352_v11 = vld [vmem:[%s1263_s19 + $0x2b8] sm:$0xff]  ;;  %v383_v12 = vld [vmem:[%s1263_s19 + $0x3b0] sm:$0xff]  ;;  %v1117_v15 = vpack.c.bf16 %v334_v5, %v333_v0 }
  0x32   : > { %1108 = vmatprep.subr.bf16.mxu0 %v1107_v38  ;;  %v384_v13 = vld [vmem:[%s1263_s19 + $0x3b8] sm:$0xff]  ;;  %v250_v14 = vld [vmem:[%s1319_s23 + $0x88] sm:$0xff]  ;;  %v335_v16 = vld [vmem:[%s1263_s19 + $0x230] sm:$0xff]  ;;  %v1149_v19 = vpack.c.bf16 %v366_v9, %v365_v6  ;;  %v1119_v20 = vpack.c.bf16 %v352_v11, %v351_v10 }
  0x33   : > { %1106 = vmatpush3.bf16.msra.mxu1 %v1105_v37  ;;  %v249_v17 = vld [vmem:[%s1319_s23 + $0x80] sm:$0xff]  ;;  %v252_v18 = vld [vmem:[%s1319_s23 + $0x98] sm:$0xff]  ;;  %v367_v22 = vld [vmem:[%s1263_s19 + $0x330] sm:$0xff]  ;;  %v1151_v24 = vpack.c.bf16 %v384_v13, %v383_v12 }
  0x34   : > { %1140 = vmatprep.subr.bf16.mxu1 %v1139_v42  ;;  %465 = vmatmul.mubr.f32.vlgmr.msra.gmra.mrb[0].mxu0 %v233_v48  ;;  %v336_v21 = vld [vmem:[%s1263_s19 + $0x238] sm:$0xff]  ;;  %v251_v23 = vld [vmem:[%s1319_s23 + $0x90] sm:$0xff]  ;;  %v353_v26 = vld [vmem:[%s1263_s19 + $0x2c0] sm:$0xff] }
  0x35   : > { %1110 = vmatpush3.bf16.msra.mxu0 %v1109_v49  ;;  %469 = vmatprep.mubr.f32.mxu0 %v242_v62  ;;  %v368_v25 = vld [vmem:[%s1263_s19 + $0x338] sm:$0xff]  ;;  %v354_v27 = vld [vmem:[%s1263_s19 + $0x2c8] sm:$0xff]  ;;  %v385_v28 = vld [vmem:[%s1263_s19 + $0x3c0] sm:$0xff]  ;;  %v1121_v31 = vpack.c.bf16 %v336_v21, %v335_v16 }
  0x36   : > { %550 = vmatmul.mubr.f32.vlgmr.msra.gmra.mrb[0].mxu1 %v235_v50  ;;  %1112 = vmatprep.subr.bf16.mxu0 %v1111_v52  ;;  %v386_v29 = vld [vmem:[%s1263_s19 + $0x3c8] sm:$0xff]  ;;  %v337_v32 = vld [vmem:[%s1263_s19 + $0x240] sm:$0xff]  ;;  %v260_v34 = vld [vmem:[%s1319_s23 + $0xd8] sm:$0xff]  ;;  %v1153_v35 = vpack.c.bf16 %v368_v25, %v367_v22  ;;  %v1123_v36 = vpack.c.bf16 %v354_v27, %v353_v26 }
  0x37   : > { %1142 = vmatpush3.bf16.msra.mxu1 %v1141_v51  ;;  %554 = vmatprep.mubr.f32.mxu1 %v244_v2  ;;  %v258_v30 = vld [vmem:[%s1319_s23 + $0xc8] sm:$0xff]  ;;  %v257_v33 = vld [vmem:[%s1319_s23 + $0xc0] sm:$0xff]  ;;  %v259_v39 = vld [vmem:[%s1319_s23 + $0xd0] sm:$0xff]  ;;  %v1155_v40 = vpack.c.bf16 %v386_v29, %v385_v28 }
  0x38   : > { %1144 = vmatprep.subr.bf16.mxu1 %v1143_v56  ;;  %470 = vmatmul.mubr.f32.gmra.mrb[2].mxu0 %v241_v1  ;;  %v338_v37 = vld [vmem:[%s1263_s19 + $0x248] sm:$0xff]  ;;  %v369_v38 = vld [vmem:[%s1263_s19 + $0x340] sm:$0xff]  ;;  %v355_v42 = vld [vmem:[%s1263_s19 + $0x2d0] sm:$0xff] }
  0x39   : > { %1114 = vmatpush3.bf16.msra.mxu0 %v1113_v63  ;;  %474 = vmatprep.mubr.f32.mxu0 %v250_v14  ;;  %v370_v41 = vld [vmem:[%s1263_s19 + $0x348] sm:$0xff]  ;;  %v356_v43 = vld [vmem:[%s1263_s19 + $0x2d8] sm:$0xff]  ;;  %v387_v44 = vld [vmem:[%s1263_s19 + $0x3d0] sm:$0xff]  ;;  %v1125_v46 = vpack.c.bf16 %v338_v37, %v337_v32 }
  0x3a   : > { %555 = vmatmul.mubr.f32.gmra.mrb[2].mxu1 %v243_v7  ;;  %1116 = vmatprep.subr.bf16.mxu0 %v1115_v4  ;;  %v388_v45 = vld [vmem:[%s1263_s19 + $0x3d8] sm:$0xff]  ;;  %v238_v47 = vld [vmem:[%s1319_s23 + $0x28] sm:$0xff]  ;;  %v1157_v49 = vpack.c.bf16 %v370_v41, %v369_v38  ;;  %v1127_v50 = vpack.c.bf16 %v356_v43, %v355_v42  ;;  %v339_v51 = vld [vmem:[%s1263_s19 + $0x250] sm:$0xff] }
  0x3b   : > { %1146 = vmatpush3.bf16.msra.mxu1 %v1145_v3  ;;  %559 = vmatprep.mubr.f32.mxu1 %v252_v18  ;;  %v240_v48 = vld [vmem:[%s1319_s23 + $0x38] sm:$0xff]  ;;  %v371_v53 = vld [vmem:[%s1263_s19 + $0x350] sm:$0xff]  ;;  %v1159_v54 = vpack.c.bf16 %v388_v45, %v387_v44  ;;  %v357_v56 = vld [vmem:[%s1263_s19 + $0x2e0] sm:$0xff] }
  0x3c   : > { %1148 = vmatprep.subr.bf16.mxu1 %v1147_v8  ;;  %475 = vmatmul.mubr.f32.gmra.mrb[4].mxu0 %v249_v17  ;;  %v340_v52 = vld [vmem:[%s1263_s19 + $0x258] sm:$0xff]  ;;  %v358_v57 = vld [vmem:[%s1263_s19 + $0x2e8] sm:$0xff]  ;;  %v389_v58 = vld [vmem:[%s1263_s19 + $0x3e0] sm:$0xff] }
  0x3d   : > { %1118 = vmatpush3.bf16.msra.mxu0 %v1117_v15  ;;  %479 = vmatprep.mubr.f32.mxu0 %v258_v30  ;;  %v372_v55 = vld [vmem:[%s1263_s19 + $0x358] sm:$0xff]  ;;  %v390_v59 = vld [vmem:[%s1263_s19 + $0x3e8] sm:$0xff]  ;;  %v1129_v60 = vpack.c.bf16 %v340_v52, %v339_v51  ;;  %v1131_v62 = vpack.c.bf16 %v358_v57, %v357_v56  ;;  %v341_v63 = vld [vmem:[%s1263_s19 + $0x260] sm:$0xff] }
  0x3e   : > { %560 = vmatmul.mubr.f32.gmra.mrb[4].mxu1 %v251_v23  ;;  %1120 = vmatprep.subr.bf16.mxu0 %v1119_v20  ;;  %v1161_v61 = vpack.c.bf16 %v372_v55, %v371_v53  ;;  %v342_v0 = vld [vmem:[%s1263_s19 + $0x268] sm:$0xff]  ;;  %v373_v1 = vld [vmem:[%s1263_s19 + $0x360] sm:$0xff]  ;;  %v1163_v2 = vpack.c.bf16 %v390_v59, %v389_v58  ;;  %v359_v4 = vld [vmem:[%s1263_s19 + $0x2f0] sm:$0xff] }
  0x3f   : > { %1150 = vmatpush3.bf16.msra.mxu1 %v1149_v19  ;;  %564 = vmatprep.mubr.f32.mxu1 %v260_v34  ;;  %v374_v3 = vld [vmem:[%s1263_s19 + $0x368] sm:$0xff]  ;;  %v360_v5 = vld [vmem:[%s1263_s19 + $0x2f8] sm:$0xff]  ;;  %v391_v6 = vld [vmem:[%s1263_s19 + $0x3f0] sm:$0xff]  ;;  %v1133_v8 = vpack.c.bf16 %v342_v0, %v341_v63 }
  0x40   : > { %1152 = vmatprep.subr.bf16.mxu1 %v1151_v24  ;;  %480 = vmatmul.mubr.f32.gmra.mrb[6].mxu0 %v257_v33  ;;  %v392_v7 = vld [vmem:[%s1263_s19 + $0x3f8] sm:$0xff]  ;;  %v1165_v9 = vpack.c.bf16 %v374_v3, %v373_v1  ;;  %v1135_v10 = vpack.c.bf16 %v360_v5, %v359_v4  ;;  %v343_v11 = vld [vmem:[%s1263_s19 + $0x270] sm:$0xff]  ;;  %v237_v18 = vld [vmem:[%s1319_s23 + $0x20] sm:$0xff] }
  0x41   : > { %1122 = vmatpush3.bf16.msra.mxu0 %v1121_v31  ;;  %634 = vmatprep.mubr.f32.mxu0 %v238_v47  ;;  %v344_v12 = vld [vmem:[%s1263_s19 + $0x278] sm:$0xff]  ;;  %v1167_v13 = vpack.c.bf16 %v392_v7, %v391_v6  ;;  %v375_v14 = vld [vmem:[%s1263_s19 + $0x370] sm:$0xff]  ;;  %v246_v20 = vld [vmem:[%s1319_s23 + $0x68] sm:$0xff] }
  0x42   : > { %565 = vmatmul.mubr.f32.gmra.mrb[6].mxu1 %v259_v39  ;;  %1124 = vmatprep.subr.bf16.mxu0 %v1123_v36  ;;  %v376_v15 = vld [vmem:[%s1263_s19 + $0x378] sm:$0xff]  ;;  %v1137_v16 = vpack.c.bf16 %v344_v12, %v343_v11  ;;  %v239_v19 = vld [vmem:[%s1319_s23 + $0x30] sm:$0xff]  ;;  %v245_v22 = vld [vmem:[%s1319_s23 + $0x60] sm:$0xff] }
  0x43   : > { %1154 = vmatpush3.bf16.msra.mxu1 %v1153_v35  ;;  %719 = vmatprep.mubr.f32.mxu1 %v240_v48  ;;  %v1169_v17 = vpack.c.bf16 %v376_v15, %v375_v14  ;;  %v248_v21 = vld [vmem:[%s1319_s23 + $0x78] sm:$0xff]  ;;  %v247_v23 = vld [vmem:[%s1319_s23 + $0x70] sm:$0xff]  ;;  %v254_v24 = vld [vmem:[%s1319_s23 + $0xa8] sm:$0xff] }
  0x44   : > { %1156 = vmatprep.subr.bf16.mxu1 %v1155_v40  ;;  %v256_v25 = vld [vmem:[%s1319_s23 + $0xb8] sm:$0xff]  ;;  %v253_v26 = vld [vmem:[%s1319_s23 + $0xa0] sm:$0xff]  ;;  %v255_v27 = vld [vmem:[%s1319_s23 + $0xb0] sm:$0xff] }
  0x45   : > { %1126 = vmatpush3.bf16.msra.mxu0 %v1125_v46  ;;  %v262_v28 = vld [vmem:[%s1319_s23 + $0xe8] sm:$0xff]  ;;  %v264_v29 = vld [vmem:[%s1319_s23 + $0xf8] sm:$0xff]  ;;  %v261_v30 = vld [vmem:[%s1319_s23 + $0xe0] sm:$0xff] }
  0x46   : > { %1128 = vmatprep.subr.bf16.mxu0 %v1127_v50  ;;  %v263_v31 = vld [vmem:[%s1319_s23 + $0xf0] sm:$0xff]  ;;  %v861_v33 = vld [vmem:[%s1449_s2] ss:$0 sm:$0xff] }
  0x47   : > { %1158 = vmatpush3.bf16.msra.mxu1 %v1157_v49 }
  0x48   : > { %1160 = vmatprep.subr.bf16.mxu1 %v1159_v54 }
  0x49   : > { %1130 = vmatpush3.bf16.msra.mxu0 %v1129_v60 }
  0x4a   : > { %1132 = vmatprep.subr.bf16.mxu0 %v1131_v62 }
  0x4b   : > { %1162 = vmatpush3.bf16.msra.mxu1 %v1161_v61 }
  0x4c   : > { %1164 = vmatprep.subr.bf16.mxu1 %v1163_v2 }
  0x4d   : > { %1134 = vmatpush3.bf16.msra.mxu0 %v1133_v8 }
  0x4e   : > { %1136 = vmatprep.subr.bf16.mxu0 %v1135_v10 }
  0x4f   : > { %1166 = vmatpush3.bf16.msra.mxu1 %v1165_v9 }
  0x50   : > { %1168 = vmatprep.subr.bf16.mxu1 %v1167_v13 }
  0x51   : > { %1138 = vmatpush3.bf16.msra.mxu0 %v1137_v16 }
  0x53   : > { %1170 = vmatpush3.bf16.msra.mxu1 %v1169_v17 }
  0x54   : > { %635 = vmatmul.mubr.f32.vlgmr.msra.gmra.mrb[8].mxu0 %v237_v18 }
  0x55   : > { %639 = vmatprep.mubr.f32.mxu0 %v246_v20 }
  0x56   : > { %720 = vmatmul.mubr.f32.vlgmr.msra.gmra.mrb[8].mxu1 %v239_v19 }
  0x57   : > { %724 = vmatprep.mubr.f32.mxu1 %v248_v21 }
  0x58   : > { %640 = vmatmul.mubr.f32.gmra.mrb[10].mxu0 %v245_v22 }
  0x59   : > { %644 = vmatprep.mubr.f32.mxu0 %v254_v24 }
  0x5a   : > { %725 = vmatmul.mubr.f32.gmra.mrb[10].mxu1 %v247_v23 }
  0x5b   : > { %729 = vmatprep.mubr.f32.mxu1 %v256_v25 }
  0x5c   : > { %645 = vmatmul.mubr.f32.gmra.mrb[12].mxu0 %v253_v26 }
  0x5d   : > { %649 = vmatprep.mubr.f32.mxu0 %v262_v28 }
  0x5e   : > { %730 = vmatmul.mubr.f32.gmra.mrb[12].mxu1 %v255_v27 }
  0x5f   : > { %734 = vmatprep.mubr.f32.mxu1 %v264_v29 }
  0x60   : > { %650 = vmatmul.mubr.f32.gmra.mrb[14].mxu0 %v261_v30 }
  0x62   : > { %735 = vmatmul.mubr.f32.gmra.mrb[14].mxu1 %v263_v31 }
 0x107   : > { %v899_v32 = vpop.f32.mrb[0].mxu0 }
 0x108   : > { %v900_v34 = vpop.f32.mrb[1].mxu0 }
 0x109   : > { %v943_v35 = vpop.f32.mrb[0].mxu1  ;;  %v901_v36 = vadd.f32 %v900_v34, %v899_v32 }
 0x10a   : > { %v944_v37 = vpop.f32.mrb[1].mxu1 }
 0x10b   : > { %v945_v38 = vadd.f32 %v944_v37, %v943_v35  ;;  %v467_v39 = vadd.f32 %v901_v36, %v861_v33  ;;  %v902_v40 = vpop.f32.mrb[2].mxu0 }
 0x10c   : > { %v903_v41 = vpop.f32.mrb[3].mxu0 }
 0x10d   : > { %v946_v42 = vpop.f32.mrb[2].mxu1  ;;  %v552_v43 = vadd.f32 %v945_v38, %v467_v39  ;;  %v904_v44 = vadd.f32 %v903_v41, %v902_v40 }
 0x10e   : > { %v947_v45 = vpop.f32.mrb[3].mxu1 }
 0x10f   : > { %v948_v46 = vadd.f32 %v947_v45, %v946_v42  ;;  %v472_v47 = vadd.f32 %v904_v44, %v861_v33  ;;  %v905_v48 = vpop.f32.mrb[4].mxu0 }
 0x110   : > { %v906_v49 = vpop.f32.mrb[5].mxu0 }
 0x111   : > { %v949_v50 = vpop.f32.mrb[4].mxu1  ;;  %v557_v51 = vadd.f32 %v948_v46, %v472_v47  ;;  %v907_v52 = vadd.f32 %v906_v49, %v905_v48 }
 0x112   : > { %v950_v53 = vpop.f32.mrb[5].mxu1 }
 0x113   : > { %v951_v54 = vadd.f32 %v950_v53, %v949_v50  ;;  %v477_v55 = vadd.f32 %v907_v52, %v861_v33  ;;  %v908_v56 = vpop.f32.mrb[6].mxu0 }
 0x114   : > { %v909_v57 = vpop.f32.mrb[7].mxu0 }
 0x115   : > { %v952_v58 = vpop.f32.mrb[6].mxu1  ;;  %v562_v59 = vadd.f32 %v951_v54, %v477_v55  ;;  %v910_v60 = vadd.f32 %v909_v57, %v908_v56 }
 0x116   : > { %v953_v61 = vpop.f32.mrb[7].mxu1 }
 0x117   : > { %v954_v62 = vadd.f32 %v953_v61, %v952_v58  ;;  %v482_v63 = vadd.f32 %v910_v60, %v861_v33 }
 0x119   : > { %v567_v0 = vadd.f32 %v954_v62, %v482_v63 }
 0x127   : > { %v987_v1 = vpop.f32.mrb[8].mxu0 }
 0x128   : > { %v988_v2 = vpop.f32.mrb[9].mxu0 }
 0x129   : > { %v1031_v3 = vpop.f32.mrb[8].mxu1  ;;  %v989_v4 = vadd.f32 %v988_v2, %v987_v1 }
 0x12a   : > { %v1032_v5 = vpop.f32.mrb[9].mxu1 }
 0x12b   : > { %v1033_v6 = vadd.f32 %v1032_v5, %v1031_v3  ;;  %v637_v7 = vadd.f32 %v989_v4, %v552_v43  ;;  %v990_v8 = vpop.f32.mrb[10].mxu0 }
 0x12c   : > { %v991_v9 = vpop.f32.mrb[11].mxu0 }
 0x12d   : > { %v1034_v10 = vpop.f32.mrb[10].mxu1  ;;  %v722_v11 = vadd.f32 %v1033_v6, %v637_v7  ;;  %v992_v12 = vadd.f32 %v991_v9, %v990_v8 }
 0x12e   : > { %v1035_v13 = vpop.f32.mrb[11].mxu1 }
 0x12f   : > { %v1036_v14 = vadd.f32 %v1035_v13, %v1034_v10  ;;  %v740_v15 = vmax.f32 %v722_v11, 0.0  ;;  %v642_v16 = vadd.f32 %v992_v12, %v557_v51  ;;  %v993_v17 = vpop.f32.mrb[12].mxu0 }
 0x130   : > { %v994_v18 = vpop.f32.mrb[13].mxu0 }
 0x131   : > { %v1037_v19 = vpop.f32.mrb[12].mxu1  ;;  %744 = vst [vmem:[%s231_s29] sm:$0xff] %v740_v15  ;;  %v727_v20 = vadd.f32 %v1036_v14, %v642_v16  ;;  %v995_v21 = vadd.f32 %v994_v18, %v993_v17 }
 0x132   : > { %v1038_v22 = vpop.f32.mrb[13].mxu1 }
 0x133   : > { %v1039_v23 = vadd.f32 %v1038_v22, %v1037_v19  ;;  %v741_v24 = vmax.f32 %v727_v20, 0.0  ;;  %v647_v25 = vadd.f32 %v995_v21, %v562_v59  ;;  %v996_v26 = vpop.f32.mrb[14].mxu0 }
 0x134   : > { %v997_v27 = vpop.f32.mrb[15].mxu0 }
 0x135   : > { %v1040_v28 = vpop.f32.mrb[14].mxu1  ;;  %745 = vst [vmem:[%s231_s29 + $0x8] sm:$0xff] %v741_v24  ;;  %v732_v29 = vadd.f32 %v1039_v23, %v647_v25  ;;  %v998_v30 = vadd.f32 %v997_v27, %v996_v26 }
 0x136   : > { %v1041_v31 = vpop.f32.mrb[15].mxu1 }
 0x137   : > { %v1042_v32 = vadd.f32 %v1041_v31, %v1040_v28  ;;  %v742_v33 = vmax.f32 %v732_v29, 0.0  ;;  %v652_v34 = vadd.f32 %v998_v30, %v567_v0 }
 0x139   : > { %746 = vst [vmem:[%s231_s29 + $0x10] sm:$0xff] %v742_v33  ;;  %v737_v35 = vadd.f32 %v1042_v32, %v652_v34 }
 0x13b   : > { %v743_v36 = vmax.f32 %v737_v35, 0.0 }
 0x13d   : > { %747 = vst [vmem:[%s231_s29 + $0x18] sm:$0xff] %v743_v36 }
 0x13e PF: > { %s13_s14 = sadd.s32 1, %s1217_s14   ;;  %s1451_s12 = smov %s1213_s13 }
 0x13f   : > { %p10_p5 = scmp.ge.s32.totalorder %s13_s14, 6   ;;  %s1452_s13 = smov %s1454_s15 }
 0x141   :  { %12 = sbr.rel (!%p10_p5) target bundleno = 2 (0x2), region = 65 }

// kernel: autoencoder_forward.5
= control target key start
LH: loop header
LB: loop body
LE: loop exit
PB: predicated region body
PF: predicated region fallthrough
CT: control target
= control target key end

     0   :  { %s3685_s1 = inlined_call_operand.vmem [shape: f32[1,2048,256], index: 1, kind: input, shape index: {}]   ;;  %s3686_s0 = inlined_call_operand.vmem [shape: f32[1,32,2048], index: 0, kind: input, shape index: {}]   ;;  %s3687_s2 = inlined_call_operand.vmem [shape: f32[1,256], index: 2, kind: input, shape index: {}]   ;;  %s3688_s3 = inlined_call_operand.vmem [shape: f32[1,32,256], index: 3, kind: output, shape index: {}]  }
   0x1   :  { %v79_v0 = vld [vmem:[%s3685_s1 + $0x8] sm:$0xff]  ;;  %v81_v1 = vld [vmem:[%s3685_s1 + $0x18] sm:$0xff]  ;;  %v78_v5 = vld [vmem:[%s3685_s1] sm:$0xff] }
   0x2   :  { %v335_v2 = vld [vmem:[%s3685_s1 + $0x808] sm:$0xff]  ;;  %v1334_v3 = vpack.c.bf16 %v81_v1, %v79_v0  ;;  %v337_v4 = vld [vmem:[%s3685_s1 + $0x818] sm:$0xff]  ;;  %v80_v6 = vld [vmem:[%s3685_s1 + $0x10] sm:$0xff] }
   0x3   :  { %v1590_v7 = vpack.c.bf16 %v337_v4, %v335_v2  ;;  %v1336_v8 = vpack.c.bf16 %v80_v6, %v78_v5  ;;  %v334_v9 = vld [vmem:[%s3685_s1 + $0x800] sm:$0xff]  ;;  %v336_v10 = vld [vmem:[%s3685_s1 + $0x810] sm:$0xff]  ;;  %v83_v11 = vld [vmem:[%s3685_s1 + $0x28] sm:$0xff] }
   0x4   :  { %1335 = vmatprep.subr.bf16.mxu1 %v1334_v3  ;;  %v1592_v12 = vpack.c.bf16 %v336_v10, %v334_v9  ;;  %v85_v13 = vld [vmem:[%s3685_s1 + $0x38] sm:$0xff]  ;;  %v339_v14 = vld [vmem:[%s3685_s1 + $0x828] sm:$0xff]  ;;  %v82_v18 = vld [vmem:[%s3685_s1 + $0x20] sm:$0xff] }
   0x5   :  { %v341_v15 = vld [vmem:[%s3685_s1 + $0x838] sm:$0xff]  ;;  %1591 = vmatprep.subr.bf16.mxu0 %v1590_v7  ;;  %1337 = vmatpush1.bf16.msra.mxu1 %v1336_v8  ;;  %v1338_v16 = vpack.c.bf16 %v85_v13, %v83_v11  ;;  %v84_v19 = vld [vmem:[%s3685_s1 + $0x30] sm:$0xff]  ;;  %v338_v20 = vld [vmem:[%s3685_s1 + $0x820] sm:$0xff] }
   0x6   :  { %v1594_v17 = vpack.c.bf16 %v341_v15, %v339_v14  ;;  %1593 = vmatpush1.bf16.msra.mxu0 %v1592_v12  ;;  %v1340_v21 = vpack.c.bf16 %v84_v19, %v82_v18  ;;  %v340_v22 = vld [vmem:[%s3685_s1 + $0x830] sm:$0xff]  ;;  %v87_v23 = vld [vmem:[%s3685_s1 + $0x48] sm:$0xff]  ;;  %v89_v24 = vld [vmem:[%s3685_s1 + $0x58] sm:$0xff] }
   0x7   :  { %1339 = vmatprep.subr.bf16.mxu1 %v1338_v16  ;;  %v1596_v25 = vpack.c.bf16 %v340_v22, %v338_v20  ;;  %v1342_v26 = vpack.c.bf16 %v89_v24, %v87_v23  ;;  %v343_v27 = vld [vmem:[%s3685_s1 + $0x848] sm:$0xff]  ;;  %v345_v28 = vld [vmem:[%s3685_s1 + $0x858] sm:$0xff]  ;;  %v86_v29 = vld [vmem:[%s3685_s1 + $0x40] sm:$0xff] }
   0x8   :  { %1595 = vmatprep.subr.bf16.mxu0 %v1594_v17  ;;  %v1598_v30 = vpack.c.bf16 %v345_v28, %v343_v27  ;;  %v88_v31 = vld [vmem:[%s3685_s1 + $0x50] sm:$0xff]  ;;  %v342_v32 = vld [vmem:[%s3685_s1 + $0x840] sm:$0xff]  ;;  %v91_v35 = vld [vmem:[%s3685_s1 + $0x68] sm:$0xff] }
   0x9   :  { %v344_v33 = vld [vmem:[%s3685_s1 + $0x850] sm:$0xff]  ;;  %1341 = vmatpush1.bf16.msra.mxu1 %v1340_v21  ;;  %v1344_v34 = vpack.c.bf16 %v88_v31, %v86_v29  ;;  %v93_v36 = vld [vmem:[%s3685_s1 + $0x78] sm:$0xff]  ;;  %v347_v37 = vld [vmem:[%s3685_s1 + $0x868] sm:$0xff] }
   0xa   :  { %1597 = vmatpush1.bf16.msra.mxu0 %v1596_v25  ;;  %1343 = vmatprep.subr.bf16.mxu1 %v1342_v26  ;;  %v1600_v38 = vpack.c.bf16 %v344_v33, %v342_v32  ;;  %v1346_v39 = vpack.c.bf16 %v93_v36, %v91_v35  ;;  %v349_v40 = vld [vmem:[%s3685_s1 + $0x878] sm:$0xff]  ;;  %v90_v41 = vld [vmem:[%s3685_s1 + $0x60] sm:$0xff]  ;;  %v92_v42 = vld [vmem:[%s3685_s1 + $0x70] sm:$0xff] }
   0xb   :  { %1599 = vmatprep.subr.bf16.mxu0 %v1598_v30  ;;  %v1602_v43 = vpack.c.bf16 %v349_v40, %v347_v37  ;;  %v346_v44 = vld [vmem:[%s3685_s1 + $0x860] sm:$0xff]  ;;  %v348_v45 = vld [vmem:[%s3685_s1 + $0x870] sm:$0xff]  ;;  %v95_v46 = vld [vmem:[%s3685_s1 + $0x88] sm:$0xff]  ;;  %v1348_v50 = vpack.c.bf16 %v92_v42, %v90_v41 }
   0xc   :  { %v97_v47 = vld [vmem:[%s3685_s1 + $0x98] sm:$0xff]  ;;  %v351_v48 = vld [vmem:[%s3685_s1 + $0x888] sm:$0xff]  ;;  %v1604_v51 = vpack.c.bf16 %v348_v45, %v346_v44  ;;  %v94_v53 = vld [vmem:[%s3685_s1 + $0x80] sm:$0xff] }
   0xd   :  { %v353_v49 = vld [vmem:[%s3685_s1 + $0x898] sm:$0xff]  ;;  %1345 = vmatpush1.bf16.msra.mxu1 %v1344_v34  ;;  %v1350_v52 = vpack.c.bf16 %v97_v47, %v95_v46  ;;  %v96_v54 = vld [vmem:[%s3685_s1 + $0x90] sm:$0xff]  ;;  %v350_v55 = vld [vmem:[%s3685_s1 + $0x880] sm:$0xff] }
   0xe   :  { %1601 = vmatpush1.bf16.msra.mxu0 %v1600_v38  ;;  %1347 = vmatprep.subr.bf16.mxu1 %v1346_v39  ;;  %v1606_v56 = vpack.c.bf16 %v353_v49, %v351_v48  ;;  %v352_v57 = vld [vmem:[%s3685_s1 + $0x890] sm:$0xff]  ;;  %v99_v58 = vld [vmem:[%s3685_s1 + $0xa8] sm:$0xff]  ;;  %v101_v59 = vld [vmem:[%s3685_s1 + $0xb8] sm:$0xff]  ;;  %v1352_v62 = vpack.c.bf16 %v96_v54, %v94_v53 }
   0xf   :  { %1603 = vmatprep.subr.bf16.mxu0 %v1602_v43  ;;  %v355_v60 = vld [vmem:[%s3685_s1 + $0x8a8] sm:$0xff]  ;;  %v357_v61 = vld [vmem:[%s3685_s1 + $0x8b8] sm:$0xff]  ;;  %v1608_v63 = vpack.c.bf16 %v352_v57, %v350_v55  ;;  %v1354_v0 = vpack.c.bf16 %v101_v59, %v99_v58  ;;  %v98_v1 = vld [vmem:[%s3685_s1 + $0xa0] sm:$0xff] }
  0x10   :  { %v100_v2 = vld [vmem:[%s3685_s1 + $0xb0] sm:$0xff]  ;;  %v354_v3 = vld [vmem:[%s3685_s1 + $0x8a0] sm:$0xff]  ;;  %v1610_v4 = vpack.c.bf16 %v357_v61, %v355_v60  ;;  %v103_v6 = vld [vmem:[%s3685_s1 + $0xc8] sm:$0xff] }
  0x11   :  { %1349 = vmatpush1.bf16.msra.mxu1 %v1348_v50  ;;  %v356_v5 = vld [vmem:[%s3685_s1 + $0x8b0] sm:$0xff]  ;;  %v105_v7 = vld [vmem:[%s3685_s1 + $0xd8] sm:$0xff]  ;;  %v359_v8 = vld [vmem:[%s3685_s1 + $0x8c8] sm:$0xff]  ;;  %v1356_v10 = vpack.c.bf16 %v100_v2, %v98_v1 }
  0x12   :  { %1605 = vmatpush1.bf16.msra.mxu0 %v1604_v51  ;;  %1351 = vmatprep.subr.bf16.mxu1 %v1350_v52  ;;  %v361_v9 = vld [vmem:[%s3685_s1 + $0x8d8] sm:$0xff]  ;;  %v1612_v11 = vpack.c.bf16 %v356_v5, %v354_v3  ;;  %v1358_v12 = vpack.c.bf16 %v105_v7, %v103_v6  ;;  %v102_v13 = vld [vmem:[%s3685_s1 + $0xc0] sm:$0xff]  ;;  %v104_v14 = vld [vmem:[%s3685_s1 + $0xd0] sm:$0xff] }
  0x13   :  { %1607 = vmatprep.subr.bf16.mxu0 %v1606_v56  ;;  %v358_v15 = vld [vmem:[%s3685_s1 + $0x8c0] sm:$0xff]  ;;  %v1614_v16 = vpack.c.bf16 %v361_v9, %v359_v8  ;;  %v360_v17 = vld [vmem:[%s3685_s1 + $0x8d0] sm:$0xff]  ;;  %v107_v18 = vld [vmem:[%s3685_s1 + $0xe8] sm:$0xff]  ;;  %v1360_v22 = vpack.c.bf16 %v104_v14, %v102_v13 }
  0x14   :  { %v109_v19 = vld [vmem:[%s3685_s1 + $0xf8] sm:$0xff]  ;;  %v363_v20 = vld [vmem:[%s3685_s1 + $0x8e8] sm:$0xff]  ;;  %v1616_v23 = vpack.c.bf16 %v360_v17, %v358_v15  ;;  %v106_v25 = vld [vmem:[%s3685_s1 + $0xe0] sm:$0xff] }
  0x15   :  { %1353 = vmatpush1.bf16.msra.mxu1 %v1352_v62  ;;  %v365_v21 = vld [vmem:[%s3685_s1 + $0x8f8] sm:$0xff]  ;;  %v1362_v24 = vpack.c.bf16 %v109_v19, %v107_v18  ;;  %v108_v26 = vld [vmem:[%s3685_s1 + $0xf0] sm:$0xff]  ;;  %v362_v27 = vld [vmem:[%s3685_s1 + $0x8e0] sm:$0xff] }
  0x16   :  { %1609 = vmatpush1.bf16.msra.mxu0 %v1608_v63  ;;  %1355 = vmatprep.subr.bf16.mxu1 %v1354_v0  ;;  %v1618_v28 = vpack.c.bf16 %v365_v21, %v363_v20  ;;  %v364_v29 = vld [vmem:[%s3685_s1 + $0x8f0] sm:$0xff]  ;;  %v111_v30 = vld [vmem:[%s3685_s1 + $0x108] sm:$0xff]  ;;  %v113_v31 = vld [vmem:[%s3685_s1 + $0x118] sm:$0xff]  ;;  %v1364_v34 = vpack.c.bf16 %v108_v26, %v106_v25 }
  0x17   :  { %1611 = vmatprep.subr.bf16.mxu0 %v1610_v4  ;;  %v367_v32 = vld [vmem:[%s3685_s1 + $0x908] sm:$0xff]  ;;  %v369_v33 = vld [vmem:[%s3685_s1 + $0x918] sm:$0xff]  ;;  %v1620_v35 = vpack.c.bf16 %v364_v29, %v362_v27  ;;  %v1366_v36 = vpack.c.bf16 %v113_v31, %v111_v30  ;;  %v110_v37 = vld [vmem:[%s3685_s1 + $0x100] sm:$0xff] }
  0x18   :  { %v112_v38 = vld [vmem:[%s3685_s1 + $0x110] sm:$0xff]  ;;  %v366_v39 = vld [vmem:[%s3685_s1 + $0x900] sm:$0xff]  ;;  %v1622_v40 = vpack.c.bf16 %v369_v33, %v367_v32  ;;  %v115_v42 = vld [vmem:[%s3685_s1 + $0x128] sm:$0xff] }
  0x19   :  { %1357 = vmatpush1.bf16.msra.mxu1 %v1356_v10  ;;  %v368_v41 = vld [vmem:[%s3685_s1 + $0x910] sm:$0xff]  ;;  %v117_v43 = vld [vmem:[%s3685_s1 + $0x138] sm:$0xff]  ;;  %v371_v44 = vld [vmem:[%s3685_s1 + $0x928] sm:$0xff]  ;;  %v1368_v46 = vpack.c.bf16 %v112_v38, %v110_v37 }
  0x1a   :  { %1613 = vmatpush1.bf16.msra.mxu0 %v1612_v11  ;;  %1359 = vmatprep.subr.bf16.mxu1 %v1358_v12  ;;  %v373_v45 = vld [vmem:[%s3685_s1 + $0x938] sm:$0xff]  ;;  %v1624_v47 = vpack.c.bf16 %v368_v41, %v366_v39  ;;  %v1370_v48 = vpack.c.bf16 %v117_v43, %v115_v42  ;;  %v114_v49 = vld [vmem:[%s3685_s1 + $0x120] sm:$0xff]  ;;  %v116_v50 = vld [vmem:[%s3685_s1 + $0x130] sm:$0xff] }
  0x1b   :  { %1615 = vmatprep.subr.bf16.mxu0 %v1614_v16  ;;  %v370_v51 = vld [vmem:[%s3685_s1 + $0x920] sm:$0xff]  ;;  %v1626_v52 = vpack.c.bf16 %v373_v45, %v371_v44  ;;  %v372_v53 = vld [vmem:[%s3685_s1 + $0x930] sm:$0xff]  ;;  %v119_v54 = vld [vmem:[%s3685_s1 + $0x148] sm:$0xff]  ;;  %v1372_v58 = vpack.c.bf16 %v116_v50, %v114_v49 }
  0x1c   :  { %v121_v55 = vld [vmem:[%s3685_s1 + $0x158] sm:$0xff]  ;;  %v375_v56 = vld [vmem:[%s3685_s1 + $0x948] sm:$0xff]  ;;  %v1628_v59 = vpack.c.bf16 %v372_v53, %v370_v51  ;;  %v118_v61 = vld [vmem:[%s3685_s1 + $0x140] sm:$0xff] }
  0x1d   :  { %1361 = vmatpush1.bf16.msra.mxu1 %v1360_v22  ;;  %v377_v57 = vld [vmem:[%s3685_s1 + $0x958] sm:$0xff]  ;;  %v1374_v60 = vpack.c.bf16 %v121_v55, %v119_v54  ;;  %v120_v62 = vld [vmem:[%s3685_s1 + $0x150] sm:$0xff]  ;;  %v374_v63 = vld [vmem:[%s3685_s1 + $0x940] sm:$0xff] }
  0x1e   :  { %1617 = vmatpush1.bf16.msra.mxu0 %v1616_v23  ;;  %1363 = vmatprep.subr.bf16.mxu1 %v1362_v24  ;;  %v1630_v0 = vpack.c.bf16 %v377_v57, %v375_v56  ;;  %v376_v1 = vld [vmem:[%s3685_s1 + $0x950] sm:$0xff]  ;;  %v123_v2 = vld [vmem:[%s3685_s1 + $0x168] sm:$0xff]  ;;  %v125_v3 = vld [vmem:[%s3685_s1 + $0x178] sm:$0xff]  ;;  %v1376_v6 = vpack.c.bf16 %v120_v62, %v118_v61 }
  0x1f   :  { %1619 = vmatprep.subr.bf16.mxu0 %v1618_v28  ;;  %v379_v4 = vld [vmem:[%s3685_s1 + $0x968] sm:$0xff]  ;;  %v381_v5 = vld [vmem:[%s3685_s1 + $0x978] sm:$0xff]  ;;  %v122_v7 = vld [vmem:[%s3685_s1 + $0x160] sm:$0xff]  ;;  %v1632_v8 = vpack.c.bf16 %v376_v1, %v374_v63  ;;  %v1378_v9 = vpack.c.bf16 %v125_v3, %v123_v2 }
  0x20   :  { %v124_v10 = vld [vmem:[%s3685_s1 + $0x170] sm:$0xff]  ;;  %v378_v11 = vld [vmem:[%s3685_s1 + $0x960] sm:$0xff]  ;;  %v1634_v13 = vpack.c.bf16 %v381_v5, %v379_v4  ;;  %v127_v14 = vld [vmem:[%s3685_s1 + $0x188] sm:$0xff] }
  0x21   :  { %1365 = vmatpush1.bf16.msra.mxu1 %v1364_v34  ;;  %v380_v12 = vld [vmem:[%s3685_s1 + $0x970] sm:$0xff]  ;;  %v129_v15 = vld [vmem:[%s3685_s1 + $0x198] sm:$0xff]  ;;  %v15_v16 = vld [vmem:[%s3686_s0 + $0x8] sm:$0xff]  ;;  %v1380_v20 = vpack.c.bf16 %v124_v10, %v122_v7 }
  0x22   :  { %1621 = vmatpush1.bf16.msra.mxu0 %v1620_v35  ;;  %1367 = vmatprep.subr.bf16.mxu1 %v1366_v36  ;;  %v383_v17 = vld [vmem:[%s3685_s1 + $0x988] sm:$0xff]  ;;  %v385_v18 = vld [vmem:[%s3685_s1 + $0x998] sm:$0xff]  ;;  %v1636_v21 = vpack.c.bf16 %v380_v12, %v378_v11  ;;  %v1382_v22 = vpack.c.bf16 %v129_v15, %v127_v14  ;;  %v126_v23 = vld [vmem:[%s3685_s1 + $0x180] sm:$0xff] }
  0x23   :  { %1623 = vmatprep.subr.bf16.mxu0 %v1622_v40  ;;  %666 = vmatprep.mubr.f32.mxu1 %v15_v16  ;;  %v23_v19 = vld [vmem:[%s3686_s0 + $0x48] sm:$0xff]  ;;  %v128_v24 = vld [vmem:[%s3685_s1 + $0x190] sm:$0xff]  ;;  %v382_v25 = vld [vmem:[%s3685_s1 + $0x980] sm:$0xff]  ;;  %v1638_v26 = vpack.c.bf16 %v385_v18, %v383_v17 }
  0x24   :  { %1022 = vmatprep.mubr.f32.mxu0 %v23_v19  ;;  %v384_v27 = vld [vmem:[%s3685_s1 + $0x990] sm:$0xff]  ;;  %v131_v28 = vld [vmem:[%s3685_s1 + $0x1a8] sm:$0xff]  ;;  %v133_v29 = vld [vmem:[%s3685_s1 + $0x1b8] sm:$0xff]  ;;  %v1384_v32 = vpack.c.bf16 %v128_v24, %v126_v23 }
  0x25   :  { %1369 = vmatpush1.bf16.msra.mxu1 %v1368_v46  ;;  %v387_v30 = vld [vmem:[%s3685_s1 + $0x9a8] sm:$0xff]  ;;  %v389_v31 = vld [vmem:[%s3685_s1 + $0x9b8] sm:$0xff]  ;;  %v1640_v33 = vpack.c.bf16 %v384_v27, %v382_v25  ;;  %v1386_v34 = vpack.c.bf16 %v133_v29, %v131_v28  ;;  %v130_v35 = vld [vmem:[%s3685_s1 + $0x1a0] sm:$0xff] }
  0x26   :  { %1625 = vmatpush1.bf16.msra.mxu0 %v1624_v47  ;;  %1371 = vmatprep.subr.bf16.mxu1 %v1370_v48  ;;  %v132_v36 = vld [vmem:[%s3685_s1 + $0x1b0] sm:$0xff]  ;;  %v386_v37 = vld [vmem:[%s3685_s1 + $0x9a0] sm:$0xff]  ;;  %v1642_v38 = vpack.c.bf16 %v389_v31, %v387_v30  ;;  %v135_v40 = vld [vmem:[%s3685_s1 + $0x1c8] sm:$0xff] }
  0x27   :  { %1627 = vmatprep.subr.bf16.mxu0 %v1626_v52  ;;  %v388_v39 = vld [vmem:[%s3685_s1 + $0x9b0] sm:$0xff]  ;;  %v137_v41 = vld [vmem:[%s3685_s1 + $0x1d8] sm:$0xff]  ;;  %v391_v42 = vld [vmem:[%s3685_s1 + $0x9c8] sm:$0xff]  ;;  %v1388_v44 = vpack.c.bf16 %v132_v36, %v130_v35 }
  0x28   :  { %v393_v43 = vld [vmem:[%s3685_s1 + $0x9d8] sm:$0xff]  ;;  %v1644_v45 = vpack.c.bf16 %v388_v39, %v386_v37  ;;  %v1390_v46 = vpack.c.bf16 %v137_v41, %v135_v40  ;;  %v134_v47 = vld [vmem:[%s3685_s1 + $0x1c0] sm:$0xff]  ;;  %v136_v48 = vld [vmem:[%s3685_s1 + $0x1d0] sm:$0xff] }
  0x29   :  { %1373 = vmatpush1.bf16.msra.mxu1 %v1372_v58  ;;  %v390_v49 = vld [vmem:[%s3685_s1 + $0x9c0] sm:$0xff]  ;;  %v1646_v50 = vpack.c.bf16 %v393_v43, %v391_v42  ;;  %v392_v51 = vld [vmem:[%s3685_s1 + $0x9d0] sm:$0xff]  ;;  %v139_v52 = vld [vmem:[%s3685_s1 + $0x1e8] sm:$0xff]  ;;  %v1392_v56 = vpack.c.bf16 %v136_v48, %v134_v47 }
  0x2a   :  { %1629 = vmatpush1.bf16.msra.mxu0 %v1628_v59  ;;  %1375 = vmatprep.subr.bf16.mxu1 %v1374_v60  ;;  %v141_v53 = vld [vmem:[%s3685_s1 + $0x1f8] sm:$0xff]  ;;  %v395_v54 = vld [vmem:[%s3685_s1 + $0x9e8] sm:$0xff]  ;;  %v1648_v57 = vpack.c.bf16 %v392_v51, %v390_v49  ;;  %v138_v59 = vld [vmem:[%s3685_s1 + $0x1e0] sm:$0xff] }
  0x2b   :  { %1631 = vmatprep.subr.bf16.mxu0 %v1630_v0  ;;  %v397_v55 = vld [vmem:[%s3685_s1 + $0x9f8] sm:$0xff]  ;;  %v1394_v58 = vpack.c.bf16 %v141_v53, %v139_v52  ;;  %v140_v60 = vld [vmem:[%s3685_s1 + $0x1f0] sm:$0xff]  ;;  %v394_v61 = vld [vmem:[%s3685_s1 + $0x9e0] sm:$0xff] }
  0x2c   :  { %v1650_v62 = vpack.c.bf16 %v397_v55, %v395_v54  ;;  %v396_v63 = vld [vmem:[%s3685_s1 + $0x9f0] sm:$0xff]  ;;  %v143_v0 = vld [vmem:[%s3685_s1 + $0x208] sm:$0xff]  ;;  %v145_v1 = vld [vmem:[%s3685_s1 + $0x218] sm:$0xff]  ;;  %v1396_v4 = vpack.c.bf16 %v140_v60, %v138_v59 }
  0x2d   :  { %1377 = vmatpush1.bf16.msra.mxu1 %v1376_v6  ;;  %v399_v2 = vld [vmem:[%s3685_s1 + $0xa08] sm:$0xff]  ;;  %v401_v3 = vld [vmem:[%s3685_s1 + $0xa18] sm:$0xff]  ;;  %v1652_v5 = vpack.c.bf16 %v396_v63, %v394_v61  ;;  %v1398_v6 = vpack.c.bf16 %v145_v1, %v143_v0  ;;  %v142_v7 = vld [vmem:[%s3685_s1 + $0x200] sm:$0xff] }
  0x2e   :  { %1633 = vmatpush1.bf16.msra.mxu0 %v1632_v8  ;;  %1379 = vmatprep.subr.bf16.mxu1 %v1378_v9  ;;  %v144_v8 = vld [vmem:[%s3685_s1 + $0x210] sm:$0xff]  ;;  %v398_v9 = vld [vmem:[%s3685_s1 + $0xa00] sm:$0xff]  ;;  %v1654_v10 = vpack.c.bf16 %v401_v3, %v399_v2  ;;  %v147_v12 = vld [vmem:[%s3685_s1 + $0x228] sm:$0xff] }
  0x2f   :  { %1635 = vmatprep.subr.bf16.mxu0 %v1634_v13  ;;  %v400_v11 = vld [vmem:[%s3685_s1 + $0xa10] sm:$0xff]  ;;  %v149_v13 = vld [vmem:[%s3685_s1 + $0x238] sm:$0xff]  ;;  %v403_v14 = vld [vmem:[%s3685_s1 + $0xa28] sm:$0xff]  ;;  %v1400_v17 = vpack.c.bf16 %v144_v8, %v142_v7 }
  0x30   :  { %v405_v15 = vld [vmem:[%s3685_s1 + $0xa38] sm:$0xff]  ;;  %v14_v16 = vld [vmem:[%s3686_s0] sm:$0xff]  ;;  %v1656_v19 = vpack.c.bf16 %v400_v11, %v398_v9  ;;  %v404_v25 = vld [vmem:[%s3685_s1 + $0xa30] sm:$0xff] }
  0x31   :  { %1381 = vmatpush1.bf16.msra.mxu1 %v1380_v20  ;;  %v22_v18 = vld [vmem:[%s3686_s0 + $0x40] sm:$0xff]  ;;  %v1402_v20 = vpack.c.bf16 %v149_v13, %v147_v12  ;;  %v1658_v24 = vpack.c.bf16 %v405_v15, %v403_v14  ;;  %v153_v27 = vld [vmem:[%s3685_s1 + $0x258] sm:$0xff]  ;;  %v407_v28 = vld [vmem:[%s3685_s1 + $0xa48] sm:$0xff] }
  0x32   :  { %1637 = vmatpush1.bf16.msra.mxu0 %v1636_v21  ;;  %1383 = vmatprep.subr.bf16.mxu1 %v1382_v22  ;;  %v146_v21 = vld [vmem:[%s3685_s1 + $0x220] sm:$0xff]  ;;  %v148_v22 = vld [vmem:[%s3685_s1 + $0x230] sm:$0xff]  ;;  %v409_v29 = vld [vmem:[%s3685_s1 + $0xa58] sm:$0xff] }
  0x33   :  { %1639 = vmatprep.subr.bf16.mxu0 %v1638_v26  ;;  %v402_v23 = vld [vmem:[%s3685_s1 + $0xa20] sm:$0xff]  ;;  %v151_v26 = vld [vmem:[%s3685_s1 + $0x248] sm:$0xff]  ;;  %v1404_v30 = vpack.c.bf16 %v148_v22, %v146_v21  ;;  %v1662_v36 = vpack.c.bf16 %v409_v29, %v407_v28  ;;  %v408_v37 = vld [vmem:[%s3685_s1 + $0xa50] sm:$0xff] }
  0x34   :  { %v1660_v31 = vpack.c.bf16 %v404_v25, %v402_v23  ;;  %v406_v35 = vld [vmem:[%s3685_s1 + $0xa40] sm:$0xff]  ;;  %v157_v39 = vld [vmem:[%s3685_s1 + $0x278] sm:$0xff]  ;;  %v411_v40 = vld [vmem:[%s3685_s1 + $0xa68] sm:$0xff] }
  0x35   :  { %1385 = vmatpush1.bf16.msra.mxu1 %v1384_v32  ;;  %v1406_v32 = vpack.c.bf16 %v153_v27, %v151_v26  ;;  %v413_v41 = vld [vmem:[%s3685_s1 + $0xa78] sm:$0xff]  ;;  %v1664_v43 = vpack.c.bf16 %v408_v37, %v406_v35  ;;  %v410_v47 = vld [vmem:[%s3685_s1 + $0xa60] sm:$0xff]  ;;  %v412_v49 = vld [vmem:[%s3685_s1 + $0xa70] sm:$0xff] }
  0x36   :  { %1641 = vmatpush1.bf16.msra.mxu0 %v1640_v33  ;;  %1387 = vmatprep.subr.bf16.mxu1 %v1386_v34  ;;  %v150_v33 = vld [vmem:[%s3685_s1 + $0x240] sm:$0xff]  ;;  %v152_v34 = vld [vmem:[%s3685_s1 + $0x250] sm:$0xff]  ;;  %v1666_v48 = vpack.c.bf16 %v413_v41, %v411_v40  ;;  %v161_v51 = vld [vmem:[%s3685_s1 + $0x298] sm:$0xff] }
  0x37   :  { %1643 = vmatprep.subr.bf16.mxu0 %v1642_v38  ;;  %v155_v38 = vld [vmem:[%s3685_s1 + $0x268] sm:$0xff]  ;;  %v1408_v42 = vpack.c.bf16 %v152_v34, %v150_v33  ;;  %v417_v53 = vld [vmem:[%s3685_s1 + $0xa98] sm:$0xff]  ;;  %v158_v55 = vld [vmem:[%s3685_s1 + $0x280] sm:$0xff] }
  0x38   :  { %v415_v52 = vld [vmem:[%s3685_s1 + $0xa88] sm:$0xff]  ;;  %v414_v59 = vld [vmem:[%s3685_s1 + $0xa80] sm:$0xff]  ;;  %v416_v60 = vld [vmem:[%s3685_s1 + $0xa90] sm:$0xff] }
  0x39   :  { %1389 = vmatpush1.bf16.msra.mxu1 %v1388_v44  ;;  %v1410_v44 = vpack.c.bf16 %v157_v39, %v155_v38  ;;  %v1670_v61 = vpack.c.bf16 %v417_v53, %v415_v52  ;;  %v165_v63 = vld [vmem:[%s3685_s1 + $0x2b8] sm:$0xff]  ;;  %v31_v0 = vld [vmem:[%s3686_s0 + $0x88] sm:$0xff]  ;;  %v30_v7 = vld [vmem:[%s3686_s0 + $0x80] sm:$0xff]  ;;  %v1672_v8 = vpack.c.bf16 %v416_v60, %v414_v59 }
  0x3a   :  { %1645 = vmatpush1.bf16.msra.mxu0 %v1644_v45  ;;  %1391 = vmatprep.subr.bf16.mxu1 %v1390_v46  ;;  %v154_v45 = vld [vmem:[%s3685_s1 + $0x260] sm:$0xff]  ;;  %v156_v46 = vld [vmem:[%s3685_s1 + $0x270] sm:$0xff]  ;;  %v419_v1 = vld [vmem:[%s3685_s1 + $0xaa8] sm:$0xff] }
  0x3b   :  { %1647 = vmatprep.subr.bf16.mxu0 %v1646_v50  ;;  %v159_v50 = vld [vmem:[%s3685_s1 + $0x288] sm:$0xff]  ;;  %v1412_v54 = vpack.c.bf16 %v156_v46, %v154_v45  ;;  %v421_v2 = vld [vmem:[%s3685_s1 + $0xab8] sm:$0xff]  ;;  %v420_v11 = vld [vmem:[%s3685_s1 + $0xab0] sm:$0xff] }
  0x3c   :  { %v39_v3 = vld [vmem:[%s3686_s0 + $0xc8] sm:$0xff]  ;;  %v38_v12 = vld [vmem:[%s3686_s0 + $0xc0] sm:$0xff]  ;;  %v1674_v13 = vpack.c.bf16 %v421_v2, %v419_v1  ;;  %v169_v15 = vld [vmem:[%s3685_s1 + $0x2d8] sm:$0xff] }
  0x3d   :  { %1393 = vmatpush1.bf16.msra.mxu1 %v1392_v56  ;;  %v1668_v56 = vpack.c.bf16 %v412_v49, %v410_v47  ;;  %v167_v14 = vld [vmem:[%s3685_s1 + $0x2c8] sm:$0xff]  ;;  %v166_v21 = vld [vmem:[%s3685_s1 + $0x2c0] sm:$0xff]  ;;  %v168_v22 = vld [vmem:[%s3685_s1 + $0x2d0] sm:$0xff] }
  0x3e   :  { %1649 = vmatpush1.bf16.msra.mxu0 %v1648_v57  ;;  %1395 = vmatprep.subr.bf16.mxu1 %v1394_v58  ;;  %v1414_v57 = vpack.c.bf16 %v161_v51, %v159_v50  ;;  %v160_v58 = vld [vmem:[%s3685_s1 + $0x290] sm:$0xff]  ;;  %v46_v23 = vld [vmem:[%s3686_s0 + $0x100] sm:$0xff]  ;;  %v1422_v25 = vpack.c.bf16 %v169_v15, %v167_v14  ;;  %v427_v33 = vld [vmem:[%s3685_s1 + $0xae8] sm:$0xff] }
  0x3f   :  { %1651 = vmatprep.subr.bf16.mxu0 %v1650_v62  ;;  %v163_v62 = vld [vmem:[%s3685_s1 + $0x2a8] sm:$0xff]  ;;  %v422_v26 = vld [vmem:[%s3685_s1 + $0xac0] sm:$0xff]  ;;  %v424_v27 = vld [vmem:[%s3685_s1 + $0xad0] sm:$0xff] }
  0x40   :  { %v1418_v9 = vpack.c.bf16 %v165_v63, %v163_v62  ;;  %v54_v28 = vld [vmem:[%s3686_s0 + $0x140] sm:$0xff]  ;;  %v429_v34 = vld [vmem:[%s3685_s1 + $0xaf8] sm:$0xff]  ;;  %v71_v35 = vld [vmem:[%s3686_s0 + $0x1c8] sm:$0xff]  ;;  %v1680_v40 = vpack.c.bf16 %v424_v27, %v422_v26 }
  0x41   :  { %1397 = vmatpush1.bf16.msra.mxu1 %v1396_v4  ;;  %v1416_v4 = vpack.c.bf16 %v160_v58, %v158_v55  ;;  %v170_v37 = vld [vmem:[%s3685_s1 + $0x2e0] sm:$0xff]  ;;  %v172_v38 = vld [vmem:[%s3685_s1 + $0x2f0] sm:$0xff]  ;;  %v1682_v45 = vpack.c.bf16 %v429_v34, %v427_v33  ;;  %v175_v46 = vld [vmem:[%s3685_s1 + $0x308] sm:$0xff] }
  0x42   :  { %1653 = vmatpush1.bf16.msra.mxu0 %v1652_v5  ;;  %1399 = vmatprep.subr.bf16.mxu1 %v1398_v6  ;;  %v162_v5 = vld [vmem:[%s3685_s1 + $0x2a0] sm:$0xff]  ;;  %v164_v6 = vld [vmem:[%s3685_s1 + $0x2b0] sm:$0xff]  ;;  %v177_v47 = vld [vmem:[%s3685_s1 + $0x318] sm:$0xff]  ;;  %v1428_v52 = vpack.c.bf16 %v172_v38, %v170_v37 }
  0x43   :  { %1655 = vmatprep.subr.bf16.mxu0 %v1654_v10  ;;  %v418_v10 = vld [vmem:[%s3685_s1 + $0xaa0] sm:$0xff]  ;;  %v431_v49 = vld [vmem:[%s3685_s1 + $0xb08] sm:$0xff]  ;;  %v433_v50 = vld [vmem:[%s3685_s1 + $0xb18] sm:$0xff] }
  0x44   :  { %667 = vmatmul.mubr.f32.vlgmr.msra.gmra.mrb[0].mxu1 %v14_v16  ;;  %v47_v16 = vld [vmem:[%s3686_s0 + $0x108] sm:$0xff]  ;;  %v62_v39 = vld [vmem:[%s3686_s0 + $0x180] sm:$0xff]  ;;  %v25_v51 = vld [vmem:[%s3686_s0 + $0x58] sm:$0xff]  ;;  %v1686_v58 = vpack.c.bf16 %v433_v50, %v431_v49 }
  0x45   :  { %1401 = vmatpush1.bf16.msra.mxu1 %v1400_v17  ;;  %1023 = vmatmul.mubr.f32.vlgmr.msra.gmra.mrb[0].mxu0 %v22_v18  ;;  %v423_v17 = vld [vmem:[%s3685_s1 + $0xac8] sm:$0xff]  ;;  %v425_v18 = vld [vmem:[%s3685_s1 + $0xad8] sm:$0xff]  ;;  %v174_v55 = vld [vmem:[%s3685_s1 + $0x300] sm:$0xff] }
  0x46   :  { %1657 = vmatpush1.bf16.msra.mxu0 %v1656_v19  ;;  %1403 = vmatprep.subr.bf16.mxu1 %v1402_v20  ;;  %v55_v19 = vld [vmem:[%s3686_s0 + $0x148] sm:$0xff]  ;;  %v1420_v20 = vpack.c.bf16 %v164_v6, %v162_v5  ;;  %v1678_v29 = vpack.c.bf16 %v425_v18, %v423_v17  ;;  %v432_v59 = vld [vmem:[%s3685_s1 + $0xb10] sm:$0xff]  ;;  %v437_v63 = vld [vmem:[%s3685_s1 + $0xb38] sm:$0xff] }
  0x47   :  { %1659 = vmatprep.subr.bf16.mxu0 %v1658_v24  ;;  %672 = vmatprep.mubr.f32.mxu1 %v31_v0  ;;  %v1676_v24 = vpack.c.bf16 %v420_v11, %v418_v10  ;;  %v179_v60 = vld [vmem:[%s3685_s1 + $0x328] sm:$0xff]  ;;  %v434_v5 = vld [vmem:[%s3685_s1 + $0xb20] sm:$0xff]  ;;  %v441_v11 = vld [vmem:[%s3685_s1 + $0xb58] sm:$0xff] }
  0x48   :  { %1028 = vmatprep.mubr.f32.mxu0 %v39_v3  ;;  %673 = vmatmul.mubr.f32.gmra.mrb[2].mxu1 %v30_v7  ;;  %v435_v62 = vld [vmem:[%s3685_s1 + $0xb28] sm:$0xff]  ;;  %v178_v3 = vld [vmem:[%s3685_s1 + $0x320] sm:$0xff]  ;;  %v436_v7 = vld [vmem:[%s3685_s1 + $0xb30] sm:$0xff] }
  0x49   :  { %1405 = vmatpush1.bf16.msra.mxu1 %v1404_v30  ;;  %1029 = vmatmul.mubr.f32.gmra.mrb[2].mxu0 %v38_v12  ;;  %v171_v30 = vld [vmem:[%s3685_s1 + $0x2e8] sm:$0xff]  ;;  %v1690_v6 = vpack.c.bf16 %v437_v63, %v435_v62  ;;  %v182_v15 = vld [vmem:[%s3685_s1 + $0x340] sm:$0xff]  ;;  %v193_v33 = vld [vmem:[%s3685_s1 + $0x398] sm:$0xff] }
  0x4a   :  { %1661 = vmatpush1.bf16.msra.mxu0 %v1660_v31  ;;  %1407 = vmatprep.subr.bf16.mxu1 %v1406_v32  ;;  %v173_v31 = vld [vmem:[%s3685_s1 + $0x2f8] sm:$0xff]  ;;  %v63_v32 = vld [vmem:[%s3686_s0 + $0x188] sm:$0xff]  ;;  %v438_v17 = vld [vmem:[%s3685_s1 + $0xb40] sm:$0xff] }
  0x4b   :  { %1663 = vmatprep.subr.bf16.mxu0 %v1662_v36  ;;  %678 = vmatprep.mubr.f32.mxu1 %v47_v16  ;;  %v1424_v36 = vpack.c.bf16 %v168_v22, %v166_v21  ;;  %v1426_v41 = vpack.c.bf16 %v173_v31, %v171_v30  ;;  %v439_v10 = vld [vmem:[%s3685_s1 + $0xb48] sm:$0xff]  ;;  %v184_v16 = vld [vmem:[%s3685_s1 + $0x350] sm:$0xff]  ;;  %v189_v21 = vld [vmem:[%s3685_s1 + $0x378] sm:$0xff] }
  0x4c   :  { %1034 = vmatprep.mubr.f32.mxu0 %v55_v19  ;;  %679 = vmatmul.mubr.f32.gmra.mrb[4].mxu1 %v46_v23  ;;  %v1694_v18 = vpack.c.bf16 %v441_v11, %v439_v10  ;;  %v440_v19 = vld [vmem:[%s3685_s1 + $0xb50] sm:$0xff]  ;;  %v443_v22 = vld [vmem:[%s3685_s1 + $0xb68] sm:$0xff]  ;;  %v445_v23 = vld [vmem:[%s3685_s1 + $0xb78] sm:$0xff] }
  0x4d   :  { %1409 = vmatpush1.bf16.msra.mxu1 %v1408_v42  ;;  %1035 = vmatmul.mubr.f32.gmra.mrb[4].mxu0 %v54_v28  ;;  %v426_v42 = vld [vmem:[%s3685_s1 + $0xae0] sm:$0xff]  ;;  %v188_v28 = vld [vmem:[%s3685_s1 + $0x370] sm:$0xff]  ;;  %v1698_v30 = vpack.c.bf16 %v445_v23, %v443_v22  ;;  %v447_v34 = vld [vmem:[%s3685_s1 + $0xb88] sm:$0xff] }
  0x4e   :  { %1665 = vmatpush1.bf16.msra.mxu0 %v1664_v43  ;;  %1411 = vmatprep.subr.bf16.mxu1 %v1410_v44  ;;  %v428_v43 = vld [vmem:[%s3685_s1 + $0xaf0] sm:$0xff]  ;;  %v70_v44 = vld [vmem:[%s3686_s0 + $0x1c0] sm:$0xff] }
  0x4f   :  { %1667 = vmatprep.subr.bf16.mxu0 %v1666_v48  ;;  %684 = vmatprep.mubr.f32.mxu1 %v63_v32  ;;  %v17_v48 = vld [vmem:[%s3686_s0 + $0x18] sm:$0xff]  ;;  %v1684_v53 = vpack.c.bf16 %v428_v43, %v426_v42  ;;  %v186_v27 = vld [vmem:[%s3685_s1 + $0x360] sm:$0xff]  ;;  %v444_v31 = vld [vmem:[%s3685_s1 + $0xb70] sm:$0xff] }
  0x50   :  { %1040 = vmatprep.mubr.f32.mxu0 %v71_v35  ;;  %685 = vmatmul.mubr.f32.gmra.mrb[6].mxu1 %v62_v39  ;;  %v191_v32 = vld [vmem:[%s3685_s1 + $0x388] sm:$0xff]  ;;  %v449_v35 = vld [vmem:[%s3685_s1 + $0xb98] sm:$0xff]  ;;  %v190_v39 = vld [vmem:[%s3685_s1 + $0x380] sm:$0xff] }
  0x51   :  { %1413 = vmatpush1.bf16.msra.mxu1 %v1412_v54  ;;  %1041 = vmatmul.mubr.f32.gmra.mrb[6].mxu0 %v70_v44  ;;  %v1430_v54 = vpack.c.bf16 %v177_v47, %v175_v46  ;;  %v1446_v38 = vpack.c.bf16 %v193_v33, %v191_v32  ;;  %v1702_v42 = vpack.c.bf16 %v449_v35, %v447_v34  ;;  %v448_v43 = vld [vmem:[%s3685_s1 + $0xb90] sm:$0xff]  ;;  %v195_v44 = vld [vmem:[%s3685_s1 + $0x3a8] sm:$0xff]  ;;  %v453_v47 = vld [vmem:[%s3685_s1 + $0xbb8] sm:$0xff] }
  0x52   :  { %1669 = vmatpush1.bf16.msra.mxu0 %v1668_v56  ;;  %1415 = vmatprep.subr.bf16.mxu1 %v1414_v57  ;;  %v176_v56 = vld [vmem:[%s3685_s1 + $0x310] sm:$0xff]  ;;  %v430_v57 = vld [vmem:[%s3685_s1 + $0xb00] sm:$0xff]  ;;  %v451_v46 = vld [vmem:[%s3685_s1 + $0xba8] sm:$0xff] }
  0x53   :  { %1671 = vmatprep.subr.bf16.mxu0 %v1670_v61  ;;  %755 = vmatprep.mubr.f32.mxu1 %v17_v48  ;;  %v181_v61 = vld [vmem:[%s3685_s1 + $0x338] sm:$0xff]  ;;  %v1432_v0 = vpack.c.bf16 %v176_v56, %v174_v55  ;;  %v1688_v1 = vpack.c.bf16 %v432_v59, %v430_v57  ;;  %v452_v55 = vld [vmem:[%s3685_s1 + $0xbb0] sm:$0xff]  ;;  %v199_v56 = vld [vmem:[%s3685_s1 + $0x3c8] sm:$0xff] }
  0x54   :  { %1111 = vmatprep.mubr.f32.mxu0 %v25_v51  ;;  %v1434_v2 = vpack.c.bf16 %v181_v61, %v179_v60  ;;  %v194_v51 = vld [vmem:[%s3685_s1 + $0x3a0] sm:$0xff]  ;;  %v201_v57 = vld [vmem:[%s3685_s1 + $0x3d8] sm:$0xff]  ;;  %v16_v32 = vld [vmem:[%s3686_s0 + $0x10] sm:$0xff] }
  0x55   :  { %1417 = vmatpush1.bf16.msra.mxu1 %v1416_v4  ;;  %v180_v4 = vld [vmem:[%s3685_s1 + $0x330] sm:$0xff]  ;;  %v457_v59 = vld [vmem:[%s3685_s1 + $0xbd8] sm:$0xff]  ;;  %v1454_v62 = vpack.c.bf16 %v201_v57, %v199_v56  ;;  %v198_v63 = vld [vmem:[%s3685_s1 + $0x3c0] sm:$0xff] }
  0x56   :  { %1673 = vmatpush1.bf16.msra.mxu0 %v1672_v8  ;;  %1419 = vmatprep.subr.bf16.mxu1 %v1418_v9  ;;  %v183_v8 = vld [vmem:[%s3685_s1 + $0x348] sm:$0xff]  ;;  %v185_v9 = vld [vmem:[%s3685_s1 + $0x358] sm:$0xff]  ;;  %v1436_v12 = vpack.c.bf16 %v180_v4, %v178_v3  ;;  %v456_v3 = vld [vmem:[%s3685_s1 + $0xbd0] sm:$0xff] }
  0x57   :  { %1675 = vmatprep.subr.bf16.mxu0 %v1674_v13  ;;  %v1692_v13 = vpack.c.bf16 %v436_v7, %v434_v5  ;;  %v1438_v14 = vpack.c.bf16 %v185_v9, %v183_v8  ;;  %v203_v4 = vld [vmem:[%s3685_s1 + $0x3e8] sm:$0xff]  ;;  %v205_v5 = vld [vmem:[%s3685_s1 + $0x3f8] sm:$0xff]  ;;  %v202_v11 = vld [vmem:[%s3685_s1 + $0x3e0] sm:$0xff] }
  0x58   :  { %v461_v7 = vld [vmem:[%s3685_s1 + $0xbf8] sm:$0xff]  ;;  %v1458_v10 = vpack.c.bf16 %v205_v5, %v203_v4  ;;  %v206_v23 = vld [vmem:[%s3685_s1 + $0x400] sm:$0xff]  ;;  %v24_v34 = vld [vmem:[%s3686_s0 + $0x50] sm:$0xff] }
  0x59   :  { %1421 = vmatpush1.bf16.msra.mxu1 %v1420_v20  ;;  %v187_v20 = vld [vmem:[%s3685_s1 + $0x368] sm:$0xff]  ;;  %v472_v57 = vld [vmem:[%s3685_s1 + $0xc50] sm:$0xff] }
  0x5a   :  { %1677 = vmatpush1.bf16.msra.mxu0 %v1676_v24  ;;  %1423 = vmatprep.subr.bf16.mxu1 %v1422_v25  ;;  %v1440_v24 = vpack.c.bf16 %v184_v16, %v182_v15  ;;  %v1696_v25 = vpack.c.bf16 %v440_v19, %v438_v17  ;;  %v1442_v26 = vpack.c.bf16 %v189_v21, %v187_v20  ;;  %v460_v15 = vld [vmem:[%s3685_s1 + $0xbf0] sm:$0xff]  ;;  %v207_v16 = vld [vmem:[%s3685_s1 + $0x408] sm:$0xff]  ;;  %v209_v17 = vld [vmem:[%s3685_s1 + $0x418] sm:$0xff] }
  0x5b   :  { %1679 = vmatprep.subr.bf16.mxu0 %v1678_v29  ;;  %v442_v29 = vld [vmem:[%s3685_s1 + $0xb60] sm:$0xff]  ;;  %v465_v19 = vld [vmem:[%s3685_s1 + $0xc18] sm:$0xff]  ;;  %v1462_v22 = vpack.c.bf16 %v209_v17, %v207_v16  ;;  %v220_v5 = vld [vmem:[%s3685_s1 + $0x470] sm:$0xff] }
  0x5c   :  { %v1700_v37 = vpack.c.bf16 %v444_v31, %v442_v29  ;;  %v213_v29 = vld [vmem:[%s3685_s1 + $0x438] sm:$0xff]  ;;  %v222_v16 = vld [vmem:[%s3685_s1 + $0x480] sm:$0xff] }
  0x5d   :  { %1425 = vmatpush1.bf16.msra.mxu1 %v1424_v36  ;;  %v1444_v36 = vpack.c.bf16 %v188_v28, %v186_v27  ;;  %v464_v27 = vld [vmem:[%s3685_s1 + $0xc10] sm:$0xff]  ;;  %v211_v28 = vld [vmem:[%s3685_s1 + $0x428] sm:$0xff]  ;;  %v469_v31 = vld [vmem:[%s3685_s1 + $0xc38] sm:$0xff] }
  0x5e   :  { %1681 = vmatpush1.bf16.msra.mxu0 %v1680_v40  ;;  %1427 = vmatprep.subr.bf16.mxu1 %v1426_v41  ;;  %v192_v40 = vld [vmem:[%s3685_s1 + $0x390] sm:$0xff]  ;;  %v446_v41 = vld [vmem:[%s3685_s1 + $0xb80] sm:$0xff]  ;;  %v73_v17 = vld [vmem:[%s3686_s0 + $0x1d8] sm:$0xff] }
  0x5f   :  { %1683 = vmatprep.subr.bf16.mxu0 %v1682_v45  ;;  %v197_v45 = vld [vmem:[%s3685_s1 + $0x3b8] sm:$0xff]  ;;  %v1448_v48 = vpack.c.bf16 %v192_v40, %v190_v39  ;;  %v1704_v49 = vpack.c.bf16 %v448_v43, %v446_v41  ;;  %v466_v39 = vld [vmem:[%s3685_s1 + $0xc20] sm:$0xff]  ;;  %v468_v41 = vld [vmem:[%s3685_s1 + $0xc30] sm:$0xff] }
  0x60   :  { %v1450_v50 = vpack.c.bf16 %v197_v45, %v195_v44  ;;  %v217_v43 = vld [vmem:[%s3685_s1 + $0x458] sm:$0xff]  ;;  %v471_v44 = vld [vmem:[%s3685_s1 + $0xc48] sm:$0xff] }
  0x61   :  { %1429 = vmatpush1.bf16.msra.mxu1 %v1428_v52  ;;  %v196_v52 = vld [vmem:[%s3685_s1 + $0x3b0] sm:$0xff]  ;;  %v473_v45 = vld [vmem:[%s3685_s1 + $0xc58] sm:$0xff] }
  0x62   :  { %1685 = vmatpush1.bf16.msra.mxu0 %v1684_v53  ;;  %1431 = vmatprep.subr.bf16.mxu1 %v1430_v54  ;;  %v450_v53 = vld [vmem:[%s3685_s1 + $0xba0] sm:$0xff]  ;;  %v1706_v54 = vpack.c.bf16 %v453_v47, %v451_v46  ;;  %v1452_v60 = vpack.c.bf16 %v196_v52, %v194_v51  ;;  %v33_v46 = vld [vmem:[%s3686_s0 + $0x98] sm:$0xff]  ;;  %v1724_v51 = vpack.c.bf16 %v468_v41, %v466_v39  ;;  %v484_v39 = vld [vmem:[%s3685_s1 + $0xcb0] sm:$0xff] }
  0x63   :  { %1687 = vmatprep.subr.bf16.mxu0 %v1686_v58  ;;  %v455_v58 = vld [vmem:[%s3685_s1 + $0xbc8] sm:$0xff]  ;;  %v1708_v61 = vpack.c.bf16 %v452_v55, %v450_v53  ;;  %v216_v53 = vld [vmem:[%s3685_s1 + $0x450] sm:$0xff]  ;;  %v1726_v56 = vpack.c.bf16 %v473_v45, %v471_v44  ;;  %v233_v41 = vld [vmem:[%s3685_s1 + $0x4d8] sm:$0xff] }
  0x64   :  { %v40_v55 = vld [vmem:[%s3686_s0 + $0xd0] sm:$0xff] }
  0x65   :  { %1433 = vmatpush1.bf16.msra.mxu1 %v1432_v0  ;;  %v200_v0 = vld [vmem:[%s3685_s1 + $0x3d0] sm:$0xff] }
  0x66   :  { %1689 = vmatpush1.bf16.msra.mxu0 %v1688_v1  ;;  %1435 = vmatprep.subr.bf16.mxu1 %v1434_v2  ;;  %v454_v1 = vld [vmem:[%s3685_s1 + $0xbc0] sm:$0xff]  ;;  %v1710_v2 = vpack.c.bf16 %v457_v59, %v455_v58  ;;  %v1456_v8 = vpack.c.bf16 %v200_v0, %v198_v63  ;;  %v219_v58 = vld [vmem:[%s3685_s1 + $0x468] sm:$0xff]  ;;  %v221_v59 = vld [vmem:[%s3685_s1 + $0x478] sm:$0xff] }
  0x67   :  { %1691 = vmatprep.subr.bf16.mxu0 %v1690_v6  ;;  %v459_v6 = vld [vmem:[%s3685_s1 + $0xbe8] sm:$0xff]  ;;  %v1712_v9 = vpack.c.bf16 %v456_v3, %v454_v1  ;;  %v218_v0 = vld [vmem:[%s3685_s1 + $0x460] sm:$0xff]  ;;  %v57_v1 = vld [vmem:[%s3686_s0 + $0x158] sm:$0xff]  ;;  %v1474_v4 = vpack.c.bf16 %v221_v59, %v219_v58 }
  0x68   :  { %v234_v59 = vld [vmem:[%s3685_s1 + $0x4e0] sm:$0xff] }
  0x69   :  { %1437 = vmatpush1.bf16.msra.mxu1 %v1436_v12  ;;  %v204_v12 = vld [vmem:[%s3685_s1 + $0x3f0] sm:$0xff] }
  0x6a   :  { %1693 = vmatpush1.bf16.msra.mxu0 %v1692_v13  ;;  %1439 = vmatprep.subr.bf16.mxu1 %v1438_v14  ;;  %v458_v13 = vld [vmem:[%s3685_s1 + $0xbe0] sm:$0xff]  ;;  %v1714_v14 = vpack.c.bf16 %v461_v7, %v459_v6  ;;  %v1460_v20 = vpack.c.bf16 %v204_v12, %v202_v11  ;;  %v56_v7 = vld [vmem:[%s3686_s0 + $0x150] sm:$0xff]  ;;  %v225_v11 = vld [vmem:[%s3685_s1 + $0x498] sm:$0xff] }
  0x6b   :  { %1695 = vmatprep.subr.bf16.mxu0 %v1694_v18  ;;  %v463_v18 = vld [vmem:[%s3685_s1 + $0xc08] sm:$0xff]  ;;  %v1716_v21 = vpack.c.bf16 %v460_v15, %v458_v13  ;;  %v474_v6 = vld [vmem:[%s3685_s1 + $0xc60] sm:$0xff]  ;;  %v481_v13 = vld [vmem:[%s3685_s1 + $0xc98] sm:$0xff]  ;;  %v1476_v15 = vpack.c.bf16 %v220_v5, %v218_v0 }
  0x6c   :  { %v479_v12 = vld [vmem:[%s3685_s1 + $0xc88] sm:$0xff] }
  0x6d   :  { %1441 = vmatpush1.bf16.msra.mxu1 %v1440_v24  ;;  %v208_v24 = vld [vmem:[%s3685_s1 + $0x410] sm:$0xff]  ;;  %v239_v0 = vld [vmem:[%s3685_s1 + $0x508] sm:$0xff] }
  0x6e   :  { %1697 = vmatpush1.bf16.msra.mxu0 %v1696_v25  ;;  %1443 = vmatprep.subr.bf16.mxu1 %v1442_v26  ;;  %v462_v25 = vld [vmem:[%s3685_s1 + $0xc00] sm:$0xff]  ;;  %v1718_v26 = vpack.c.bf16 %v465_v19, %v463_v18  ;;  %v1464_v33 = vpack.c.bf16 %v208_v24, %v206_v23  ;;  %v64_v18 = vld [vmem:[%s3686_s0 + $0x190] sm:$0xff]  ;;  %v1734_v24 = vpack.c.bf16 %v481_v13, %v479_v12  ;;  %v243_v12 = vld [vmem:[%s3685_s1 + $0x528] sm:$0xff] }
  0x6f   :  { %1699 = vmatprep.subr.bf16.mxu0 %v1698_v30  ;;  %v467_v30 = vld [vmem:[%s3685_s1 + $0xc28] sm:$0xff]  ;;  %v1720_v35 = vpack.c.bf16 %v464_v27, %v462_v25  ;;  %v72_v23 = vld [vmem:[%s3686_s0 + $0x1d0] sm:$0xff]  ;;  %v229_v27 = vld [vmem:[%s3685_s1 + $0x4b8] sm:$0xff] }
  0x70   :  { %v1722_v40 = vpack.c.bf16 %v469_v31, %v467_v30  ;;  %v480_v25 = vld [vmem:[%s3685_s1 + $0xc90] sm:$0xff]  ;;  %v19_v30 = vld [vmem:[%s3686_s0 + $0x28] sm:$0xff]  ;;  %v245_v13 = vld [vmem:[%s3685_s1 + $0x538] sm:$0xff] }
  0x71   :  { %1445 = vmatpush1.bf16.msra.mxu1 %v1444_v36  ;;  %v1466_v36 = vpack.c.bf16 %v213_v29, %v211_v28  ;;  %v483_v28 = vld [vmem:[%s3685_s1 + $0xca8] sm:$0xff]  ;;  %v485_v29 = vld [vmem:[%s3685_s1 + $0xcb8] sm:$0xff] }
  0x72   :  { %1701 = vmatpush1.bf16.msra.mxu0 %v1700_v37  ;;  %1447 = vmatprep.subr.bf16.mxu1 %v1446_v38  ;;  %v210_v37 = vld [vmem:[%s3685_s1 + $0x420] sm:$0xff]  ;;  %v212_v38 = vld [vmem:[%s3685_s1 + $0x430] sm:$0xff] }
  0x73   :  { %1703 = vmatprep.subr.bf16.mxu0 %v1702_v42  ;;  %v215_v42 = vld [vmem:[%s3685_s1 + $0x448] sm:$0xff]  ;;  %v1468_v47 = vpack.c.bf16 %v212_v38, %v210_v37  ;;  %v482_v37 = vld [vmem:[%s3685_s1 + $0xca0] sm:$0xff]  ;;  %v1738_v38 = vpack.c.bf16 %v485_v29, %v483_v28 }
  0x74   :  { %v1470_v52 = vpack.c.bf16 %v217_v43, %v215_v42  ;;  %v487_v42 = vld [vmem:[%s3685_s1 + $0xcc8] sm:$0xff]  ;;  %v489_v43 = vld [vmem:[%s3685_s1 + $0xcd8] sm:$0xff]  ;;  %v1740_v45 = vpack.c.bf16 %v484_v39, %v482_v37 }
  0x75   :  { %1449 = vmatpush1.bf16.msra.mxu1 %v1448_v48  ;;  %v214_v48 = vld [vmem:[%s3685_s1 + $0x440] sm:$0xff]  ;;  %v253_v37 = vld [vmem:[%s3685_s1 + $0x578] sm:$0xff] }
  0x76   :  { %1705 = vmatpush1.bf16.msra.mxu0 %v1704_v49  ;;  %1451 = vmatprep.subr.bf16.mxu1 %v1450_v50  ;;  %v41_v49 = vld [vmem:[%s3686_s0 + $0xd8] sm:$0xff]  ;;  %v32_v50 = vld [vmem:[%s3686_s0 + $0x90] sm:$0xff]  ;;  %v1472_v63 = vpack.c.bf16 %v216_v53, %v214_v48 }
  0x77   :  { %1707 = vmatprep.subr.bf16.mxu0 %v1706_v54  ;;  %v470_v54 = vld [vmem:[%s3685_s1 + $0xc40] sm:$0xff]  ;;  %v232_v48 = vld [vmem:[%s3685_s1 + $0x4d0] sm:$0xff]  ;;  %v237_v53 = vld [vmem:[%s3685_s1 + $0x4f8] sm:$0xff] }
  0x78   :  { %v1728_v3 = vpack.c.bf16 %v472_v57, %v470_v54  ;;  %v491_v54 = vld [vmem:[%s3685_s1 + $0xce8] sm:$0xff]  ;;  %v509_v39 = vld [vmem:[%s3685_s1 + $0xd78] sm:$0xff] }
  0x79   :  { %1453 = vmatpush1.bf16.msra.mxu1 %v1452_v60  ;;  %v475_v60 = vld [vmem:[%s3685_s1 + $0xc68] sm:$0xff] }
  0x7a   :  { %1709 = vmatpush1.bf16.msra.mxu0 %v1708_v61  ;;  %1455 = vmatprep.subr.bf16.mxu1 %v1454_v62  ;;  %v477_v61 = vld [vmem:[%s3685_s1 + $0xc78] sm:$0xff] }
  0x7b   :  { %1711 = vmatprep.subr.bf16.mxu0 %v1710_v2  ;;  %v49_v62 = vld [vmem:[%s3686_s0 + $0x118] sm:$0xff]  ;;  %v48_v2 = vld [vmem:[%s3686_s0 + $0x110] sm:$0xff] }
  0x7d   :  { %1457 = vmatpush1.bf16.msra.mxu1 %v1456_v8  ;;  %v1730_v8 = vpack.c.bf16 %v477_v61, %v475_v60  ;;  %v236_v60 = vld [vmem:[%s3685_s1 + $0x4f0] sm:$0xff]  ;;  %v490_v61 = vld [vmem:[%s3685_s1 + $0xce0] sm:$0xff] }
  0x7e   :  { %1713 = vmatpush1.bf16.msra.mxu0 %v1712_v9  ;;  %1459 = vmatprep.subr.bf16.mxu1 %v1458_v10  ;;  %v476_v9 = vld [vmem:[%s3685_s1 + $0xc70] sm:$0xff]  ;;  %v223_v10 = vld [vmem:[%s3685_s1 + $0x488] sm:$0xff] }
  0x7f   :  { %1715 = vmatprep.subr.bf16.mxu0 %v1714_v14  ;;  %v65_v14 = vld [vmem:[%s3686_s0 + $0x198] sm:$0xff]  ;;  %v1732_v19 = vpack.c.bf16 %v476_v9, %v474_v6  ;;  %v494_v9 = vld [vmem:[%s3685_s1 + $0xd00] sm:$0xff] }
  0x81   :  { %1461 = vmatpush1.bf16.msra.mxu1 %v1460_v20  ;;  %v1478_v20 = vpack.c.bf16 %v225_v11, %v223_v10  ;;  %v496_v11 = vld [vmem:[%s3685_s1 + $0xd10] sm:$0xff] }
  0x82   :  { %1717 = vmatpush1.bf16.msra.mxu0 %v1716_v21  ;;  %1463 = vmatprep.subr.bf16.mxu1 %v1462_v22  ;;  %v224_v21 = vld [vmem:[%s3685_s1 + $0x490] sm:$0xff]  ;;  %v478_v22 = vld [vmem:[%s3685_s1 + $0xc80] sm:$0xff] }
  0x83   :  { %1719 = vmatprep.subr.bf16.mxu0 %v1718_v26  ;;  %v227_v26 = vld [vmem:[%s3685_s1 + $0x4a8] sm:$0xff]  ;;  %v1480_v31 = vpack.c.bf16 %v224_v21, %v222_v16  ;;  %v498_v21 = vld [vmem:[%s3685_s1 + $0xd20] sm:$0xff] }
  0x84   :  { %756 = vmatmul.mubr.f32.vlgmr.msra.gmra.mrb[0].mxu1 %v16_v32  ;;  %v27_v32 = vld [vmem:[%s3686_s0 + $0x68] sm:$0xff] }
  0x85   :  { %1465 = vmatpush1.bf16.msra.mxu1 %v1464_v33  ;;  %1112 = vmatmul.mubr.f32.vlgmr.msra.gmra.mrb[0].mxu0 %v24_v34  ;;  %v1736_v33 = vpack.c.bf16 %v480_v25, %v478_v22  ;;  %v1482_v34 = vpack.c.bf16 %v229_v27, %v227_v26  ;;  %v249_v25 = vld [vmem:[%s3685_s1 + $0x558] sm:$0xff]  ;;  %v503_v26 = vld [vmem:[%s3685_s1 + $0xd48] sm:$0xff] }
  0x86   :  { %1721 = vmatpush1.bf16.msra.mxu0 %v1720_v35  ;;  %1467 = vmatprep.subr.bf16.mxu1 %v1466_v36  ;;  %v226_v35 = vld [vmem:[%s3685_s1 + $0x4a0] sm:$0xff]  ;;  %v228_v36 = vld [vmem:[%s3685_s1 + $0x4b0] sm:$0xff]  ;;  %v505_v27 = vld [vmem:[%s3685_s1 + $0xd58] sm:$0xff] }
  0x87   :  { %1723 = vmatprep.subr.bf16.mxu0 %v1722_v40  ;;  %761 = vmatprep.mubr.f32.mxu1 %v33_v46  ;;  %v231_v40 = vld [vmem:[%s3685_s1 + $0x4c8] sm:$0xff]  ;;  %v1484_v44 = vpack.c.bf16 %v228_v36, %v226_v35  ;;  %v504_v35 = vld [vmem:[%s3685_s1 + $0xd50] sm:$0xff] }
  0x88   :  { %1117 = vmatprep.mubr.f32.mxu0 %v41_v49  ;;  %762 = vmatmul.mubr.f32.gmra.mrb[2].mxu1 %v32_v50  ;;  %v1486_v46 = vpack.c.bf16 %v233_v41, %v231_v40  ;;  %v486_v49 = vld [vmem:[%s3685_s1 + $0xcc0] sm:$0xff]  ;;  %v1742_v50 = vpack.c.bf16 %v489_v43, %v487_v42  ;;  %v251_v36 = vld [vmem:[%s3685_s1 + $0x568] sm:$0xff] }
  0x89   :  { %1469 = vmatpush1.bf16.msra.mxu1 %v1468_v47  ;;  %1118 = vmatmul.mubr.f32.gmra.mrb[2].mxu0 %v40_v55  ;;  %v230_v47 = vld [vmem:[%s3685_s1 + $0x4c0] sm:$0xff]  ;;  %v493_v55 = vld [vmem:[%s3685_s1 + $0xcf8] sm:$0xff]  ;;  %v1506_v42 = vpack.c.bf16 %v253_v37, %v251_v36 }
  0x8a   :  { %1725 = vmatpush1.bf16.msra.mxu0 %v1724_v51  ;;  %1471 = vmatprep.subr.bf16.mxu1 %v1470_v52  ;;  %v488_v51 = vld [vmem:[%s3685_s1 + $0xcd0] sm:$0xff]  ;;  %v235_v52 = vld [vmem:[%s3685_s1 + $0x4e8] sm:$0xff]  ;;  %v250_v43 = vld [vmem:[%s3685_s1 + $0x560] sm:$0xff] }
  0x8b   :  { %1727 = vmatprep.subr.bf16.mxu0 %v1726_v56  ;;  %767 = vmatprep.mubr.f32.mxu1 %v49_v62  ;;  %v1488_v56 = vpack.c.bf16 %v232_v48, %v230_v47  ;;  %v1744_v57 = vpack.c.bf16 %v488_v51, %v486_v49  ;;  %v1490_v58 = vpack.c.bf16 %v237_v53, %v235_v52  ;;  %v508_v47 = vld [vmem:[%s3685_s1 + $0xd70] sm:$0xff]  ;;  %v255_v48 = vld [vmem:[%s3685_s1 + $0x588] sm:$0xff]  ;;  %v257_v49 = vld [vmem:[%s3685_s1 + $0x598] sm:$0xff] }
  0x8c   :  { %1123 = vmatprep.mubr.f32.mxu0 %v57_v1  ;;  %768 = vmatmul.mubr.f32.gmra.mrb[4].mxu1 %v48_v2  ;;  %v1746_v62 = vpack.c.bf16 %v493_v55, %v491_v54  ;;  %v241_v1 = vld [vmem:[%s3685_s1 + $0x518] sm:$0xff]  ;;  %v495_v2 = vld [vmem:[%s3685_s1 + $0xd08] sm:$0xff]  ;;  %v1510_v54 = vpack.c.bf16 %v257_v49, %v255_v48  ;;  %v254_v55 = vld [vmem:[%s3685_s1 + $0x580] sm:$0xff] }
  0x8d   :  { %1473 = vmatpush1.bf16.msra.mxu1 %v1472_v63  ;;  %1124 = vmatmul.mubr.f32.gmra.mrb[4].mxu0 %v56_v7  ;;  %v492_v63 = vld [vmem:[%s3685_s1 + $0xcf0] sm:$0xff]  ;;  %v1494_v6 = vpack.c.bf16 %v241_v1, %v239_v0  ;;  %v238_v7 = vld [vmem:[%s3685_s1 + $0x500] sm:$0xff]  ;;  %v513_v51 = vld [vmem:[%s3685_s1 + $0xd98] sm:$0xff] }
  0x8e   :  { %1729 = vmatpush1.bf16.msra.mxu0 %v1728_v3  ;;  %1475 = vmatprep.subr.bf16.mxu1 %v1474_v4  ;;  %v497_v3 = vld [vmem:[%s3685_s1 + $0xd18] sm:$0xff]  ;;  %v1492_v4 = vpack.c.bf16 %v236_v60, %v234_v59  ;;  %v1748_v5 = vpack.c.bf16 %v492_v63, %v490_v61  ;;  %v512_v59 = vld [vmem:[%s3685_s1 + $0xd90] sm:$0xff]  ;;  %v259_v60 = vld [vmem:[%s3685_s1 + $0x5a8] sm:$0xff] }
  0x8f   :  { %1731 = vmatprep.subr.bf16.mxu0 %v1730_v8  ;;  %773 = vmatprep.mubr.f32.mxu1 %v65_v14  ;;  %v240_v8 = vld [vmem:[%s3685_s1 + $0x510] sm:$0xff]  ;;  %v1750_v10 = vpack.c.bf16 %v497_v3, %v495_v2  ;;  %v499_v14 = vld [vmem:[%s3685_s1 + $0xd28] sm:$0xff]  ;;  %v261_v61 = vld [vmem:[%s3685_s1 + $0x5b8] sm:$0xff] }
  0x90   :  { %1129 = vmatprep.mubr.f32.mxu0 %v73_v17  ;;  %774 = vmatmul.mubr.f32.gmra.mrb[6].mxu1 %v64_v18  ;;  %v1496_v16 = vpack.c.bf16 %v240_v8, %v238_v7  ;;  %v1752_v17 = vpack.c.bf16 %v496_v11, %v494_v9  ;;  %v1498_v18 = vpack.c.bf16 %v245_v13, %v243_v12  ;;  %v517_v63 = vld [vmem:[%s3685_s1 + $0xdb8] sm:$0xff]  ;;  %v258_v3 = vld [vmem:[%s3685_s1 + $0x5a0] sm:$0xff]  ;;  %v516_v7 = vld [vmem:[%s3685_s1 + $0xdb0] sm:$0xff] }
  0x91   :  { %1477 = vmatpush1.bf16.msra.mxu1 %v1476_v15  ;;  %1130 = vmatmul.mubr.f32.gmra.mrb[6].mxu0 %v72_v23  ;;  %v501_v15 = vld [vmem:[%s3685_s1 + $0xd38] sm:$0xff]  ;;  %v500_v23 = vld [vmem:[%s3685_s1 + $0xd30] sm:$0xff]  ;;  %v1514_v2 = vpack.c.bf16 %v261_v61, %v259_v60  ;;  %v263_v8 = vld [vmem:[%s3685_s1 + $0x5c8] sm:$0xff] }
  0x92   :  { %1733 = vmatpush1.bf16.msra.mxu0 %v1732_v19  ;;  %1479 = vmatprep.subr.bf16.mxu1 %v1478_v20  ;;  %v242_v19 = vld [vmem:[%s3685_s1 + $0x520] sm:$0xff]  ;;  %v244_v20 = vld [vmem:[%s3685_s1 + $0x530] sm:$0xff]  ;;  %v1754_v22 = vpack.c.bf16 %v501_v15, %v499_v14  ;;  %v1756_v29 = vpack.c.bf16 %v500_v23, %v498_v21  ;;  %v265_v9 = vld [vmem:[%s3685_s1 + $0x5d8] sm:$0xff] }
  0x93   :  { %1735 = vmatprep.subr.bf16.mxu0 %v1734_v24  ;;  %844 = vmatprep.mubr.f32.mxu1 %v19_v30  ;;  %v247_v24 = vld [vmem:[%s3685_s1 + $0x548] sm:$0xff]  ;;  %v1500_v28 = vpack.c.bf16 %v244_v20, %v242_v19  ;;  %v521_v11 = vld [vmem:[%s3685_s1 + $0xdd8] sm:$0xff]  ;;  %v1518_v14 = vpack.c.bf16 %v265_v9, %v263_v8  ;;  %v262_v15 = vld [vmem:[%s3685_s1 + $0x5c0] sm:$0xff] }
  0x94   :  { %1200 = vmatprep.mubr.f32.mxu0 %v27_v32  ;;  %v1502_v30 = vpack.c.bf16 %v249_v25, %v247_v24  ;;  %v248_v32 = vld [vmem:[%s3685_s1 + $0x550] sm:$0xff]  ;;  %v267_v20 = vld [vmem:[%s3685_s1 + $0x5e8] sm:$0xff]  ;;  %v269_v21 = vld [vmem:[%s3685_s1 + $0x5f8] sm:$0xff] }
  0x95   :  { %1481 = vmatpush1.bf16.msra.mxu1 %v1480_v31  ;;  %v246_v31 = vld [vmem:[%s3685_s1 + $0x540] sm:$0xff]  ;;  %v520_v19 = vld [vmem:[%s3685_s1 + $0xdd0] sm:$0xff]  ;;  %v525_v23 = vld [vmem:[%s3685_s1 + $0xdf8] sm:$0xff] }
  0x96   :  { %1737 = vmatpush1.bf16.msra.mxu0 %v1736_v33  ;;  %1483 = vmatprep.subr.bf16.mxu1 %v1482_v34  ;;  %v502_v33 = vld [vmem:[%s3685_s1 + $0xd40] sm:$0xff]  ;;  %v1758_v34 = vpack.c.bf16 %v505_v27, %v503_v26  ;;  %v1504_v40 = vpack.c.bf16 %v248_v32, %v246_v31  ;;  %v1522_v26 = vpack.c.bf16 %v269_v21, %v267_v20  ;;  %v524_v31 = vld [vmem:[%s3685_s1 + $0xdf0] sm:$0xff]  ;;  %v271_v32 = vld [vmem:[%s3685_s1 + $0x608] sm:$0xff] }
  0x97   :  { %1739 = vmatprep.subr.bf16.mxu0 %v1738_v38  ;;  %v507_v38 = vld [vmem:[%s3685_s1 + $0xd68] sm:$0xff]  ;;  %v1760_v41 = vpack.c.bf16 %v504_v35, %v502_v33  ;;  %v266_v27 = vld [vmem:[%s3685_s1 + $0x5e0] sm:$0xff]  ;;  %v273_v33 = vld [vmem:[%s3685_s1 + $0x618] sm:$0xff] }
  0x98   :  { %v529_v35 = vld [vmem:[%s3685_s1 + $0xe18] sm:$0xff]  ;;  %v18_v48 = vld [vmem:[%s3686_s0 + $0x20] sm:$0xff]  ;;  %v535_v60 = vld [vmem:[%s3685_s1 + $0xe48] sm:$0xff] }
  0x99   :  { %1485 = vmatpush1.bf16.msra.mxu1 %v1484_v44  ;;  %v252_v44 = vld [vmem:[%s3685_s1 + $0x570] sm:$0xff]  ;;  %v537_v61 = vld [vmem:[%s3685_s1 + $0xe58] sm:$0xff] }
  0x9a   :  { %1741 = vmatpush1.bf16.msra.mxu0 %v1740_v45  ;;  %1487 = vmatprep.subr.bf16.mxu1 %v1486_v46  ;;  %v506_v45 = vld [vmem:[%s3685_s1 + $0xd60] sm:$0xff]  ;;  %v1762_v46 = vpack.c.bf16 %v509_v39, %v507_v38  ;;  %v1508_v52 = vpack.c.bf16 %v252_v44, %v250_v43  ;;  %v1526_v38 = vpack.c.bf16 %v273_v33, %v271_v32  ;;  %v528_v43 = vld [vmem:[%s3685_s1 + $0xe10] sm:$0xff]  ;;  %v275_v44 = vld [vmem:[%s3685_s1 + $0x628] sm:$0xff] }
  0x9b   :  { %1743 = vmatprep.subr.bf16.mxu0 %v1742_v50  ;;  %v511_v50 = vld [vmem:[%s3685_s1 + $0xd88] sm:$0xff]  ;;  %v1764_v53 = vpack.c.bf16 %v508_v47, %v506_v45  ;;  %v270_v39 = vld [vmem:[%s3685_s1 + $0x600] sm:$0xff]  ;;  %v277_v45 = vld [vmem:[%s3685_s1 + $0x638] sm:$0xff]  ;;  %v1790_v8 = vpack.c.bf16 %v537_v61, %v535_v60 }
  0x9c   :  { %v533_v47 = vld [vmem:[%s3685_s1 + $0xe38] sm:$0xff]  ;;  %v536_v9 = vld [vmem:[%s3685_s1 + $0xe50] sm:$0xff]  ;;  %v286_v32 = vld [vmem:[%s3685_s1 + $0x680] sm:$0xff] }
  0x9d   :  { %1489 = vmatpush1.bf16.msra.mxu1 %v1488_v56  ;;  %v256_v56 = vld [vmem:[%s3685_s1 + $0x590] sm:$0xff]  ;;  %v75_v33 = vld [vmem:[%s3686_s0 + $0x1e8] sm:$0xff] }
  0x9e   :  { %1745 = vmatpush1.bf16.msra.mxu0 %v1744_v57  ;;  %1491 = vmatprep.subr.bf16.mxu1 %v1490_v58  ;;  %v510_v57 = vld [vmem:[%s3685_s1 + $0xd80] sm:$0xff]  ;;  %v1766_v58 = vpack.c.bf16 %v513_v51, %v511_v50  ;;  %v1512_v0 = vpack.c.bf16 %v256_v56, %v254_v55  ;;  %v284_v21 = vld [vmem:[%s3685_s1 + $0x670] sm:$0xff] }
  0x9f   :  { %1747 = vmatprep.subr.bf16.mxu0 %v1746_v62  ;;  %v515_v62 = vld [vmem:[%s3685_s1 + $0xda8] sm:$0xff]  ;;  %v1768_v1 = vpack.c.bf16 %v512_v59, %v510_v57  ;;  %v26_v50 = vld [vmem:[%s3686_s0 + $0x60] sm:$0xff]  ;;  %v532_v57 = vld [vmem:[%s3685_s1 + $0xe30] sm:$0xff] }
  0xa0   :  { %v530_v55 = vld [vmem:[%s3685_s1 + $0xe20] sm:$0xff]  ;;  %v281_v59 = vld [vmem:[%s3685_s1 + $0x658] sm:$0xff] }
  0xa1   :  { %1493 = vmatpush1.bf16.msra.mxu1 %v1492_v4  ;;  %v260_v4 = vld [vmem:[%s3685_s1 + $0x5b0] sm:$0xff] }
  0xa2   :  { %1749 = vmatpush1.bf16.msra.mxu0 %v1748_v5  ;;  %1495 = vmatprep.subr.bf16.mxu1 %v1494_v6  ;;  %v514_v5 = vld [vmem:[%s3685_s1 + $0xda0] sm:$0xff]  ;;  %v1770_v6 = vpack.c.bf16 %v517_v63, %v515_v62  ;;  %v1516_v12 = vpack.c.bf16 %v260_v4, %v258_v3  ;;  %v35_v62 = vld [vmem:[%s3686_s0 + $0xa8] sm:$0xff]  ;;  %v1788_v3 = vpack.c.bf16 %v532_v57, %v530_v55  ;;  %v548_v55 = vld [vmem:[%s3685_s1 + $0xeb0] sm:$0xff] }
  0xa3   :  { %1751 = vmatprep.subr.bf16.mxu0 %v1750_v10  ;;  %v519_v10 = vld [vmem:[%s3685_s1 + $0xdc8] sm:$0xff]  ;;  %v1772_v13 = vpack.c.bf16 %v516_v7, %v514_v5  ;;  %v280_v5 = vld [vmem:[%s3685_s1 + $0x650] sm:$0xff]  ;;  %v42_v7 = vld [vmem:[%s3686_s0 + $0xe0] sm:$0xff] }
  0xa4   :  { %v297_v57 = vld [vmem:[%s3685_s1 + $0x6d8] sm:$0xff] }
  0xa5   :  { %1497 = vmatpush1.bf16.msra.mxu1 %v1496_v16  ;;  %v264_v16 = vld [vmem:[%s3685_s1 + $0x5d0] sm:$0xff] }
  0xa6   :  { %1753 = vmatpush1.bf16.msra.mxu0 %v1752_v17  ;;  %1499 = vmatprep.subr.bf16.mxu1 %v1498_v18  ;;  %v518_v17 = vld [vmem:[%s3685_s1 + $0xdc0] sm:$0xff]  ;;  %v1774_v18 = vpack.c.bf16 %v521_v11, %v519_v10  ;;  %v1520_v24 = vpack.c.bf16 %v264_v16, %v262_v15  ;;  %v283_v10 = vld [vmem:[%s3685_s1 + $0x668] sm:$0xff]  ;;  %v285_v11 = vld [vmem:[%s3685_s1 + $0x678] sm:$0xff] }
  0xa7   :  { %1755 = vmatprep.subr.bf16.mxu0 %v1754_v22  ;;  %v523_v22 = vld [vmem:[%s3685_s1 + $0xde8] sm:$0xff]  ;;  %v1776_v25 = vpack.c.bf16 %v520_v19, %v518_v17  ;;  %v282_v16 = vld [vmem:[%s3685_s1 + $0x660] sm:$0xff]  ;;  %v1538_v20 = vpack.c.bf16 %v285_v11, %v283_v10 }
  0xa8   :  { %v59_v17 = vld [vmem:[%s3686_s0 + $0x168] sm:$0xff]  ;;  %v298_v11 = vld [vmem:[%s3685_s1 + $0x6e0] sm:$0xff] }
  0xa9   :  { %1501 = vmatpush1.bf16.msra.mxu1 %v1500_v28  ;;  %v268_v28 = vld [vmem:[%s3685_s1 + $0x5f0] sm:$0xff] }
  0xaa   :  { %1757 = vmatpush1.bf16.msra.mxu0 %v1756_v29  ;;  %1503 = vmatprep.subr.bf16.mxu1 %v1502_v30  ;;  %v522_v29 = vld [vmem:[%s3685_s1 + $0xde0] sm:$0xff]  ;;  %v1778_v30 = vpack.c.bf16 %v525_v23, %v523_v22  ;;  %v1524_v36 = vpack.c.bf16 %v268_v28, %v266_v27  ;;  %v289_v27 = vld [vmem:[%s3685_s1 + $0x698] sm:$0xff]  ;;  %v543_v28 = vld [vmem:[%s3685_s1 + $0xe88] sm:$0xff] }
  0xab   :  { %1759 = vmatprep.subr.bf16.mxu0 %v1758_v34  ;;  %v527_v34 = vld [vmem:[%s3685_s1 + $0xe08] sm:$0xff]  ;;  %v1780_v37 = vpack.c.bf16 %v524_v31, %v522_v29  ;;  %v538_v22 = vld [vmem:[%s3685_s1 + $0xe60] sm:$0xff]  ;;  %v545_v29 = vld [vmem:[%s3685_s1 + $0xe98] sm:$0xff]  ;;  %v1540_v31 = vpack.c.bf16 %v284_v21, %v282_v16 }
  0xac   :  { %v58_v23 = vld [vmem:[%s3686_s0 + $0x160] sm:$0xff]  ;;  %v303_v16 = vld [vmem:[%s3685_s1 + $0x708] sm:$0xff] }
  0xad   :  { %1505 = vmatpush1.bf16.msra.mxu1 %v1504_v40  ;;  %v272_v40 = vld [vmem:[%s3685_s1 + $0x610] sm:$0xff] }
  0xae   :  { %1761 = vmatpush1.bf16.msra.mxu0 %v1760_v41  ;;  %1507 = vmatprep.subr.bf16.mxu1 %v1506_v42  ;;  %v526_v41 = vld [vmem:[%s3685_s1 + $0xe00] sm:$0xff]  ;;  %v1782_v42 = vpack.c.bf16 %v529_v35, %v527_v34  ;;  %v1528_v49 = vpack.c.bf16 %v272_v40, %v270_v39  ;;  %v1798_v40 = vpack.c.bf16 %v545_v29, %v543_v28  ;;  %v307_v28 = vld [vmem:[%s3685_s1 + $0x728] sm:$0xff]  ;;  %v309_v29 = vld [vmem:[%s3685_s1 + $0x738] sm:$0xff] }
  0xaf   :  { %1763 = vmatprep.subr.bf16.mxu0 %v1762_v46  ;;  %v531_v46 = vld [vmem:[%s3685_s1 + $0xe28] sm:$0xff]  ;;  %v1784_v51 = vpack.c.bf16 %v528_v43, %v526_v41  ;;  %v66_v34 = vld [vmem:[%s3686_s0 + $0x1a0] sm:$0xff]  ;;  %v544_v41 = vld [vmem:[%s3685_s1 + $0xe90] sm:$0xff] }
  0xb0   :  { %v1786_v56 = vpack.c.bf16 %v533_v47, %v531_v46  ;;  %v74_v39 = vld [vmem:[%s3686_s0 + $0x1e0] sm:$0xff]  ;;  %v293_v43 = vld [vmem:[%s3685_s1 + $0x6b8] sm:$0xff] }
  0xb1   :  { %1509 = vmatpush1.bf16.msra.mxu1 %v1508_v52  ;;  %v1530_v52 = vpack.c.bf16 %v277_v45, %v275_v44  ;;  %v547_v44 = vld [vmem:[%s3685_s1 + $0xea8] sm:$0xff]  ;;  %v549_v45 = vld [vmem:[%s3685_s1 + $0xeb8] sm:$0xff] }
  0xb2   :  { %1765 = vmatpush1.bf16.msra.mxu0 %v1764_v53  ;;  %1511 = vmatprep.subr.bf16.mxu1 %v1510_v54  ;;  %v274_v53 = vld [vmem:[%s3685_s1 + $0x620] sm:$0xff]  ;;  %v276_v54 = vld [vmem:[%s3685_s1 + $0x630] sm:$0xff]  ;;  %v21_v46 = vld [vmem:[%s3686_s0 + $0x38] sm:$0xff] }
  0xb3   :  { %1767 = vmatprep.subr.bf16.mxu0 %v1766_v58  ;;  %v279_v58 = vld [vmem:[%s3685_s1 + $0x648] sm:$0xff]  ;;  %v1532_v63 = vpack.c.bf16 %v276_v54, %v274_v53  ;;  %v546_v53 = vld [vmem:[%s3685_s1 + $0xea0] sm:$0xff]  ;;  %v1802_v54 = vpack.c.bf16 %v549_v45, %v547_v44 }
  0xb4   :  { %v1534_v4 = vpack.c.bf16 %v281_v59, %v279_v58  ;;  %v551_v58 = vld [vmem:[%s3685_s1 + $0xec8] sm:$0xff]  ;;  %v553_v59 = vld [vmem:[%s3685_s1 + $0xed8] sm:$0xff]  ;;  %v1804_v61 = vpack.c.bf16 %v548_v55, %v546_v53 }
  0xb5   :  { %1513 = vmatpush1.bf16.msra.mxu1 %v1512_v0  ;;  %v278_v0 = vld [vmem:[%s3685_s1 + $0x640] sm:$0xff]  ;;  %v317_v53 = vld [vmem:[%s3685_s1 + $0x778] sm:$0xff] }
  0xb6   :  { %1769 = vmatpush1.bf16.msra.mxu0 %v1768_v1  ;;  %1515 = vmatprep.subr.bf16.mxu1 %v1514_v2  ;;  %v43_v1 = vld [vmem:[%s3686_s0 + $0xe8] sm:$0xff]  ;;  %v34_v2 = vld [vmem:[%s3686_s0 + $0xa0] sm:$0xff]  ;;  %v1536_v15 = vpack.c.bf16 %v280_v5, %v278_v0  ;;  %v296_v0 = vld [vmem:[%s3685_s1 + $0x6d0] sm:$0xff] }
  0xb7   :  { %1771 = vmatprep.subr.bf16.mxu0 %v1770_v6  ;;  %v534_v6 = vld [vmem:[%s3685_s1 + $0xe40] sm:$0xff]  ;;  %v301_v5 = vld [vmem:[%s3685_s1 + $0x6f8] sm:$0xff] }
  0xb8   :  { %v1792_v19 = vpack.c.bf16 %v536_v9, %v534_v6  ;;  %v555_v6 = vld [vmem:[%s3685_s1 + $0xee8] sm:$0xff]  ;;  %v573_v55 = vld [vmem:[%s3685_s1 + $0xf78] sm:$0xff] }
  0xb9   :  { %1517 = vmatpush1.bf16.msra.mxu1 %v1516_v12  ;;  %v539_v12 = vld [vmem:[%s3685_s1 + $0xe68] sm:$0xff] }
  0xba   :  { %1773 = vmatpush1.bf16.msra.mxu0 %v1772_v13  ;;  %1519 = vmatprep.subr.bf16.mxu1 %v1518_v14  ;;  %v541_v13 = vld [vmem:[%s3685_s1 + $0xe78] sm:$0xff]  ;;  %v51_v14 = vld [vmem:[%s3686_s0 + $0x128] sm:$0xff] }
  0xbb   :  { %1775 = vmatprep.subr.bf16.mxu0 %v1774_v18  ;;  %v50_v18 = vld [vmem:[%s3686_s0 + $0x120] sm:$0xff] }
  0xbd   :  { %1521 = vmatpush1.bf16.msra.mxu1 %v1520_v24  ;;  %v1794_v24 = vpack.c.bf16 %v541_v13, %v539_v12  ;;  %v300_v12 = vld [vmem:[%s3685_s1 + $0x6f0] sm:$0xff]  ;;  %v554_v13 = vld [vmem:[%s3685_s1 + $0xee0] sm:$0xff] }
  0xbe   :  { %1777 = vmatpush1.bf16.msra.mxu0 %v1776_v25  ;;  %1523 = vmatprep.subr.bf16.mxu1 %v1522_v26  ;;  %v540_v25 = vld [vmem:[%s3685_s1 + $0xe70] sm:$0xff]  ;;  %v287_v26 = vld [vmem:[%s3685_s1 + $0x688] sm:$0xff] }
  0xbf   :  { %1779 = vmatprep.subr.bf16.mxu0 %v1778_v30  ;;  %v67_v30 = vld [vmem:[%s3686_s0 + $0x1a8] sm:$0xff]  ;;  %v1796_v35 = vpack.c.bf16 %v540_v25, %v538_v22  ;;  %v558_v25 = vld [vmem:[%s3685_s1 + $0xf00] sm:$0xff] }
  0xc1   :  { %1525 = vmatpush1.bf16.msra.mxu1 %v1524_v36  ;;  %v1542_v36 = vpack.c.bf16 %v289_v27, %v287_v26  ;;  %v560_v27 = vld [vmem:[%s3685_s1 + $0xf10] sm:$0xff] }
  0xc2   :  { %1781 = vmatpush1.bf16.msra.mxu0 %v1780_v37  ;;  %1527 = vmatprep.subr.bf16.mxu1 %v1526_v38  ;;  %v288_v37 = vld [vmem:[%s3685_s1 + $0x690] sm:$0xff]  ;;  %v542_v38 = vld [vmem:[%s3685_s1 + $0xe80] sm:$0xff] }
  0xc3   :  { %1783 = vmatprep.subr.bf16.mxu0 %v1782_v42  ;;  %v291_v42 = vld [vmem:[%s3685_s1 + $0x6a8] sm:$0xff]  ;;  %v1544_v47 = vpack.c.bf16 %v288_v37, %v286_v32  ;;  %v562_v37 = vld [vmem:[%s3685_s1 + $0xf20] sm:$0xff] }
  0xc4   :  { %845 = vmatmul.mubr.f32.vlgmr.msra.gmra.mrb[0].mxu1 %v18_v48  ;;  %v29_v48 = vld [vmem:[%s3686_s0 + $0x78] sm:$0xff] }
  0xc5   :  { %1529 = vmatpush1.bf16.msra.mxu1 %v1528_v49  ;;  %1201 = vmatmul.mubr.f32.vlgmr.msra.gmra.mrb[0].mxu0 %v26_v50  ;;  %v1800_v49 = vpack.c.bf16 %v544_v41, %v542_v38  ;;  %v1546_v50 = vpack.c.bf16 %v293_v43, %v291_v42  ;;  %v313_v41 = vld [vmem:[%s3685_s1 + $0x758] sm:$0xff]  ;;  %v567_v42 = vld [vmem:[%s3685_s1 + $0xf48] sm:$0xff] }
  0xc6   :  { %1785 = vmatpush1.bf16.msra.mxu0 %v1784_v51  ;;  %1531 = vmatprep.subr.bf16.mxu1 %v1530_v52  ;;  %v290_v51 = vld [vmem:[%s3685_s1 + $0x6a0] sm:$0xff]  ;;  %v292_v52 = vld [vmem:[%s3685_s1 + $0x6b0] sm:$0xff]  ;;  %v569_v43 = vld [vmem:[%s3685_s1 + $0xf58] sm:$0xff] }
  0xc7   :  { %1787 = vmatprep.subr.bf16.mxu0 %v1786_v56  ;;  %850 = vmatprep.mubr.f32.mxu1 %v35_v62  ;;  %v295_v56 = vld [vmem:[%s3685_s1 + $0x6c8] sm:$0xff]  ;;  %v1548_v60 = vpack.c.bf16 %v292_v52, %v290_v51  ;;  %v568_v51 = vld [vmem:[%s3685_s1 + $0xf50] sm:$0xff] }
  0xc8   :  { %1206 = vmatprep.mubr.f32.mxu0 %v43_v1  ;;  %851 = vmatmul.mubr.f32.gmra.mrb[2].mxu1 %v34_v2  ;;  %v1550_v62 = vpack.c.bf16 %v297_v57, %v295_v56  ;;  %v550_v1 = vld [vmem:[%s3685_s1 + $0xec0] sm:$0xff]  ;;  %v1806_v2 = vpack.c.bf16 %v553_v59, %v551_v58  ;;  %v315_v52 = vld [vmem:[%s3685_s1 + $0x768] sm:$0xff] }
  0xc9   :  { %1533 = vmatpush1.bf16.msra.mxu1 %v1532_v63  ;;  %1207 = vmatmul.mubr.f32.gmra.mrb[2].mxu0 %v42_v7  ;;  %v294_v63 = vld [vmem:[%s3685_s1 + $0x6c0] sm:$0xff]  ;;  %v557_v7 = vld [vmem:[%s3685_s1 + $0xef8] sm:$0xff]  ;;  %v1570_v58 = vpack.c.bf16 %v317_v53, %v315_v52 }
  0xca   :  { %1789 = vmatpush1.bf16.msra.mxu0 %v1788_v3  ;;  %1535 = vmatprep.subr.bf16.mxu1 %v1534_v4  ;;  %v552_v3 = vld [vmem:[%s3685_s1 + $0xed0] sm:$0xff]  ;;  %v299_v4 = vld [vmem:[%s3685_s1 + $0x6e8] sm:$0xff]  ;;  %v314_v59 = vld [vmem:[%s3685_s1 + $0x760] sm:$0xff] }
  0xcb   :  { %1791 = vmatprep.subr.bf16.mxu0 %v1790_v8  ;;  %856 = vmatprep.mubr.f32.mxu1 %v51_v14  ;;  %v1552_v8 = vpack.c.bf16 %v296_v0, %v294_v63  ;;  %v1808_v9 = vpack.c.bf16 %v552_v3, %v550_v1  ;;  %v1554_v10 = vpack.c.bf16 %v301_v5, %v299_v4  ;;  %v572_v63 = vld [vmem:[%s3685_s1 + $0xf70] sm:$0xff]  ;;  %v319_v0 = vld [vmem:[%s3685_s1 + $0x788] sm:$0xff]  ;;  %v321_v1 = vld [vmem:[%s3685_s1 + $0x798] sm:$0xff] }
  0xcc   :  { %1212 = vmatprep.mubr.f32.mxu0 %v59_v17  ;;  %857 = vmatmul.mubr.f32.gmra.mrb[4].mxu1 %v50_v18  ;;  %v1810_v14 = vpack.c.bf16 %v557_v7, %v555_v6  ;;  %v305_v17 = vld [vmem:[%s3685_s1 + $0x718] sm:$0xff]  ;;  %v559_v18 = vld [vmem:[%s3685_s1 + $0xf08] sm:$0xff]  ;;  %v1574_v6 = vpack.c.bf16 %v321_v1, %v319_v0  ;;  %v318_v7 = vld [vmem:[%s3685_s1 + $0x780] sm:$0xff]  ;;  %v592_v0 = vlaneseq }
  0xcd   :  { %1537 = vmatpush1.bf16.msra.mxu1 %v1536_v15  ;;  %1213 = vmatmul.mubr.f32.gmra.mrb[4].mxu0 %v58_v23  ;;  %v556_v15 = vld [vmem:[%s3685_s1 + $0xef0] sm:$0xff]  ;;  %v1558_v22 = vpack.c.bf16 %v305_v17, %v303_v16  ;;  %v302_v23 = vld [vmem:[%s3685_s1 + $0x700] sm:$0xff]  ;;  %v577_v3 = vld [vmem:[%s3685_s1 + $0xf98] sm:$0xff] }
  0xce   :  { %1793 = vmatpush1.bf16.msra.mxu0 %v1792_v19  ;;  %1539 = vmatprep.subr.bf16.mxu1 %v1538_v20  ;;  %v561_v19 = vld [vmem:[%s3685_s1 + $0xf18] sm:$0xff]  ;;  %v1556_v20 = vpack.c.bf16 %v300_v12, %v298_v11  ;;  %v1812_v21 = vpack.c.bf16 %v556_v15, %v554_v13  ;;  %v576_v11 = vld [vmem:[%s3685_s1 + $0xf90] sm:$0xff]  ;;  %v323_v12 = vld [vmem:[%s3685_s1 + $0x7a8] sm:$0xff]  ;;  %v593_v1 = vshrl.u32 %v592_v0, 7 }
  0xcf   :  { %1795 = vmatprep.subr.bf16.mxu0 %v1794_v24  ;;  %862 = vmatprep.mubr.f32.mxu1 %v67_v30  ;;  %v304_v24 = vld [vmem:[%s3685_s1 + $0x710] sm:$0xff]  ;;  %v1814_v26 = vpack.c.bf16 %v561_v19, %v559_v18  ;;  %v563_v30 = vld [vmem:[%s3685_s1 + $0xf28] sm:$0xff]  ;;  %v325_v13 = vld [vmem:[%s3685_s1 + $0x7b8] sm:$0xff] }
  0xd0   :  { %1218 = vmatprep.mubr.f32.mxu0 %v75_v33  ;;  %863 = vmatmul.mubr.f32.gmra.mrb[6].mxu1 %v66_v34  ;;  %v1560_v32 = vpack.c.bf16 %v304_v24, %v302_v23  ;;  %v1816_v33 = vpack.c.bf16 %v560_v27, %v558_v25  ;;  %v1562_v34 = vpack.c.bf16 %v309_v29, %v307_v28  ;;  %v581_v15 = vld [vmem:[%s3685_s1 + $0xfb8] sm:$0xff]  ;;  %v322_v19 = vld [vmem:[%s3685_s1 + $0x7a0] sm:$0xff]  ;;  %v580_v23 = vld [vmem:[%s3685_s1 + $0xfb0] sm:$0xff] }
  0xd1   :  { %1541 = vmatpush1.bf16.msra.mxu1 %v1540_v31  ;;  %1219 = vmatmul.mubr.f32.gmra.mrb[6].mxu0 %v74_v39  ;;  %v565_v31 = vld [vmem:[%s3685_s1 + $0xf38] sm:$0xff]  ;;  %v564_v39 = vld [vmem:[%s3685_s1 + $0xf30] sm:$0xff]  ;;  %v1578_v18 = vpack.c.bf16 %v325_v13, %v323_v12  ;;  %v327_v24 = vld [vmem:[%s3685_s1 + $0x7c8] sm:$0xff] }
  0xd2   :  { %1797 = vmatpush1.bf16.msra.mxu0 %v1796_v35  ;;  %1543 = vmatprep.subr.bf16.mxu1 %v1542_v36  ;;  %v306_v35 = vld [vmem:[%s3685_s1 + $0x720] sm:$0xff]  ;;  %v308_v36 = vld [vmem:[%s3685_s1 + $0x730] sm:$0xff]  ;;  %v1818_v38 = vpack.c.bf16 %v565_v31, %v563_v30  ;;  %v1820_v45 = vpack.c.bf16 %v564_v39, %v562_v37  ;;  %v329_v25 = vld [vmem:[%s3685_s1 + $0x7d8] sm:$0xff] }
  0xd3   :  { %1799 = vmatprep.subr.bf16.mxu0 %v1798_v40  ;;  %933 = vmatprep.mubr.f32.mxu1 %v21_v46  ;;  %v311_v40 = vld [vmem:[%s3685_s1 + $0x748] sm:$0xff]  ;;  %v1564_v44 = vpack.c.bf16 %v308_v36, %v306_v35  ;;  %v585_v27 = vld [vmem:[%s3685_s1 + $0xfd8] sm:$0xff]  ;;  %v1582_v30 = vpack.c.bf16 %v329_v25, %v327_v24  ;;  %v326_v31 = vld [vmem:[%s3685_s1 + $0x7c0] sm:$0xff] }
  0xd4   :  { %1289 = vmatprep.mubr.f32.mxu0 %v29_v48  ;;  %v1566_v46 = vpack.c.bf16 %v313_v41, %v311_v40  ;;  %v312_v48 = vld [vmem:[%s3685_s1 + $0x750] sm:$0xff]  ;;  %v331_v36 = vld [vmem:[%s3685_s1 + $0x7e8] sm:$0xff]  ;;  %v333_v37 = vld [vmem:[%s3685_s1 + $0x7f8] sm:$0xff] }
  0xd5   :  { %1545 = vmatpush1.bf16.msra.mxu1 %v1544_v47  ;;  %v310_v47 = vld [vmem:[%s3685_s1 + $0x740] sm:$0xff]  ;;  %v584_v35 = vld [vmem:[%s3685_s1 + $0xfd0] sm:$0xff]  ;;  %v589_v39 = vld [vmem:[%s3685_s1 + $0xff8] sm:$0xff] }
  0xd6   :  { %1801 = vmatpush1.bf16.msra.mxu0 %v1800_v49  ;;  %1547 = vmatprep.subr.bf16.mxu1 %v1546_v50  ;;  %v566_v49 = vld [vmem:[%s3685_s1 + $0xf40] sm:$0xff]  ;;  %v1822_v50 = vpack.c.bf16 %v569_v43, %v567_v42  ;;  %v1568_v56 = vpack.c.bf16 %v312_v48, %v310_v47  ;;  %v1586_v42 = vpack.c.bf16 %v333_v37, %v331_v36  ;;  %v588_v47 = vld [vmem:[%s3685_s1 + $0xff0] sm:$0xff]  ;;  %v37_v52 = vld [vmem:[%s3686_s0 + $0xb8] sm:$0xff] }
  0xd7   :  { %1803 = vmatprep.subr.bf16.mxu0 %v1802_v54  ;;  %v571_v54 = vld [vmem:[%s3685_s1 + $0xf68] sm:$0xff]  ;;  %v1824_v57 = vpack.c.bf16 %v568_v51, %v566_v49  ;;  %v330_v43 = vld [vmem:[%s3685_s1 + $0x7e0] sm:$0xff]  ;;  %v28_v51 = vld [vmem:[%s3686_s0 + $0x70] sm:$0xff] }
  0xd8   :  { %v45_v53 = vld [vmem:[%s3686_s0 + $0xf8] sm:$0xff] }
  0xd9   :  { %1549 = vmatpush1.bf16.msra.mxu1 %v1548_v60  ;;  %v316_v60 = vld [vmem:[%s3685_s1 + $0x770] sm:$0xff] }
  0xda   :  { %1805 = vmatpush1.bf16.msra.mxu0 %v1804_v61  ;;  %1551 = vmatprep.subr.bf16.mxu1 %v1550_v62  ;;  %v570_v61 = vld [vmem:[%s3685_s1 + $0xf60] sm:$0xff]  ;;  %v1826_v62 = vpack.c.bf16 %v573_v55, %v571_v54  ;;  %v1572_v4 = vpack.c.bf16 %v316_v60, %v314_v59  ;;  %v36_v54 = vld [vmem:[%s3686_s0 + $0xb0] sm:$0xff]  ;;  %v69_v60 = vld [vmem:[%s3686_s0 + $0x1b8] sm:$0xff] }
  0xdb   :  { %1807 = vmatprep.subr.bf16.mxu0 %v1806_v2  ;;  %v575_v2 = vld [vmem:[%s3685_s1 + $0xf88] sm:$0xff]  ;;  %v1828_v5 = vpack.c.bf16 %v572_v63, %v570_v61  ;;  %v44_v55 = vld [vmem:[%s3686_s0 + $0xf0] sm:$0xff]  ;;  %v77_v61 = vld [vmem:[%s3686_s0 + $0x1f8] sm:$0xff] }
  0xdc   :  { %v60_v59 = vld [vmem:[%s3686_s0 + $0x170] sm:$0xff] }
  0xdd   :  { %1553 = vmatpush1.bf16.msra.mxu1 %v1552_v8  ;;  %v320_v8 = vld [vmem:[%s3685_s1 + $0x790] sm:$0xff] }
  0xde   :  { %1809 = vmatpush1.bf16.msra.mxu0 %v1808_v9  ;;  %1555 = vmatprep.subr.bf16.mxu1 %v1554_v10  ;;  %v574_v9 = vld [vmem:[%s3685_s1 + $0xf80] sm:$0xff]  ;;  %v1830_v10 = vpack.c.bf16 %v577_v3, %v575_v2  ;;  %v1576_v16 = vpack.c.bf16 %v320_v8, %v318_v7  ;;  %v76_v63 = vld [vmem:[%s3686_s0 + $0x1f0] sm:$0xff]  ;;  %v594_v2 = vsub.s32 0, %v593_v1 }
  0xdf   :  { %1811 = vmatprep.subr.bf16.mxu0 %v1810_v14  ;;  %v579_v14 = vld [vmem:[%s3685_s1 + $0xfa8] sm:$0xff]  ;;  %v1832_v17 = vpack.c.bf16 %v576_v11, %v574_v9  ;;  %v590_v3 = vld [vmem:[%s3687_s2] sm:$0x3] }
  0xe1   :  { %1557 = vmatpush1.bf16.msra.mxu1 %v1556_v20  ;;  %v324_v20 = vld [vmem:[%s3685_s1 + $0x7b0] sm:$0xff] }
  0xe2   :  { %1813 = vmatpush1.bf16.msra.mxu0 %v1812_v21  ;;  %1559 = vmatprep.subr.bf16.mxu1 %v1558_v22  ;;  %v578_v21 = vld [vmem:[%s3685_s1 + $0xfa0] sm:$0xff]  ;;  %v1834_v22 = vpack.c.bf16 %v581_v15, %v579_v14  ;;  %v1580_v28 = vpack.c.bf16 %v324_v20, %v322_v19 }
  0xe3   :  { %1815 = vmatprep.subr.bf16.mxu0 %v1814_v26  ;;  %v583_v26 = vld [vmem:[%s3685_s1 + $0xfc8] sm:$0xff]  ;;  %v1836_v29 = vpack.c.bf16 %v580_v23, %v578_v21 }
  0xe5   :  { %1561 = vmatpush1.bf16.msra.mxu1 %v1560_v32  ;;  %v328_v32 = vld [vmem:[%s3685_s1 + $0x7d0] sm:$0xff] }
  0xe6   :  { %1817 = vmatpush1.bf16.msra.mxu0 %v1816_v33  ;;  %1563 = vmatprep.subr.bf16.mxu1 %v1562_v34  ;;  %v582_v33 = vld [vmem:[%s3685_s1 + $0xfc0] sm:$0xff]  ;;  %v1838_v34 = vpack.c.bf16 %v585_v27, %v583_v26  ;;  %v1584_v40 = vpack.c.bf16 %v328_v32, %v326_v31 }
  0xe7   :  { %1819 = vmatprep.subr.bf16.mxu0 %v1818_v38  ;;  %v587_v38 = vld [vmem:[%s3685_s1 + $0xfe8] sm:$0xff]  ;;  %v1840_v41 = vpack.c.bf16 %v584_v35, %v582_v33 }
  0xe9   :  { %1565 = vmatpush1.bf16.msra.mxu1 %v1564_v44  ;;  %v332_v44 = vld [vmem:[%s3685_s1 + $0x7f0] sm:$0xff] }
  0xea   :  { %1821 = vmatpush1.bf16.msra.mxu0 %v1820_v45  ;;  %1567 = vmatprep.subr.bf16.mxu1 %v1566_v46  ;;  %v1842_v45 = vpack.c.bf16 %v589_v39, %v587_v38  ;;  %v586_v46 = vld [vmem:[%s3685_s1 + $0xfe0] sm:$0xff]  ;;  %v1588_v48 = vpack.c.bf16 %v332_v44, %v330_v43 }
  0xeb   :  { %1823 = vmatprep.subr.bf16.mxu0 %v1822_v50  ;;  %v1844_v49 = vpack.c.bf16 %v588_v47, %v586_v46  ;;  %v20_v50 = vld [vmem:[%s3686_s0 + $0x30] sm:$0xff] }
  0xed   :  { %1569 = vmatpush1.bf16.msra.mxu1 %v1568_v56  ;;  %v53_v56 = vld [vmem:[%s3686_s0 + $0x138] sm:$0xff] }
  0xee   :  { %1825 = vmatpush1.bf16.msra.mxu0 %v1824_v57  ;;  %1571 = vmatprep.subr.bf16.mxu1 %v1570_v58  ;;  %v61_v57 = vld [vmem:[%s3686_s0 + $0x178] sm:$0xff]  ;;  %v52_v58 = vld [vmem:[%s3686_s0 + $0x130] sm:$0xff] }
  0xef   :  { %1827 = vmatprep.subr.bf16.mxu0 %v1826_v62  ;;  %v68_v62 = vld [vmem:[%s3686_s0 + $0x1b0] sm:$0xff] }
  0xf1   :  { %1573 = vmatpush1.bf16.msra.mxu1 %v1572_v4  ;;  %v598_v4 = vsub.s32 1, %v593_v1 }
  0xf2   :  { %1829 = vmatpush1.bf16.msra.mxu0 %v1828_v5  ;;  %1575 = vmatprep.subr.bf16.mxu1 %v1574_v6  ;;  %v595_v5 = vrot.slane %v590_v3, %v594_v2 }
  0xf3   :  { %1831 = vmatprep.subr.bf16.mxu0 %v1830_v10  ;;  %v599_v6 = vrot.slane %v590_v3, %v598_v4 }
  0xf5   :  { %1577 = vmatpush1.bf16.msra.mxu1 %v1576_v16 }
  0xf6   :  { %1833 = vmatpush1.bf16.msra.mxu0 %v1832_v17  ;;  %1579 = vmatprep.subr.bf16.mxu1 %v1578_v18 }
  0xf7   :  { %1835 = vmatprep.subr.bf16.mxu0 %v1834_v22 }
  0xf9   :  { %1581 = vmatpush1.bf16.msra.mxu1 %v1580_v28 }
  0xfa   :  { %1837 = vmatpush1.bf16.msra.mxu0 %v1836_v29  ;;  %1583 = vmatprep.subr.bf16.mxu1 %v1582_v30 }
  0xfb   :  { %1839 = vmatprep.subr.bf16.mxu0 %v1838_v34 }
  0xfd   :  { %1585 = vmatpush1.bf16.msra.mxu1 %v1584_v40 }
  0xfe   :  { %1841 = vmatpush1.bf16.msra.mxu0 %v1840_v41  ;;  %1587 = vmatprep.subr.bf16.mxu1 %v1586_v42 }
  0xff   :  { %1843 = vmatprep.subr.bf16.mxu0 %v1842_v45 }
 0x101   :  { %1589 = vmatpush1.bf16.msra.mxu1 %v1588_v48 }
 0x102   :  { %1845 = vmatpush1.bf16.msra.mxu0 %v1844_v49 }
 0x104   :  { %934 = vmatmul.mubr.f32.vlgmr.msra.gmra.mrb[0].mxu1 %v20_v50 }
 0x105   :  { %1290 = vmatmul.mubr.f32.vlgmr.msra.gmra.mrb[0].mxu0 %v28_v51  ;;  %939 = vmatprep.mubr.f32.mxu1 %v37_v52 }
 0x106   :  { %1295 = vmatprep.mubr.f32.mxu0 %v45_v53 }
 0x108   :  { %940 = vmatmul.mubr.f32.gmra.mrb[2].mxu1 %v36_v54 }
 0x109   :  { %1296 = vmatmul.mubr.f32.gmra.mrb[2].mxu0 %v44_v55  ;;  %945 = vmatprep.mubr.f32.mxu1 %v53_v56 }
 0x10a   :  { %1301 = vmatprep.mubr.f32.mxu0 %v61_v57 }
 0x10c   :  { %946 = vmatmul.mubr.f32.gmra.mrb[4].mxu1 %v52_v58 }
 0x10d   :  { %1302 = vmatmul.mubr.f32.gmra.mrb[4].mxu0 %v60_v59  ;;  %951 = vmatprep.mubr.f32.mxu1 %v69_v60 }
 0x10e   :  { %1307 = vmatprep.mubr.f32.mxu0 %v77_v61 }
 0x110   :  { %952 = vmatmul.mubr.f32.gmra.mrb[6].mxu1 %v68_v62 }
 0x111   :  { %1308 = vmatmul.mubr.f32.gmra.mrb[6].mxu0 %v76_v63 }
 0x1d7   :  { %v935_v7 = vpop.f32.mrb[0].mxu1 }
 0x1d8   :  { %v1846_v8 = vadd.f32 %v935_v7, %v595_v5  ;;  %v1291_v9 = vpop.f32.mrb[0].mxu0  ;;  %v937_v10 = vpop.f32.mrb[1].mxu1 }
 0x1d9   :  { %v1848_v11 = vadd.f32 %v937_v10, %v599_v6  ;;  %v1293_v12 = vpop.f32.mrb[1].mxu0 }
 0x1da   :  { %v1847_v13 = vadd.f32 %v1846_v8, %v1291_v9 }
 0x1db   :  { %v1849_v14 = vadd.f32 %v1848_v11, %v1293_v12  ;;  %v941_v15 = vpop.f32.mrb[2].mxu1 }
 0x1dc   :  { %v1314_v16 = vmax.f32 %v1847_v13, 0.0  ;;  %v1850_v17 = vadd.f32 %v941_v15, %v595_v5  ;;  %v1297_v18 = vpop.f32.mrb[2].mxu0  ;;  %v943_v19 = vpop.f32.mrb[3].mxu1 }
 0x1dd   :  { %v1315_v20 = vmax.f32 %v1849_v14, 0.0  ;;  %v1852_v21 = vadd.f32 %v943_v19, %v599_v6  ;;  %v1299_v22 = vpop.f32.mrb[3].mxu0 }
 0x1de   :  { %1322 = vst [vmem:[%s3688_s3] sm:$0xff] %v1314_v16  ;;  %v1851_v23 = vadd.f32 %v1850_v17, %v1297_v18 }
 0x1df   :  { %1323 = vst [vmem:[%s3688_s3 + $0x8] sm:$0xff] %v1315_v20  ;;  %v1853_v24 = vadd.f32 %v1852_v21, %v1299_v22  ;;  %v947_v25 = vpop.f32.mrb[4].mxu1 }
 0x1e0   :  { %v1316_v26 = vmax.f32 %v1851_v23, 0.0  ;;  %v1854_v27 = vadd.f32 %v947_v25, %v595_v5  ;;  %v1303_v28 = vpop.f32.mrb[4].mxu0  ;;  %v949_v29 = vpop.f32.mrb[5].mxu1 }
 0x1e1   :  { %v1317_v30 = vmax.f32 %v1853_v24, 0.0  ;;  %v1856_v31 = vadd.f32 %v949_v29, %v599_v6  ;;  %v1305_v32 = vpop.f32.mrb[5].mxu0 }
 0x1e2   :  { %1324 = vst [vmem:[%s3688_s3 + $0x10] sm:$0xff] %v1316_v26  ;;  %v1855_v33 = vadd.f32 %v1854_v27, %v1303_v28 }
 0x1e3   :  { %1325 = vst [vmem:[%s3688_s3 + $0x18] sm:$0xff] %v1317_v30  ;;  %v1857_v34 = vadd.f32 %v1856_v31, %v1305_v32  ;;  %v953_v35 = vpop.f32.mrb[6].mxu1 }
 0x1e4   :  { %v1318_v36 = vmax.f32 %v1855_v33, 0.0  ;;  %v1858_v37 = vadd.f32 %v953_v35, %v595_v5  ;;  %v1309_v38 = vpop.f32.mrb[6].mxu0  ;;  %v955_v39 = vpop.f32.mrb[7].mxu1 }
 0x1e5   :  { %v1319_v40 = vmax.f32 %v1857_v34, 0.0  ;;  %v1860_v41 = vadd.f32 %v955_v39, %v599_v6  ;;  %v1311_v42 = vpop.f32.mrb[7].mxu0 }
 0x1e6   :  { %1326 = vst [vmem:[%s3688_s3 + $0x20] sm:$0xff] %v1318_v36  ;;  %v1859_v43 = vadd.f32 %v1858_v37, %v1309_v38 }
 0x1e7   :  { %1327 = vst [vmem:[%s3688_s3 + $0x28] sm:$0xff] %v1319_v40  ;;  %v1861_v44 = vadd.f32 %v1860_v41, %v1311_v42 }
 0x1e8   :  { %v1320_v45 = vmax.f32 %v1859_v43, 0.0 }
 0x1e9   :  { %v1321_v46 = vmax.f32 %v1861_v44, 0.0 }
 0x1ea   :  { %1328 = vst [vmem:[%s3688_s3 + $0x30] sm:$0xff] %v1320_v45 }
 0x1eb   :  { %1329 = vst [vmem:[%s3688_s3 + $0x38] sm:$0xff] %v1321_v46 }

// kernel: autoencoder_forward.6
= control target key start
LH: loop header
LB: loop body
LE: loop exit
PB: predicated region body
PF: predicated region fallthrough
CT: control target
= control target key end

     0   :  { %10 = vsyncpa [#allocation3], 0  ;;  %s5867_s0 = inlined_call_operand.vmem [shape: f32[9,32,32], index: 0, kind: input, shape index: {}]   ;;  %s5868_s1 = inlined_call_operand.hbm [shape: f32[6,9,256,256], index: 1, kind: input, shape index: {}]   ;;  %s5869_s2 = inlined_call_operand.vmem [shape: f32[6,256,256], index: 2, kind: input, shape index: {}]   ;;  %s5870_s3 = inlined_call_operand.vmem [shape: f32[6,1,256], index: 3, kind: input, shape index: {}]   ;;  %s5871_s4 = inlined_call_operand.vmem [shape: f32[32,256], index: 4, kind: input, shape index: {}]   ;;  %s5872_s5 = inlined_call_operand.vmem [shape: f32[32,256], index: 5, kind: output, shape index: {}]  }
   0x1   :  { %12 = vsyncpa [#allocation3 + $0x1], 0  ;;  %s4556_s18 = smov 0   ;;  %s4558_s19 = smov 0  }
   0x2   :  { %s4560_s20 = smov 0   ;;  %s4562_s21 = smov 0  }
   0x3 LB: > { %s4575_s22 = sadd.s32 4294967295, %s4520_s21   ;;  %s4578_s23 = sadd.s32 1, %s4520_s21   ;;  %s4520_s21 = sphi %s4562_s21, %s5883_s21   ;;  %s4516_s20 = sphi %s4560_s20, %s5882_s20   ;;  %s4512_s19 = sphi %s4558_s19, %s5881_s19   ;;  %s4508_s18 = sphi %s4556_s18, %s5880_s18  }
   0x4   : > { %s43_s24 = ssub.s32 %s4520_s21, %s4578_s23  ;;  %s46_s25 = sadd.s32 1, %s4516_s20 }
   0x5   : > { %p44_p0 = scmp.eq.s32.totalorder %s43_s24, 0  ;;  %p53_p1 = scmp.ne.s32.totalorder %s4516_s20, %s4512_s19 }
   0x6   : > { %p54_p2 = scmp.eq.s32.totalorder %s4520_s21, 0  ;;  %p59_p3 = scmp.ne.s32.totalorder %s4512_s19, %s4508_s18 }
   0x7   : > { %s4588_s26 = scalar_select %p44_p0, %s4516_s20, %s46_s25  }
   0x8   : > { %p55_p4 = por %p54_p2, %p53_p1  ;;  %p60_p5 = scmp.eq.s32.totalorder %s4575_s22, 0 }
   0x9   : > { %p4409_p6 = scmp.lt.s32.totalorder %s4520_s21, 6  ;;  %s183_s28 = sand.u32 1, %s4516_s20  }
   0xa   : > { %p4592_p7 = por %p60_p5, %p59_p3  ;;  %s4400_s29 = smul.u32 4608, %s183_s28 }
   0xb   : > { %s4401_s30 = smul.u32 73728, %s4520_s21  ;;  %p4598_p8 = pnand %p4409_p6, %p55_p4 }
   0xc   : > { %s187_s10 = scalar_lea.vmem [#allocation2], %s4400_s29  ;;  %s4610_s12 = scalar_lea.sflag [#allocation3], %s183_s28 }
   0xd   : > { %s4605_s9 = scalar_lea.hbm %s5868_s1, %s4401_s30  ;;  %s194_s11 = sshll.u32 %s187_s10, 4  ;;  %s4607_s11 = int_to_ptr.vmem [resolvable:$true] %s194_s11 }
   0xe   : > { %s4456_s13 = scalar_lea.hbm %s4605_s9, 73728  ;;  %p4458_p11 = pneg %p4598_p8 }
   0xf   : > { %p4457_p10 = scmp.ne.s32.totalorder %s4605_s9, %s4456_s13  ;;  %s4461_s16 = scalar_lea.hbm %s5868_s1, 442368 }
  0x10   : > { %p4462_p0 = scmp.lt.u32.totalorder %s4605_s9, %s5868_s1  ;;  %p4463_p1 = scmp.lt.u32.totalorder %s4461_s16, %s4456_s13 }
  0x11   : > { %p4459_p12 = pnand %p4458_p11, %p4457_p10  ;;  %p4465_p3 = scmp.lt.u32.totalorder %s4456_s13, %s4605_s9 }
  0x12   : > { %p4464_p2 = por %p4463_p1, %p4462_p0 }
  0x13   : > { %p4460_p13 = pneg %p4459_p12 }
  0x14   : > { %p4466_p4 = por %p4465_p3, %p4464_p2 }
  0x16   : > { %p4467_p5 = pnand %p4466_p4, %p4460_p13 }
  0x18   : > { %4470 = shalt.err (!%p4467_p5)
}
  0x19   : > { %s4471_s24 = scalar_lea.vmem %s4607_s11, 73728  ;;  %s4522_s25 = smov [#allocation2]  }
  0x1a   : > { %p4472_p6 = scmp.ne.s32.totalorder %s4607_s11, %s4471_s24  ;;  %s4476_s28 = sshll.u32 %s4522_s25, 4  ;;  %s4477_s28 = int_to_ptr.vmem [resolvable:$false] %s4476_s28 }
  0x1b   : > { %s4478_s29 = scalar_lea.vmem %s4477_s28, 147456  ;;  %p4479_p9 = scmp.lt.s32.totalorder %s4607_s11, %s4477_s28 }
  0x1c   : > { %p4474_p10 = pnand %p4472_p6, %p4458_p11  ;;  %p4480_p0 = scmp.lt.s32.totalorder %s4478_s29, %s4471_s24 }
  0x1e   : > { %p4475_p12 = pneg %p4474_p10  ;;  %p4481_p1 = por %p4480_p0, %p4479_p9 }
  0x20   : > { %p4482_p2 = pnand %p4481_p1, %p4475_p12 }
  0x22   : > { %4485 = shalt.err (!%p4482_p2)
}
  0x23   : > { %s4523_s30 = smov 256   ;;  %s4524_s7 = smov 16  }
  0x24   : > { %4408 = dma.hbm_to_vmem [thread:$0]  (!%p4598_p8), %s4605_s9, 73728, %s4607_s11, %s4610_s12, %s4523_s30, %s4523_s30, %s4524_s7  }
  0x25   : > { %p217_p11 = scmp.lt.s32.totalorder %s4520_s21, 7  ;;  %p5875_p13 = scmp.ge.s32.totalorder %s4520_s21, 1 }
  0x27   : > { %p218_p3 = pnand %p5875_p13, %p217_p11 }
  0x28   : > { %s223_s8 = sand.u32 (!%p218_p3), 1, %s4512_s19  }
  0x29   : > { %221 = sbr.rel (%p218_p3) target bundleno = 1758 (0x6de), region = 40  ;;  %s224_s13 = scalar_lea.sflag (!%p218_p3), [#allocation3], %s223_s8 }
  0x2a   : > { %s4402_s10 = smul.u32 (!%p218_p3), 4608, %s223_s8 }
  0x2c   : > { %s4642_s14 = scalar_lea.vmem (!%p218_p3), [#allocation2], %s4402_s10 }
  0x30   : > { %4503 = dma.done.wait (%p4592_p7), %s224_s13, 73728  }
  0x31   : > { %4505 = vsyncadd (%p4592_p7), %s224_s13, 4294893568  ;;  %p258_p8 = scmp.lt.s32.totalorder %s4575_s22, 5  ;;  %s268_s21 = ssub.s32 0, %s4575_s22 }
  0x32   : > { %s3029_s9 = smin.u32 %s4575_s22, %s268_s21  ;;  %p267_p7 = scmp.lt.s32.totalorder %s4575_s22, 0 }
  0x33   : > { %s259_s6 = scalar_select %p258_p8, %s4575_s22, 5 }
  0x34   : > { %4446 = sdivrem.u32 %s3029_s9, 3  ;;  %p3032_p6 = scmp.ne.s32.totalorder %s4575_s22, 0 }
  0x35   : > { %s3615_s11 = sshll.u32 %s259_s6, 9  ;;  %s3028_s12 = sshll.u32 %s259_s6, 1  ;;  %v286_v0 = vld [vmem:[%s5871_s4] sm:$0xff] (!%p3032_p6)  ;;  %v287_v1 = vld [vmem:[%s5871_s4 + $0x8] sm:$0xff] (!%p3032_p6)  ;;  %v288_v2 = vld [vmem:[%s5871_s4 + $0x10] sm:$0xff] (!%p3032_p6) }
  0x36   : > { %s4655_s17 = scalar_lea.vmem %s5869_s2, %s3615_s11  ;;  %s4660_s27 = scalar_lea.vmem %s5870_s3, %s3028_s12  ;;  %294 = vst [vmem:[%s5872_s5] sm:$0xff] (!%p3032_p6), %v286_v0  ;;  %295 = vst [vmem:[%s5872_s5 + $0x8] sm:$0xff] (!%p3032_p6), %v287_v1  ;;  %v289_v3 = vld [vmem:[%s5871_s4 + $0x18] sm:$0xff] (!%p3032_p6)  ;;  %v290_v4 = vld [vmem:[%s5871_s4 + $0x20] sm:$0xff] (!%p3032_p6) }
  0x37   : > { %296 = vst [vmem:[%s5872_s5 + $0x10] sm:$0xff] (!%p3032_p6), %v288_v2  ;;  %v291_v5 = vld [vmem:[%s5871_s4 + $0x28] sm:$0xff] (!%p3032_p6)  ;;  %297 = vst [vmem:[%s5872_s5 + $0x18] sm:$0xff] (!%p3032_p6), %v289_v3  ;;  %v292_v6 = vld [vmem:[%s5871_s4 + $0x30] sm:$0xff] (!%p3032_p6) }
  0x38   : > { %298 = vst [vmem:[%s5872_s5 + $0x20] sm:$0xff] (!%p3032_p6), %v290_v4  ;;  %299 = vst [vmem:[%s5872_s5 + $0x28] sm:$0xff] (!%p3032_p6), %v291_v5  ;;  %v293_v7 = vld [vmem:[%s5871_s4 + $0x38] sm:$0xff] (!%p3032_p6) }
  0x39   : > { %300 = vst [vmem:[%s5872_s5 + $0x30] sm:$0xff] (!%p3032_p6), %v292_v6  ;;  %301 = vst [vmem:[%s5872_s5 + $0x38] sm:$0xff] (!%p3032_p6), %v293_v7 }
  0x3d   : > { %s4447_s25 = spop.drf %4446  ;;  %285 = sbr.rel (%p3032_p6) target bundleno = 68 (0x44), region = 48 }
  0x3e   : > { %s272_s28 = ssub.s32 0, %s4447_s25 }
  0x3f   : > { %s5885_s28 = smov (!%p267_p7, %s272_s28), %s4447_s25 }
  0x40   : > { %p3031_p9 = scmp.lt.s32.totalorder %s5885_s28, 0  ;;  %s278_s29 = sadd.s32 3, %s5885_s28 }
  0x42   : > { %s5887_s29 = smov (!%p3031_p9, %s278_s29), %s5885_s28 }
  0x43   : > { %p280_p4 = scmp.gt.s32.totalorder %s5887_s29, 0  ;;  %p281_p5 = scmp.eq.s32.totalorder %s5887_s29, 2 }
  0x44 PF: > { %v303_v8 = vld [vmem:[%s5872_s5 + $0x8] sm:$0xff]  ;;  %v305_v9 = vld [vmem:[%s5872_s5 + $0x18] sm:$0xff]  ;;  %v302_v10 = vld [vmem:[%s5872_s5] sm:$0xff]  ;;  %v4525_v17 = vmov 0.0   ;;  %vm347_vm1 = vcmask 261120  }
  0x45   : > { %s318_s8 = scalar_select %p280_p4, 1, 0  ;;  %v311_v11 = vmax.f32 %v303_v8, 0.0  ;;  %v313_v12 = vmax.f32 %v305_v9, 0.0  ;;  %v304_v13 = vld [vmem:[%s5872_s5 + $0x10] sm:$0xff]  ;;  %v310_v14 = vmax.f32 %v302_v10, 0.0  ;;  %424 = vmatprep.mubr.f32.mxu0 %v4525_v17 }
  0x46   : > { %v307_v15 = vld [vmem:[%s5872_s5 + $0x28] sm:$0xff]  ;;  %v309_v16 = vld [vmem:[%s5872_s5 + $0x38] sm:$0xff]  ;;  %v312_v19 = vmax.f32 %v304_v13, 0.0  ;;  %v306_v22 = vld [vmem:[%s5872_s5 + $0x20] sm:$0xff] }
  0x47   : > { %v319_v18 = vstv %s318_s8  ;;  %v315_v20 = vmax.f32 %v307_v15, 0.0  ;;  %v317_v21 = vmax.f32 %v309_v16, 0.0  ;;  %v308_v23 = vld [vmem:[%s5872_s5 + $0x30] sm:$0xff]  ;;  %v314_v25 = vmax.f32 %v306_v22, 0.0  ;;  %v450_v38 = vld [vmem:[%s4642_s14 + $0x8] sm:$0xff]  ;;  %v452_v39 = vld [vmem:[%s4642_s14 + $0x18] sm:$0xff] }
  0x48   : > { %vm4743_vm0 = vcmp.eq.s32.totalorder %v319_v18, 1  ;;  %v316_v26 = vmax.f32 %v308_v23, 0.0  ;;  %v3624_v41 = vpack.c.bf16 %v452_v39, %v450_v38  ;;  %v449_v42 = vld [vmem:[%s4642_s14] sm:$0xff]  ;;  %v451_v43 = vld [vmem:[%s4642_s14 + $0x10] sm:$0xff]  ;;  %v454_v44 = vld [vmem:[%s4642_s14 + $0x28] sm:$0xff] }
  0x49   : > { %v322_v27 = vsel %vm4743_vm0, %v311_v11, %v303_v8  ;;  %v324_v28 = vsel %vm4743_vm0, %v313_v12, %v305_v9  ;;  %v321_v29 = vsel %vm4743_vm0, %v310_v14, %v302_v10  ;;  %v323_v30 = vsel %vm4743_vm0, %v312_v19, %v304_v13  ;;  %v456_v45 = vld [vmem:[%s4642_s14 + $0x38] sm:$0xff]  ;;  %v343_v46 = vld [vmem:[%s5867_s0] sm:$0xff]  ;;  %v453_v49 = vld [vmem:[%s4642_s14 + $0x20] sm:$0xff] }
  0x4a   : > { %v4755_v31 = vpack.c.bf16 %v324_v28, %v322_v27  ;;  %v4757_v32 = vpack.c.bf16 %v323_v30, %v321_v29  ;;  %v326_v33 = vsel %vm4743_vm0, %v315_v20, %v307_v15  ;;  %v328_v34 = vsel %vm4743_vm0, %v317_v21, %v309_v16  ;;  %v455_v50 = vld [vmem:[%s4642_s14 + $0x30] sm:$0xff]  ;;  %v458_v51 = vld [vmem:[%s4642_s14 + $0x48] sm:$0xff]  ;;  %v460_v52 = vld [vmem:[%s4642_s14 + $0x58] sm:$0xff] }
  0x4b   : > { %v4763_v35 = vpack.c.bf16 %v328_v34, %v326_v33  ;;  %v325_v36 = vsel %vm4743_vm0, %v314_v25, %v306_v22  ;;  %v327_v37 = vsel %vm4743_vm0, %v316_v26, %v308_v23  ;;  %v3626_v47 = vpack.c.bf16 %v451_v43, %v449_v42  ;;  %v344_v53 = vld [vmem:[%s5867_s0 + $0x8] sm:$0xff]  ;;  %v457_v56 = vld [vmem:[%s4642_s14 + $0x40] sm:$0xff]  ;;  %v459_v57 = vld [vmem:[%s4642_s14 + $0x50] sm:$0xff] }
  0x4c   : > { %3617 = vmatprep.subr.bf16.mxu0 %v4755_v31  ;;  %v4773_v40 = vpack.c.bf16 %v327_v37, %v325_v36  ;;  %v3628_v48 = vpack.c.bf16 %v456_v45, %v454_v44  ;;  %v3630_v54 = vpack.c.bf16 %v455_v50, %v453_v49  ;;  %v3632_v55 = vpack.c.bf16 %v460_v52, %v458_v51  ;;  %v462_v58 = vld [vmem:[%s4642_s14 + $0x68] sm:$0xff]  ;;  %v464_v59 = vld [vmem:[%s4642_s14 + $0x78] sm:$0xff]  ;;  %v345_v60 = vld [vmem:[%s5867_s0 + $0x10] sm:$0xff] }
  0x4d   : > { %3619 = vmatpush1.bf16.msra.mxu0 %v4757_v32  ;;  %v3634_v61 = vpack.c.bf16 %v459_v57, %v457_v56  ;;  %v3636_v62 = vpack.c.bf16 %v464_v59, %v462_v58  ;;  %v461_v63 = vld [vmem:[%s4642_s14 + $0x60] sm:$0xff]  ;;  %v463_v0 = vld [vmem:[%s4642_s14 + $0x70] sm:$0xff]  ;;  %v466_v1 = vld [vmem:[%s4642_s14 + $0x88] sm:$0xff] }
  0x4e   : > { %3621 = vmatprep.subr.bf16.mxu0 %v4763_v35  ;;  %v468_v2 = vld [vmem:[%s4642_s14 + $0x98] sm:$0xff]  ;;  %v346_v3 = vld [vmem:[%s5867_s0 + $0x18] sm:$0xff]  ;;  %v3638_v4 = vpack.c.bf16 %v463_v0, %v461_v63  ;;  %v465_v6 = vld [vmem:[%s4642_s14 + $0x80] sm:$0xff] }
  0x4f   : > { %v3640_v5 = vpack.c.bf16 %v468_v2, %v466_v1  ;;  %v467_v7 = vld [vmem:[%s4642_s14 + $0x90] sm:$0xff]  ;;  %v470_v8 = vld [vmem:[%s4642_s14 + $0xa8] sm:$0xff]  ;;  %v472_v9 = vld [vmem:[%s4642_s14 + $0xb8] sm:$0xff] }
  0x50   : > { %v3642_v10 = vpack.c.bf16 %v467_v7, %v465_v6  ;;  %v3644_v11 = vpack.c.bf16 %v472_v9, %v470_v8  ;;  %v469_v12 = vld [vmem:[%s4642_s14 + $0xa0] sm:$0xff]  ;;  %v471_v13 = vld [vmem:[%s4642_s14 + $0xb0] sm:$0xff]  ;;  %v474_v14 = vld [vmem:[%s4642_s14 + $0xc8] sm:$0xff] }
  0x51   : > { %3623 = vmatpush1.bf16.msra.mxu0 %v4773_v40  ;;  %v476_v15 = vld [vmem:[%s4642_s14 + $0xd8] sm:$0xff]  ;;  %v3646_v16 = vpack.c.bf16 %v471_v13, %v469_v12  ;;  %v473_v19 = vld [vmem:[%s4642_s14 + $0xc0] sm:$0xff]  ;;  %v475_v20 = vld [vmem:[%s4642_s14 + $0xd0] sm:$0xff] }
  0x52   : > { %3625 = vmatprep.subr.bf16.mxu0 %v3624_v41  ;;  %v3648_v18 = vpack.c.bf16 %v476_v15, %v474_v14  ;;  %v478_v21 = vld [vmem:[%s4642_s14 + $0xe8] sm:$0xff]  ;;  %v480_v22 = vld [vmem:[%s4642_s14 + $0xf8] sm:$0xff]  ;;  %v3650_v23 = vpack.c.bf16 %v475_v20, %v473_v19  ;;  %v477_v26 = vld [vmem:[%s4642_s14 + $0xe0] sm:$0xff] }
  0x53   : > { %v3652_v25 = vpack.c.bf16 %v480_v22, %v478_v21  ;;  %v479_v27 = vld [vmem:[%s4642_s14 + $0xf0] sm:$0xff]  ;;  %v482_v28 = vld [vmem:[%s4642_s14 + $0x108] sm:$0xff]  ;;  %v484_v29 = vld [vmem:[%s4642_s14 + $0x118] sm:$0xff] }
  0x54   : > { %3033 = vmatmul.mubr.msk.f32.vlgmr.msra.gmra.mrb[0].mxu0 %vm347_vm1, %v343_v46  ;;  %v3654_v30 = vpack.c.bf16 %v479_v27, %v477_v26  ;;  %v3656_v33 = vpack.c.bf16 %v484_v29, %v482_v28  ;;  %v481_v34 = vld [vmem:[%s4642_s14 + $0x100] sm:$0xff]  ;;  %v483_v36 = vld [vmem:[%s4642_s14 + $0x110] sm:$0xff]  ;;  %v486_v37 = vld [vmem:[%s4642_s14 + $0x128] sm:$0xff] }
  0x55   : > { %430 = vmatprep.mubr.f32.mxu0 %v4525_v17  ;;  %3627 = vmatpush1.bf16.msra.mxu0 %v3626_v47  ;;  %v488_v38 = vld [vmem:[%s4642_s14 + $0x138] sm:$0xff]  ;;  %v3658_v39 = vpack.c.bf16 %v483_v36, %v481_v34  ;;  %v485_v42 = vld [vmem:[%s4642_s14 + $0x120] sm:$0xff]  ;;  %v487_v43 = vld [vmem:[%s4642_s14 + $0x130] sm:$0xff] }
  0x56   : > { %3629 = vmatprep.subr.bf16.mxu0 %v3628_v48  ;;  %v3660_v41 = vpack.c.bf16 %v488_v38, %v486_v37  ;;  %v490_v44 = vld [vmem:[%s4642_s14 + $0x148] sm:$0xff]  ;;  %v492_v45 = vld [vmem:[%s4642_s14 + $0x158] sm:$0xff]  ;;  %v3662_v46 = vpack.c.bf16 %v487_v43, %v485_v42  ;;  %v489_v48 = vld [vmem:[%s4642_s14 + $0x140] sm:$0xff] }
  0x57   : > { %v3664_v47 = vpack.c.bf16 %v492_v45, %v490_v44  ;;  %v491_v49 = vld [vmem:[%s4642_s14 + $0x150] sm:$0xff]  ;;  %v494_v50 = vld [vmem:[%s4642_s14 + $0x168] sm:$0xff]  ;;  %v496_v51 = vld [vmem:[%s4642_s14 + $0x178] sm:$0xff] }
  0x58   : > { %3034 = vmatmul.mubr.msk.f32.gmra.mrb[2].mxu0 %vm347_vm1, %v344_v53  ;;  %v3666_v52 = vpack.c.bf16 %v491_v49, %v489_v48  ;;  %v3668_v53 = vpack.c.bf16 %v496_v51, %v494_v50  ;;  %v498_v56 = vld [vmem:[%s4642_s14 + $0x188] sm:$0xff]  ;;  %v500_v57 = vld [vmem:[%s4642_s14 + $0x198] sm:$0xff]  ;;  %v501_v2 = vld [vmem:[%s4642_s14 + $0x1a0] sm:$0xff] }
  0x59   : > { %436 = vmatprep.mubr.f32.mxu0 %v4525_v17  ;;  %3631 = vmatpush1.bf16.msra.mxu0 %v3630_v54  ;;  %v493_v54 = vld [vmem:[%s4642_s14 + $0x160] sm:$0xff]  ;;  %v3672_v59 = vpack.c.bf16 %v500_v57, %v498_v56  ;;  %v504_v63 = vld [vmem:[%s4642_s14 + $0x1b8] sm:$0xff]  ;;  %v507_v9 = vld [vmem:[%s4642_s14 + $0x1d0] sm:$0xff] }
  0x5a   : > { %3633 = vmatprep.subr.bf16.mxu0 %v3632_v55  ;;  %v495_v55 = vld [vmem:[%s4642_s14 + $0x170] sm:$0xff]  ;;  %v505_v8 = vld [vmem:[%s4642_s14 + $0x1c0] sm:$0xff]  ;;  %v3046_v20 = vld [vmem:[%s4642_s14 + $0x208] sm:$0xff] }
  0x5b   : > { %v3670_v58 = vpack.c.bf16 %v495_v55, %v493_v54  ;;  %v3682_v12 = vpack.c.bf16 %v507_v9, %v505_v8  ;;  %v509_v14 = vld [vmem:[%s4642_s14 + $0x1e0] sm:$0xff]  ;;  %v511_v15 = vld [vmem:[%s4642_s14 + $0x1f0] sm:$0xff]  ;;  %v3048_v21 = vld [vmem:[%s4642_s14 + $0x218] sm:$0xff] }
  0x5c   : > { %3035 = vmatmul.mubr.msk.f32.gmra.mrb[4].mxu0 %vm347_vm1, %v345_v60  ;;  %v497_v60 = vld [vmem:[%s4642_s14 + $0x180] sm:$0xff]  ;;  %v3050_v34 = vld [vmem:[%s4642_s14 + $0x228] sm:$0xff]  ;;  %v3052_v36 = vld [vmem:[%s4642_s14 + $0x238] sm:$0xff] }
  0x5d   : > { %442 = vmatprep.mubr.f32.mxu0 %v4525_v17  ;;  %3635 = vmatpush1.bf16.msra.mxu0 %v3634_v61  ;;  %v499_v61 = vld [vmem:[%s4642_s14 + $0x190] sm:$0xff]  ;;  %v3054_v43 = vld [vmem:[%s4642_s14 + $0x248] sm:$0xff]  ;;  %v3056_v44 = vld [vmem:[%s4642_s14 + $0x258] sm:$0xff] }
  0x5e   : > { %3637 = vmatprep.subr.bf16.mxu0 %v3636_v62  ;;  %v502_v62 = vld [vmem:[%s4642_s14 + $0x1a8] sm:$0xff]  ;;  %v3674_v0 = vpack.c.bf16 %v499_v61, %v497_v60  ;;  %v3037_v37 = vld [vmem:[%s5867_s0 + $0x20] sm:$0xff]  ;;  %v3038_v45 = vld [vmem:[%s5867_s0 + $0x28] sm:$0xff] }
  0x5f   : > { %v3676_v1 = vpack.c.bf16 %v504_v63, %v502_v62  ;;  %v3051_v42 = vld [vmem:[%s4642_s14 + $0x230] sm:$0xff]  ;;  %v3053_v48 = vld [vmem:[%s4642_s14 + $0x240] sm:$0xff]  ;;  %v3058_v50 = vld [vmem:[%s4642_s14 + $0x268] sm:$0xff] }
  0x60   : > { %3036 = vmatmul.mubr.msk.f32.gmra.mrb[6].mxu0 %vm347_vm1, %v346_v3  ;;  %v503_v3 = vld [vmem:[%s4642_s14 + $0x1b0] sm:$0xff]  ;;  %v3060_v51 = vld [vmem:[%s4642_s14 + $0x278] sm:$0xff]  ;;  %v3057_v55 = vld [vmem:[%s4642_s14 + $0x260] sm:$0xff] }
  0x61   : > { %3639 = vmatpush1.bf16.msra.mxu0 %v3638_v4  ;;  %v506_v4 = vld [vmem:[%s4642_s14 + $0x1c8] sm:$0xff]  ;;  %v3678_v6 = vpack.c.bf16 %v503_v3, %v501_v2  ;;  %v3055_v49 = vld [vmem:[%s4642_s14 + $0x250] sm:$0xff]  ;;  %v3708_v54 = vpack.c.bf16 %v3060_v51, %v3058_v50  ;;  %v3061_v62 = vld [vmem:[%s4642_s14 + $0x280] sm:$0xff] }
  0x62   : > { %3641 = vmatprep.subr.bf16.mxu0 %v3640_v5  ;;  %v508_v5 = vld [vmem:[%s4642_s14 + $0x1d8] sm:$0xff]  ;;  %v3059_v56 = vld [vmem:[%s4642_s14 + $0x270] sm:$0xff]  ;;  %v3062_v57 = vld [vmem:[%s4642_s14 + $0x288] sm:$0xff] }
  0x63   : > { %v3680_v7 = vpack.c.bf16 %v508_v5, %v506_v4  ;;  %v3710_v60 = vpack.c.bf16 %v3059_v56, %v3057_v55  ;;  %v3063_v63 = vld [vmem:[%s4642_s14 + $0x290] sm:$0xff]  ;;  %v3065_v4 = vld [vmem:[%s4642_s14 + $0x2a0] sm:$0xff]  ;;  %v3100_v55 = vld [vmem:[%s4642_s14 + $0x3b8] sm:$0xff] }
  0x64   : > { %v3714_v2 = vpack.c.bf16 %v3063_v63, %v3061_v62  ;;  %v3067_v5 = vld [vmem:[%s4642_s14 + $0x2b0] sm:$0xff] }
  0x65   : > { %3643 = vmatpush1.bf16.msra.mxu0 %v3642_v10  ;;  %v510_v10 = vld [vmem:[%s4642_s14 + $0x1e8] sm:$0xff]  ;;  %v3718_v8 = vpack.c.bf16 %v3067_v5, %v3065_v4 }
  0x66   : > { %3645 = vmatprep.subr.bf16.mxu0 %v3644_v11  ;;  %v512_v11 = vld [vmem:[%s4642_s14 + $0x1f8] sm:$0xff] }
  0x67   : > { %v3684_v13 = vpack.c.bf16 %v512_v11, %v510_v10  ;;  %v3069_v10 = vld [vmem:[%s4642_s14 + $0x2c0] sm:$0xff]  ;;  %v3071_v11 = vld [vmem:[%s4642_s14 + $0x2d0] sm:$0xff] }
  0x69   : > { %3647 = vmatpush1.bf16.msra.mxu0 %v3646_v16  ;;  %v3686_v16 = vpack.c.bf16 %v511_v15, %v509_v14  ;;  %v3722_v14 = vpack.c.bf16 %v3071_v11, %v3069_v10  ;;  %v3118_v11 = vld [vmem:[%s4642_s14 + $0x408] sm:$0xff] }
  0x6a   : > { %3649 = vmatprep.subr.bf16.mxu0 %v3648_v18 }
  0x6d   : > { %3651 = vmatpush1.bf16.msra.mxu0 %v3650_v23 }
  0x6e   : > { %3653 = vmatprep.subr.bf16.mxu0 %v3652_v25  ;;  %v3696_v25 = vpack.c.bf16 %v3048_v21, %v3046_v20  ;;  %v3080_v20 = vld [vmem:[%s4642_s14 + $0x318] sm:$0xff] }
  0x71   : > { %3655 = vmatpush1.bf16.msra.mxu0 %v3654_v30  ;;  %v3045_v30 = vld [vmem:[%s4642_s14 + $0x200] sm:$0xff] }
  0x72   : > { %3657 = vmatprep.subr.bf16.mxu0 %v3656_v33  ;;  %v3047_v33 = vld [vmem:[%s4642_s14 + $0x210] sm:$0xff] }
  0x73   : > { %v3698_v38 = vpack.c.bf16 %v3047_v33, %v3045_v30  ;;  %v3081_v30 = vld [vmem:[%s4642_s14 + $0x320] sm:$0xff]  ;;  %v3083_v33 = vld [vmem:[%s4642_s14 + $0x330] sm:$0xff] }
  0x75   : > { %3659 = vmatpush1.bf16.msra.mxu0 %v3658_v39  ;;  %v3700_v39 = vpack.c.bf16 %v3052_v36, %v3050_v34  ;;  %v3086_v34 = vld [vmem:[%s4642_s14 + $0x348] sm:$0xff]  ;;  %v3088_v36 = vld [vmem:[%s4642_s14 + $0x358] sm:$0xff] }
  0x76   : > { %3661 = vmatprep.subr.bf16.mxu0 %v3660_v41  ;;  %v3049_v41 = vld [vmem:[%s4642_s14 + $0x220] sm:$0xff] }
  0x79   : > { %3663 = vmatpush1.bf16.msra.mxu0 %v3662_v46  ;;  %v3702_v46 = vpack.c.bf16 %v3051_v42, %v3049_v41  ;;  %v3087_v41 = vld [vmem:[%s4642_s14 + $0x350] sm:$0xff]  ;;  %v3090_v42 = vld [vmem:[%s4642_s14 + $0x368] sm:$0xff] }
  0x7a   : > { %3665 = vmatprep.subr.bf16.mxu0 %v3664_v47  ;;  %v3704_v47 = vpack.c.bf16 %v3056_v44, %v3054_v43  ;;  %v3092_v43 = vld [vmem:[%s4642_s14 + $0x378] sm:$0xff] }
  0x7d   : > { %3667 = vmatpush1.bf16.msra.mxu0 %v3666_v52  ;;  %v3039_v52 = vld [vmem:[%s5867_s0 + $0x30] sm:$0xff] }
  0x7e   : > { %3669 = vmatprep.subr.bf16.mxu0 %v3668_v53  ;;  %v3706_v53 = vpack.c.bf16 %v3055_v49, %v3053_v48  ;;  %v3094_v48 = vld [vmem:[%s4642_s14 + $0x388] sm:$0xff]  ;;  %v3096_v49 = vld [vmem:[%s4642_s14 + $0x398] sm:$0xff] }
  0x7f   : > { %v3744_v51 = vpack.c.bf16 %v3096_v49, %v3094_v48  ;;  %v3131_v48 = vld [vmem:[%s4642_s14 + $0x470] sm:$0xff]  ;;  %v3134_v49 = vld [vmem:[%s4642_s14 + $0x488] sm:$0xff] }
  0x81   : > { %3671 = vmatpush1.bf16.msra.mxu0 %v3670_v58  ;;  %v3064_v58 = vld [vmem:[%s4642_s14 + $0x298] sm:$0xff] }
  0x82   : > { %3673 = vmatprep.subr.bf16.mxu0 %v3672_v59  ;;  %v3040_v59 = vld [vmem:[%s5867_s0 + $0x38] sm:$0xff]  ;;  %v3712_v61 = vpack.c.bf16 %v3064_v58, %v3062_v57  ;;  %v3097_v58 = vld [vmem:[%s4642_s14 + $0x3a0] sm:$0xff] }
  0x85   : > { %3675 = vmatpush1.bf16.msra.mxu0 %v3674_v0  ;;  %v3066_v0 = vld [vmem:[%s4642_s14 + $0x2a8] sm:$0xff] }
  0x86   : > { %3677 = vmatprep.subr.bf16.mxu0 %v3676_v1  ;;  %v3068_v1 = vld [vmem:[%s4642_s14 + $0x2b8] sm:$0xff] }
  0x87   : > { %v3716_v3 = vpack.c.bf16 %v3068_v1, %v3066_v0  ;;  %v3101_v0 = vld [vmem:[%s4642_s14 + $0x3c0] sm:$0xff]  ;;  %v3103_v1 = vld [vmem:[%s4642_s14 + $0x3d0] sm:$0xff] }
  0x88   : > { %v3754_v4 = vpack.c.bf16 %v3103_v1, %v3101_v0 }
  0x89   : > { %3679 = vmatpush1.bf16.msra.mxu0 %v3678_v6  ;;  %v3070_v6 = vld [vmem:[%s4642_s14 + $0x2c8] sm:$0xff] }
  0x8a   : > { %3681 = vmatprep.subr.bf16.mxu0 %v3680_v7  ;;  %v3072_v7 = vld [vmem:[%s4642_s14 + $0x2d8] sm:$0xff] }
  0x8b   : > { %v3720_v9 = vpack.c.bf16 %v3072_v7, %v3070_v6  ;;  %v3105_v6 = vld [vmem:[%s4642_s14 + $0x3e0] sm:$0xff]  ;;  %v3107_v7 = vld [vmem:[%s4642_s14 + $0x3f0] sm:$0xff] }
  0x8d   : > { %3683 = vmatpush1.bf16.msra.mxu0 %v3682_v12  ;;  %v3074_v12 = vld [vmem:[%s4642_s14 + $0x2e8] sm:$0xff] }
  0x8e   : > { %3685 = vmatprep.subr.bf16.mxu0 %v3684_v13  ;;  %v3076_v13 = vld [vmem:[%s4642_s14 + $0x2f8] sm:$0xff] }
  0x8f   : > { %v3724_v15 = vpack.c.bf16 %v3076_v13, %v3074_v12  ;;  %v3120_v12 = vld [vmem:[%s4642_s14 + $0x418] sm:$0xff] }
  0x91   : > { %3687 = vmatpush1.bf16.msra.mxu0 %v3686_v16  ;;  %v3073_v16 = vld [vmem:[%s4642_s14 + $0x2e0] sm:$0xff] }
  0x92   : > { %3689 = vmatprep.subr.bf16.mxu0 %v4755_v31 }
 0x127   : > { %v426_v18 = vpop.f32.mrb[0].mxu0 }
 0x128   : > { %v428_v19 = vpop.f32.mrb[1].mxu0 }
 0x129   : > { %577 = vmatprep.mubr.f32.mxu0 %v428_v19  ;;  %v3078_v19 = vld [vmem:[%s4642_s14 + $0x308] sm:$0xff] }
 0x12a   : > { %578 = vmatmul.mubr.f32.vlgmr.msra.gmra.mrb[8].mxu0 %v426_v18  ;;  %v3075_v18 = vld [vmem:[%s4642_s14 + $0x2f0] sm:$0xff] }
 0x12b   : > { %3691 = vmatpush1.bf16.msra.mxu0 %v4757_v32  ;;  %v432_v22 = vpop.f32.mrb[2].mxu0  ;;  %v3726_v21 = vpack.c.bf16 %v3075_v18, %v3073_v16 }
 0x12c   : > { %v434_v23 = vpop.f32.mrb[3].mxu0  ;;  %3693 = vmatprep.subr.bf16.mxu0 %v4763_v35 }
 0x12d   : > { %583 = vmatprep.mubr.f32.mxu0 %v434_v23  ;;  %v3077_v23 = vld [vmem:[%s4642_s14 + $0x300] sm:$0xff] }
 0x12e   : > { %584 = vmatmul.mubr.f32.gmra.mrb[10].mxu0 %v432_v22  ;;  %v3728_v22 = vpack.c.bf16 %v3080_v20, %v3078_v19 }
 0x12f   : > { %v438_v26 = vpop.f32.mrb[4].mxu0  ;;  %3695 = vmatpush1.bf16.msra.mxu0 %v4773_v40 }
 0x130   : > { %v440_v27 = vpop.f32.mrb[5].mxu0  ;;  %3697 = vmatprep.subr.bf16.mxu0 %v3696_v25  ;;  %v3079_v25 = vld [vmem:[%s4642_s14 + $0x310] sm:$0xff] }
 0x131   : > { %589 = vmatprep.mubr.f32.mxu0 %v440_v27  ;;  %v3084_v27 = vld [vmem:[%s4642_s14 + $0x338] sm:$0xff] }
 0x132   : > { %590 = vmatmul.mubr.f32.gmra.mrb[12].mxu0 %v438_v26  ;;  %v3082_v26 = vld [vmem:[%s4642_s14 + $0x328] sm:$0xff] }
 0x133   : > { %v444_v28 = vpop.f32.mrb[6].mxu0 }
 0x134   : > { %v446_v29 = vpop.f32.mrb[7].mxu0 }
 0x135   : > { %595 = vmatprep.mubr.f32.mxu0 %v446_v29  ;;  %v3732_v29 = vpack.c.bf16 %v3084_v27, %v3082_v26  ;;  %v3109_v26 = vld [vmem:[%s5867_s0 + $0x40] sm:$0xff] }
 0x136   : > { %596 = vmatmul.mubr.f32.gmra.mrb[14].mxu0 %v444_v28  ;;  %v3730_v28 = vpack.c.bf16 %v3079_v25, %v3077_v23  ;;  %v3122_v23 = vld [vmem:[%s4642_s14 + $0x428] sm:$0xff]  ;;  %v3124_v25 = vld [vmem:[%s4642_s14 + $0x438] sm:$0xff] }
 0x137   : > { %691 = vmatprep.mubr.f32.mxu0 %v4525_v17 }
 0x13a   : > { %3041 = vmatmul.mubr.msk.f32.vlgmr.msra.gmra.mrb[16].mxu0 %vm347_vm1, %v3037_v37  ;;  %v3734_v37 = vpack.c.bf16 %v3083_v33, %v3081_v30  ;;  %v3123_v30 = vld [vmem:[%s4642_s14 + $0x430] sm:$0xff]  ;;  %v3126_v33 = vld [vmem:[%s4642_s14 + $0x448] sm:$0xff] }
 0x13b   : > { %697 = vmatprep.mubr.f32.mxu0 %v4525_v17  ;;  %3699 = vmatpush1.bf16.msra.mxu0 %v3698_v38  ;;  %v3736_v38 = vpack.c.bf16 %v3088_v36, %v3086_v34  ;;  %v3128_v34 = vld [vmem:[%s4642_s14 + $0x458] sm:$0xff] }
 0x13c   : > { %3701 = vmatprep.subr.bf16.mxu0 %v3700_v39  ;;  %v3085_v39 = vld [vmem:[%s4642_s14 + $0x340] sm:$0xff]  ;;  %v3110_v36 = vld [vmem:[%s5867_s0 + $0x48] sm:$0xff] }
 0x13d   : > { %v3738_v44 = vpack.c.bf16 %v3087_v41, %v3085_v39  ;;  %v3125_v39 = vld [vmem:[%s4642_s14 + $0x440] sm:$0xff]  ;;  %v3127_v41 = vld [vmem:[%s4642_s14 + $0x450] sm:$0xff] }
 0x13e   : > { %3042 = vmatmul.mubr.msk.f32.gmra.mrb[18].mxu0 %vm347_vm1, %v3038_v45  ;;  %v3740_v45 = vpack.c.bf16 %v3092_v43, %v3090_v42  ;;  %v3130_v42 = vld [vmem:[%s4642_s14 + $0x468] sm:$0xff]  ;;  %v3132_v43 = vld [vmem:[%s4642_s14 + $0x478] sm:$0xff] }
 0x13f   : > { %703 = vmatprep.mubr.f32.mxu0 %v4525_v17  ;;  %3703 = vmatpush1.bf16.msra.mxu0 %v3702_v46  ;;  %v3089_v46 = vld [vmem:[%s4642_s14 + $0x360] sm:$0xff] }
 0x140   : > { %3705 = vmatprep.subr.bf16.mxu0 %v3704_v47  ;;  %v3091_v47 = vld [vmem:[%s4642_s14 + $0x370] sm:$0xff] }
 0x141   : > { %v3742_v50 = vpack.c.bf16 %v3091_v47, %v3089_v46  ;;  %v3780_v46 = vpack.c.bf16 %v3132_v43, %v3130_v42  ;;  %v3129_v47 = vld [vmem:[%s4642_s14 + $0x460] sm:$0xff] }
 0x142   : > { %3043 = vmatmul.mubr.msk.f32.gmra.mrb[20].mxu0 %vm347_vm1, %v3039_v52  ;;  %v3093_v52 = vld [vmem:[%s4642_s14 + $0x380] sm:$0xff] }
 0x143   : > { %709 = vmatprep.mubr.f32.mxu0 %v4525_v17  ;;  %3707 = vmatpush1.bf16.msra.mxu0 %v3706_v53  ;;  %v3095_v53 = vld [vmem:[%s4642_s14 + $0x390] sm:$0xff] }
 0x144   : > { %3709 = vmatprep.subr.bf16.mxu0 %v3708_v54  ;;  %v3098_v54 = vld [vmem:[%s4642_s14 + $0x3a8] sm:$0xff]  ;;  %v3746_v56 = vpack.c.bf16 %v3095_v53, %v3093_v52  ;;  %v3782_v52 = vpack.c.bf16 %v3131_v48, %v3129_v47  ;;  %v3172_v47 = vld [vmem:[%s4642_s14 + $0x5b8] sm:$0xff] }
 0x145   : > { %v3748_v57 = vpack.c.bf16 %v3100_v55, %v3098_v54  ;;  %v3133_v54 = vld [vmem:[%s4642_s14 + $0x480] sm:$0xff]  ;;  %v3135_v55 = vld [vmem:[%s4642_s14 + $0x490] sm:$0xff] }
 0x146   : > { %3044 = vmatmul.mubr.msk.f32.gmra.mrb[22].mxu0 %vm347_vm1, %v3040_v59  ;;  %v3099_v59 = vld [vmem:[%s4642_s14 + $0x3b0] sm:$0xff] }
 0x147   : > { %3711 = vmatpush1.bf16.msra.mxu0 %v3710_v60  ;;  %v3102_v60 = vld [vmem:[%s4642_s14 + $0x3c8] sm:$0xff]  ;;  %v3750_v62 = vpack.c.bf16 %v3099_v59, %v3097_v58  ;;  %v3786_v58 = vpack.c.bf16 %v3135_v55, %v3133_v54 }
 0x148   : > { %3713 = vmatprep.subr.bf16.mxu0 %v3712_v61  ;;  %v3104_v61 = vld [vmem:[%s4642_s14 + $0x3d8] sm:$0xff] }
 0x149   : > { %v3752_v63 = vpack.c.bf16 %v3104_v61, %v3102_v60  ;;  %v3137_v60 = vld [vmem:[%s4642_s14 + $0x4a0] sm:$0xff]  ;;  %v3139_v61 = vld [vmem:[%s4642_s14 + $0x4b0] sm:$0xff] }
 0x14a   : > { %v3790_v0 = vpack.c.bf16 %v3139_v61, %v3137_v60 }
 0x14b   : > { %3715 = vmatpush1.bf16.msra.mxu0 %v3714_v2  ;;  %v3106_v2 = vld [vmem:[%s4642_s14 + $0x3e8] sm:$0xff] }
 0x14c   : > { %3717 = vmatprep.subr.bf16.mxu0 %v3716_v3  ;;  %v3108_v3 = vld [vmem:[%s4642_s14 + $0x3f8] sm:$0xff] }
 0x14d   : > { %v3756_v5 = vpack.c.bf16 %v3108_v3, %v3106_v2  ;;  %v3141_v2 = vld [vmem:[%s4642_s14 + $0x4c0] sm:$0xff]  ;;  %v3143_v3 = vld [vmem:[%s4642_s14 + $0x4d0] sm:$0xff] }
 0x14f   : > { %3719 = vmatpush1.bf16.msra.mxu0 %v3718_v8  ;;  %v3758_v8 = vpack.c.bf16 %v3107_v7, %v3105_v6  ;;  %v3794_v6 = vpack.c.bf16 %v3143_v3, %v3141_v2  ;;  %v3192_v2 = vld [vmem:[%s4642_s14 + $0x618] sm:$0xff]  ;;  %v3189_v3 = vld [vmem:[%s4642_s14 + $0x600] sm:$0xff] }
 0x150   : > { %3721 = vmatprep.subr.bf16.mxu0 %v3720_v9 }
 0x153   : > { %3723 = vmatpush1.bf16.msra.mxu0 %v3722_v14 }
 0x154   : > { %3725 = vmatprep.subr.bf16.mxu0 %v3724_v15  ;;  %v3768_v15 = vpack.c.bf16 %v3120_v12, %v3118_v11  ;;  %v3152_v11 = vld [vmem:[%s4642_s14 + $0x518] sm:$0xff] }
 0x157   : > { %3727 = vmatpush1.bf16.msra.mxu0 %v3726_v21  ;;  %v3117_v21 = vld [vmem:[%s4642_s14 + $0x400] sm:$0xff] }
 0x158   : > { %3729 = vmatprep.subr.bf16.mxu0 %v3728_v22  ;;  %v3119_v22 = vld [vmem:[%s4642_s14 + $0x410] sm:$0xff] }
 0x159   : > { %v3770_v27 = vpack.c.bf16 %v3119_v22, %v3117_v21  ;;  %v3153_v21 = vld [vmem:[%s4642_s14 + $0x520] sm:$0xff]  ;;  %v3155_v22 = vld [vmem:[%s4642_s14 + $0x530] sm:$0xff] }
 0x15b   : > { %3731 = vmatpush1.bf16.msra.mxu0 %v3730_v28  ;;  %v3772_v28 = vpack.c.bf16 %v3124_v25, %v3122_v23  ;;  %v3158_v23 = vld [vmem:[%s4642_s14 + $0x548] sm:$0xff]  ;;  %v3160_v25 = vld [vmem:[%s4642_s14 + $0x558] sm:$0xff] }
 0x15c   : > { %3733 = vmatprep.subr.bf16.mxu0 %v3732_v29  ;;  %v3121_v29 = vld [vmem:[%s4642_s14 + $0x420] sm:$0xff] }
 0x15f   : > { %3735 = vmatpush1.bf16.msra.mxu0 %v3734_v37  ;;  %v3774_v37 = vpack.c.bf16 %v3123_v30, %v3121_v29  ;;  %v3159_v29 = vld [vmem:[%s4642_s14 + $0x550] sm:$0xff]  ;;  %v3162_v30 = vld [vmem:[%s4642_s14 + $0x568] sm:$0xff] }
 0x160   : > { %3737 = vmatprep.subr.bf16.mxu0 %v3736_v38  ;;  %v3776_v38 = vpack.c.bf16 %v3128_v34, %v3126_v33  ;;  %v3164_v33 = vld [vmem:[%s4642_s14 + $0x578] sm:$0xff] }
 0x163   : > { %3739 = vmatpush1.bf16.msra.mxu0 %v3738_v44  ;;  %v3111_v44 = vld [vmem:[%s5867_s0 + $0x50] sm:$0xff] }
 0x164   : > { %3741 = vmatprep.subr.bf16.mxu0 %v3740_v45  ;;  %v3778_v45 = vpack.c.bf16 %v3127_v41, %v3125_v39  ;;  %v3166_v39 = vld [vmem:[%s4642_s14 + $0x588] sm:$0xff]  ;;  %v3168_v41 = vld [vmem:[%s4642_s14 + $0x598] sm:$0xff] }
 0x165   : > { %v3816_v43 = vpack.c.bf16 %v3168_v41, %v3166_v39  ;;  %v3209_v39 = vld [vmem:[%s4642_s14 + $0x6a0] sm:$0xff]  ;;  %v3211_v41 = vld [vmem:[%s4642_s14 + $0x6b0] sm:$0xff] }
 0x167   : > { %3743 = vmatpush1.bf16.msra.mxu0 %v3742_v50  ;;  %v3136_v50 = vld [vmem:[%s4642_s14 + $0x498] sm:$0xff] }
 0x168   : > { %3745 = vmatprep.subr.bf16.mxu0 %v3744_v51  ;;  %v3112_v51 = vld [vmem:[%s5867_s0 + $0x58] sm:$0xff]  ;;  %v3784_v53 = vpack.c.bf16 %v3136_v50, %v3134_v49  ;;  %v3169_v50 = vld [vmem:[%s4642_s14 + $0x5a0] sm:$0xff] }
 0x16b   : > { %3747 = vmatpush1.bf16.msra.mxu0 %v3746_v56  ;;  %v3138_v56 = vld [vmem:[%s4642_s14 + $0x4a8] sm:$0xff] }
 0x16c   : > { %3749 = vmatprep.subr.bf16.mxu0 %v3748_v57  ;;  %v3140_v57 = vld [vmem:[%s4642_s14 + $0x4b8] sm:$0xff] }
 0x16d   : > { %v3788_v59 = vpack.c.bf16 %v3140_v57, %v3138_v56  ;;  %v3173_v56 = vld [vmem:[%s4642_s14 + $0x5c0] sm:$0xff]  ;;  %v3175_v57 = vld [vmem:[%s4642_s14 + $0x5d0] sm:$0xff] }
 0x16e   : > { %v3826_v60 = vpack.c.bf16 %v3175_v57, %v3173_v56 }
 0x16f   : > { %3751 = vmatpush1.bf16.msra.mxu0 %v3750_v62  ;;  %v3142_v62 = vld [vmem:[%s4642_s14 + $0x4c8] sm:$0xff] }
 0x170   : > { %3753 = vmatprep.subr.bf16.mxu0 %v3752_v63  ;;  %v3144_v63 = vld [vmem:[%s4642_s14 + $0x4d8] sm:$0xff] }
 0x171   : > { %v3792_v1 = vpack.c.bf16 %v3144_v63, %v3142_v62  ;;  %v3177_v62 = vld [vmem:[%s4642_s14 + $0x5e0] sm:$0xff]  ;;  %v3179_v63 = vld [vmem:[%s4642_s14 + $0x5f0] sm:$0xff] }
 0x173   : > { %3755 = vmatpush1.bf16.msra.mxu0 %v3754_v4  ;;  %v3146_v4 = vld [vmem:[%s4642_s14 + $0x4e8] sm:$0xff] }
 0x174   : > { %3757 = vmatprep.subr.bf16.mxu0 %v3756_v5  ;;  %v3148_v5 = vld [vmem:[%s4642_s14 + $0x4f8] sm:$0xff] }
 0x175   : > { %v3796_v7 = vpack.c.bf16 %v3148_v5, %v3146_v4  ;;  %v3191_v5 = vld [vmem:[%s4642_s14 + $0x610] sm:$0xff] }
 0x177   : > { %3759 = vmatpush1.bf16.msra.mxu0 %v3758_v8  ;;  %v3145_v8 = vld [vmem:[%s4642_s14 + $0x4e0] sm:$0xff] }
 0x178   : > { %3761 = vmatprep.subr.bf16.mxu0 %v4755_v31 }
 0x20d   : > { %v693_v9 = vpop.f32.mrb[16].mxu0 }
 0x20e   : > { %v695_v10 = vpop.f32.mrb[17].mxu0 }
 0x20f   : > { %845 = vmatprep.mubr.f32.mxu0 %v695_v10  ;;  %v3150_v10 = vld [vmem:[%s4642_s14 + $0x508] sm:$0xff] }
 0x210   : > { %846 = vmatmul.mubr.f32.vlgmr.msra.gmra.mrb[8].mxu0 %v693_v9  ;;  %v3147_v9 = vld [vmem:[%s4642_s14 + $0x4f0] sm:$0xff] }
 0x211   : > { %3763 = vmatpush1.bf16.msra.mxu0 %v4757_v32  ;;  %v699_v13 = vpop.f32.mrb[18].mxu0  ;;  %v3798_v12 = vpack.c.bf16 %v3147_v9, %v3145_v8  ;;  %v3842_v8 = vpack.c.bf16 %v3191_v5, %v3189_v3  ;;  %v3232_v3 = vld [vmem:[%s4642_s14 + $0x758] sm:$0xff] }
 0x212   : > { %v701_v14 = vpop.f32.mrb[19].mxu0  ;;  %3765 = vmatprep.subr.bf16.mxu0 %v4763_v35 }
 0x213   : > { %851 = vmatprep.mubr.f32.mxu0 %v701_v14  ;;  %v3149_v14 = vld [vmem:[%s4642_s14 + $0x500] sm:$0xff] }
 0x214   : > { %852 = vmatmul.mubr.f32.gmra.mrb[10].mxu0 %v699_v13  ;;  %v3800_v13 = vpack.c.bf16 %v3152_v11, %v3150_v10  ;;  %v3193_v10 = vld [vmem:[%s4642_s14 + $0x620] sm:$0xff]  ;;  %v3195_v11 = vld [vmem:[%s4642_s14 + $0x630] sm:$0xff] }
 0x215   : > { %v705_v16 = vpop.f32.mrb[20].mxu0  ;;  %3767 = vmatpush1.bf16.msra.mxu0 %v4773_v40 }
 0x216   : > { %v707_v18 = vpop.f32.mrb[21].mxu0  ;;  %3769 = vmatprep.subr.bf16.mxu0 %v3768_v15  ;;  %v3151_v15 = vld [vmem:[%s4642_s14 + $0x510] sm:$0xff] }
 0x217   : > { %857 = vmatprep.mubr.f32.mxu0 %v707_v18  ;;  %v3156_v18 = vld [vmem:[%s4642_s14 + $0x538] sm:$0xff] }
 0x218   : > { %858 = vmatmul.mubr.f32.gmra.mrb[12].mxu0 %v705_v16  ;;  %v3154_v16 = vld [vmem:[%s4642_s14 + $0x528] sm:$0xff] }
 0x219   : > { %v711_v19 = vpop.f32.mrb[22].mxu0 }
 0x21a   : > { %v713_v20 = vpop.f32.mrb[23].mxu0 }
 0x21b   : > { %863 = vmatprep.mubr.f32.mxu0 %v713_v20  ;;  %v3804_v20 = vpack.c.bf16 %v3156_v18, %v3154_v16  ;;  %v3197_v16 = vld [vmem:[%s4642_s14 + $0x640] sm:$0xff]  ;;  %v3199_v18 = vld [vmem:[%s4642_s14 + $0x650] sm:$0xff] }
 0x21c   : > { %864 = vmatmul.mubr.f32.gmra.mrb[14].mxu0 %v711_v19  ;;  %v3802_v19 = vpack.c.bf16 %v3151_v15, %v3149_v14  ;;  %v3846_v14 = vpack.c.bf16 %v3195_v11, %v3193_v10 }
 0x21d   : > { %959 = vmatprep.mubr.f32.mxu0 %v4525_v17 }
 0x220   : > { %3113 = vmatmul.mubr.msk.f32.vlgmr.msra.gmra.mrb[24].mxu0 %vm347_vm1, %v3109_v26  ;;  %v3806_v26 = vpack.c.bf16 %v3155_v22, %v3153_v21  ;;  %v3850_v21 = vpack.c.bf16 %v3199_v18, %v3197_v16 }
 0x221   : > { %965 = vmatprep.mubr.f32.mxu0 %v4525_v17  ;;  %3771 = vmatpush1.bf16.msra.mxu0 %v3770_v27  ;;  %v3808_v27 = vpack.c.bf16 %v3160_v25, %v3158_v23  ;;  %v3201_v23 = vld [vmem:[%s4642_s14 + $0x660] sm:$0xff]  ;;  %v3203_v25 = vld [vmem:[%s4642_s14 + $0x670] sm:$0xff] }
 0x222   : > { %3773 = vmatprep.subr.bf16.mxu0 %v3772_v28  ;;  %v3157_v28 = vld [vmem:[%s4642_s14 + $0x540] sm:$0xff] }
 0x223   : > { %v3810_v34 = vpack.c.bf16 %v3159_v29, %v3157_v28  ;;  %v3854_v28 = vpack.c.bf16 %v3203_v25, %v3201_v23  ;;  %v3181_v25 = vld [vmem:[%s5867_s0 + $0x60] sm:$0xff] }
 0x224   : > { %3114 = vmatmul.mubr.msk.f32.gmra.mrb[26].mxu0 %vm347_vm1, %v3110_v36  ;;  %v3812_v36 = vpack.c.bf16 %v3164_v33, %v3162_v30  ;;  %v3205_v30 = vld [vmem:[%s4642_s14 + $0x680] sm:$0xff]  ;;  %v3207_v33 = vld [vmem:[%s4642_s14 + $0x690] sm:$0xff] }
 0x225   : > { %971 = vmatprep.mubr.f32.mxu0 %v4525_v17  ;;  %3775 = vmatpush1.bf16.msra.mxu0 %v3774_v37  ;;  %v3161_v37 = vld [vmem:[%s4642_s14 + $0x560] sm:$0xff] }
 0x226   : > { %3777 = vmatprep.subr.bf16.mxu0 %v3776_v38  ;;  %v3163_v38 = vld [vmem:[%s4642_s14 + $0x570] sm:$0xff] }
 0x227   : > { %v3814_v42 = vpack.c.bf16 %v3163_v38, %v3161_v37  ;;  %v3858_v37 = vpack.c.bf16 %v3207_v33, %v3205_v30  ;;  %v3254_v30 = vld [vmem:[%s5867_s0 + $0x88] sm:$0xff]  ;;  %v3255_v33 = vld [vmem:[%s5867_s0 + $0x90] sm:$0xff] }
 0x228   : > { %3115 = vmatmul.mubr.msk.f32.gmra.mrb[28].mxu0 %vm347_vm1, %v3111_v44  ;;  %v3165_v44 = vld [vmem:[%s4642_s14 + $0x580] sm:$0xff] }
 0x229   : > { %977 = vmatprep.mubr.f32.mxu0 %v4525_v17  ;;  %3779 = vmatpush1.bf16.msra.mxu0 %v3778_v45  ;;  %v3167_v45 = vld [vmem:[%s4642_s14 + $0x590] sm:$0xff] }
 0x22a   : > { %3781 = vmatprep.subr.bf16.mxu0 %v3780_v46  ;;  %v3170_v46 = vld [vmem:[%s4642_s14 + $0x5a8] sm:$0xff]  ;;  %v3818_v48 = vpack.c.bf16 %v3167_v45, %v3165_v44  ;;  %v3862_v44 = vpack.c.bf16 %v3211_v41, %v3209_v39  ;;  %v3397_v41 = vld [vmem:[%s5867_s0 + $0xc0] sm:$0xff] }
 0x22b   : > { %v3820_v49 = vpack.c.bf16 %v3172_v47, %v3170_v46  ;;  %v3213_v46 = vld [vmem:[%s4642_s14 + $0x6c0] sm:$0xff]  ;;  %v3215_v47 = vld [vmem:[%s4642_s14 + $0x6d0] sm:$0xff]  ;;  %v3328_v39 = vld [vmem:[%s5867_s0 + $0xb8] sm:$0xff] }
 0x22c   : > { %3116 = vmatmul.mubr.msk.f32.gmra.mrb[30].mxu0 %vm347_vm1, %v3112_v51  ;;  %v3171_v51 = vld [vmem:[%s4642_s14 + $0x5b0] sm:$0xff] }
 0x22d   : > { %3783 = vmatpush1.bf16.msra.mxu0 %v3782_v52  ;;  %v3174_v52 = vld [vmem:[%s4642_s14 + $0x5c8] sm:$0xff]  ;;  %v3822_v54 = vpack.c.bf16 %v3171_v51, %v3169_v50  ;;  %v3866_v50 = vpack.c.bf16 %v3215_v47, %v3213_v46  ;;  %v3239_v46 = vld [vmem:[%s4642_s14 + $0x790] sm:$0xff] }
 0x22e   : > { %3785 = vmatprep.subr.bf16.mxu0 %v3784_v53  ;;  %v3176_v53 = vld [vmem:[%s4642_s14 + $0x5d8] sm:$0xff] }
 0x22f   : > { %v3824_v55 = vpack.c.bf16 %v3176_v53, %v3174_v52  ;;  %v3217_v52 = vld [vmem:[%s4642_s14 + $0x6e0] sm:$0xff]  ;;  %v3219_v53 = vld [vmem:[%s4642_s14 + $0x6f0] sm:$0xff] }
 0x230   : > { %v3870_v56 = vpack.c.bf16 %v3219_v53, %v3217_v52  ;;  %v3246_v53 = vld [vmem:[%s4642_s14 + $0x7c8] sm:$0xff] }
 0x231   : > { %3787 = vmatpush1.bf16.msra.mxu0 %v3786_v58  ;;  %v3178_v58 = vld [vmem:[%s4642_s14 + $0x5e8] sm:$0xff] }
 0x232   : > { %3789 = vmatprep.subr.bf16.mxu0 %v3788_v59  ;;  %v3180_v59 = vld [vmem:[%s4642_s14 + $0x5f8] sm:$0xff] }
 0x233   : > { %v3828_v61 = vpack.c.bf16 %v3180_v59, %v3178_v58  ;;  %v3221_v58 = vld [vmem:[%s4642_s14 + $0x700] sm:$0xff]  ;;  %v3223_v59 = vld [vmem:[%s4642_s14 + $0x710] sm:$0xff] }
 0x235   : > { %3791 = vmatpush1.bf16.msra.mxu0 %v3790_v0  ;;  %v3830_v0 = vpack.c.bf16 %v3179_v63, %v3177_v62  ;;  %v3874_v62 = vpack.c.bf16 %v3223_v59, %v3221_v58  ;;  %v3250_v59 = vld [vmem:[%s4642_s14 + $0x7e8] sm:$0xff] }
 0x236   : > { %3793 = vmatprep.subr.bf16.mxu0 %v3792_v1  ;;  %v3190_v1 = vld [vmem:[%s4642_s14 + $0x608] sm:$0xff] }
 0x237   : > { %v3840_v4 = vpack.c.bf16 %v3192_v2, %v3190_v1  ;;  %v3227_v1 = vld [vmem:[%s4642_s14 + $0x730] sm:$0xff]  ;;  %v3230_v2 = vld [vmem:[%s4642_s14 + $0x748] sm:$0xff] }
 0x238   : > { %v3880_v5 = vpack.c.bf16 %v3232_v3, %v3230_v2  ;;  %v3264_v2 = vld [vmem:[%s4642_s14 + $0x818] sm:$0xff] }
 0x239   : > { %3795 = vmatpush1.bf16.msra.mxu0 %v3794_v6  ;;  %v3194_v6 = vld [vmem:[%s4642_s14 + $0x628] sm:$0xff]  ;;  %3841 = vmatprep.subr.bf16.mxu1 %v3840_v4 }
 0x23a   : > { %3797 = vmatprep.subr.bf16.mxu0 %v3796_v7  ;;  %v3196_v7 = vld [vmem:[%s4642_s14 + $0x638] sm:$0xff]  ;;  %3843 = vmatpush1.bf16.msra.mxu1 %v3842_v8  ;;  %v3234_v8 = vld [vmem:[%s4642_s14 + $0x768] sm:$0xff] }
 0x23b   : > { %v3844_v9 = vpack.c.bf16 %v3196_v7, %v3194_v6  ;;  %v3229_v6 = vld [vmem:[%s4642_s14 + $0x740] sm:$0xff]  ;;  %v3231_v7 = vld [vmem:[%s4642_s14 + $0x750] sm:$0xff] }
 0x23c   : > { %v3882_v10 = vpack.c.bf16 %v3231_v7, %v3229_v6  ;;  %v3400_v6 = vld [vmem:[%s5867_s0 + $0xd8] sm:$0xff]  ;;  %v3469_v7 = vld [vmem:[%s5867_s0 + $0xe0] sm:$0xff] }
 0x23d   : > { %3799 = vmatpush1.bf16.msra.mxu0 %v3798_v12  ;;  %v3198_v12 = vld [vmem:[%s4642_s14 + $0x648] sm:$0xff]  ;;  %3845 = vmatprep.subr.bf16.mxu1 %v3844_v9  ;;  %v3236_v9 = vld [vmem:[%s4642_s14 + $0x778] sm:$0xff] }
 0x23e   : > { %3801 = vmatprep.subr.bf16.mxu0 %v3800_v13  ;;  %v3200_v13 = vld [vmem:[%s4642_s14 + $0x658] sm:$0xff]  ;;  %3847 = vmatpush1.bf16.msra.mxu1 %v3846_v14  ;;  %v3884_v11 = vpack.c.bf16 %v3236_v9, %v3234_v8  ;;  %v3471_v9 = vld [vmem:[%s5867_s0 + $0xf0] sm:$0xff] }
 0x23f   : > { %v3848_v15 = vpack.c.bf16 %v3200_v13, %v3198_v12  ;;  %v3233_v12 = vld [vmem:[%s4642_s14 + $0x760] sm:$0xff]  ;;  %v3235_v13 = vld [vmem:[%s4642_s14 + $0x770] sm:$0xff]  ;;  %v3470_v8 = vld [vmem:[%s5867_s0 + $0xe8] sm:$0xff] }
 0x240   : > { %v3886_v14 = vpack.c.bf16 %v3235_v13, %v3233_v12  ;;  %v3543_v12 = vld [vmem:[%s5867_s0 + $0x110] sm:$0xff] }
 0x241   : > { %3803 = vmatpush1.bf16.msra.mxu0 %v3802_v19  ;;  %v3202_v19 = vld [vmem:[%s4642_s14 + $0x668] sm:$0xff]  ;;  %3849 = vmatprep.subr.bf16.mxu1 %v3848_v15 }
 0x242   : > { %3805 = vmatprep.subr.bf16.mxu0 %v3804_v20  ;;  %v3204_v20 = vld [vmem:[%s4642_s14 + $0x678] sm:$0xff]  ;;  %3851 = vmatpush1.bf16.msra.mxu1 %v3850_v21 }
 0x243   : > { %v3852_v22 = vpack.c.bf16 %v3204_v20, %v3202_v19 }
 0x245   : > { %3807 = vmatpush1.bf16.msra.mxu0 %v3806_v26  ;;  %v3206_v26 = vld [vmem:[%s4642_s14 + $0x688] sm:$0xff]  ;;  %3853 = vmatprep.subr.bf16.mxu1 %v3852_v22 }
 0x246   : > { %3809 = vmatprep.subr.bf16.mxu0 %v3808_v27  ;;  %v3208_v27 = vld [vmem:[%s4642_s14 + $0x698] sm:$0xff]  ;;  %3855 = vmatpush1.bf16.msra.mxu1 %v3854_v28  ;;  %v3184_v28 = vld [vmem:[%s5867_s0 + $0x78] sm:$0xff] }
 0x247   : > { %v3856_v29 = vpack.c.bf16 %v3208_v27, %v3206_v26  ;;  %v3182_v26 = vld [vmem:[%s5867_s0 + $0x68] sm:$0xff]  ;;  %v3183_v27 = vld [vmem:[%s5867_s0 + $0x70] sm:$0xff] }
 0x249   : > { %3811 = vmatpush1.bf16.msra.mxu0 %v3810_v34  ;;  %v3210_v34 = vld [vmem:[%s4642_s14 + $0x6a8] sm:$0xff]  ;;  %3857 = vmatprep.subr.bf16.mxu1 %v3856_v29  ;;  %v3253_v29 = vld [vmem:[%s5867_s0 + $0x80] sm:$0xff] }
 0x24a   : > { %3813 = vmatprep.subr.bf16.mxu0 %v3812_v36  ;;  %v3212_v36 = vld [vmem:[%s4642_s14 + $0x6b8] sm:$0xff]  ;;  %3859 = vmatpush1.bf16.msra.mxu1 %v3858_v37 }
 0x24b   : > { %v3860_v38 = vpack.c.bf16 %v3212_v36, %v3210_v34  ;;  %v3256_v34 = vld [vmem:[%s5867_s0 + $0x98] sm:$0xff]  ;;  %v3325_v36 = vld [vmem:[%s5867_s0 + $0xa0] sm:$0xff]  ;;  %v3326_v37 = vld [vmem:[%s5867_s0 + $0xa8] sm:$0xff] }
 0x24d   : > { %3815 = vmatpush1.bf16.msra.mxu0 %v3814_v42  ;;  %v3214_v42 = vld [vmem:[%s4642_s14 + $0x6c8] sm:$0xff]  ;;  %3861 = vmatprep.subr.bf16.mxu1 %v3860_v38  ;;  %v3327_v38 = vld [vmem:[%s5867_s0 + $0xb0] sm:$0xff] }
 0x24e   : > { %3817 = vmatprep.subr.bf16.mxu0 %v3816_v43  ;;  %v3216_v43 = vld [vmem:[%s4642_s14 + $0x6d8] sm:$0xff]  ;;  %3863 = vmatpush1.bf16.msra.mxu1 %v3862_v44 }
 0x24f   : > { %v3864_v45 = vpack.c.bf16 %v3216_v43, %v3214_v42  ;;  %v3238_v42 = vld [vmem:[%s4642_s14 + $0x788] sm:$0xff]  ;;  %v3240_v43 = vld [vmem:[%s4642_s14 + $0x798] sm:$0xff] }
 0x250   : > { %v3888_v44 = vpack.c.bf16 %v3240_v43, %v3238_v42  ;;  %v3274_v43 = vld [vmem:[%s4642_s14 + $0x868] sm:$0xff] }
 0x251   : > { %3819 = vmatpush1.bf16.msra.mxu0 %v3818_v48  ;;  %v3218_v48 = vld [vmem:[%s4642_s14 + $0x6e8] sm:$0xff]  ;;  %3865 = vmatprep.subr.bf16.mxu1 %v3864_v45  ;;  %v3237_v45 = vld [vmem:[%s4642_s14 + $0x780] sm:$0xff] }
 0x252   : > { %3821 = vmatprep.subr.bf16.mxu0 %v3820_v49  ;;  %v3220_v49 = vld [vmem:[%s4642_s14 + $0x6f8] sm:$0xff]  ;;  %3867 = vmatpush1.bf16.msra.mxu1 %v3866_v50  ;;  %v3890_v47 = vpack.c.bf16 %v3239_v46, %v3237_v45 }
 0x253   : > { %v3868_v51 = vpack.c.bf16 %v3220_v49, %v3218_v48  ;;  %v3242_v48 = vld [vmem:[%s4642_s14 + $0x7a8] sm:$0xff]  ;;  %v3244_v49 = vld [vmem:[%s4642_s14 + $0x7b8] sm:$0xff] }
 0x254   : > { %v3892_v50 = vpack.c.bf16 %v3244_v49, %v3242_v48  ;;  %v3273_v48 = vld [vmem:[%s4642_s14 + $0x860] sm:$0xff]  ;;  %v3275_v49 = vld [vmem:[%s4642_s14 + $0x870] sm:$0xff] }
 0x255   : > { %3823 = vmatpush1.bf16.msra.mxu0 %v3822_v54  ;;  %v3222_v54 = vld [vmem:[%s4642_s14 + $0x708] sm:$0xff]  ;;  %3869 = vmatprep.subr.bf16.mxu1 %v3868_v51  ;;  %v3241_v51 = vld [vmem:[%s4642_s14 + $0x7a0] sm:$0xff] }
 0x256   : > { %3825 = vmatprep.subr.bf16.mxu0 %v3824_v55  ;;  %v3224_v55 = vld [vmem:[%s4642_s14 + $0x718] sm:$0xff]  ;;  %3871 = vmatpush1.bf16.msra.mxu1 %v3870_v56  ;;  %v3245_v56 = vld [vmem:[%s4642_s14 + $0x7c0] sm:$0xff] }
 0x257   : > { %v3872_v57 = vpack.c.bf16 %v3224_v55, %v3222_v54  ;;  %v3248_v54 = vld [vmem:[%s4642_s14 + $0x7d8] sm:$0xff] }
 0x258   : > { %v3896_v55 = vpack.c.bf16 %v3248_v54, %v3246_v53 }
 0x259   : > { %3827 = vmatpush1.bf16.msra.mxu0 %v3826_v60  ;;  %v3226_v60 = vld [vmem:[%s4642_s14 + $0x728] sm:$0xff]  ;;  %3873 = vmatprep.subr.bf16.mxu1 %v3872_v57  ;;  %v3247_v57 = vld [vmem:[%s4642_s14 + $0x7d0] sm:$0xff] }
 0x25a   : > { %3829 = vmatprep.subr.bf16.mxu0 %v3828_v61  ;;  %v3228_v61 = vld [vmem:[%s4642_s14 + $0x738] sm:$0xff]  ;;  %3875 = vmatpush1.bf16.msra.mxu1 %v3874_v62  ;;  %v3898_v58 = vpack.c.bf16 %v3247_v57, %v3245_v56  ;;  %v3249_v62 = vld [vmem:[%s4642_s14 + $0x7e0] sm:$0xff]  ;;  %v3279_v56 = vld [vmem:[%s4642_s14 + $0x890] sm:$0xff] }
 0x25b   : > { %v3876_v63 = vpack.c.bf16 %v3228_v61, %v3226_v60  ;;  %v3252_v60 = vld [vmem:[%s4642_s14 + $0x7f8] sm:$0xff] }
 0x25c   : > { %v3900_v61 = vpack.c.bf16 %v3252_v60, %v3250_v59  ;;  %v3284_v59 = vld [vmem:[%s4642_s14 + $0x8b8] sm:$0xff] }
 0x25d   : > { %3831 = vmatpush1.bf16.msra.mxu0 %v3830_v0  ;;  %v3225_v0 = vld [vmem:[%s4642_s14 + $0x720] sm:$0xff]  ;;  %3877 = vmatprep.subr.bf16.mxu1 %v3876_v63  ;;  %v3251_v63 = vld [vmem:[%s4642_s14 + $0x7f0] sm:$0xff] }
 0x25e   : > { %3833 = vmatprep.subr.bf16.mxu0 %v4755_v31  ;;  %v3878_v4 = vpack.c.bf16 %v3227_v1, %v3225_v0  ;;  %v3902_v0 = vpack.c.bf16 %v3251_v63, %v3249_v62  ;;  %v3262_v1 = vld [vmem:[%s4642_s14 + $0x808] sm:$0xff]  ;;  %v3281_v63 = vld [vmem:[%s4642_s14 + $0x8a0] sm:$0xff] }
 0x25f   : > { %v3912_v3 = vpack.c.bf16 %v3264_v2, %v3262_v1  ;;  %v3286_v2 = vld [vmem:[%s4642_s14 + $0x8c8] sm:$0xff] }
 0x260   : > { %3879 = vmatpush1.bf16.msra.mxu1 %v3878_v4  ;;  %v3398_v4 = vld [vmem:[%s5867_s0 + $0xc8] sm:$0xff] }
 0x261   : > { %3881 = vmatprep.subr.bf16.mxu1 %v3880_v5  ;;  %v3399_v5 = vld [vmem:[%s5867_s0 + $0xd0] sm:$0xff] }
 0x264   : > { %3883 = vmatpush1.bf16.msra.mxu1 %v3882_v10 }
 0x265   : > { %3885 = vmatprep.subr.bf16.mxu1 %v3884_v11 }
 0x268   : > { %3887 = vmatpush1.bf16.msra.mxu1 %v3886_v14 }
 0x269   : > { %3889 = vmatprep.subr.bf16.mxu1 %v3888_v44  ;;  %v3276_v44 = vld [vmem:[%s4642_s14 + $0x878] sm:$0xff] }
 0x26c   : > { %3891 = vmatpush1.bf16.msra.mxu1 %v3890_v47  ;;  %v3924_v47 = vpack.c.bf16 %v3276_v44, %v3274_v43  ;;  %v3302_v44 = vld [vmem:[%s4642_s14 + $0x948] sm:$0xff] }
 0x26d   : > { %3893 = vmatprep.subr.bf16.mxu1 %v3892_v50 }
 0x2f3   : > { %v961_v15 = vpop.f32.mrb[24].mxu0 }
 0x2f4   : > { %v963_v16 = vpop.f32.mrb[25].mxu0 }
 0x2f5   : > { %1113 = vmatprep.mubr.f32.mxu0 %v963_v16 }
 0x2f6   : > { %1114 = vmatmul.mubr.f32.vlgmr.msra.gmra.mrb[8].mxu0 %v961_v15  ;;  %v3544_v15 = vld [vmem:[%s5867_s0 + $0x118] sm:$0xff] }
 0x2f7   : > { %3835 = vmatpush1.bf16.msra.mxu0 %v4757_v32  ;;  %v967_v18 = vpop.f32.mrb[26].mxu0 }
 0x2f8   : > { %v969_v19 = vpop.f32.mrb[27].mxu0  ;;  %3837 = vmatprep.subr.bf16.mxu0 %v4763_v35 }
 0x2f9   : > { %1119 = vmatprep.mubr.f32.mxu0 %v969_v19 }
 0x2fa   : > { %1120 = vmatmul.mubr.f32.gmra.mrb[10].mxu0 %v967_v18 }
 0x2fb   : > { %v973_v20 = vpop.f32.mrb[28].mxu0  ;;  %3839 = vmatpush1.bf16.msra.mxu0 %v4773_v40 }
 0x2fc   : > { %v975_v21 = vpop.f32.mrb[29].mxu0  ;;  %3905 = vmatprep.subr.bf16.mxu0 %v4755_v31 }
 0x2fd   : > { %1125 = vmatprep.mubr.f32.mxu0 %v975_v21  ;;  %v3261_v21 = vld [vmem:[%s4642_s14 + $0x800] sm:$0xff] }
 0x2fe   : > { %1126 = vmatmul.mubr.f32.gmra.mrb[12].mxu0 %v973_v20 }
 0x2ff   : > { %v979_v22 = vpop.f32.mrb[30].mxu0 }
 0x300   : > { %v981_v23 = vpop.f32.mrb[31].mxu0 }
 0x301   : > { %1131 = vmatprep.mubr.f32.mxu0 %v981_v23  ;;  %v3268_v23 = vld [vmem:[%s4642_s14 + $0x838] sm:$0xff] }
 0x302   : > { %1132 = vmatmul.mubr.f32.gmra.mrb[14].mxu0 %v979_v22  ;;  %v3263_v22 = vld [vmem:[%s4642_s14 + $0x810] sm:$0xff] }
 0x303   : > { %1227 = vmatprep.mubr.f32.mxu0 %v4525_v17 }
 0x306   : > { %3185 = vmatmul.mubr.msk.f32.vlgmr.msra.gmra.mrb[32].mxu0 %vm347_vm1, %v3181_v25 }
 0x307   : > { %3907 = vmatpush1.bf16.msra.mxu0 %v4757_v32  ;;  %1233 = vmatprep.mubr.f32.mxu0 %v4525_v17 }
 0x308   : > { %3909 = vmatprep.subr.bf16.mxu0 %v4763_v35 }
 0x30a   : > { %3186 = vmatmul.mubr.msk.f32.gmra.mrb[34].mxu0 %vm347_vm1, %v3182_v26  ;;  %v3914_v26 = vpack.c.bf16 %v3263_v22, %v3261_v21  ;;  %v3289_v21 = vld [vmem:[%s4642_s14 + $0x8e0] sm:$0xff]  ;;  %v3291_v22 = vld [vmem:[%s4642_s14 + $0x8f0] sm:$0xff] }
 0x30b   : > { %1239 = vmatprep.mubr.f32.mxu0 %v4525_v17  ;;  %3911 = vmatpush1.bf16.msra.mxu0 %v4773_v40 }
 0x30c   : > { %3977 = vmatprep.subr.bf16.mxu0 %v4755_v31 }
 0x30e   : > { %3187 = vmatmul.mubr.msk.f32.gmra.mrb[36].mxu0 %vm347_vm1, %v3183_v27 }
 0x30f   : > { %1245 = vmatprep.mubr.f32.mxu0 %v4525_v17 }
 0x312   : > { %3188 = vmatmul.mubr.msk.f32.gmra.mrb[38].mxu0 %vm347_vm1, %v3184_v28 }
 0x313   : > { %1495 = vmatprep.mubr.f32.mxu0 %v4525_v17 }
 0x316   : > { %3257 = vmatmul.mubr.msk.f32.vlgmr.msra.gmra.mrb[40].mxu0 %vm347_vm1, %v3253_v29  ;;  %v3265_v29 = vld [vmem:[%s4642_s14 + $0x820] sm:$0xff] }
 0x317   : > { %3979 = vmatpush1.bf16.msra.mxu0 %v4757_v32  ;;  %1501 = vmatprep.mubr.f32.mxu0 %v4525_v17 }
 0x318   : > { %3981 = vmatprep.subr.bf16.mxu0 %v4763_v35 }
 0x31a   : > { %3258 = vmatmul.mubr.msk.f32.gmra.mrb[42].mxu0 %vm347_vm1, %v3254_v30  ;;  %v3267_v30 = vld [vmem:[%s4642_s14 + $0x830] sm:$0xff] }
 0x31b   : > { %1507 = vmatprep.mubr.f32.mxu0 %v4525_v17  ;;  %3983 = vmatpush1.bf16.msra.mxu0 %v4773_v40 }
 0x31c   : > { %4049 = vmatprep.subr.bf16.mxu0 %v4755_v31 }
 0x31e   : > { %3259 = vmatmul.mubr.msk.f32.gmra.mrb[44].mxu0 %vm347_vm1, %v3255_v33  ;;  %v3270_v33 = vld [vmem:[%s4642_s14 + $0x848] sm:$0xff] }
 0x31f   : > { %1513 = vmatprep.mubr.f32.mxu0 %v4525_v17 }
 0x322   : > { %3260 = vmatmul.mubr.msk.f32.gmra.mrb[46].mxu0 %vm347_vm1, %v3256_v34  ;;  %v3272_v34 = vld [vmem:[%s4642_s14 + $0x858] sm:$0xff] }
 0x323   : > { %1763 = vmatprep.mubr.f32.mxu0 %v4525_v17 }
 0x326   : > { %3329 = vmatmul.mubr.msk.f32.vlgmr.msra.gmra.mrb[48].mxu0 %vm347_vm1, %v3325_v36  ;;  %v3918_v36 = vpack.c.bf16 %v3267_v30, %v3265_v29  ;;  %v3293_v29 = vld [vmem:[%s4642_s14 + $0x900] sm:$0xff]  ;;  %v3295_v30 = vld [vmem:[%s4642_s14 + $0x910] sm:$0xff] }
 0x327   : > { %4051 = vmatpush1.bf16.msra.mxu0 %v4757_v32  ;;  %1769 = vmatprep.mubr.f32.mxu0 %v4525_v17 }
 0x328   : > { %4053 = vmatprep.subr.bf16.mxu0 %v4763_v35 }
 0x32a   : > { %3330 = vmatmul.mubr.msk.f32.gmra.mrb[50].mxu0 %vm347_vm1, %v3326_v37 }
 0x32b   : > { %1775 = vmatprep.mubr.f32.mxu0 %v4525_v17  ;;  %4055 = vmatpush1.bf16.msra.mxu0 %v4773_v40 }
 0x32c   : > { %4121 = vmatprep.subr.bf16.mxu0 %v4755_v31 }
 0x32e   : > { %3331 = vmatmul.mubr.msk.f32.gmra.mrb[52].mxu0 %vm347_vm1, %v3327_v38  ;;  %v3920_v38 = vpack.c.bf16 %v3272_v34, %v3270_v33  ;;  %v3298_v34 = vld [vmem:[%s4642_s14 + $0x928] sm:$0xff] }
 0x32f   : > { %1781 = vmatprep.mubr.f32.mxu0 %v4525_v17 }
 0x332   : > { %3332 = vmatmul.mubr.msk.f32.gmra.mrb[54].mxu0 %vm347_vm1, %v3328_v39  ;;  %v3269_v39 = vld [vmem:[%s4642_s14 + $0x840] sm:$0xff] }
 0x333   : > { %2031 = vmatprep.mubr.f32.mxu0 %v4525_v17 }
 0x336   : > { %3401 = vmatmul.mubr.msk.f32.vlgmr.msra.gmra.mrb[56].mxu0 %vm347_vm1, %v3397_v41  ;;  %v3271_v41 = vld [vmem:[%s4642_s14 + $0x850] sm:$0xff] }
 0x337   : > { %4123 = vmatpush1.bf16.msra.mxu0 %v4757_v32  ;;  %2037 = vmatprep.mubr.f32.mxu0 %v4525_v17  ;;  %v3922_v45 = vpack.c.bf16 %v3271_v41, %v3269_v39  ;;  %v3297_v41 = vld [vmem:[%s4642_s14 + $0x920] sm:$0xff] }
 0x338   : > { %4125 = vmatprep.subr.bf16.mxu0 %v4763_v35 }
 0x33a   : > { %3402 = vmatmul.mubr.msk.f32.gmra.mrb[58].mxu0 %vm347_vm1, %v3398_v4 }
 0x33b   : > { %4127 = vmatpush1.bf16.msra.mxu0 %v4773_v40  ;;  %2043 = vmatprep.mubr.f32.mxu0 %v4525_v17 }
 0x33c   : > { %4193 = vmatprep.subr.bf16.mxu0 %v4755_v31  ;;  %v3243_v31 = vld [vmem:[%s4642_s14 + $0x7b0] sm:$0xff] }
 0x33d   : > { %v3894_v52 = vpack.c.bf16 %v3243_v31, %v3241_v51  ;;  %v3278_v51 = vld [vmem:[%s4642_s14 + $0x888] sm:$0xff]  ;;  %v3280_v31 = vld [vmem:[%s4642_s14 + $0x898] sm:$0xff] }
 0x33e   : > { %3403 = vmatmul.mubr.msk.f32.gmra.mrb[60].mxu0 %vm347_vm1, %v3399_v5  ;;  %v3928_v54 = vpack.c.bf16 %v3280_v31, %v3278_v51  ;;  %v3308_v51 = vld [vmem:[%s4642_s14 + $0x978] sm:$0xff] }
 0x33f   : > { %3895 = vmatpush1.bf16.msra.mxu1 %v3894_v52  ;;  %2049 = vmatprep.mubr.f32.mxu0 %v4525_v17  ;;  %v3926_v52 = vpack.c.bf16 %v3275_v49, %v3273_v48  ;;  %v3301_v48 = vld [vmem:[%s4642_s14 + $0x940] sm:$0xff]  ;;  %v3303_v49 = vld [vmem:[%s4642_s14 + $0x950] sm:$0xff] }
 0x340   : > { %3897 = vmatprep.subr.bf16.mxu1 %v3896_v55  ;;  %v3277_v55 = vld [vmem:[%s4642_s14 + $0x880] sm:$0xff]  ;;  %v3954_v31 = vpack.c.bf16 %v3303_v49, %v3301_v48  ;;  %v3340_v48 = vld [vmem:[%s4642_s14 + $0xa38] sm:$0xff] }
 0x341   : > { %v3930_v60 = vpack.c.bf16 %v3279_v56, %v3277_v55  ;;  %v3310_v55 = vld [vmem:[%s4642_s14 + $0x988] sm:$0xff]  ;;  %v3312_v56 = vld [vmem:[%s4642_s14 + $0x998] sm:$0xff] }
 0x342   : > { %3404 = vmatmul.mubr.msk.f32.gmra.mrb[62].mxu0 %vm347_vm1, %v3400_v6 }
 0x343   : > { %3899 = vmatpush1.bf16.msra.mxu1 %v3898_v58  ;;  %2299 = vmatprep.mubr.f32.mxu0 %v4525_v17  ;;  %v3282_v58 = vld [vmem:[%s4642_s14 + $0x8a8] sm:$0xff] }
 0x344   : > { %3901 = vmatprep.subr.bf16.mxu1 %v3900_v61  ;;  %v3932_v62 = vpack.c.bf16 %v3284_v59, %v3282_v58  ;;  %v3960_v58 = vpack.c.bf16 %v3312_v56, %v3310_v55  ;;  %v3309_v59 = vld [vmem:[%s4642_s14 + $0x980] sm:$0xff] }
 0x346   : > { %3473 = vmatmul.mubr.msk.f32.vlgmr.msra.gmra.mrb[64].mxu0 %vm347_vm1, %v3469_v7  ;;  %v3285_v7 = vld [vmem:[%s4642_s14 + $0x8c0] sm:$0xff] }
 0x347   : > { %3903 = vmatpush1.bf16.msra.mxu1 %v3902_v0  ;;  %4195 = vmatpush1.bf16.msra.mxu0 %v4757_v32  ;;  %v3472_v32 = vld [vmem:[%s5867_s0 + $0xf8] sm:$0xff]  ;;  %v3283_v0 = vld [vmem:[%s4642_s14 + $0x8b0] sm:$0xff] }
 0x348   : > { %3913 = vmatprep.subr.bf16.mxu1 %v3912_v3  ;;  %2305 = vmatprep.mubr.f32.mxu0 %v4525_v17  ;;  %v3288_v3 = vld [vmem:[%s4642_s14 + $0x8d8] sm:$0xff]  ;;  %v3934_v4 = vpack.c.bf16 %v3283_v0, %v3281_v63 }
 0x349   : > { %4197 = vmatprep.subr.bf16.mxu0 %v4763_v35  ;;  %v3541_v35 = vld [vmem:[%s5867_s0 + $0x100] sm:$0xff]  ;;  %v3936_v6 = vpack.c.bf16 %v3288_v3, %v3286_v2  ;;  %v3316_v63 = vld [vmem:[%s4642_s14 + $0x9b8] sm:$0xff]  ;;  %v3313_v3 = vld [vmem:[%s4642_s14 + $0x9a0] sm:$0xff] }
 0x34a   : > { %3474 = vmatmul.mubr.msk.f32.gmra.mrb[66].mxu0 %vm347_vm1, %v3470_v8  ;;  %v3287_v8 = vld [vmem:[%s4642_s14 + $0x8d0] sm:$0xff] }
 0x34b   : > { %4199 = vmatpush1.bf16.msra.mxu0 %v4773_v40  ;;  %2311 = vmatprep.mubr.f32.mxu0 %v4525_v17  ;;  %v3542_v40 = vld [vmem:[%s5867_s0 + $0x108] sm:$0xff] }
 0x34e   : > { %3475 = vmatmul.mubr.msk.f32.gmra.mrb[68].mxu0 %vm347_vm1, %v3471_v9 }
 0x34f   : > { %2317 = vmatprep.mubr.f32.mxu0 %v4525_v17 }
 0x352   : > { %3476 = vmatmul.mubr.msk.f32.gmra.mrb[70].mxu0 %vm347_vm1, %v3472_v32  ;;  %v3290_v32 = vld [vmem:[%s4642_s14 + $0x8e8] sm:$0xff] }
 0x353   : > { %2567 = vmatprep.mubr.f32.mxu0 %v4525_v17 }
 0x356   : > { %3545 = vmatmul.mubr.msk.f32.vlgmr.msra.gmra.mrb[72].mxu0 %vm347_vm1, %v3541_v35  ;;  %v3292_v35 = vld [vmem:[%s4642_s14 + $0x8f8] sm:$0xff] }
 0x357   : > { %2573 = vmatprep.mubr.f32.mxu0 %v4525_v17 }
 0x35a   : > { %3546 = vmatmul.mubr.msk.f32.gmra.mrb[74].mxu0 %vm347_vm1, %v3542_v40  ;;  %v3938_v40 = vpack.c.bf16 %v3287_v8, %v3285_v7  ;;  %v3318_v7 = vld [vmem:[%s4642_s14 + $0x9c8] sm:$0xff]  ;;  %v3320_v8 = vld [vmem:[%s4642_s14 + $0x9d8] sm:$0xff] }
 0x35b   : > { %2579 = vmatprep.mubr.f32.mxu0 %v4525_v17 }
 0x35e   : > { %3547 = vmatmul.mubr.msk.f32.gmra.mrb[76].mxu0 %vm347_vm1, %v3543_v12 }
 0x35f   : > { %2585 = vmatprep.mubr.f32.mxu0 %v4525_v17  ;;  %v3266_v17 = vld [vmem:[%s4642_s14 + $0x828] sm:$0xff] }
 0x360   : > { %v3916_v28 = vpack.c.bf16 %v3268_v23, %v3266_v17  ;;  %v3294_v23 = vld [vmem:[%s4642_s14 + $0x908] sm:$0xff] }
 0x362   : > { %3548 = vmatmul.mubr.msk.f32.gmra.mrb[78].mxu0 %vm347_vm1, %v3544_v15  ;;  %v3940_v15 = vpack.c.bf16 %v3292_v35, %v3290_v32 }
 0x3c9   : > { %v5233_v10 = vpop.f32.mrb[8].mxu0 }
 0x3ca   : > { %v5236_v11 = vpop.f32.mrb[9].mxu0 }
 0x3cd   : > { %v5242_v13 = vpop.f32.mrb[10].mxu0 }
 0x3ce   : > { %v5245_v14 = vpop.f32.mrb[11].mxu0 }
 0x3d1   : > { %v5251_v16 = vpop.f32.mrb[12].mxu0 }
 0x3d2   : > { %v5254_v18 = vpop.f32.mrb[13].mxu0 }
 0x3d5   : > { %v5256_v19 = vpop.f32.mrb[14].mxu0 }
 0x3d6   : > { %v5258_v20 = vpop.f32.mrb[15].mxu0 }
 0x3d9   : > { %v1229_v25 = vpop.f32.mrb[32].mxu0 }
 0x3da   : > { %v1231_v27 = vpop.f32.mrb[33].mxu0 }
 0x3db   : > { %1381 = vmatprep.mubr.f32.mxu1 %v1231_v27 }
 0x3dc   : > { %1382 = vmatmul.mubr.f32.vlgmr.msra.gmra.mrb[0].mxu1 %v1229_v25  ;;  %v3296_v25 = vld [vmem:[%s4642_s14 + $0x918] sm:$0xff] }
 0x3dd   : > { %3915 = vmatpush1.bf16.msra.mxu1 %v3914_v26  ;;  %v1235_v37 = vpop.f32.mrb[34].mxu0  ;;  %v3942_v26 = vpack.c.bf16 %v3291_v22, %v3289_v21  ;;  %v3319_v21 = vld [vmem:[%s4642_s14 + $0x9d0] sm:$0xff] }
 0x3de   : > { %3917 = vmatprep.subr.bf16.mxu1 %v3916_v28  ;;  %v1237_v42 = vpop.f32.mrb[35].mxu0  ;;  %v3944_v28 = vpack.c.bf16 %v3296_v25, %v3294_v23  ;;  %v3322_v23 = vld [vmem:[%s4642_s14 + $0x9e8] sm:$0xff]  ;;  %v3324_v25 = vld [vmem:[%s4642_s14 + $0x9f8] sm:$0xff] }
 0x3df   : > { %1387 = vmatprep.mubr.f32.mxu1 %v1237_v42  ;;  %v3299_v42 = vld [vmem:[%s4642_s14 + $0x930] sm:$0xff] }
 0x3e0   : > { %1388 = vmatmul.mubr.f32.gmra.mrb[2].mxu1 %v1235_v37  ;;  %v3946_v37 = vpack.c.bf16 %v3295_v30, %v3293_v29  ;;  %v3972_v29 = vpack.c.bf16 %v3324_v25, %v3322_v23  ;;  %v3321_v30 = vld [vmem:[%s4642_s14 + $0x9e0] sm:$0xff] }
 0x3e1   : > { %3919 = vmatpush1.bf16.msra.mxu1 %v3918_v36  ;;  %v1241_v46 = vpop.f32.mrb[36].mxu0  ;;  %v3300_v36 = vld [vmem:[%s4642_s14 + $0x938] sm:$0xff]  ;;  %v3357_v25 = vld [vmem:[%s4642_s14 + $0xac0] sm:$0xff] }
 0x3e2   : > { %3921 = vmatprep.subr.bf16.mxu1 %v3920_v38  ;;  %v1243_v50 = vpop.f32.mrb[37].mxu0  ;;  %v3948_v39 = vpack.c.bf16 %v3300_v36, %v3298_v34  ;;  %v3323_v34 = vld [vmem:[%s4642_s14 + $0x9f0] sm:$0xff] }
 0x3e3   : > { %1393 = vmatprep.mubr.f32.mxu1 %v1243_v50  ;;  %v3306_v50 = vld [vmem:[%s4642_s14 + $0x968] sm:$0xff] }
 0x3e4   : > { %1394 = vmatmul.mubr.f32.gmra.mrb[4].mxu1 %v1241_v46  ;;  %v3950_v46 = vpack.c.bf16 %v3299_v42, %v3297_v41  ;;  %v3974_v41 = vpack.c.bf16 %v3323_v34, %v3321_v30 }
 0x3e5   : > { %3923 = vmatpush1.bf16.msra.mxu1 %v3922_v45  ;;  %v1247_v53 = vpop.f32.mrb[38].mxu0  ;;  %v3304_v45 = vld [vmem:[%s4642_s14 + $0x958] sm:$0xff] }
 0x3e6   : > { %3925 = vmatprep.subr.bf16.mxu1 %v3924_v47  ;;  %v1249_v57 = vpop.f32.mrb[39].mxu0  ;;  %v3952_v47 = vpack.c.bf16 %v3304_v45, %v3302_v44  ;;  %v3333_v44 = vld [vmem:[%s4642_s14 + $0xa00] sm:$0xff]  ;;  %v3335_v45 = vld [vmem:[%s4642_s14 + $0xa10] sm:$0xff] }
 0x3e7   : > { %1399 = vmatprep.mubr.f32.mxu1 %v1249_v57  ;;  %v3986_v49 = vpack.c.bf16 %v3335_v45, %v3333_v44 }
 0x3e8   : > { %1400 = vmatmul.mubr.f32.gmra.mrb[6].mxu1 %v1247_v53  ;;  %v3305_v53 = vld [vmem:[%s4642_s14 + $0x960] sm:$0xff] }
 0x3e9   : > { %3927 = vmatpush1.bf16.msra.mxu1 %v3926_v52  ;;  %v5280_v61 = vpop.f32.mrb[40].mxu0  ;;  %v3956_v52 = vpack.c.bf16 %v3308_v51, %v3306_v50 }
 0x3ea   : > { %3929 = vmatprep.subr.bf16.mxu1 %v3928_v54  ;;  %v1499_v1 = vpop.f32.mrb[41].mxu0  ;;  %v3307_v54 = vld [vmem:[%s4642_s14 + $0x970] sm:$0xff] }
 0x3eb   : > { %1649 = vmatprep.mubr.f32.mxu1 %v1499_v1  ;;  %v3958_v57 = vpack.c.bf16 %v3307_v54, %v3305_v53  ;;  %v3342_v53 = vld [vmem:[%s4642_s14 + $0xa48] sm:$0xff]  ;;  %v3344_v54 = vld [vmem:[%s4642_s14 + $0xa58] sm:$0xff] }
 0x3ec   : > { %v3992_v56 = vpack.c.bf16 %v3344_v54, %v3342_v53  ;;  %v3369_v53 = vld [vmem:[%s4642_s14 + $0xb20] sm:$0xff]  ;;  %v3371_v54 = vld [vmem:[%s4642_s14 + $0xb30] sm:$0xff] }
 0x3ed   : > { %3931 = vmatpush1.bf16.msra.mxu1 %v3930_v60  ;;  %v5286_v5 = vpop.f32.mrb[42].mxu0  ;;  %v3311_v60 = vld [vmem:[%s4642_s14 + $0x990] sm:$0xff] }
 0x3ee   : > { %3933 = vmatprep.subr.bf16.mxu1 %v3932_v62  ;;  %v5290_v9 = vpop.f32.mrb[43].mxu0  ;;  %v3314_v62 = vld [vmem:[%s4642_s14 + $0x9a8] sm:$0xff]  ;;  %v3962_v0 = vpack.c.bf16 %v3311_v60, %v3309_v59  ;;  %v3348_v60 = vld [vmem:[%s4642_s14 + $0xa78] sm:$0xff] }
 0x3ef   : > { %v3964_v2 = vpack.c.bf16 %v3316_v63, %v3314_v62  ;;  %v3346_v59 = vld [vmem:[%s4642_s14 + $0xa68] sm:$0xff]  ;;  %v3347_v63 = vld [vmem:[%s4642_s14 + $0xa70] sm:$0xff] }
 0x3f0   : > { %v3996_v62 = vpack.c.bf16 %v3348_v60, %v3346_v59  ;;  %v3373_v59 = vld [vmem:[%s4642_s14 + $0xb40] sm:$0xff]  ;;  %v3375_v60 = vld [vmem:[%s4642_s14 + $0xb50] sm:$0xff] }
 0x3f1   : > { %3935 = vmatpush1.bf16.msra.mxu1 %v3934_v4  ;;  %v5294_v12 = vpop.f32.mrb[44].mxu0  ;;  %v3315_v4 = vld [vmem:[%s4642_s14 + $0x9b0] sm:$0xff] }
 0x3f2   : > { %3937 = vmatprep.subr.bf16.mxu1 %v3936_v6  ;;  %v5298_v17 = vpop.f32.mrb[45].mxu0  ;;  %v3966_v32 = vpack.c.bf16 %v3315_v4, %v3313_v3  ;;  %v3351_v4 = vld [vmem:[%s4642_s14 + $0xa90] sm:$0xff] }
 0x3f5   : > { %3939 = vmatpush1.bf16.msra.mxu1 %v3938_v40  ;;  %v5302_v27 = vpop.f32.mrb[46].mxu0  ;;  %v3968_v40 = vpack.c.bf16 %v3320_v8, %v3318_v7  ;;  %v3354_v7 = vld [vmem:[%s4642_s14 + $0xaa8] sm:$0xff]  ;;  %v3356_v8 = vld [vmem:[%s4642_s14 + $0xab8] sm:$0xff] }
 0x3f6   : > { %3941 = vmatprep.subr.bf16.mxu1 %v3940_v15  ;;  %v5306_v33 = vpop.f32.mrb[47].mxu0  ;;  %v3317_v15 = vld [vmem:[%s4642_s14 + $0x9c0] sm:$0xff] }
 0x3f9   : > { %3943 = vmatpush1.bf16.msra.mxu1 %v3942_v26  ;;  %v5310_v38 = vpop.f32.mrb[48].mxu0  ;;  %v3970_v26 = vpack.c.bf16 %v3319_v21, %v3317_v15  ;;  %v3358_v15 = vld [vmem:[%s4642_s14 + $0xac8] sm:$0xff]  ;;  %v3360_v21 = vld [vmem:[%s4642_s14 + $0xad8] sm:$0xff] }
 0x3fa   : > { %3945 = vmatprep.subr.bf16.mxu1 %v3944_v28  ;;  %v5314_v43 = vpop.f32.mrb[49].mxu0 }
 0x3fd   : > { %3947 = vmatpush1.bf16.msra.mxu1 %v3946_v37  ;;  %v5330_v1 = vpop.f32.mrb[50].mxu0  ;;  %v3334_v37 = vld [vmem:[%s4642_s14 + $0xa08] sm:$0xff] }
 0x3fe   : > { %3949 = vmatprep.subr.bf16.mxu1 %v3948_v39  ;;  %v5334_v6 = vpop.f32.mrb[51].mxu0  ;;  %v3336_v39 = vld [vmem:[%s4642_s14 + $0xa18] sm:$0xff] }
 0x3ff   : > { %v3984_v42 = vpack.c.bf16 %v3336_v39, %v3334_v37  ;;  %v3361_v37 = vld [vmem:[%s4642_s14 + $0xae0] sm:$0xff]  ;;  %v3363_v39 = vld [vmem:[%s4642_s14 + $0xaf0] sm:$0xff] }
 0x400   : > { %v4014_v44 = vpack.c.bf16 %v3363_v39, %v3361_v37  ;;  %v3394_v37 = vld [vmem:[%s4642_s14 + $0xbe8] sm:$0xff]  ;;  %v3396_v39 = vld [vmem:[%s4642_s14 + $0xbf8] sm:$0xff] }
 0x401   : > { %3951 = vmatpush1.bf16.msra.mxu1 %v3950_v46  ;;  %v5338_v35 = vpop.f32.mrb[52].mxu0 }
 0x402   : > { %3953 = vmatprep.subr.bf16.mxu1 %v3952_v47  ;;  %v5342_v22 = vpop.f32.mrb[53].mxu0  ;;  %v3338_v47 = vld [vmem:[%s4642_s14 + $0xa28] sm:$0xff] }
 0x403   : > { %v3988_v51 = vpack.c.bf16 %v3340_v48, %v3338_v47  ;;  %v3365_v47 = vld [vmem:[%s4642_s14 + $0xb00] sm:$0xff]  ;;  %v3367_v48 = vld [vmem:[%s4642_s14 + $0xb10] sm:$0xff] }
 0x405   : > { %3955 = vmatpush1.bf16.msra.mxu1 %v3954_v31  ;;  %v5346_v28 = vpop.f32.mrb[54].mxu0  ;;  %v3337_v31 = vld [vmem:[%s4642_s14 + $0xa20] sm:$0xff] }
 0x406   : > { %3957 = vmatprep.subr.bf16.mxu1 %v3956_v52  ;;  %v5350_v36 = vpop.f32.mrb[55].mxu0  ;;  %v3339_v52 = vld [vmem:[%s4642_s14 + $0xa30] sm:$0xff] }
 0x407   : > { %v3990_v55 = vpack.c.bf16 %v3339_v52, %v3337_v31  ;;  %v4018_v31 = vpack.c.bf16 %v3367_v48, %v3365_v47  ;;  %v3393_v47 = vld [vmem:[%s4642_s14 + $0xbe0] sm:$0xff]  ;;  %v3395_v48 = vld [vmem:[%s4642_s14 + $0xbf0] sm:$0xff] }
 0x409   : > { %3959 = vmatpush1.bf16.msra.mxu1 %v3958_v57  ;;  %v5356_v46 = vpop.f32.mrb[56].mxu0  ;;  %v3341_v57 = vld [vmem:[%s4642_s14 + $0xa40] sm:$0xff] }
 0x40a   : > { %3961 = vmatprep.subr.bf16.mxu1 %v3960_v58  ;;  %v5360_v50 = vpop.f32.mrb[57].mxu0  ;;  %v3343_v58 = vld [vmem:[%s4642_s14 + $0xa50] sm:$0xff] }
 0x40d   : > { %3963 = vmatpush1.bf16.msra.mxu1 %v3962_v0  ;;  %v3350_v0 = vld [vmem:[%s4642_s14 + $0xa88] sm:$0xff] }
 0x40e   : > { %3965 = vmatprep.subr.bf16.mxu1 %v3964_v2  ;;  %v3352_v2 = vld [vmem:[%s4642_s14 + $0xa98] sm:$0xff] }
 0x40f   : > { %v4000_v3 = vpack.c.bf16 %v3352_v2, %v3350_v0  ;;  %v3377_v0 = vld [vmem:[%s4642_s14 + $0xb60] sm:$0xff]  ;;  %v3379_v2 = vld [vmem:[%s4642_s14 + $0xb70] sm:$0xff] }
 0x411   : > { %3967 = vmatpush1.bf16.msra.mxu1 %v3966_v32  ;;  %v4004_v32 = vpack.c.bf16 %v3356_v8, %v3354_v7  ;;  %v3381_v7 = vld [vmem:[%s4642_s14 + $0xb80] sm:$0xff]  ;;  %v3383_v8 = vld [vmem:[%s4642_s14 + $0xb90] sm:$0xff] }
 0x412   : > { %3969 = vmatprep.subr.bf16.mxu1 %v3968_v40  ;;  %v3355_v40 = vld [vmem:[%s4642_s14 + $0xab0] sm:$0xff] }
 0x415   : > { %3971 = vmatpush1.bf16.msra.mxu1 %v3970_v26  ;;  %v3359_v26 = vld [vmem:[%s4642_s14 + $0xad0] sm:$0xff] }
 0x416   : > { %3973 = vmatprep.subr.bf16.mxu1 %v3972_v29  ;;  %v3362_v29 = vld [vmem:[%s4642_s14 + $0xae8] sm:$0xff]  ;;  %v4010_v30 = vpack.c.bf16 %v3359_v26, %v3357_v25  ;;  %v5422_v25 = vpop.f32.mrb[58].mxu0 }
 0x419   : > { %3975 = vmatpush1.bf16.msra.mxu1 %v3974_v41  ;;  %v3366_v41 = vld [vmem:[%s4642_s14 + $0xb08] sm:$0xff] }
 0x41a   : > { %3985 = vmatprep.subr.bf16.mxu1 %v3984_v42  ;;  %v3368_v42 = vld [vmem:[%s4642_s14 + $0xb18] sm:$0xff] }
 0x41b   : > { %v4016_v45 = vpack.c.bf16 %v3368_v42, %v3366_v41 }
 0x41c   : > { %1650 = vmatmul.mubr.f32.vlgmr.msra.gmra.mrb[0].mxu1 %v5280_v61  ;;  %v3994_v61 = vpack.c.bf16 %v3343_v58, %v3341_v57  ;;  %v4022_v57 = vpack.c.bf16 %v3371_v54, %v3369_v53 }
 0x41d   : > { %3987 = vmatpush1.bf16.msra.mxu1 %v3986_v49  ;;  %1655 = vmatprep.mubr.f32.mxu1 %v5290_v9  ;;  %v3345_v9 = vld [vmem:[%s4642_s14 + $0xa60] sm:$0xff]  ;;  %v3370_v49 = vld [vmem:[%s4642_s14 + $0xb28] sm:$0xff] }
 0x41e   : > { %3989 = vmatprep.subr.bf16.mxu1 %v3988_v51  ;;  %v3372_v51 = vld [vmem:[%s4642_s14 + $0xb38] sm:$0xff] }
 0x41f   : > { %v4020_v52 = vpack.c.bf16 %v3372_v51, %v3370_v49  ;;  %v3406_v49 = vld [vmem:[%s4642_s14 + $0xc08] sm:$0xff]  ;;  %v3408_v51 = vld [vmem:[%s4642_s14 + $0xc18] sm:$0xff] }
 0x420   : > { %1656 = vmatmul.mubr.f32.gmra.mrb[2].mxu1 %v5286_v5  ;;  %v3998_v5 = vpack.c.bf16 %v3347_v63, %v3345_v9  ;;  %v4026_v9 = vpack.c.bf16 %v3375_v60, %v3373_v59  ;;  %v4056_v54 = vpack.c.bf16 %v3408_v51, %v3406_v49  ;;  %v3433_v49 = vld [vmem:[%s4642_s14 + $0xce0] sm:$0xff]  ;;  %v3435_v51 = vld [vmem:[%s4642_s14 + $0xcf0] sm:$0xff] }
 0x421   : > { %3991 = vmatpush1.bf16.msra.mxu1 %v3990_v55  ;;  %1661 = vmatprep.mubr.f32.mxu1 %v5298_v17  ;;  %v3349_v17 = vld [vmem:[%s4642_s14 + $0xa80] sm:$0xff]  ;;  %v3374_v55 = vld [vmem:[%s4642_s14 + $0xb48] sm:$0xff] }
 0x422   : > { %3993 = vmatprep.subr.bf16.mxu1 %v3992_v56  ;;  %v3376_v56 = vld [vmem:[%s4642_s14 + $0xb58] sm:$0xff] }
 0x423   : > { %v4024_v58 = vpack.c.bf16 %v3376_v56, %v3374_v55  ;;  %v3405_v55 = vld [vmem:[%s4642_s14 + $0xc00] sm:$0xff]  ;;  %v3407_v56 = vld [vmem:[%s4642_s14 + $0xc10] sm:$0xff] }
 0x424   : > { %1662 = vmatmul.mubr.f32.gmra.mrb[4].mxu1 %v5294_v12  ;;  %v4002_v12 = vpack.c.bf16 %v3351_v4, %v3349_v17  ;;  %v4030_v17 = vpack.c.bf16 %v3379_v2, %v3377_v0  ;;  %v4058_v59 = vpack.c.bf16 %v3407_v56, %v3405_v55  ;;  %v3414_v0 = vld [vmem:[%s4642_s14 + $0xc48] sm:$0xff]  ;;  %v3416_v2 = vld [vmem:[%s4642_s14 + $0xc58] sm:$0xff]  ;;  %v4086_v55 = vpack.c.bf16 %v3435_v51, %v3433_v49 }
 0x425   : > { %3995 = vmatpush1.bf16.msra.mxu1 %v3994_v61  ;;  %1667 = vmatprep.mubr.f32.mxu1 %v5306_v33  ;;  %v3353_v33 = vld [vmem:[%s4642_s14 + $0xaa0] sm:$0xff]  ;;  %v3378_v61 = vld [vmem:[%s4642_s14 + $0xb68] sm:$0xff] }
 0x426   : > { %3997 = vmatprep.subr.bf16.mxu1 %v3996_v62  ;;  %v4006_v23 = vpack.c.bf16 %v3355_v40, %v3353_v33  ;;  %v3380_v62 = vld [vmem:[%s4642_s14 + $0xb78] sm:$0xff]  ;;  %v4034_v33 = vpack.c.bf16 %v3383_v8, %v3381_v7  ;;  %v3418_v7 = vld [vmem:[%s4642_s14 + $0xc68] sm:$0xff] }
 0x427   : > { %v4028_v63 = vpack.c.bf16 %v3380_v62, %v3378_v61  ;;  %v3409_v62 = vld [vmem:[%s4642_s14 + $0xc20] sm:$0xff]  ;;  %v3420_v8 = vld [vmem:[%s4642_s14 + $0xc78] sm:$0xff]  ;;  %v3466_v51 = vld [vmem:[%s4642_s14 + $0xde8] sm:$0xff] }
 0x428   : > { %1668 = vmatmul.mubr.f32.gmra.mrb[6].mxu1 %v5302_v27  ;;  %v4008_v27 = vpack.c.bf16 %v3360_v21, %v3358_v15  ;;  %v3385_v15 = vld [vmem:[%s4642_s14 + $0xba0] sm:$0xff]  ;;  %v3387_v21 = vld [vmem:[%s4642_s14 + $0xbb0] sm:$0xff] }
 0x429   : > { %3999 = vmatpush1.bf16.msra.mxu1 %v3998_v5  ;;  %1917 = vmatprep.mubr.f32.mxu1 %v5314_v43  ;;  %v3364_v43 = vld [vmem:[%s4642_s14 + $0xaf8] sm:$0xff]  ;;  %v3382_v5 = vld [vmem:[%s4642_s14 + $0xb88] sm:$0xff]  ;;  %v4038_v26 = vpack.c.bf16 %v3387_v21, %v3385_v15  ;;  %v3423_v21 = vld [vmem:[%s4642_s14 + $0xc90] sm:$0xff] }
 0x42a   : > { %4001 = vmatprep.subr.bf16.mxu1 %v4000_v3  ;;  %v4012_v34 = vpack.c.bf16 %v3364_v43, %v3362_v29  ;;  %v3384_v3 = vld [vmem:[%s4642_s14 + $0xb98] sm:$0xff]  ;;  %v5424_v29 = vpop.f32.mrb[59].mxu0 }
 0x42b   : > { %v4032_v4 = vpack.c.bf16 %v3384_v3, %v3382_v5  ;;  %v5430_v41 = vpop.f32.mrb[60].mxu0  ;;  %v4064_v3 = vpack.c.bf16 %v3416_v2, %v3414_v0  ;;  %v3441_v0 = vld [vmem:[%s4642_s14 + $0xd20] sm:$0xff]  ;;  %v3443_v2 = vld [vmem:[%s4642_s14 + $0xd30] sm:$0xff] }
 0x42d   : > { %4003 = vmatpush1.bf16.msra.mxu1 %v4002_v12  ;;  %v3386_v12 = vld [vmem:[%s4642_s14 + $0xba8] sm:$0xff] }
 0x42e   : > { %4005 = vmatprep.subr.bf16.mxu1 %v4004_v32  ;;  %v3388_v32 = vld [vmem:[%s4642_s14 + $0xbb8] sm:$0xff] }
 0x42f   : > { %v4036_v40 = vpack.c.bf16 %v3388_v32, %v3386_v12  ;;  %v4068_v12 = vpack.c.bf16 %v3420_v8, %v3418_v7  ;;  %v3419_v32 = vld [vmem:[%s4642_s14 + $0xc70] sm:$0xff]  ;;  %v3445_v7 = vld [vmem:[%s4642_s14 + $0xd40] sm:$0xff] }
 0x430   : > { %v3447_v8 = vld [vmem:[%s4642_s14 + $0xd50] sm:$0xff] }
 0x431   : > { %4007 = vmatpush1.bf16.msra.mxu1 %v4006_v23  ;;  %v3390_v23 = vld [vmem:[%s4642_s14 + $0xbc8] sm:$0xff] }
 0x432   : > { %4009 = vmatprep.subr.bf16.mxu1 %v4008_v27  ;;  %v3392_v27 = vld [vmem:[%s4642_s14 + $0xbd8] sm:$0xff] }
 0x433   : > { %v4040_v43 = vpack.c.bf16 %v3392_v27, %v3390_v23  ;;  %v3426_v23 = vld [vmem:[%s4642_s14 + $0xca8] sm:$0xff]  ;;  %v3428_v27 = vld [vmem:[%s4642_s14 + $0xcb8] sm:$0xff] }
 0x435   : > { %4011 = vmatpush1.bf16.msra.mxu1 %v4010_v30  ;;  %v3389_v30 = vld [vmem:[%s4642_s14 + $0xbc0] sm:$0xff] }
 0x436   : > { %4013 = vmatprep.subr.bf16.mxu1 %v4012_v34  ;;  %v3391_v34 = vld [vmem:[%s4642_s14 + $0xbd0] sm:$0xff] }
 0x437   : > { %v4042_v42 = vpack.c.bf16 %v3391_v34, %v3389_v30  ;;  %v3430_v30 = vld [vmem:[%s4642_s14 + $0xcc8] sm:$0xff]  ;;  %v3432_v34 = vld [vmem:[%s4642_s14 + $0xcd8] sm:$0xff] }
 0x439   : > { %4015 = vmatpush1.bf16.msra.mxu1 %v4014_v44  ;;  %v5432_v44 = vpop.f32.mrb[61].mxu0 }
 0x43a   : > { %4017 = vmatprep.subr.bf16.mxu1 %v4016_v45  ;;  %v4044_v45 = vpack.c.bf16 %v3396_v39, %v3394_v37  ;;  %v3429_v39 = vld [vmem:[%s4642_s14 + $0xcc0] sm:$0xff] }
 0x43d   : > { %4019 = vmatpush1.bf16.msra.mxu1 %v4018_v31  ;;  %v5438_v31 = vpop.f32.mrb[62].mxu0 }
 0x43e   : > { %4021 = vmatprep.subr.bf16.mxu1 %v4020_v52  ;;  %v4046_v52 = vpack.c.bf16 %v3395_v48, %v3393_v47  ;;  %v5440_v53 = vpop.f32.mrb[63].mxu0 }
 0x43f   : > { %v5446_v60 = vpop.f32.mrb[64].mxu0 }
 0x441   : > { %4023 = vmatpush1.bf16.msra.mxu1 %v4022_v57  ;;  %v3410_v57 = vld [vmem:[%s4642_s14 + $0xc28] sm:$0xff] }
 0x442   : > { %4025 = vmatprep.subr.bf16.mxu1 %v4024_v58  ;;  %v3412_v58 = vld [vmem:[%s4642_s14 + $0xc38] sm:$0xff] }
 0x443   : > { %v4060_v61 = vpack.c.bf16 %v3412_v58, %v3410_v57  ;;  %v3437_v57 = vld [vmem:[%s4642_s14 + $0xd00] sm:$0xff]  ;;  %v3439_v58 = vld [vmem:[%s4642_s14 + $0xd10] sm:$0xff] }
 0x445   : > { %4027 = vmatpush1.bf16.msra.mxu1 %v4026_v9  ;;  %v3411_v9 = vld [vmem:[%s4642_s14 + $0xc30] sm:$0xff] }
 0x446   : > { %4029 = vmatprep.subr.bf16.mxu1 %v4028_v63  ;;  %v5450_v63 = vpop.f32.mrb[65].mxu0  ;;  %v4062_v5 = vpack.c.bf16 %v3411_v9, %v3409_v62  ;;  %v4090_v62 = vpack.c.bf16 %v3439_v58, %v3437_v57  ;;  %v3465_v57 = vld [vmem:[%s4642_s14 + $0xde0] sm:$0xff]  ;;  %v3467_v58 = vld [vmem:[%s4642_s14 + $0xdf0] sm:$0xff] }
 0x449   : > { %4031 = vmatpush1.bf16.msra.mxu1 %v4030_v17  ;;  %v3413_v17 = vld [vmem:[%s4642_s14 + $0xc40] sm:$0xff] }
 0x44a   : > { %4033 = vmatprep.subr.bf16.mxu1 %v4032_v4  ;;  %v3415_v4 = vld [vmem:[%s4642_s14 + $0xc50] sm:$0xff] }
 0x44d   : > { %4035 = vmatpush1.bf16.msra.mxu1 %v4034_v33  ;;  %v3422_v33 = vld [vmem:[%s4642_s14 + $0xc88] sm:$0xff] }
 0x44e   : > { %4037 = vmatprep.subr.bf16.mxu1 %v4036_v40  ;;  %v3424_v40 = vld [vmem:[%s4642_s14 + $0xc98] sm:$0xff] }
 0x44f   : > { %v4072_v15 = vpack.c.bf16 %v3424_v40, %v3422_v33  ;;  %v3449_v33 = vld [vmem:[%s4642_s14 + $0xd60] sm:$0xff]  ;;  %v3451_v40 = vld [vmem:[%s4642_s14 + $0xd70] sm:$0xff] }
 0x451   : > { %4039 = vmatpush1.bf16.msra.mxu1 %v4038_v26  ;;  %v4076_v26 = vpack.c.bf16 %v3428_v27, %v3426_v23  ;;  %v3453_v23 = vld [vmem:[%s4642_s14 + $0xd80] sm:$0xff]  ;;  %v3455_v27 = vld [vmem:[%s4642_s14 + $0xd90] sm:$0xff] }
 0x452   : > { %4041 = vmatprep.subr.bf16.mxu1 %v4040_v43  ;;  %v3427_v43 = vld [vmem:[%s4642_s14 + $0xcb0] sm:$0xff] }
 0x455   : > { %4043 = vmatpush1.bf16.msra.mxu1 %v4042_v42  ;;  %v3431_v42 = vld [vmem:[%s4642_s14 + $0xcd0] sm:$0xff] }
 0x456   : > { %4045 = vmatprep.subr.bf16.mxu1 %v4044_v45  ;;  %v3434_v45 = vld [vmem:[%s4642_s14 + $0xce8] sm:$0xff]  ;;  %v4082_v47 = vpack.c.bf16 %v3431_v42, %v3429_v39  ;;  %v3464_v39 = vld [vmem:[%s4642_s14 + $0xdd8] sm:$0xff] }
 0x459   : > { %4047 = vmatpush1.bf16.msra.mxu1 %v4046_v52  ;;  %v3438_v52 = vld [vmem:[%s4642_s14 + $0xd08] sm:$0xff] }
 0x45a   : > { %4057 = vmatprep.subr.bf16.mxu1 %v4056_v54  ;;  %v3440_v54 = vld [vmem:[%s4642_s14 + $0xd18] sm:$0xff] }
 0x45b   : > { %v4088_v56 = vpack.c.bf16 %v3440_v54, %v3438_v52  ;;  %v3468_v52 = vld [vmem:[%s4642_s14 + $0xdf8] sm:$0xff] }
 0x45c   : > { %1918 = vmatmul.mubr.f32.vlgmr.msra.gmra.mrb[0].mxu1 %v5310_v38  ;;  %v4066_v38 = vpack.c.bf16 %v3415_v4, %v3413_v17  ;;  %v4094_v17 = vpack.c.bf16 %v3443_v2, %v3441_v0  ;;  %v4118_v0 = vpack.c.bf16 %v3467_v58, %v3465_v57  ;;  %v2762_v57 = vld [vmem:[%s4655_s17] sm:$0xff] }
 0x45d   : > { %4059 = vmatpush1.bf16.msra.mxu1 %v4058_v59  ;;  %1923 = vmatprep.mubr.f32.mxu1 %v5334_v6  ;;  %v3417_v6 = vld [vmem:[%s4642_s14 + $0xc60] sm:$0xff]  ;;  %v3442_v59 = vld [vmem:[%s4642_s14 + $0xd28] sm:$0xff] }
 0x45e   : > { %4061 = vmatprep.subr.bf16.mxu1 %v4060_v61  ;;  %v3444_v61 = vld [vmem:[%s4642_s14 + $0xd38] sm:$0xff] }
 0x45f   : > { %v4092_v9 = vpack.c.bf16 %v3444_v61, %v3442_v59  ;;  %v3478_v61 = vld [vmem:[%s4642_s14 + $0xe08] sm:$0xff] }
 0x460   : > { %1924 = vmatmul.mubr.f32.gmra.mrb[2].mxu1 %v5330_v1  ;;  %v4070_v1 = vpack.c.bf16 %v3419_v32, %v3417_v6  ;;  %v4098_v6 = vpack.c.bf16 %v3447_v8, %v3445_v7 }
 0x461   : > { %4063 = vmatpush1.bf16.msra.mxu1 %v4062_v5  ;;  %1929 = vmatprep.mubr.f32.mxu1 %v5342_v22  ;;  %v3421_v22 = vld [vmem:[%s4642_s14 + $0xc80] sm:$0xff]  ;;  %v3446_v5 = vld [vmem:[%s4642_s14 + $0xd48] sm:$0xff] }
 0x462   : > { %4065 = vmatprep.subr.bf16.mxu1 %v4064_v3  ;;  %v3448_v3 = vld [vmem:[%s4642_s14 + $0xd58] sm:$0xff] }
 0x463   : > { %v4096_v4 = vpack.c.bf16 %v3448_v3, %v3446_v5  ;;  %v3477_v5 = vld [vmem:[%s4642_s14 + $0xe00] sm:$0xff]  ;;  %v3479_v3 = vld [vmem:[%s4642_s14 + $0xe10] sm:$0xff] }
 0x464   : > { %1930 = vmatmul.mubr.f32.gmra.mrb[4].mxu1 %v5338_v35  ;;  %v4074_v35 = vpack.c.bf16 %v3423_v21, %v3421_v22  ;;  %v4102_v22 = vpack.c.bf16 %v3451_v40, %v3449_v33  ;;  %v4130_v8 = vpack.c.bf16 %v3479_v3, %v3477_v5  ;;  %v3486_v33 = vld [vmem:[%s4642_s14 + $0xe48] sm:$0xff]  ;;  %v3488_v40 = vld [vmem:[%s4642_s14 + $0xe58] sm:$0xff] }
 0x465   : > { %4067 = vmatpush1.bf16.msra.mxu1 %v4066_v38  ;;  %1935 = vmatprep.mubr.f32.mxu1 %v5350_v36  ;;  %v3425_v36 = vld [vmem:[%s4642_s14 + $0xca0] sm:$0xff]  ;;  %v3450_v38 = vld [vmem:[%s4642_s14 + $0xd68] sm:$0xff] }
 0x466   : > { %4069 = vmatprep.subr.bf16.mxu1 %v4068_v12  ;;  %v4078_v37 = vpack.c.bf16 %v3427_v43, %v3425_v36  ;;  %v3452_v12 = vld [vmem:[%s4642_s14 + $0xd78] sm:$0xff]  ;;  %v4106_v36 = vpack.c.bf16 %v3455_v27, %v3453_v23  ;;  %v3485_v23 = vld [vmem:[%s4642_s14 + $0xe40] sm:$0xff]  ;;  %v3487_v27 = vld [vmem:[%s4642_s14 + $0xe50] sm:$0xff] }
 0x467   : > { %v4100_v32 = vpack.c.bf16 %v3452_v12, %v3450_v38 }
 0x468   : > { %1936 = vmatmul.mubr.f32.gmra.mrb[6].mxu1 %v5346_v28  ;;  %v4080_v28 = vpack.c.bf16 %v3432_v34, %v3430_v30  ;;  %v3457_v30 = vld [vmem:[%s4642_s14 + $0xda0] sm:$0xff]  ;;  %v3459_v34 = vld [vmem:[%s4642_s14 + $0xdb0] sm:$0xff] }
 0x469   : > { %4071 = vmatpush1.bf16.msra.mxu1 %v4070_v1  ;;  %2185 = vmatprep.mubr.f32.mxu1 %v5360_v50  ;;  %v3436_v50 = vld [vmem:[%s4642_s14 + $0xcf8] sm:$0xff]  ;;  %v3454_v1 = vld [vmem:[%s4642_s14 + $0xd88] sm:$0xff] }
 0x46a   : > { %4073 = vmatprep.subr.bf16.mxu1 %v4072_v15  ;;  %v4084_v48 = vpack.c.bf16 %v3436_v50, %v3434_v45  ;;  %v3456_v15 = vld [vmem:[%s4642_s14 + $0xd98] sm:$0xff]  ;;  %v4110_v45 = vpack.c.bf16 %v3459_v34, %v3457_v30  ;;  %v3489_v30 = vld [vmem:[%s4642_s14 + $0xe60] sm:$0xff]  ;;  %v3491_v34 = vld [vmem:[%s4642_s14 + $0xe70] sm:$0xff] }
 0x46b   : > { %v4104_v21 = vpack.c.bf16 %v3456_v15, %v3454_v1 }
 0x46d   : > { %4075 = vmatpush1.bf16.msra.mxu1 %v4074_v35  ;;  %v3458_v35 = vld [vmem:[%s4642_s14 + $0xda8] sm:$0xff] }
 0x46e   : > { %4077 = vmatprep.subr.bf16.mxu1 %v4076_v26  ;;  %v3460_v26 = vld [vmem:[%s4642_s14 + $0xdb8] sm:$0xff] }
 0x46f   : > { %v4108_v43 = vpack.c.bf16 %v3460_v26, %v3458_v35  ;;  %v3490_v35 = vld [vmem:[%s4642_s14 + $0xe68] sm:$0xff]  ;;  %v3492_v26 = vld [vmem:[%s4642_s14 + $0xe78] sm:$0xff] }
 0x471   : > { %4079 = vmatpush1.bf16.msra.mxu1 %v4078_v37  ;;  %v5508_v37 = vpop.f32.mrb[66].mxu0 }
 0x472   : > { %4081 = vmatprep.subr.bf16.mxu1 %v4080_v28  ;;  %v3462_v28 = vld [vmem:[%s4642_s14 + $0xdc8] sm:$0xff]  ;;  %v5512_v42 = vpop.f32.mrb[67].mxu0 }
 0x473   : > { %v4112_v50 = vpack.c.bf16 %v3464_v39, %v3462_v28  ;;  %v5516_v49 = vpop.f32.mrb[68].mxu0  ;;  %v3494_v28 = vld [vmem:[%s4642_s14 + $0xe88] sm:$0xff] }
 0x474   : > { %v5520_v54 = vpop.f32.mrb[69].mxu0 }
 0x475   : > { %4083 = vmatpush1.bf16.msra.mxu1 %v4082_v47  ;;  %v3461_v47 = vld [vmem:[%s4642_s14 + $0xdc0] sm:$0xff]  ;;  %v5524_v59 = vpop.f32.mrb[70].mxu0 }
 0x476   : > { %4085 = vmatprep.subr.bf16.mxu1 %v4084_v48  ;;  %v3463_v48 = vld [vmem:[%s4642_s14 + $0xdd0] sm:$0xff] }
 0x479   : > { %4087 = vmatpush1.bf16.msra.mxu1 %v4086_v55  ;;  %v4114_v55 = vpack.c.bf16 %v3463_v48, %v3461_v47  ;;  %v3493_v47 = vld [vmem:[%s4642_s14 + $0xe80] sm:$0xff]  ;;  %v3495_v48 = vld [vmem:[%s4642_s14 + $0xe90] sm:$0xff] }
 0x47a   : > { %4089 = vmatprep.subr.bf16.mxu1 %v4088_v56  ;;  %v4116_v56 = vpack.c.bf16 %v3468_v52, %v3466_v51  ;;  %v3498_v51 = vld [vmem:[%s4642_s14 + $0xea8] sm:$0xff]  ;;  %v3500_v52 = vld [vmem:[%s4642_s14 + $0xeb8] sm:$0xff]  ;;  %v4146_v58 = vpack.c.bf16 %v3495_v48, %v3493_v47  ;;  %v2776_v47 = vld [vmem:[%s4655_s17 + $0x70] sm:$0xff] }
 0x47b   : > { %v4148_v5 = vpack.c.bf16 %v3500_v52, %v3498_v51  ;;  %v3507_v51 = vld [vmem:[%s4642_s14 + $0xef0] sm:$0xff]  ;;  %v2779_v52 = vld [vmem:[%s4655_s17 + $0x88] sm:$0xff] }
 0x47d   : > { %4091 = vmatpush1.bf16.msra.mxu1 %v4090_v62  ;;  %v3480_v62 = vld [vmem:[%s4642_s14 + $0xe18] sm:$0xff] }
 0x47e   : > { %4093 = vmatprep.subr.bf16.mxu1 %v4092_v9  ;;  %v5528_v9 = vpop.f32.mrb[71].mxu0  ;;  %v4128_v2 = vpack.c.bf16 %v3480_v62, %v3478_v61  ;;  %v2764_v62 = vld [vmem:[%s4655_s17 + $0x10] sm:$0xff] }
 0x47f   : > { %v5534_v7 = vpop.f32.mrb[72].mxu0 }
 0x480   : > { %v5536_v38 = vpop.f32.mrb[73].mxu0 }
 0x481   : > { %4095 = vmatpush1.bf16.msra.mxu1 %v4094_v17  ;;  %v3482_v17 = vld [vmem:[%s4642_s14 + $0xe28] sm:$0xff]  ;;  %v5543_v1 = vpop.f32.mrb[74].mxu0 }
 0x482   : > { %4097 = vmatprep.subr.bf16.mxu1 %v4096_v4  ;;  %v3484_v4 = vld [vmem:[%s4642_s14 + $0xe38] sm:$0xff] }
 0x483   : > { %v4132_v12 = vpack.c.bf16 %v3484_v4, %v3482_v17  ;;  %v2766_v17 = vld [vmem:[%s4655_s17 + $0x20] sm:$0xff]  ;;  %v2768_v4 = vld [vmem:[%s4655_s17 + $0x30] sm:$0xff] }
 0x485   : > { %4099 = vmatpush1.bf16.msra.mxu1 %v4098_v6  ;;  %v3481_v6 = vld [vmem:[%s4642_s14 + $0xe20] sm:$0xff] }
 0x486   : > { %4101 = vmatprep.subr.bf16.mxu1 %v4100_v32  ;;  %v3483_v32 = vld [vmem:[%s4642_s14 + $0xe30] sm:$0xff] }
 0x487   : > { %v4134_v15 = vpack.c.bf16 %v3483_v32, %v3481_v6  ;;  %v3504_v6 = vld [vmem:[%s4642_s14 + $0xed8] sm:$0xff]  ;;  %v4270_v32 = vpack.c.bf16 %v2768_v4, %v2766_v17  ;;  %v3514_v17 = vld [vmem:[%s4642_s14 + $0xf28] sm:$0xff] }
 0x488   : > { %v3516_v4 = vld [vmem:[%s4642_s14 + $0xf38] sm:$0xff] }
 0x489   : > { %4103 = vmatpush1.bf16.msra.mxu1 %v4102_v22  ;;  %v5546_v22 = vpop.f32.mrb[75].mxu0 }
 0x48a   : > { %4105 = vmatprep.subr.bf16.mxu1 %v4104_v21  ;;  %v4136_v21 = vpack.c.bf16 %v3488_v40, %v3486_v33  ;;  %v3501_v40 = vld [vmem:[%s4642_s14 + $0xec0] sm:$0xff] }
 0x48d   : > { %4107 = vmatpush1.bf16.msra.mxu1 %v4106_v36  ;;  %v4138_v36 = vpack.c.bf16 %v3487_v27, %v3485_v23  ;;  %v2772_v23 = vld [vmem:[%s4655_s17 + $0x50] sm:$0xff] }
 0x48e   : > { %4109 = vmatprep.subr.bf16.mxu1 %v4108_v43  ;;  %v4140_v43 = vpack.c.bf16 %v3492_v26, %v3490_v35  ;;  %v3503_v35 = vld [vmem:[%s4642_s14 + $0xed0] sm:$0xff]  ;;  %v2775_v26 = vld [vmem:[%s4655_s17 + $0x68] sm:$0xff] }
 0x491   : > { %4111 = vmatpush1.bf16.msra.mxu1 %v4110_v45 }
 0x492   : > { %4113 = vmatprep.subr.bf16.mxu1 %v4112_v50 }
 0x495   : > { %4115 = vmatpush1.bf16.msra.mxu1 %v4114_v55  ;;  %v3499_v55 = vld [vmem:[%s4642_s14 + $0xeb0] sm:$0xff] }
 0x496   : > { %4117 = vmatprep.subr.bf16.mxu1 %v4116_v56  ;;  %v2763_v56 = vld [vmem:[%s4655_s17 + $0x8] sm:$0xff] }
 0x499   : > { %4119 = vmatpush1.bf16.msra.mxu1 %v4118_v0  ;;  %v2767_v0 = vld [vmem:[%s4655_s17 + $0x28] sm:$0xff] }
 0x49a   : > { %4129 = vmatprep.subr.bf16.mxu1 %v4128_v2  ;;  %v2769_v2 = vld [vmem:[%s4655_s17 + $0x38] sm:$0xff] }
 0x49b   : > { %v4268_v3 = vpack.c.bf16 %v2769_v2, %v2767_v0  ;;  %v2780_v0 = vld [vmem:[%s4655_s17 + $0x90] sm:$0xff] }
 0x49c   : > { %2186 = vmatmul.mubr.f32.vlgmr.msra.gmra.mrb[0].mxu1 %v5356_v46  ;;  %v5553_v46 = vpop.f32.mrb[76].mxu0 }
 0x49d   : > { %4131 = vmatpush1.bf16.msra.mxu1 %v4130_v8  ;;  %2191 = vmatprep.mubr.f32.mxu1 %v5424_v29  ;;  %v5556_v29 = vpop.f32.mrb[77].mxu0  ;;  %v2771_v8 = vld [vmem:[%s4655_s17 + $0x48] sm:$0xff] }
 0x49e   : > { %4133 = vmatprep.subr.bf16.mxu1 %v4132_v12  ;;  %v5563_v39 = vpop.f32.mrb[78].mxu0  ;;  %v3502_v12 = vld [vmem:[%s4642_s14 + $0xec8] sm:$0xff] }
 0x49f   : > { %v5566_v45 = vpop.f32.mrb[79].mxu0  ;;  %v4152_v27 = vpack.c.bf16 %v3504_v6, %v3502_v12  ;;  %v3513_v6 = vld [vmem:[%s4642_s14 + $0xf20] sm:$0xff] }
 0x4a0   : > { %2192 = vmatmul.mubr.f32.gmra.mrb[2].mxu1 %v5422_v25  ;;  %v3496_v25 = vld [vmem:[%s4642_s14 + $0xe98] sm:$0xff] }
 0x4a1   : > { %4135 = vmatpush1.bf16.msra.mxu1 %v4134_v15  ;;  %2197 = vmatprep.mubr.f32.mxu1 %v5432_v44  ;;  %v4142_v44 = vpack.c.bf16 %v3491_v34, %v3489_v30  ;;  %v4144_v50 = vpack.c.bf16 %v3496_v25, %v3494_v28  ;;  %v3508_v30 = vld [vmem:[%s4642_s14 + $0xef8] sm:$0xff]  ;;  %v4154_v28 = vpack.c.bf16 %v3503_v35, %v3501_v40  ;;  %v3505_v25 = vld [vmem:[%s4642_s14 + $0xee0] sm:$0xff] }
 0x4a2   : > { %4137 = vmatprep.subr.bf16.mxu1 %v4136_v21  ;;  %v2770_v21 = vld [vmem:[%s4655_s17 + $0x40] sm:$0xff]  ;;  %v4164_v40 = vpack.c.bf16 %v3516_v4, %v3514_v17  ;;  %v3520_v35 = vld [vmem:[%s4642_s14 + $0xf58] sm:$0xff]  ;;  %v3525_v17 = vld [vmem:[%s4642_s14 + $0xf80] sm:$0xff] }
 0x4a3   : > { %v4274_v34 = vpack.c.bf16 %v2772_v23, %v2770_v21  ;;  %v2787_v21 = vld [vmem:[%s4655_s17 + $0xc8] sm:$0xff]  ;;  %v2789_v23 = vld [vmem:[%s4655_s17 + $0xd8] sm:$0xff] }
 0x4a4   : > { %2198 = vmatmul.mubr.f32.gmra.mrb[4].mxu1 %v5430_v41  ;;  %v3497_v41 = vld [vmem:[%s4642_s14 + $0xea0] sm:$0xff] }
 0x4a5   : > { %4139 = vmatpush1.bf16.msra.mxu1 %v4138_v36  ;;  %2203 = vmatprep.mubr.f32.mxu1 %v5440_v53  ;;  %v2765_v53 = vld [vmem:[%s4655_s17 + $0x18] sm:$0xff]  ;;  %v4150_v33 = vpack.c.bf16 %v3499_v55, %v3497_v41 }
 0x4a6   : > { %4141 = vmatprep.subr.bf16.mxu1 %v4140_v43  ;;  %v4264_v61 = vpack.c.bf16 %v2765_v53, %v2763_v56  ;;  %v2777_v36 = vld [vmem:[%s4655_s17 + $0x78] sm:$0xff]  ;;  %v3512_v56 = vld [vmem:[%s4642_s14 + $0xf18] sm:$0xff] }
 0x4a7   : > { %v3506_v43 = vld [vmem:[%s4642_s14 + $0xee8] sm:$0xff] }
 0x4a8   : > { %2204 = vmatmul.mubr.f32.gmra.mrb[6].mxu1 %v5438_v31  ;;  %v4266_v31 = vpack.c.bf16 %v2764_v62, %v2762_v57  ;;  %4265 = vmatprep.subr.bf16.mxu0 %v4264_v61  ;;  %v4156_v48 = vpack.c.bf16 %v3508_v30, %v3506_v43  ;;  %v2781_v41 = vld [vmem:[%s4655_s17 + $0x98] sm:$0xff]  ;;  %v4158_v57 = vpack.c.bf16 %v3507_v51, %v3505_v25  ;;  %v2778_v62 = vld [vmem:[%s4655_s17 + $0x80] sm:$0xff]  ;;  %v3517_v43 = vld [vmem:[%s4642_s14 + $0xf40] sm:$0xff] }
 0x4a9   : > { %4143 = vmatpush1.bf16.msra.mxu1 %v4142_v44  ;;  %2453 = vmatprep.mubr.f32.mxu1 %v5450_v63  ;;  %v2773_v63 = vld [vmem:[%s4655_s17 + $0x58] sm:$0xff]  ;;  %v4276_v44 = vpack.c.bf16 %v2777_v36, %v2775_v26  ;;  %v4280_v61 = vpack.c.bf16 %v2781_v41, %v2779_v52  ;;  %v4288_v30 = vpack.c.bf16 %v2789_v23, %v2787_v21  ;;  %v3524_v51 = vld [vmem:[%s4642_s14 + $0xf78] sm:$0xff] }
 0x4aa   : > { %4145 = vmatprep.subr.bf16.mxu1 %v4144_v50  ;;  %4267 = vmatpush1.bf16.msra.mxu0 %v4266_v31  ;;  %v4272_v15 = vpack.c.bf16 %v2773_v63, %v2771_v8  ;;  %v2774_v50 = vld [vmem:[%s4655_s17 + $0x60] sm:$0xff]  ;;  %v3510_v55 = vld [vmem:[%s4642_s14 + $0xf08] sm:$0xff]  ;;  %v2783_v31 = vld [vmem:[%s4655_s17 + $0xa8] sm:$0xff]  ;;  %v4282_v8 = vpack.c.bf16 %v2780_v0, %v2778_v62 }
 0x4ab   : > { %4269 = vmatprep.subr.bf16.mxu0 %v4268_v3  ;;  %v4278_v53 = vpack.c.bf16 %v2776_v47, %v2774_v50  ;;  %v4160_v2 = vpack.c.bf16 %v3512_v56, %v3510_v55  ;;  %v2785_v3 = vld [vmem:[%s4655_s17 + $0xb8] sm:$0xff]  ;;  %v2791_v50 = vld [vmem:[%s4655_s17 + $0xe8] sm:$0xff]  ;;  %v3521_v55 = vld [vmem:[%s4642_s14 + $0xf60] sm:$0xff] }
 0x4ac   : > { %v4284_v63 = vpack.c.bf16 %v2785_v3, %v2783_v31  ;;  %v2793_v47 = vld [vmem:[%s4655_s17 + $0xf8] sm:$0xff]  ;;  %v2795_v62 = vld [vmem:[%s4655_s17 + $0x108] sm:$0xff] }
 0x4ad   : > { %4147 = vmatpush1.bf16.msra.mxu1 %v4146_v58  ;;  %v3509_v58 = vld [vmem:[%s4642_s14 + $0xf00] sm:$0xff]  ;;  %v4292_v56 = vpack.c.bf16 %v2793_v47, %v2791_v50  ;;  %v2797_v0 = vld [vmem:[%s4655_s17 + $0x118] sm:$0xff] }
 0x4ae   : > { %4149 = vmatprep.subr.bf16.mxu1 %v4148_v5  ;;  %4271 = vmatpush1.bf16.msra.mxu0 %v4270_v32  ;;  %v3511_v5 = vld [vmem:[%s4642_s14 + $0xf10] sm:$0xff]  ;;  %v4296_v4 = vpack.c.bf16 %v2797_v0, %v2795_v62 }
 0x4af   : > { %4273 = vmatprep.subr.bf16.mxu0 %v4272_v15  ;;  %v4162_v12 = vpack.c.bf16 %v3511_v5, %v3509_v58  ;;  %v2782_v32 = vld [vmem:[%s4655_s17 + $0xa0] sm:$0xff]  ;;  %v3528_v5 = vld [vmem:[%s4642_s14 + $0xf98] sm:$0xff] }
 0x4b0   : > { %v3515_v15 = vld [vmem:[%s4642_s14 + $0xf30] sm:$0xff] }
 0x4b1   : > { %4151 = vmatpush1.bf16.msra.mxu1 %v4150_v33  ;;  %v2784_v33 = vld [vmem:[%s4655_s17 + $0xb0] sm:$0xff]  ;;  %v4166_v36 = vpack.c.bf16 %v3515_v15, %v3513_v6  ;;  %v3532_v15 = vld [vmem:[%s4642_s14 + $0xfb8] sm:$0xff] }
 0x4b2   : > { %4153 = vmatprep.subr.bf16.mxu1 %v4152_v27  ;;  %4275 = vmatpush1.bf16.msra.mxu0 %v4274_v34  ;;  %v3518_v27 = vld [vmem:[%s4642_s14 + $0xf48] sm:$0xff]  ;;  %v4286_v26 = vpack.c.bf16 %v2784_v33, %v2782_v32  ;;  %v2786_v34 = vld [vmem:[%s4655_s17 + $0xc0] sm:$0xff]  ;;  %v2799_v32 = vld [vmem:[%s4655_s17 + $0x128] sm:$0xff] }
 0x4b3   : > { %4277 = vmatprep.subr.bf16.mxu0 %v4276_v44  ;;  %v4168_v25 = vpack.c.bf16 %v3520_v35, %v3518_v27  ;;  %v3519_v44 = vld [vmem:[%s4642_s14 + $0xf50] sm:$0xff]  ;;  %v2801_v33 = vld [vmem:[%s4655_s17 + $0x138] sm:$0xff]  ;;  %v3529_v27 = vld [vmem:[%s4642_s14 + $0xfa0] sm:$0xff] }
 0x4b4   : > { %v4170_v41 = vpack.c.bf16 %v3519_v44, %v3517_v43  ;;  %v4300_v35 = vpack.c.bf16 %v2801_v33, %v2799_v32  ;;  %v3536_v44 = vld [vmem:[%s4642_s14 + $0xfd8] sm:$0xff] }
 0x4b5   : > { %4155 = vmatpush1.bf16.msra.mxu1 %v4154_v28  ;;  %v2788_v28 = vld [vmem:[%s4655_s17 + $0xd0] sm:$0xff] }
 0x4b6   : > { %4157 = vmatprep.subr.bf16.mxu1 %v4156_v48  ;;  %4279 = vmatpush1.bf16.msra.mxu0 %v4278_v53  ;;  %v3522_v48 = vld [vmem:[%s4642_s14 + $0xf68] sm:$0xff]  ;;  %v4290_v52 = vpack.c.bf16 %v2788_v28, %v2786_v34  ;;  %v2790_v53 = vld [vmem:[%s4655_s17 + $0xe0] sm:$0xff]  ;;  %v2803_v34 = vld [vmem:[%s4655_s17 + $0x148] sm:$0xff] }
 0x4b7   : > { %4281 = vmatprep.subr.bf16.mxu0 %v4280_v61  ;;  %v4172_v58 = vpack.c.bf16 %v3524_v51, %v3522_v48  ;;  %v3523_v61 = vld [vmem:[%s4642_s14 + $0xf70] sm:$0xff]  ;;  %v2805_v28 = vld [vmem:[%s4655_s17 + $0x158] sm:$0xff]  ;;  %v3533_v48 = vld [vmem:[%s4642_s14 + $0xfc0] sm:$0xff] }
 0x4b8   : > { %v4174_v3 = vpack.c.bf16 %v3523_v61, %v3521_v55  ;;  %v4304_v51 = vpack.c.bf16 %v2805_v28, %v2803_v34  ;;  %v3540_v61 = vld [vmem:[%s4642_s14 + $0xff8] sm:$0xff] }
 0x4b9   : > { %4159 = vmatpush1.bf16.msra.mxu1 %v4158_v57  ;;  %v2792_v57 = vld [vmem:[%s4655_s17 + $0xf0] sm:$0xff] }
 0x4ba   : > { %4161 = vmatprep.subr.bf16.mxu1 %v4160_v2  ;;  %4283 = vmatpush1.bf16.msra.mxu0 %v4282_v8  ;;  %v3526_v2 = vld [vmem:[%s4642_s14 + $0xf88] sm:$0xff]  ;;  %v4294_v31 = vpack.c.bf16 %v2792_v57, %v2790_v53  ;;  %v2794_v8 = vld [vmem:[%s4655_s17 + $0x100] sm:$0xff]  ;;  %v2807_v53 = vld [vmem:[%s4655_s17 + $0x168] sm:$0xff] }
 0x4bb   : > { %4285 = vmatprep.subr.bf16.mxu0 %v4284_v63  ;;  %v4176_v6 = vpack.c.bf16 %v3528_v5, %v3526_v2  ;;  %v3527_v63 = vld [vmem:[%s4642_s14 + $0xf90] sm:$0xff]  ;;  %v2809_v57 = vld [vmem:[%s4655_s17 + $0x178] sm:$0xff]  ;;  %v3537_v2 = vld [vmem:[%s4642_s14 + $0xfe0] sm:$0xff] }
 0x4bc   : > { %v4178_v23 = vpack.c.bf16 %v3527_v63, %v3525_v17  ;;  %v4308_v5 = vpack.c.bf16 %v2809_v57, %v2807_v53  ;;  %v3552_v63 = vld [vmem:[%s4642_s14 + $0x1018] sm:$0xff] }
 0x4bd   : > { %4163 = vmatpush1.bf16.msra.mxu1 %v4162_v12  ;;  %v2796_v12 = vld [vmem:[%s4655_s17 + $0x110] sm:$0xff] }
 0x4be   : > { %4165 = vmatprep.subr.bf16.mxu1 %v4164_v40  ;;  %4287 = vmatpush1.bf16.msra.mxu0 %v4286_v26  ;;  %v3530_v40 = vld [vmem:[%s4642_s14 + $0xfa8] sm:$0xff]  ;;  %v4298_v21 = vpack.c.bf16 %v2796_v12, %v2794_v8  ;;  %v2798_v26 = vld [vmem:[%s4655_s17 + $0x120] sm:$0xff]  ;;  %v2811_v8 = vld [vmem:[%s4655_s17 + $0x188] sm:$0xff] }
 0x4bf   : > { %4289 = vmatprep.subr.bf16.mxu0 %v4288_v30  ;;  %v4180_v43 = vpack.c.bf16 %v3532_v15, %v3530_v40  ;;  %v3531_v30 = vld [vmem:[%s4642_s14 + $0xfb0] sm:$0xff]  ;;  %v2813_v12 = vld [vmem:[%s4655_s17 + $0x198] sm:$0xff] }
 0x4c0   : > { %v4182_v47 = vpack.c.bf16 %v3531_v30, %v3529_v27  ;;  %v4312_v40 = vpack.c.bf16 %v2813_v12, %v2811_v8  ;;  %v2810_v15 = vld [vmem:[%s4655_s17 + $0x180] sm:$0xff]  ;;  %v3549_v27 = vld [vmem:[%s4642_s14 + $0x1000] sm:$0xff]  ;;  %v2817_v30 = vld [vmem:[%s4655_s17 + $0x1b8] sm:$0xff] }
 0x4c1   : > { %4167 = vmatpush1.bf16.msra.mxu1 %v4166_v36  ;;  %v2800_v36 = vld [vmem:[%s4655_s17 + $0x130] sm:$0xff]  ;;  %v3567_v12 = vld [vmem:[%s4642_s14 + $0x1090] sm:$0xff] }
 0x4c2   : > { %4169 = vmatprep.subr.bf16.mxu1 %v4168_v25  ;;  %4291 = vmatpush1.bf16.msra.mxu0 %v4290_v52  ;;  %v3534_v25 = vld [vmem:[%s4642_s14 + $0xfc8] sm:$0xff]  ;;  %v4302_v50 = vpack.c.bf16 %v2800_v36, %v2798_v26  ;;  %v2802_v52 = vld [vmem:[%s4655_s17 + $0x140] sm:$0xff]  ;;  %v3556_v36 = vld [vmem:[%s4642_s14 + $0x1038] sm:$0xff] }
 0x4c3   : > { %4293 = vmatprep.subr.bf16.mxu0 %v4292_v56  ;;  %v4184_v55 = vpack.c.bf16 %v3536_v44, %v3534_v25  ;;  %v3535_v56 = vld [vmem:[%s4642_s14 + $0xfd0] sm:$0xff]  ;;  %v3554_v26 = vld [vmem:[%s4642_s14 + $0x1028] sm:$0xff]  ;;  %v2816_v44 = vld [vmem:[%s4655_s17 + $0x1b0] sm:$0xff] }
 0x4c4   : > { %v4186_v0 = vpack.c.bf16 %v3535_v56, %v3533_v48  ;;  %v2814_v25 = vld [vmem:[%s4655_s17 + $0x1a0] sm:$0xff]  ;;  %v2821_v56 = vld [vmem:[%s4655_s17 + $0x1d8] sm:$0xff]  ;;  %v3565_v8 = vld [vmem:[%s4642_s14 + $0x1080] sm:$0xff] }
 0x4c5   : > { %4171 = vmatpush1.bf16.msra.mxu1 %v4170_v41  ;;  %v2804_v41 = vld [vmem:[%s4655_s17 + $0x150] sm:$0xff]  ;;  %v3555_v48 = vld [vmem:[%s4642_s14 + $0x1030] sm:$0xff]  ;;  %v4318_v53 = vpack.c.bf16 %v2816_v44, %v2814_v25 }
 0x4c6   : > { %4173 = vmatprep.subr.bf16.mxu1 %v4172_v58  ;;  %4295 = vmatpush1.bf16.msra.mxu0 %v4294_v31  ;;  %v3538_v58 = vld [vmem:[%s4642_s14 + $0xfe8] sm:$0xff]  ;;  %v4306_v62 = vpack.c.bf16 %v2804_v41, %v2802_v52  ;;  %v2806_v31 = vld [vmem:[%s4655_s17 + $0x160] sm:$0xff]  ;;  %v3560_v41 = vld [vmem:[%s4642_s14 + $0x1058] sm:$0xff] }
 0x4c7   : > { %4297 = vmatprep.subr.bf16.mxu0 %v4296_v4  ;;  %v4188_v17 = vpack.c.bf16 %v3540_v61, %v3538_v58  ;;  %v3539_v4 = vld [vmem:[%s4642_s14 + $0xff0] sm:$0xff]  ;;  %v3557_v61 = vld [vmem:[%s4642_s14 + $0x1040] sm:$0xff] }
 0x4c8   : > { %v4190_v33 = vpack.c.bf16 %v3539_v4, %v3537_v2  ;;  %v3562_v2 = vld [vmem:[%s4642_s14 + $0x1068] sm:$0xff]  ;;  %v3568_v4 = vld [vmem:[%s4642_s14 + $0x1098] sm:$0xff] }
 0x4c9   : > { %4175 = vmatpush1.bf16.msra.mxu1 %v4174_v3  ;;  %v2808_v3 = vld [vmem:[%s4655_s17 + $0x170] sm:$0xff] }
 0x4ca   : > { %4177 = vmatprep.subr.bf16.mxu1 %v4176_v6  ;;  %4299 = vmatpush1.bf16.msra.mxu0 %v4298_v21  ;;  %v3550_v6 = vld [vmem:[%s4642_s14 + $0x1008] sm:$0xff]  ;;  %v4310_v32 = vpack.c.bf16 %v2808_v3, %v2806_v31  ;;  %v2812_v21 = vld [vmem:[%s4655_s17 + $0x190] sm:$0xff]  ;;  %v3563_v3 = vld [vmem:[%s4642_s14 + $0x1070] sm:$0xff] }
 0x4cb   : > { %4301 = vmatprep.subr.bf16.mxu0 %v4300_v35  ;;  %v3551_v35 = vld [vmem:[%s4642_s14 + $0x1010] sm:$0xff]  ;;  %v4314_v34 = vpack.c.bf16 %v2812_v21, %v2810_v15  ;;  %v3561_v31 = vld [vmem:[%s4642_s14 + $0x1060] sm:$0xff]  ;;  %v3576_v15 = vld [vmem:[%s4642_s14 + $0x10d8] sm:$0xff] }
 0x4cc   : > { %v4202_v28 = vpack.c.bf16 %v3551_v35, %v3549_v27  ;;  %v3575_v27 = vld [vmem:[%s4642_s14 + $0x10d0] sm:$0xff]  ;;  %v3578_v35 = vld [vmem:[%s4642_s14 + $0x10e8] sm:$0xff] }
 0x4cd   : > { %4179 = vmatpush1.bf16.msra.mxu1 %v4178_v23  ;;  %v4200_v23 = vpack.c.bf16 %v3552_v63, %v3550_v6  ;;  %v3570_v6 = vld [vmem:[%s4642_s14 + $0x10a8] sm:$0xff]  ;;  %v3572_v63 = vld [vmem:[%s4642_s14 + $0x10b8] sm:$0xff] }
 0x4ce   : > { %4181 = vmatprep.subr.bf16.mxu1 %v4180_v43  ;;  %4303 = vmatpush1.bf16.msra.mxu0 %v4302_v50  ;;  %v2815_v43 = vld [vmem:[%s4655_s17 + $0x1a8] sm:$0xff]  ;;  %v4204_v50 = vpack.c.bf16 %v3556_v36, %v3554_v26 }
 0x4cf   : > { %4305 = vmatprep.subr.bf16.mxu0 %v4304_v51  ;;  %v3558_v51 = vld [vmem:[%s4642_s14 + $0x1048] sm:$0xff]  ;;  %v4316_v52 = vpack.c.bf16 %v2817_v30, %v2815_v43  ;;  %v3577_v43 = vld [vmem:[%s4642_s14 + $0x10e0] sm:$0xff]  ;;  %v3579_v30 = vld [vmem:[%s4642_s14 + $0x10f0] sm:$0xff] }
 0x4d0   : > { %v4208_v58 = vpack.c.bf16 %v3560_v41, %v3558_v51  ;;  %v4230_v25 = vpack.c.bf16 %v3579_v30, %v3577_v43  ;;  %v3588_v51 = vld [vmem:[%s4642_s14 + $0x1138] sm:$0xff]  ;;  %v3609_v43 = vld [vmem:[%s4642_s14 + $0x11e0] sm:$0xff]  ;;  %v3611_v30 = vld [vmem:[%s4642_s14 + $0x11f0] sm:$0xff] }
 0x4d1   : > { %4183 = vmatpush1.bf16.msra.mxu1 %v4182_v47  ;;  %v3553_v47 = vld [vmem:[%s4642_s14 + $0x1020] sm:$0xff] }
 0x4d2   : > { %4185 = vmatprep.subr.bf16.mxu1 %v4184_v55  ;;  %4307 = vmatpush1.bf16.msra.mxu0 %v4306_v62  ;;  %v2819_v55 = vld [vmem:[%s4655_s17 + $0x1c8] sm:$0xff]  ;;  %v4206_v57 = vpack.c.bf16 %v3555_v48, %v3553_v47  ;;  %v3559_v62 = vld [vmem:[%s4642_s14 + $0x1050] sm:$0xff]  ;;  %v3586_v48 = vld [vmem:[%s4642_s14 + $0x1128] sm:$0xff] }
 0x4d3   : > { %4309 = vmatprep.subr.bf16.mxu0 %v4308_v5  ;;  %v3564_v5 = vld [vmem:[%s4642_s14 + $0x1078] sm:$0xff]  ;;  %v3583_v47 = vld [vmem:[%s4642_s14 + $0x1110] sm:$0xff]  ;;  %v4236_v41 = vpack.c.bf16 %v3588_v51, %v3586_v48 }
 0x4d4   : > { %v2822_v48 = vld [vmem:[%s4655_s17 + $0x1e0] sm:$0xff] }
 0x4d5   : > { %4187 = vmatpush1.bf16.msra.mxu1 %v4186_v0  ;;  %v4320_v0 = vpack.c.bf16 %v2821_v56, %v2819_v55  ;;  %v3585_v55 = vld [vmem:[%s4642_s14 + $0x1120] sm:$0xff]  ;;  %v3587_v56 = vld [vmem:[%s4642_s14 + $0x1130] sm:$0xff] }
 0x4d6   : > { %4189 = vmatprep.subr.bf16.mxu1 %v4188_v17  ;;  %4311 = vmatpush1.bf16.msra.mxu0 %v4310_v32  ;;  %v3566_v17 = vld [vmem:[%s4642_s14 + $0x1088] sm:$0xff]  ;;  %v4220_v32 = vpack.c.bf16 %v3572_v63, %v3570_v6  ;;  %v3604_v63 = vld [vmem:[%s4642_s14 + $0x11b8] sm:$0xff] }
 0x4d7   : > { %4313 = vmatprep.subr.bf16.mxu0 %v4312_v40  ;;  %v3574_v40 = vld [vmem:[%s4642_s14 + $0x10c8] sm:$0xff] }
 0x4d8   : > { %v3602_v6 = vld [vmem:[%s4642_s14 + $0x11a8] sm:$0xff] }
 0x4d9   : > { %4191 = vmatpush1.bf16.msra.mxu1 %v4190_v33  ;;  %v3571_v33 = vld [vmem:[%s4642_s14 + $0x10b0] sm:$0xff] }
 0x4da   : > { %4201 = vmatprep.subr.bf16.mxu1 %v4200_v23  ;;  %4315 = vmatpush1.bf16.msra.mxu0 %v4314_v34  ;;  %v3573_v23 = vld [vmem:[%s4642_s14 + $0x10c0] sm:$0xff]  ;;  %v3582_v34 = vld [vmem:[%s4642_s14 + $0x1108] sm:$0xff] }
 0x4db   : > { %4317 = vmatprep.subr.bf16.mxu0 %v4316_v52  ;;  %v4226_v26 = vpack.c.bf16 %v3575_v27, %v3573_v23  ;;  %v3605_v23 = vld [vmem:[%s4642_s14 + $0x11c0] sm:$0xff]  ;;  %v3607_v27 = vld [vmem:[%s4642_s14 + $0x11d0] sm:$0xff] }
 0x4dc   : > { %2454 = vmatmul.mubr.f32.vlgmr.msra.gmra.mrb[0].mxu1 %v5446_v60  ;;  %v4210_v60 = vpack.c.bf16 %v3559_v62, %v3557_v61  ;;  %v3589_v62 = vld [vmem:[%s4642_s14 + $0x1140] sm:$0xff] }
 0x4dd   : > { %4203 = vmatpush1.bf16.msra.mxu1 %v4202_v28  ;;  %2459 = vmatprep.mubr.f32.mxu1 %v5512_v42  ;;  %v4212_v42 = vpack.c.bf16 %v3564_v5, %v3562_v2  ;;  %v3584_v28 = vld [vmem:[%s4642_s14 + $0x1118] sm:$0xff]  ;;  %v3594_v2 = vld [vmem:[%s4642_s14 + $0x1168] sm:$0xff] }
 0x4de   : > { %4205 = vmatprep.subr.bf16.mxu1 %v4204_v50  ;;  %4319 = vmatpush1.bf16.msra.mxu0 %v4318_v53  ;;  %v4232_v44 = vpack.c.bf16 %v3584_v28, %v3582_v34  ;;  %v3581_v50 = vld [vmem:[%s4642_s14 + $0x1100] sm:$0xff]  ;;  %v3590_v53 = vld [vmem:[%s4642_s14 + $0x1148] sm:$0xff]  ;;  %v3596_v5 = vld [vmem:[%s4642_s14 + $0x1178] sm:$0xff]  ;;  %v4262_v34 = vpack.c.bf16 %v3611_v30, %v3609_v43 }
 0x4df   : > { %4321 = vmatprep.subr.bf16.mxu0 %v4320_v0  ;;  %v4234_v52 = vpack.c.bf16 %v3583_v47, %v3581_v50  ;;  %v3591_v0 = vld [vmem:[%s4642_s14 + $0x1150] sm:$0xff]  ;;  %v2823_v50 = vld [vmem:[%s4655_s17 + $0x1e8] sm:$0xff]  ;;  %v2825_v47 = vld [vmem:[%s4655_s17 + $0x1f8] sm:$0xff] }
 0x4e0   : > { %2460 = vmatmul.mubr.f32.gmra.mrb[2].mxu1 %v5508_v37  ;;  %v4214_v37 = vpack.c.bf16 %v3563_v3, %v3561_v31  ;;  %v3593_v31 = vld [vmem:[%s4642_s14 + $0x1160] sm:$0xff]  ;;  %v3595_v3 = vld [vmem:[%s4642_s14 + $0x1170] sm:$0xff] }
 0x4e1   : > { %4207 = vmatpush1.bf16.msra.mxu1 %v4206_v57  ;;  %2465 = vmatprep.mubr.f32.mxu1 %v5520_v54  ;;  %v4216_v54 = vpack.c.bf16 %v3568_v4, %v3566_v17  ;;  %v3592_v57 = vld [vmem:[%s4642_s14 + $0x1158] sm:$0xff]  ;;  %v3598_v17 = vld [vmem:[%s4642_s14 + $0x1188] sm:$0xff]  ;;  %v2818_v28 = vld [vmem:[%s4655_s17 + $0x1c0] sm:$0xff] }
 0x4e2   : > { %4209 = vmatprep.subr.bf16.mxu1 %v4208_v58  ;;  %v4238_v58 = vpack.c.bf16 %v3587_v56, %v3585_v55  ;;  %v4240_v61 = vpack.c.bf16 %v3592_v57, %v3590_v53  ;;  %v3600_v4 = vld [vmem:[%s4642_s14 + $0x1198] sm:$0xff]  ;;  %v4450_v30 = vld [vmem:[%s5872_s5 + $0x10] sm:$0xff] }
 0x4e4   : > { %2466 = vmatmul.mubr.f32.gmra.mrb[4].mxu1 %v5516_v49  ;;  %v4218_v49 = vpack.c.bf16 %v3567_v12, %v3565_v8  ;;  %v3597_v8 = vld [vmem:[%s4642_s14 + $0x1180] sm:$0xff]  ;;  %v3599_v12 = vld [vmem:[%s4642_s14 + $0x1190] sm:$0xff] }
 0x4e5   : > { %4211 = vmatpush1.bf16.msra.mxu1 %v4210_v60  ;;  %2471 = vmatprep.mubr.f32.mxu1 %v5528_v9  ;;  %v3569_v9 = vld [vmem:[%s4642_s14 + $0x10a0] sm:$0xff]  ;;  %v4242_v60 = vpack.c.bf16 %v3591_v0, %v3589_v62 }
 0x4e6   : > { %4213 = vmatprep.subr.bf16.mxu1 %v4212_v42  ;;  %v4222_v21 = vpack.c.bf16 %v3571_v33, %v3569_v9  ;;  %v4244_v42 = vpack.c.bf16 %v3596_v5, %v3594_v2  ;;  %v3601_v9 = vld [vmem:[%s4642_s14 + $0x11a0] sm:$0xff]  ;;  %v3603_v33 = vld [vmem:[%s4642_s14 + $0x11b0] sm:$0xff] }
 0x4e8   : > { %2472 = vmatmul.mubr.f32.gmra.mrb[6].mxu1 %v5524_v59  ;;  %v4224_v59 = vpack.c.bf16 %v3576_v15, %v3574_v40  ;;  %v3606_v40 = vld [vmem:[%s4642_s14 + $0x11c8] sm:$0xff]  ;;  %v3608_v15 = vld [vmem:[%s4642_s14 + $0x11d8] sm:$0xff] }
 0x4e9   : > { %4215 = vmatpush1.bf16.msra.mxu1 %v4214_v37  ;;  %2721 = vmatprep.mubr.f32.mxu1 %v5536_v38  ;;  %v3580_v38 = vld [vmem:[%s4642_s14 + $0x10f8] sm:$0xff]  ;;  %v4246_v37 = vpack.c.bf16 %v3595_v3, %v3593_v31 }
 0x4ea   : > { %4217 = vmatprep.subr.bf16.mxu1 %v4216_v54  ;;  %v4228_v36 = vpack.c.bf16 %v3580_v38, %v3578_v35  ;;  %v4248_v54 = vpack.c.bf16 %v3600_v4, %v3598_v17  ;;  %v3610_v35 = vld [vmem:[%s4642_s14 + $0x11e8] sm:$0xff]  ;;  %v3612_v38 = vld [vmem:[%s4642_s14 + $0x11f8] sm:$0xff]  ;;  %s2939_s14 = scalar_select %p281_p5, 1, 0 }
 0x4ed   : > { %4219 = vmatpush1.bf16.msra.mxu1 %v4218_v49  ;;  %v4250_v49 = vpack.c.bf16 %v3599_v12, %v3597_v8 }
 0x4ee   : > { %4221 = vmatprep.subr.bf16.mxu1 %v4220_v32  ;;  %v4252_v32 = vpack.c.bf16 %v3604_v63, %v3602_v6 }
 0x4f1   : > { %4223 = vmatpush1.bf16.msra.mxu1 %v4222_v21  ;;  %v4254_v21 = vpack.c.bf16 %v3603_v33, %v3601_v9 }
 0x4f2   : > { %4225 = vmatprep.subr.bf16.mxu1 %v4224_v59  ;;  %v4256_v59 = vpack.c.bf16 %v3608_v15, %v3606_v40  ;;  %v2940_v15 = vstv %s2939_s14 }
 0x4f3   : > { %vm5778_vm2 = vcmp.eq.s32.totalorder %v2940_v15, 1 }
 0x4f5   : > { %4227 = vmatpush1.bf16.msra.mxu1 %v4226_v26  ;;  %v4258_v26 = vpack.c.bf16 %v3607_v27, %v3605_v23 }
 0x4f6   : > { %4229 = vmatprep.subr.bf16.mxu1 %v4228_v36  ;;  %v4260_v36 = vpack.c.bf16 %v3612_v38, %v3610_v35 }
 0x4f9   : > { %4231 = vmatpush1.bf16.msra.mxu1 %v4230_v25  ;;  %v2820_v25 = vld [vmem:[%s4655_s17 + $0x1d0] sm:$0xff] }
 0x4fa   : > { %4233 = vmatprep.subr.bf16.mxu1 %v4232_v44  ;;  %v4322_v44 = vpack.c.bf16 %v2820_v25, %v2818_v28 }
 0x4fc   : > { %4323 = vmatpush1.bf16.msra.mxu0 %v4322_v44  ;;  %v4451_v44 = vld [vmem:[%s5872_s5 + $0x18] sm:$0xff] }
 0x4fd   : > { %4235 = vmatpush1.bf16.msra.mxu1 %v4234_v52  ;;  %v329_v52 = vld [vmem:[%s4660_s27] sm:$0x3] }
 0x4fe   : > { %4237 = vmatprep.subr.bf16.mxu1 %v4236_v41 }
 0x501   : > { %4239 = vmatpush1.bf16.msra.mxu1 %v4238_v58 }
 0x502   : > { %4241 = vmatprep.subr.bf16.mxu1 %v4240_v61 }
 0x505   : > { %4243 = vmatpush1.bf16.msra.mxu1 %v4242_v60 }
 0x506   : > { %4245 = vmatprep.subr.bf16.mxu1 %v4244_v42 }
 0x509   : > { %4247 = vmatpush1.bf16.msra.mxu1 %v4246_v37 }
 0x50a   : > { %4249 = vmatprep.subr.bf16.mxu1 %v4248_v54 }
 0x50d   : > { %4251 = vmatpush1.bf16.msra.mxu1 %v4250_v49 }
 0x50e   : > { %4253 = vmatprep.subr.bf16.mxu1 %v4252_v32 }
 0x511   : > { %4255 = vmatpush1.bf16.msra.mxu1 %v4254_v21 }
 0x512   : > { %4257 = vmatprep.subr.bf16.mxu1 %v4256_v59  ;;  %v4449_v59 = vld [vmem:[%s5872_s5 + $0x8] sm:$0xff] }
 0x515   : > { %4259 = vmatpush1.bf16.msra.mxu1 %v4258_v26 }
 0x516   : > { %4261 = vmatprep.subr.bf16.mxu1 %v4260_v36 }
 0x519   : > { %4263 = vmatpush1.bf16.msra.mxu1 %v4262_v34 }
 0x51c   : > { %2722 = vmatmul.mubr.f32.vlgmr.msra.gmra.mrb[0].mxu1 %v5534_v7  ;;  %v4324_v7 = vpack.c.bf16 %v2825_v47, %v2823_v50 }
 0x51d   : > { %2727 = vmatprep.mubr.f32.mxu1 %v5546_v22  ;;  %v2824_v22 = vld [vmem:[%s4655_s17 + $0x1f0] sm:$0xff] }
 0x51e   : > { %v4326_v51 = vpack.c.bf16 %v2824_v22, %v2822_v48  ;;  %4325 = vmatprep.subr.bf16.mxu0 %v4324_v7 }
 0x520   : > { %2728 = vmatmul.mubr.f32.gmra.mrb[2].mxu1 %v5543_v1  ;;  %4327 = vmatpush1.bf16.msra.mxu0 %v4326_v51  ;;  %v331_v1 = vlaneseq }
 0x521   : > { %2733 = vmatprep.mubr.f32.mxu1 %v5556_v29 }
 0x522   : > { %v332_v29 = vshrl.u32 %v331_v1, 7 }
 0x524   : > { %2734 = vmatmul.mubr.f32.gmra.mrb[4].mxu1 %v5553_v46  ;;  %v333_v46 = vsub.s32 0, %v332_v29 }
 0x525   : > { %2739 = vmatprep.mubr.f32.mxu1 %v5566_v45  ;;  %v337_v45 = vsub.s32 1, %v332_v29  ;;  %v4452_v29 = vld [vmem:[%s5872_s5 + $0x20] sm:$0xff] }
 0x526   : > { %v334_v41 = vrot.slane %v329_v52, %v333_v46 }
 0x528   : > { %2740 = vmatmul.mubr.f32.gmra.mrb[6].mxu1 %v5563_v39  ;;  %v338_v39 = vrot.slane %v329_v52, %v337_v45  ;;  %v4328_v55 = vadd.f32 %v5233_v10, %v334_v41  ;;  %v4332_v62 = vadd.f32 %v5242_v13, %v334_v41  ;;  %v4336_v17 = vadd.f32 %v5251_v16, %v334_v41 }
 0x52a   : > { %v4330_v56 = vadd.f32 %v5236_v11, %v338_v39  ;;  %v4334_v0 = vadd.f32 %v5245_v14, %v338_v39  ;;  %v4338_v10 = vadd.f32 %v5254_v18, %v338_v39  ;;  %v4340_v14 = vadd.f32 %v5256_v19, %v334_v41  ;;  %v4448_v19 = vld [vmem:[%s5872_s5] sm:$0xff]  ;;  %v4453_v41 = vld [vmem:[%s5872_s5 + $0x28] sm:$0xff] }
 0x52b   : > { %v4342_v12 = vadd.f32 %v5258_v20, %v338_v39 }
 0x5ef   : > { %v2723_v53 = vpop.f32.mrb[0].mxu1 }
 0x5f0   : > { %v4329_v57 = vadd.f32 %v4328_v55, %v2723_v53  ;;  %v2725_v58 = vpop.f32.mrb[1].mxu1 }
 0x5f1   : > { %v4331_v61 = vadd.f32 %v4330_v56, %v2725_v58 }
 0x5f2   : > { %v2754_v60 = vmax.f32 %v4329_v57, 0.0 }
 0x5f3   : > { %v2755_v2 = vmax.f32 %v4331_v61, 0.0  ;;  %v2729_v5 = vpop.f32.mrb[2].mxu1 }
 0x5f4   : > { %v4333_v42 = vadd.f32 %v4332_v62, %v2729_v5  ;;  %v2731_v31 = vpop.f32.mrb[3].mxu1  ;;  %v4454_v62 = vld [vmem:[%s5872_s5 + $0x30] sm:$0xff] }
 0x5f5   : > { %v4335_v3 = vadd.f32 %v4334_v0, %v2731_v31  ;;  %2890 = vmatprep.mubr.f32.mxu0 %v2755_v2 }
 0x5f6   : > { %2891 = vmatmul.mubr.f32.vlgmr.msra.gmra.mrb[80].mxu0 %v2754_v60  ;;  %v2756_v37 = vmax.f32 %v4333_v42, 0.0  ;;  %v4455_v60 = vld [vmem:[%s5872_s5 + $0x38] sm:$0xff] }
 0x5f7   : > { %v2757_v11 = vmax.f32 %v4335_v3, 0.0  ;;  %v2735_v4 = vpop.f32.mrb[4].mxu1 }
 0x5f8   : > { %v4337_v54 = vadd.f32 %v4336_v17, %v2735_v4  ;;  %v2737_v8 = vpop.f32.mrb[5].mxu1 }
 0x5f9   : > { %v4339_v13 = vadd.f32 %v4338_v10, %v2737_v8  ;;  %2896 = vmatprep.mubr.f32.mxu0 %v2757_v11 }
 0x5fa   : > { %2897 = vmatmul.mubr.f32.gmra.mrb[82].mxu0 %v2756_v37  ;;  %v2758_v49 = vmax.f32 %v4337_v54, 0.0 }
 0x5fb   : > { %v2759_v6 = vmax.f32 %v4339_v13, 0.0  ;;  %v2741_v63 = vpop.f32.mrb[6].mxu1 }
 0x5fc   : > { %v4341_v16 = vadd.f32 %v4340_v14, %v2741_v63  ;;  %v2743_v32 = vpop.f32.mrb[7].mxu1 }
 0x5fd   : > { %v4343_v9 = vadd.f32 %v4342_v12, %v2743_v32  ;;  %2902 = vmatprep.mubr.f32.mxu0 %v2759_v6 }
 0x5fe   : > { %2903 = vmatmul.mubr.f32.gmra.mrb[84].mxu0 %v2758_v49  ;;  %v2760_v33 = vmax.f32 %v4341_v16, 0.0 }
 0x5ff   : > { %v2761_v18 = vmax.f32 %v4343_v9, 0.0 }
 0x601   : > { %2908 = vmatprep.mubr.f32.mxu0 %v2761_v18 }
 0x602   : > { %2909 = vmatmul.mubr.f32.gmra.mrb[86].mxu0 %v2760_v33 }
 0x6c9   : > { %v2892_v40 = vpop.f32.mrb[80].mxu0 }
 0x6ca   : > { %v2915_v20 = vadd.f32 %v4448_v19, %v2892_v40  ;;  %v2894_v21 = vpop.f32.mrb[81].mxu0 }
 0x6cb   : > { %v2916_v23 = vadd.f32 %v4449_v59, %v2894_v21 }
 0x6cc   : > { %v2923_v27 = vsel %vm4743_vm0, %v2915_v20, %v4329_v57 }
 0x6cd   : > { %v2931_v38 = vmax.f32 %v2923_v27, 0.0  ;;  %v2924_v26 = vsel %vm4743_vm0, %v2916_v23, %v4331_v61  ;;  %v2898_v36 = vpop.f32.mrb[82].mxu0 }
 0x6ce   : > { %v2932_v43 = vmax.f32 %v2924_v26, 0.0  ;;  %v2917_v34 = vadd.f32 %v4450_v30, %v2898_v36  ;;  %v2900_v28 = vpop.f32.mrb[83].mxu0 }
 0x6cf   : > { %v2942_v25 = vsel %vm5778_vm2, %v2931_v38, %v2923_v27  ;;  %v2918_v50 = vadd.f32 %v4451_v44, %v2900_v28 }
 0x6d0   : > { %2950 = vst [vmem:[%s5872_s5] sm:$0xff] %v2942_v25  ;;  %v2943_v47 = vsel %vm5778_vm2, %v2932_v43, %v2924_v26  ;;  %v2925_v7 = vsel %vm4743_vm0, %v2917_v34, %v4333_v42 }
 0x6d1   : > { %2951 = vst [vmem:[%s5872_s5 + $0x8] sm:$0xff] %v2943_v47  ;;  %v2933_v48 = vmax.f32 %v2925_v7, 0.0  ;;  %v2926_v22 = vsel %vm4743_vm0, %v2918_v50, %v4335_v3  ;;  %v2904_v51 = vpop.f32.mrb[84].mxu0 }
 0x6d2   : > { %v2934_v1 = vmax.f32 %v2926_v22, 0.0  ;;  %v2919_v46 = vadd.f32 %v4452_v29, %v2904_v51  ;;  %v2906_v52 = vpop.f32.mrb[85].mxu0 }
 0x6d3   : > { %v2944_v45 = vsel %vm5778_vm2, %v2933_v48, %v2925_v7  ;;  %v2920_v39 = vadd.f32 %v4453_v41, %v2906_v52 }
 0x6d4   : > { %2952 = vst [vmem:[%s5872_s5 + $0x10] sm:$0xff] %v2944_v45  ;;  %v2945_v55 = vsel %vm5778_vm2, %v2934_v1, %v2926_v22  ;;  %v2927_v56 = vsel %vm4743_vm0, %v2919_v46, %v4337_v54 }
 0x6d5   : > { %2953 = vst [vmem:[%s5872_s5 + $0x18] sm:$0xff] %v2945_v55  ;;  %v2935_v53 = vmax.f32 %v2927_v56, 0.0  ;;  %v2928_v57 = vsel %vm4743_vm0, %v2920_v39, %v4339_v13  ;;  %v2910_v58 = vpop.f32.mrb[86].mxu0 }
 0x6d6   : > { %v2936_v61 = vmax.f32 %v2928_v57, 0.0  ;;  %v2921_v0 = vadd.f32 %v4454_v62, %v2910_v58  ;;  %v2912_v2 = vpop.f32.mrb[87].mxu0 }
 0x6d7   : > { %v2946_v5 = vsel %vm5778_vm2, %v2935_v53, %v2927_v56  ;;  %v2922_v42 = vadd.f32 %v4455_v60, %v2912_v2 }
 0x6d8   : > { %2954 = vst [vmem:[%s5872_s5 + $0x20] sm:$0xff] %v2946_v5  ;;  %v2947_v31 = vsel %vm5778_vm2, %v2936_v61, %v2928_v57  ;;  %v2929_v3 = vsel %vm4743_vm0, %v2921_v0, %v4341_v16 }
 0x6d9   : > { %2955 = vst [vmem:[%s5872_s5 + $0x28] sm:$0xff] %v2947_v31  ;;  %v2937_v17 = vmax.f32 %v2929_v3, 0.0  ;;  %v2930_v10 = vsel %vm4743_vm0, %v2922_v42, %v4343_v9 }
 0x6da   : > { %v2938_v11 = vmax.f32 %v2930_v10, 0.0 }
 0x6db   : > { %v2948_v4 = vsel %vm5778_vm2, %v2937_v17, %v2929_v3 }
 0x6dc   : > { %2956 = vst [vmem:[%s5872_s5 + $0x30] sm:$0xff] %v2948_v4  ;;  %v2949_v37 = vsel %vm5778_vm2, %v2938_v11, %v2930_v10 }
 0x6dd   : > { %2957 = vst [vmem:[%s5872_s5 + $0x38] sm:$0xff] %v2949_v37 }
 0x6de PF: > { %p15_p10 = scmp.ge.s32.totalorder %s4578_s23, 8   ;;  %s5880_s18 = smov %s4512_s19 }
 0x6df   : > { %s5881_s19 = smov %s4516_s20  ;;  %s5882_s20 = smov %s4588_s26 }
 0x6e0   : > { %s5883_s21 = smov %s4578_s23  ;;  %17 = sbr.rel (!%p15_p10) target bundleno = 3 (0x3), region = 102 }
 0x6e7   :  { %2969 = vsyncpa [#allocation3], 1 }
 0x6e8   :  { %2971 = vsyncpa [#allocation3 + $0x1], 1 }

</bundles_post_ra>
